<compile_context>
chip_gen: v6e
topology: v6e:2x2x1
jax: 0.10.0
libtpu: 0.0.40
codegen_flags: <defaults>
</compile_context>

<pallas_src>
import jax
import jax.numpy as jnp
from jax import lax
from jax.experimental import pallas as pl
from jax.experimental.pallas import tpu as pltpu

KSIZE = 7
PAD = 3
NUM_TAPS = KSIZE * KSIZE


def _round_up(v, m):
    return (v + m - 1) // m * m


def fused_forward_kernel(xp_ref, w1_ref, b1_ref, w2_ref, b2_ref, mask_ref,
                         o_ref, cols_ref, v1_ref, v3_ref):
    HP, LG = xp_ref.shape

    def dwconv(src_ref, w_ref, bias_ref):
        # Hoist the 7 lane (kw) shifts out of the 49-tap loop (XLU rolls).
        for kw in range(KSIZE):
            sh = (PAD - kw) % LG
            src = src_ref[...]
            cols_ref[kw] = pltpu.roll(src, sh, 1) if sh else src

        acc0 = None
        acc1 = None
        for kh in range(KSIZE):
            base = kh * KSIZE
            s0 = None
            s1 = None
            # kw reduction: full-lane vector*vector multiplies with
            # precomputed per-tap weight rows, two interleaved partial sums.
            for kw in range(KSIZE):
                wrow = w_ref[pl.ds(base + kw, 1), :]          # (1, LG)
                term = wrow * cols_ref[kw]                    # (HP, LG)
                if kw % 2 == 0:
                    s0 = term if s0 is None else s0 + term
                else:
                    s1 = term if s1 is None else s1 + term
            strip = s0 + s1
            # Row (kh) offset via sublane roll (XLU), no unaligned slices.
            shr = (PAD - kh) % HP
            rolled = pltpu.roll(strip, shr, 0) if shr else strip
            if kh % 2 == 0:
                acc0 = rolled if acc0 is None else acc0 + rolled
            else:
                acc1 = rolled if acc1 is None else acc1 + rolled
        # interior = conv + bias; border forced back to exact zero so the
        # result can feed the next conv as a zero-padded input.
        return (acc0 + acc1) * mask_ref[...] + bias_ref[...]

    # v1 = conv1(x)
    v1_ref[...] = dwconv(xp_ref, w1_ref, b1_ref)
    # v3 = relu(v1 + x)   (borders: 0 + 0 -> 0)
    v3_ref[...] = jnp.maximum(v1_ref[...] + xp_ref[...], 0.0)
    # v4 = conv2(v3)
    v4 = dwconv(v3_ref, w2_ref, b2_ref)
    # v6 = relu(v4 + v1); the five (v3 + .) -> relu stages are exact
    # identities (non-negative operands), collapsed to v16 = v6 + 5*v3.
    v6 = jnp.maximum(v4 + v1_ref[...], 0.0)
    v16 = v6 + 5.0 * v3_ref[...]
    # v18 = v16 - x   (v17 = .view(...) is a no-op); reuse v1 scratch.
    v1_ref[...] = v16 - xp_ref[...]
    # v19 = conv1(v18);  v21 = relu(2 + v19)   (only interior is extracted)
    v19 = dwconv(v1_ref, w1_ref, b1_ref)
    o_ref[...] = jnp.maximum(v19 + 2.0, 0.0).astype(o_ref.dtype)


def model_forward(x, w1, b1, w2, b2, *, num_groups=2):
    N, C, H, W = x.shape
    assert N == 1, "kernel assumes batch 1 (matches the PyTorch spec)"
    if C % num_groups != 0:
        num_groups = 1
    Cg = C // num_groups
    Wp = W + 2 * PAD
    HP = _round_up(H + 2 * PAD, 8)
    LG = _round_up(Cg * Wp, 128)          # lanes per channel group (128-aligned)
    LP = num_groups * LG

    def to_slab(planes):                  # (C, HP, Wp) -> (HP, LP)
        t = planes.transpose(1, 0, 2).reshape(HP, num_groups, Cg * Wp)
        t = jnp.pad(t, ((0, 0), (0, 0), (0, LG - Cg * Wp)))
        return t.reshape(HP, LP)

    x3 = x.reshape(C, H, W).astype(jnp.float32)
    x_planes = jnp.pad(x3, ((0, 0), (PAD, HP - H - PAD), (PAD, PAD)))
    x_slab = to_slab(x_planes)

    def weight_rows(w):                   # (C, 7, 7) -> (49, LP) per-tap rows
        wt = w.reshape(C, NUM_TAPS).T.astype(jnp.float32)          # (49, C)
        wt = jnp.broadcast_to(wt[:, :, None], (NUM_TAPS, C, Wp))
        wt = wt.reshape(NUM_TAPS, num_groups, Cg * Wp)
        wt = jnp.pad(wt, ((0, 0), (0, 0), (0, LG - Cg * Wp)))
        return wt.reshape(NUM_TAPS, LP)

    interior = jnp.zeros((C, HP, Wp), jnp.float32)
    interior = interior.at[:, PAD:PAD + H, PAD:PAD + W].set(1.0)
    mask_slab = to_slab(interior)
    b1_slab = to_slab(interior * b1.reshape(C, 1, 1).astype(jnp.float32))
    b2_slab = to_slab(interior * b2.reshape(C, 1, 1).astype(jnp.float32))
    w1_rows = weight_rows(w1)
    w2_rows = weight_rows(w2)

    def lane_spec(rows):
        return pl.BlockSpec((rows, LG), lambda g: (0, g))

    out_slab = pl.pallas_call(
        fused_forward_kernel,
        out_shape=jax.ShapeDtypeStruct((HP, LP), jnp.float32),
        grid_spec=pltpu.PrefetchScalarGridSpec(
            num_scalar_prefetch=0,
            grid=(num_groups,),
            in_specs=[
                lane_spec(HP),          # padded x slab
                lane_spec(NUM_TAPS),    # conv1 per-tap weight rows
                lane_spec(HP),          # conv1 bias plane (interior only)
                lane_spec(NUM_TAPS),    # conv2 per-tap weight rows
                lane_spec(HP),          # conv2 bias plane (interior only)
                lane_spec(HP),          # interior mask
            ],
            out_specs=lane_spec(HP),
            scratch_shapes=[
                pltpu.VMEM((KSIZE, HP, LG), jnp.float32),   # lane-rolled cols
                pltpu.VMEM((HP, LG), jnp.float32),          # v1, reused for v18
                pltpu.VMEM((HP, LG), jnp.float32),          # v3
            ],
        ),
        compiler_params=pltpu.CompilerParams(
            dimension_semantics=("parallel",)),
    )(x_slab, w1_rows, b1_slab, w2_rows, b2_slab, mask_slab)

    # Wrapper-side interior extraction back to (N, C, H, W) (layout plumbing).
    out = out_slab.reshape(HP, num_groups, LG)[:, :, :Cg * Wp]
    out = out.reshape(HP, num_groups, Cg, Wp)
    out = out[PAD:PAD + H, :, :, PAD:PAD + W]                 # (H, NG, Cg, W)
    out = jnp.transpose(out, (1, 2, 0, 3)).reshape(N, C, H, W)
    return out.astype(x.dtype)


model_forward_jit = jax.jit(model_forward)


# ---------------------------------------------------------------------------
# Pure-JAX reference (faithful to the PyTorch graph) for validation
# ---------------------------------------------------------------------------
def _ref_dwconv(x, w, b):
    C = x.shape[1]
    y = lax.conv_general_dilated(
        x, w.reshape(C, 1, KSIZE, KSIZE),
        window_strides=(1, 1), padding=((PAD, PAD), (PAD, PAD)),
        dimension_numbers=("NCHW", "OIHW", "NCHW"),
        feature_group_count=C)
    return y + b.reshape(1, C, 1, 1)


def _ref_forward(x, w1, b1, w2, b2):
    v1 = _ref_dwconv(x, w1, b1)
    v3 = jnp.maximum(v1 + x, 0.0)
    v4 = _ref_dwconv(v3, w2, b2)
    t = jnp.maximum(v4 + v1, 0.0)
    for _ in range(5):
        t = jnp.maximum(v3 + t, 0.0)
    v18 = t - x
    v19 = _ref_dwconv(v18, w1, b1)
    return jnp.maximum(2.0 + v19, 0.0)


if __name__ == "__main__":
    key = jax.random.PRNGKey(0)
    kx, kw1, kb1, kw2, kb2 = jax.random.split(key, 5)

    # Channels must be 16 (depthwise 16-group conv); use a small 16x16 spatial
    # grid instead of the original 64x64 to keep the example tiny.
    N, C, H, W = 1, 16, 16, 16
    x = jax.random.normal(kx, (N, C, H, W), dtype=jnp.float32)
    w1 = 0.1 * jax.random.normal(kw1, (C, KSIZE, KSIZE), dtype=jnp.float32)
    b1 = 0.1 * jax.random.normal(kb1, (C,), dtype=jnp.float32)
    w2 = 0.1 * jax.random.normal(kw2, (C, KSIZE, KSIZE), dtype=jnp.float32)
    b2 = 0.1 * jax.random.normal(kb2, (C,), dtype=jnp.float32)

    out = model_forward_jit(x, w1, b1, w2, b2)
    out = jax.block_until_ready(out)

    ref = _ref_forward(x, w1, b1, w2, b2)
    assert out.shape == (N, C, H, W)
    assert jnp.allclose(out, ref, atol=1e-4, rtol=1e-4), "mismatch vs reference"

    print("KERNEL_OK")
</pallas_src>

<mosaic_0001>
module attributes {stable_mosaic.version = 11 : i64} {
  func.func @fused_forward_kernel(%arg0: i32, %arg1: memref<24x256xf32, #tpu.memory_space<vmem>>, %arg2: memref<49x256xf32, #tpu.memory_space<vmem>>, %arg3: memref<24x256xf32, #tpu.memory_space<vmem>>, %arg4: memref<49x256xf32, #tpu.memory_space<vmem>>, %arg5: memref<24x256xf32, #tpu.memory_space<vmem>>, %arg6: memref<24x256xf32, #tpu.memory_space<vmem>>, %arg7: memref<24x256xf32, #tpu.memory_space<vmem>>, %arg8: memref<7x24x256xf32, #tpu.memory_space<vmem>>, %arg9: memref<24x256xf32, #tpu.memory_space<vmem>>, %arg10: memref<24x256xf32, #tpu.memory_space<vmem>>) attributes {dimension_semantics = [#tpu.dimension_semantics<parallel>], iteration_bounds = array<i64: 2>, scalar_prefetch = 0 : i64, scratch_operands = 3 : i64, tpu.core_type = #tpu.core_type<tc>, window_params = [{transform_indices = @transform_0, window_bounds = array<i64: 24, 256>}, {transform_indices = @transform_1, window_bounds = array<i64: 49, 256>}, {transform_indices = @transform_2, window_bounds = array<i64: 24, 256>}, {transform_indices = @transform_3, window_bounds = array<i64: 49, 256>}, {transform_indices = @transform_4, window_bounds = array<i64: 24, 256>}, {transform_indices = @transform_5, window_bounds = array<i64: 24, 256>}, {transform_indices = @transform_6, window_bounds = array<i64: 24, 256>}]} {
    %c0 = arith.constant 0 : index
    %c0_0 = arith.constant 0 : index
    %0 = vector.load %arg1[%c0, %c0_0] : memref<24x256xf32, #tpu.memory_space<vmem>>, vector<24x256xf32>
    %c3_i32 = arith.constant 3 : i32
    %1 = tpu.dynamic_rotate %0 by %c3_i32 dim 1 : vector<24x256xf32>, i32 -> vector<24x256xf32>
    %c0_1 = arith.constant 0 : index
    %c0_2 = arith.constant 0 : index
    %c0_3 = arith.constant 0 : index
    %2 = vector.load %arg8[%c0_1, %c0_2, %c0_3] : memref<7x24x256xf32, #tpu.memory_space<vmem>>, vector<1x24x256xf32>
    %3 = vector.shape_cast %2 : vector<1x24x256xf32> to vector<24x256xf32>
    %4 = vector.shape_cast %1 : vector<24x256xf32> to vector<1x24x256xf32>
    tpu.vector_store %arg8[%c0_1, %c0_2, %c0_3], %4 {strides = array<i32>} : memref<7x24x256xf32, #tpu.memory_space<vmem>>, vector<1x24x256xf32>,
    %c0_4 = arith.constant 0 : index
    %c0_5 = arith.constant 0 : index
    %5 = vector.load %arg1[%c0_4, %c0_5] : memref<24x256xf32, #tpu.memory_space<vmem>>, vector<24x256xf32>
    %c2_i32 = arith.constant 2 : i32
    %6 = tpu.dynamic_rotate %5 by %c2_i32 dim 1 : vector<24x256xf32>, i32 -> vector<24x256xf32>
    %c1 = arith.constant 1 : index
    %c0_6 = arith.constant 0 : index
    %c0_7 = arith.constant 0 : index
    %7 = vector.load %arg8[%c1, %c0_6, %c0_7] : memref<7x24x256xf32, #tpu.memory_space<vmem>>, vector<1x24x256xf32>
    %8 = vector.shape_cast %7 : vector<1x24x256xf32> to vector<24x256xf32>
    %9 = vector.shape_cast %6 : vector<24x256xf32> to vector<1x24x256xf32>
    tpu.vector_store %arg8[%c1, %c0_6, %c0_7], %9 {strides = array<i32>} : memref<7x24x256xf32, #tpu.memory_space<vmem>>, vector<1x24x256xf32>,
    %c0_8 = arith.constant 0 : index
    %c0_9 = arith.constant 0 : index
    %10 = vector.load %arg1[%c0_8, %c0_9] : memref<24x256xf32, #tpu.memory_space<vmem>>, vector<24x256xf32>
    %c1_i32 = arith.constant 1 : i32
    %11 = tpu.dynamic_rotate %10 by %c1_i32 dim 1 : vector<24x256xf32>, i32 -> vector<24x256xf32>
    %c2 = arith.constant 2 : index
    %c0_10 = arith.constant 0 : index
    %c0_11 = arith.constant 0 : index
    %12 = vector.load %arg8[%c2, %c0_10, %c0_11] : memref<7x24x256xf32, #tpu.memory_space<vmem>>, vector<1x24x256xf32>
    %13 = vector.shape_cast %12 : vector<1x24x256xf32> to vector<24x256xf32>
    %14 = vector.shape_cast %11 : vector<24x256xf32> to vector<1x24x256xf32>
    tpu.vector_store %arg8[%c2, %c0_10, %c0_11], %14 {strides = array<i32>} : memref<7x24x256xf32, #tpu.memory_space<vmem>>, vector<1x24x256xf32>,
    %c0_12 = arith.constant 0 : index
    %c0_13 = arith.constant 0 : index
    %15 = vector.load %arg1[%c0_12, %c0_13] : memref<24x256xf32, #tpu.memory_space<vmem>>, vector<24x256xf32>
    %c3 = arith.constant 3 : index
    %c0_14 = arith.constant 0 : index
    %c0_15 = arith.constant 0 : index
    %16 = vector.load %arg8[%c3, %c0_14, %c0_15] : memref<7x24x256xf32, #tpu.memory_space<vmem>>, vector<1x24x256xf32>
    %17 = vector.shape_cast %16 : vector<1x24x256xf32> to vector<24x256xf32>
    %18 = vector.shape_cast %15 : vector<24x256xf32> to vector<1x24x256xf32>
    tpu.vector_store %arg8[%c3, %c0_14, %c0_15], %18 {strides = array<i32>} : memref<7x24x256xf32, #tpu.memory_space<vmem>>, vector<1x24x256xf32>,
    %c0_16 = arith.constant 0 : index
    %c0_17 = arith.constant 0 : index
    %19 = vector.load %arg1[%c0_16, %c0_17] : memref<24x256xf32, #tpu.memory_space<vmem>>, vector<24x256xf32>
    %c255_i32 = arith.constant 255 : i32
    %20 = tpu.dynamic_rotate %19 by %c255_i32 dim 1 : vector<24x256xf32>, i32 -> vector<24x256xf32>
    %c4 = arith.constant 4 : index
    %c0_18 = arith.constant 0 : index
    %c0_19 = arith.constant 0 : index
    %21 = vector.load %arg8[%c4, %c0_18, %c0_19] : memref<7x24x256xf32, #tpu.memory_space<vmem>>, vector<1x24x256xf32>
    %22 = vector.shape_cast %21 : vector<1x24x256xf32> to vector<24x256xf32>
    %23 = vector.shape_cast %20 : vector<24x256xf32> to vector<1x24x256xf32>
    tpu.vector_store %arg8[%c4, %c0_18, %c0_19], %23 {strides = array<i32>} : memref<7x24x256xf32, #tpu.memory_space<vmem>>, vector<1x24x256xf32>,
    %c0_20 = arith.constant 0 : index
    %c0_21 = arith.constant 0 : index
    %24 = vector.load %arg1[%c0_20, %c0_21] : memref<24x256xf32, #tpu.memory_space<vmem>>, vector<24x256xf32>
    %c254_i32 = arith.constant 254 : i32
    %25 = tpu.dynamic_rotate %24 by %c254_i32 dim 1 : vector<24x256xf32>, i32 -> vector<24x256xf32>
    %c5 = arith.constant 5 : index
    %c0_22 = arith.constant 0 : index
    %c0_23 = arith.constant 0 : index
    %26 = vector.load %arg8[%c5, %c0_22, %c0_23] : memref<7x24x256xf32, #tpu.memory_space<vmem>>, vector<1x24x256xf32>
    %27 = vector.shape_cast %26 : vector<1x24x256xf32> to vector<24x256xf32>
    %28 = vector.shape_cast %25 : vector<24x256xf32> to vector<1x24x256xf32>
    tpu.vector_store %arg8[%c5, %c0_22, %c0_23], %28 {strides = array<i32>} : memref<7x24x256xf32, #tpu.memory_space<vmem>>, vector<1x24x256xf32>,
    %c0_24 = arith.constant 0 : index
    %c0_25 = arith.constant 0 : index
    %29 = vector.load %arg1[%c0_24, %c0_25] : memref<24x256xf32, #tpu.memory_space<vmem>>, vector<24x256xf32>
    %c253_i32 = arith.constant 253 : i32
    %30 = tpu.dynamic_rotate %29 by %c253_i32 dim 1 : vector<24x256xf32>, i32 -> vector<24x256xf32>
    %c6 = arith.constant 6 : index
    %c0_26 = arith.constant 0 : index
    %c0_27 = arith.constant 0 : index
    %31 = vector.load %arg8[%c6, %c0_26, %c0_27] : memref<7x24x256xf32, #tpu.memory_space<vmem>>, vector<1x24x256xf32>
    %32 = vector.shape_cast %31 : vector<1x24x256xf32> to vector<24x256xf32>
    %33 = vector.shape_cast %30 : vector<24x256xf32> to vector<1x24x256xf32>
    tpu.vector_store %arg8[%c6, %c0_26, %c0_27], %33 {strides = array<i32>} : memref<7x24x256xf32, #tpu.memory_space<vmem>>, vector<1x24x256xf32>,
    %c0_28 = arith.constant 0 : index
    %c0_29 = arith.constant 0 : index
    %34 = vector.load %arg2[%c0_28, %c0_29] : memref<49x256xf32, #tpu.memory_space<vmem>>, vector<1x256xf32>
    %c0_30 = arith.constant 0 : index
    %c0_31 = arith.constant 0 : index
    %c0_32 = arith.constant 0 : index
    %35 = vector.load %arg8[%c0_30, %c0_31, %c0_32] : memref<7x24x256xf32, #tpu.memory_space<vmem>>, vector<1x24x256xf32>
    %36 = vector.shape_cast %35 : vector<1x24x256xf32> to vector<24x256xf32>
    %37 = vector.broadcast %34 : vector<1x256xf32> to vector<24x256xf32>
    %38 = arith.mulf %37, %36 : vector<24x256xf32>
    %c1_33 = arith.constant 1 : index
    %c0_34 = arith.constant 0 : index
    %39 = vector.load %arg2[%c1_33, %c0_34] : memref<49x256xf32, #tpu.memory_space<vmem>>, vector<1x256xf32>
    %c1_35 = arith.constant 1 : index
    %c0_36 = arith.constant 0 : index
    %c0_37 = arith.constant 0 : index
    %40 = vector.load %arg8[%c1_35, %c0_36, %c0_37] : memref<7x24x256xf32, #tpu.memory_space<vmem>>, vector<1x24x256xf32>
    %41 = vector.shape_cast %40 : vector<1x24x256xf32> to vector<24x256xf32>
    %42 = vector.broadcast %39 : vector<1x256xf32> to vector<24x256xf32>
    %43 = arith.mulf %42, %41 : vector<24x256xf32>
    %c2_38 = arith.constant 2 : index
    %c0_39 = arith.constant 0 : index
    %44 = vector.load %arg2[%c2_38, %c0_39] : memref<49x256xf32, #tpu.memory_space<vmem>>, vector<1x256xf32>
    %c2_40 = arith.constant 2 : index
    %c0_41 = arith.constant 0 : index
    %c0_42 = arith.constant 0 : index
    %45 = vector.load %arg8[%c2_40, %c0_41, %c0_42] : memref<7x24x256xf32, #tpu.memory_space<vmem>>, vector<1x24x256xf32>
    %46 = vector.shape_cast %45 : vector<1x24x256xf32> to vector<24x256xf32>
    %47 = vector.broadcast %44 : vector<1x256xf32> to vector<24x256xf32>
    %48 = arith.mulf %47, %46 : vector<24x256xf32>
    %49 = arith.addf %38, %48 : vector<24x256xf32>
    %c3_43 = arith.constant 3 : index
    %c0_44 = arith.constant 0 : index
    %50 = vector.load %arg2[%c3_43, %c0_44] : memref<49x256xf32, #tpu.memory_space<vmem>>, vector<1x256xf32>
    %c3_45 = arith.constant 3 : index
    %c0_46 = arith.constant 0 : index
    %c0_47 = arith.constant 0 : index
    %51 = vector.load %arg8[%c3_45, %c0_46, %c0_47] : memref<7x24x256xf32, #tpu.memory_space<vmem>>, vector<1x24x256xf32>
    %52 = vector.shape_cast %51 : vector<1x24x256xf32> to vector<24x256xf32>
    %53 = vector.broadcast %50 : vector<1x256xf32> to vector<24x256xf32>
    %54 = arith.mulf %53, %52 : vector<24x256xf32>
    %55 = arith.addf %43, %54 : vector<24x256xf32>
    %c4_48 = arith.constant 4 : index
    %c0_49 = arith.constant 0 : index
    %56 = vector.load %arg2[%c4_48, %c0_49] : memref<49x256xf32, #tpu.memory_space<vmem>>, vector<1x256xf32>
    %c4_50 = arith.constant 4 : index
    %c0_51 = arith.constant 0 : index
    %c0_52 = arith.constant 0 : index
    %57 = vector.load %arg8[%c4_50, %c0_51, %c0_52] : memref<7x24x256xf32, #tpu.memory_space<vmem>>, vector<1x24x256xf32>
    %58 = vector.shape_cast %57 : vector<1x24x256xf32> to vector<24x256xf32>
    %59 = vector.broadcast %56 : vector<1x256xf32> to vector<24x256xf32>
    %60 = arith.mulf %59, %58 : vector<24x256xf32>
    %61 = arith.addf %49, %60 : vector<24x256xf32>
    %c5_53 = arith.constant 5 : index
    %c0_54 = arith.constant 0 : index
    %62 = vector.load %arg2[%c5_53, %c0_54] : memref<49x256xf32, #tpu.memory_space<vmem>>, vector<1x256xf32>
    %c5_55 = arith.constant 5 : index
    %c0_56 = arith.constant 0 : index
    %c0_57 = arith.constant 0 : index
    %63 = vector.load %arg8[%c5_55, %c0_56, %c0_57] : memref<7x24x256xf32, #tpu.memory_space<vmem>>, vector<1x24x256xf32>
    %64 = vector.shape_cast %63 : vector<1x24x256xf32> to vector<24x256xf32>
    %65 = vector.broadcast %62 : vector<1x256xf32> to vector<24x256xf32>
    %66 = arith.mulf %65, %64 : vector<24x256xf32>
    %67 = arith.addf %55, %66 : vector<24x256xf32>
    %c6_58 = arith.constant 6 : index
    %c0_59 = arith.constant 0 : index
    %68 = vector.load %arg2[%c6_58, %c0_59] : memref<49x256xf32, #tpu.memory_space<vmem>>, vector<1x256xf32>
    %c6_60 = arith.constant 6 : index
    %c0_61 = arith.constant 0 : index
    %c0_62 = arith.constant 0 : index
    %69 = vector.load %arg8[%c6_60, %c0_61, %c0_62] : memref<7x24x256xf32, #tpu.memory_space<vmem>>, vector<1x24x256xf32>
    %70 = vector.shape_cast %69 : vector<1x24x256xf32> to vector<24x256xf32>
    %71 = vector.broadcast %68 : vector<1x256xf32> to vector<24x256xf32>
    %72 = arith.mulf %71, %70 : vector<24x256xf32>
    %73 = arith.addf %61, %72 : vector<24x256xf32>
    %74 = arith.addf %73, %67 : vector<24x256xf32>
    %c3_i32_63 = arith.constant 3 : i32
    %75 = tpu.dynamic_rotate %74 by %c3_i32_63 dim 0 : vector<24x256xf32>, i32 -> vector<24x256xf32>
    %c7 = arith.constant 7 : index
    %c0_64 = arith.constant 0 : index
    %76 = vector.load %arg2[%c7, %c0_64] : memref<49x256xf32, #tpu.memory_space<vmem>>, vector<1x256xf32>
    %c0_65 = arith.constant 0 : index
    %c0_66 = arith.constant 0 : index
    %c0_67 = arith.constant 0 : index
    %77 = vector.load %arg8[%c0_65, %c0_66, %c0_67] : memref<7x24x256xf32, #tpu.memory_space<vmem>>, vector<1x24x256xf32>
    %78 = vector.shape_cast %77 : vector<1x24x256xf32> to vector<24x256xf32>
    %79 = vector.broadcast %76 : vector<1x256xf32> to vector<24x256xf32>
    %80 = arith.mulf %79, %78 : vector<24x256xf32>
    %c8 = arith.constant 8 : index
    %c0_68 = arith.constant 0 : index
    %81 = vector.load %arg2[%c8, %c0_68] : memref<49x256xf32, #tpu.memory_space<vmem>>, vector<1x256xf32>
    %c1_69 = arith.constant 1 : index
    %c0_70 = arith.constant 0 : index
    %c0_71 = arith.constant 0 : index
    %82 = vector.load %arg8[%c1_69, %c0_70, %c0_71] : memref<7x24x256xf32, #tpu.memory_space<vmem>>, vector<1x24x256xf32>
    %83 = vector.shape_cast %82 : vector<1x24x256xf32> to vector<24x256xf32>
    %84 = vector.broadcast %81 : vector<1x256xf32> to vector<24x256xf32>
    %85 = arith.mulf %84, %83 : vector<24x256xf32>
    %c9 = arith.constant 9 : index
    %c0_72 = arith.constant 0 : index
    %86 = vector.load %arg2[%c9, %c0_72] : memref<49x256xf32, #tpu.memory_space<vmem>>, vector<1x256xf32>
    %c2_73 = arith.constant 2 : index
    %c0_74 = arith.constant 0 : index
    %c0_75 = arith.constant 0 : index
    %87 = vector.load %arg8[%c2_73, %c0_74, %c0_75] : memref<7x24x256xf32, #tpu.memory_space<vmem>>, vector<1x24x256xf32>
    %88 = vector.shape_cast %87 : vector<1x24x256xf32> to vector<24x256xf32>
    %89 = vector.broadcast %86 : vector<1x256xf32> to vector<24x256xf32>
    %90 = arith.mulf %89, %88 : vector<24x256xf32>
    %91 = arith.addf %80, %90 : vector<24x256xf32>
    %c10 = arith.constant 10 : index
    %c0_76 = arith.constant 0 : index
    %92 = vector.load %arg2[%c10, %c0_76] : memref<49x256xf32, #tpu.memory_space<vmem>>, vector<1x256xf32>
    %c3_77 = arith.constant 3 : index
    %c0_78 = arith.constant 0 : index
    %c0_79 = arith.constant 0 : index
    %93 = vector.load %arg8[%c3_77, %c0_78, %c0_79] : memref<7x24x256xf32, #tpu.memory_space<vmem>>, vector<1x24x256xf32>
    %94 = vector.shape_cast %93 : vector<1x24x256xf32> to vector<24x256xf32>
    %95 = vector.broadcast %92 : vector<1x256xf32> to vector<24x256xf32>
    %96 = arith.mulf %95, %94 : vector<24x256xf32>
    %97 = arith.addf %85, %96 : vector<24x256xf32>
    %c11 = arith.constant 11 : index
    %c0_80 = arith.constant 0 : index
    %98 = vector.load %arg2[%c11, %c0_80] : memref<49x256xf32, #tpu.memory_space<vmem>>, vector<1x256xf32>
    %c4_81 = arith.constant 4 : index
    %c0_82 = arith.constant 0 : index
    %c0_83 = arith.constant 0 : index
    %99 = vector.load %arg8[%c4_81, %c0_82, %c0_83] : memref<7x24x256xf32, #tpu.memory_space<vmem>>, vector<1x24x256xf32>
    %100 = vector.shape_cast %99 : vector<1x24x256xf32> to vector<24x256xf32>
    %101 = vector.broadcast %98 : vector<1x256xf32> to vector<24x256xf32>
    %102 = arith.mulf %101, %100 : vector<24x256xf32>
    %103 = arith.addf %91, %102 : vector<24x256xf32>
    %c12 = arith.constant 12 : index
    %c0_84 = arith.constant 0 : index
    %104 = vector.load %arg2[%c12, %c0_84] : memref<49x256xf32, #tpu.memory_space<vmem>>, vector<1x256xf32>
    %c5_85 = arith.constant 5 : index
    %c0_86 = arith.constant 0 : index
    %c0_87 = arith.constant 0 : index
    %105 = vector.load %arg8[%c5_85, %c0_86, %c0_87] : memref<7x24x256xf32, #tpu.memory_space<vmem>>, vector<1x24x256xf32>
    %106 = vector.shape_cast %105 : vector<1x24x256xf32> to vector<24x256xf32>
    %107 = vector.broadcast %104 : vector<1x256xf32> to vector<24x256xf32>
    %108 = arith.mulf %107, %106 : vector<24x256xf32>
    %109 = arith.addf %97, %108 : vector<24x256xf32>
    %c13 = arith.constant 13 : index
    %c0_88 = arith.constant 0 : index
    %110 = vector.load %arg2[%c13, %c0_88] : memref<49x256xf32, #tpu.memory_space<vmem>>, vector<1x256xf32>
    %c6_89 = arith.constant 6 : index
    %c0_90 = arith.constant 0 : index
    %c0_91 = arith.constant 0 : index
    %111 = vector.load %arg8[%c6_89, %c0_90, %c0_91] : memref<7x24x256xf32, #tpu.memory_space<vmem>>, vector<1x24x256xf32>
    %112 = vector.shape_cast %111 : vector<1x24x256xf32> to vector<24x256xf32>
    %113 = vector.broadcast %110 : vector<1x256xf32> to vector<24x256xf32>
    %114 = arith.mulf %113, %112 : vector<24x256xf32>
    %115 = arith.addf %103, %114 : vector<24x256xf32>
    %116 = arith.addf %115, %109 : vector<24x256xf32>
    %c2_i32_92 = arith.constant 2 : i32
    %117 = tpu.dynamic_rotate %116 by %c2_i32_92 dim 0 : vector<24x256xf32>, i32 -> vector<24x256xf32>
    %c14 = arith.constant 14 : index
    %c0_93 = arith.constant 0 : index
    %118 = vector.load %arg2[%c14, %c0_93] : memref<49x256xf32, #tpu.memory_space<vmem>>, vector<1x256xf32>
    %c0_94 = arith.constant 0 : index
    %c0_95 = arith.constant 0 : index
    %c0_96 = arith.constant 0 : index
    %119 = vector.load %arg8[%c0_94, %c0_95, %c0_96] : memref<7x24x256xf32, #tpu.memory_space<vmem>>, vector<1x24x256xf32>
    %120 = vector.shape_cast %119 : vector<1x24x256xf32> to vector<24x256xf32>
    %121 = vector.broadcast %118 : vector<1x256xf32> to vector<24x256xf32>
    %122 = arith.mulf %121, %120 : vector<24x256xf32>
    %c15 = arith.constant 15 : index
    %c0_97 = arith.constant 0 : index
    %123 = vector.load %arg2[%c15, %c0_97] : memref<49x256xf32, #tpu.memory_space<vmem>>, vector<1x256xf32>
    %c1_98 = arith.constant 1 : index
    %c0_99 = arith.constant 0 : index
    %c0_100 = arith.constant 0 : index
    %124 = vector.load %arg8[%c1_98, %c0_99, %c0_100] : memref<7x24x256xf32, #tpu.memory_space<vmem>>, vector<1x24x256xf32>
    %125 = vector.shape_cast %124 : vector<1x24x256xf32> to vector<24x256xf32>
    %126 = vector.broadcast %123 : vector<1x256xf32> to vector<24x256xf32>
    %127 = arith.mulf %126, %125 : vector<24x256xf32>
    %c16 = arith.constant 16 : index
    %c0_101 = arith.constant 0 : index
    %128 = vector.load %arg2[%c16, %c0_101] : memref<49x256xf32, #tpu.memory_space<vmem>>, vector<1x256xf32>
    %c2_102 = arith.constant 2 : index
    %c0_103 = arith.constant 0 : index
    %c0_104 = arith.constant 0 : index
    %129 = vector.load %arg8[%c2_102, %c0_103, %c0_104] : memref<7x24x256xf32, #tpu.memory_space<vmem>>, vector<1x24x256xf32>
    %130 = vector.shape_cast %129 : vector<1x24x256xf32> to vector<24x256xf32>
    %131 = vector.broadcast %128 : vector<1x256xf32> to vector<24x256xf32>
    %132 = arith.mulf %131, %130 : vector<24x256xf32>
    %133 = arith.addf %122, %132 : vector<24x256xf32>
    %c17 = arith.constant 17 : index
    %c0_105 = arith.constant 0 : index
    %134 = vector.load %arg2[%c17, %c0_105] : memref<49x256xf32, #tpu.memory_space<vmem>>, vector<1x256xf32>
    %c3_106 = arith.constant 3 : index
    %c0_107 = arith.constant 0 : index
    %c0_108 = arith.constant 0 : index
    %135 = vector.load %arg8[%c3_106, %c0_107, %c0_108] : memref<7x24x256xf32, #tpu.memory_space<vmem>>, vector<1x24x256xf32>
    %136 = vector.shape_cast %135 : vector<1x24x256xf32> to vector<24x256xf32>
    %137 = vector.broadcast %134 : vector<1x256xf32> to vector<24x256xf32>
    %138 = arith.mulf %137, %136 : vector<24x256xf32>
    %139 = arith.addf %127, %138 : vector<24x256xf32>
    %c18 = arith.constant 18 : index
    %c0_109 = arith.constant 0 : index
    %140 = vector.load %arg2[%c18, %c0_109] : memref<49x256xf32, #tpu.memory_space<vmem>>, vector<1x256xf32>
    %c4_110 = arith.constant 4 : index
    %c0_111 = arith.constant 0 : index
    %c0_112 = arith.constant 0 : index
    %141 = vector.load %arg8[%c4_110, %c0_111, %c0_112] : memref<7x24x256xf32, #tpu.memory_space<vmem>>, vector<1x24x256xf32>
    %142 = vector.shape_cast %141 : vector<1x24x256xf32> to vector<24x256xf32>
    %143 = vector.broadcast %140 : vector<1x256xf32> to vector<24x256xf32>
    %144 = arith.mulf %143, %142 : vector<24x256xf32>
    %145 = arith.addf %133, %144 : vector<24x256xf32>
    %c19 = arith.constant 19 : index
    %c0_113 = arith.constant 0 : index
    %146 = vector.load %arg2[%c19, %c0_113] : memref<49x256xf32, #tpu.memory_space<vmem>>, vector<1x256xf32>
    %c5_114 = arith.constant 5 : index
    %c0_115 = arith.constant 0 : index
    %c0_116 = arith.constant 0 : index
    %147 = vector.load %arg8[%c5_114, %c0_115, %c0_116] : memref<7x24x256xf32, #tpu.memory_space<vmem>>, vector<1x24x256xf32>
    %148 = vector.shape_cast %147 : vector<1x24x256xf32> to vector<24x256xf32>
    %149 = vector.broadcast %146 : vector<1x256xf32> to vector<24x256xf32>
    %150 = arith.mulf %149, %148 : vector<24x256xf32>
    %151 = arith.addf %139, %150 : vector<24x256xf32>
    %c20 = arith.constant 20 : index
    %c0_117 = arith.constant 0 : index
    %152 = vector.load %arg2[%c20, %c0_117] : memref<49x256xf32, #tpu.memory_space<vmem>>, vector<1x256xf32>
    %c6_118 = arith.constant 6 : index
    %c0_119 = arith.constant 0 : index
    %c0_120 = arith.constant 0 : index
    %153 = vector.load %arg8[%c6_118, %c0_119, %c0_120] : memref<7x24x256xf32, #tpu.memory_space<vmem>>, vector<1x24x256xf32>
    %154 = vector.shape_cast %153 : vector<1x24x256xf32> to vector<24x256xf32>
    %155 = vector.broadcast %152 : vector<1x256xf32> to vector<24x256xf32>
    %156 = arith.mulf %155, %154 : vector<24x256xf32>
    %157 = arith.addf %145, %156 : vector<24x256xf32>
    %158 = arith.addf %157, %151 : vector<24x256xf32>
    %c1_i32_121 = arith.constant 1 : i32
    %159 = tpu.dynamic_rotate %158 by %c1_i32_121 dim 0 : vector<24x256xf32>, i32 -> vector<24x256xf32>
    %160 = arith.addf %75, %159 : vector<24x256xf32>
    %c21 = arith.constant 21 : index
    %c0_122 = arith.constant 0 : index
    %161 = vector.load %arg2[%c21, %c0_122] : memref<49x256xf32, #tpu.memory_space<vmem>>, vector<1x256xf32>
    %c0_123 = arith.constant 0 : index
    %c0_124 = arith.constant 0 : index
    %c0_125 = arith.constant 0 : index
    %162 = vector.load %arg8[%c0_123, %c0_124, %c0_125] : memref<7x24x256xf32, #tpu.memory_space<vmem>>, vector<1x24x256xf32>
    %163 = vector.shape_cast %162 : vector<1x24x256xf32> to vector<24x256xf32>
    %164 = vector.broadcast %161 : vector<1x256xf32> to vector<24x256xf32>
    %165 = arith.mulf %164, %163 : vector<24x256xf32>
    %c22 = arith.constant 22 : index
    %c0_126 = arith.constant 0 : index
    %166 = vector.load %arg2[%c22, %c0_126] : memref<49x256xf32, #tpu.memory_space<vmem>>, vector<1x256xf32>
    %c1_127 = arith.constant 1 : index
    %c0_128 = arith.constant 0 : index
    %c0_129 = arith.constant 0 : index
    %167 = vector.load %arg8[%c1_127, %c0_128, %c0_129] : memref<7x24x256xf32, #tpu.memory_space<vmem>>, vector<1x24x256xf32>
    %168 = vector.shape_cast %167 : vector<1x24x256xf32> to vector<24x256xf32>
    %169 = vector.broadcast %166 : vector<1x256xf32> to vector<24x256xf32>
    %170 = arith.mulf %169, %168 : vector<24x256xf32>
    %c23 = arith.constant 23 : index
    %c0_130 = arith.constant 0 : index
    %171 = vector.load %arg2[%c23, %c0_130] : memref<49x256xf32, #tpu.memory_space<vmem>>, vector<1x256xf32>
    %c2_131 = arith.constant 2 : index
    %c0_132 = arith.constant 0 : index
    %c0_133 = arith.constant 0 : index
    %172 = vector.load %arg8[%c2_131, %c0_132, %c0_133] : memref<7x24x256xf32, #tpu.memory_space<vmem>>, vector<1x24x256xf32>
    %173 = vector.shape_cast %172 : vector<1x24x256xf32> to vector<24x256xf32>
    %174 = vector.broadcast %171 : vector<1x256xf32> to vector<24x256xf32>
    %175 = arith.mulf %174, %173 : vector<24x256xf32>
    %176 = arith.addf %165, %175 : vector<24x256xf32>
    %c24 = arith.constant 24 : index
    %c0_134 = arith.constant 0 : index
    %177 = vector.load %arg2[%c24, %c0_134] : memref<49x256xf32, #tpu.memory_space<vmem>>, vector<1x256xf32>
    %c3_135 = arith.constant 3 : index
    %c0_136 = arith.constant 0 : index
    %c0_137 = arith.constant 0 : index
    %178 = vector.load %arg8[%c3_135, %c0_136, %c0_137] : memref<7x24x256xf32, #tpu.memory_space<vmem>>, vector<1x24x256xf32>
    %179 = vector.shape_cast %178 : vector<1x24x256xf32> to vector<24x256xf32>
    %180 = vector.broadcast %177 : vector<1x256xf32> to vector<24x256xf32>
    %181 = arith.mulf %180, %179 : vector<24x256xf32>
    %182 = arith.addf %170, %181 : vector<24x256xf32>
    %c25 = arith.constant 25 : index
    %c0_138 = arith.constant 0 : index
    %183 = vector.load %arg2[%c25, %c0_138] : memref<49x256xf32, #tpu.memory_space<vmem>>, vector<1x256xf32>
    %c4_139 = arith.constant 4 : index
    %c0_140 = arith.constant 0 : index
    %c0_141 = arith.constant 0 : index
    %184 = vector.load %arg8[%c4_139, %c0_140, %c0_141] : memref<7x24x256xf32, #tpu.memory_space<vmem>>, vector<1x24x256xf32>
    %185 = vector.shape_cast %184 : vector<1x24x256xf32> to vector<24x256xf32>
    %186 = vector.broadcast %183 : vector<1x256xf32> to vector<24x256xf32>
    %187 = arith.mulf %186, %185 : vector<24x256xf32>
    %188 = arith.addf %176, %187 : vector<24x256xf32>
    %c26 = arith.constant 26 : index
    %c0_142 = arith.constant 0 : index
    %189 = vector.load %arg2[%c26, %c0_142] : memref<49x256xf32, #tpu.memory_space<vmem>>, vector<1x256xf32>
    %c5_143 = arith.constant 5 : index
    %c0_144 = arith.constant 0 : index
    %c0_145 = arith.constant 0 : index
    %190 = vector.load %arg8[%c5_143, %c0_144, %c0_145] : memref<7x24x256xf32, #tpu.memory_space<vmem>>, vector<1x24x256xf32>
    %191 = vector.shape_cast %190 : vector<1x24x256xf32> to vector<24x256xf32>
    %192 = vector.broadcast %189 : vector<1x256xf32> to vector<24x256xf32>
    %193 = arith.mulf %192, %191 : vector<24x256xf32>
    %194 = arith.addf %182, %193 : vector<24x256xf32>
    %c27 = arith.constant 27 : index
    %c0_146 = arith.constant 0 : index
    %195 = vector.load %arg2[%c27, %c0_146] : memref<49x256xf32, #tpu.memory_space<vmem>>, vector<1x256xf32>
    %c6_147 = arith.constant 6 : index
    %c0_148 = arith.constant 0 : index
    %c0_149 = arith.constant 0 : index
    %196 = vector.load %arg8[%c6_147, %c0_148, %c0_149] : memref<7x24x256xf32, #tpu.memory_space<vmem>>, vector<1x24x256xf32>
    %197 = vector.shape_cast %196 : vector<1x24x256xf32> to vector<24x256xf32>
    %198 = vector.broadcast %195 : vector<1x256xf32> to vector<24x256xf32>
    %199 = arith.mulf %198, %197 : vector<24x256xf32>
    %200 = arith.addf %188, %199 : vector<24x256xf32>
    %201 = arith.addf %200, %194 : vector<24x256xf32>
    %202 = arith.addf %117, %201 : vector<24x256xf32>
    %c28 = arith.constant 28 : index
    %c0_150 = arith.constant 0 : index
    %203 = vector.load %arg2[%c28, %c0_150] : memref<49x256xf32, #tpu.memory_space<vmem>>, vector<1x256xf32>
    %c0_151 = arith.constant 0 : index
    %c0_152 = arith.constant 0 : index
    %c0_153 = arith.constant 0 : index
    %204 = vector.load %arg8[%c0_151, %c0_152, %c0_153] : memref<7x24x256xf32, #tpu.memory_space<vmem>>, vector<1x24x256xf32>
    %205 = vector.shape_cast %204 : vector<1x24x256xf32> to vector<24x256xf32>
    %206 = vector.broadcast %203 : vector<1x256xf32> to vector<24x256xf32>
    %207 = arith.mulf %206, %205 : vector<24x256xf32>
    %c29 = arith.constant 29 : index
    %c0_154 = arith.constant 0 : index
    %208 = vector.load %arg2[%c29, %c0_154] : memref<49x256xf32, #tpu.memory_space<vmem>>, vector<1x256xf32>
    %c1_155 = arith.constant 1 : index
    %c0_156 = arith.constant 0 : index
    %c0_157 = arith.constant 0 : index
    %209 = vector.load %arg8[%c1_155, %c0_156, %c0_157] : memref<7x24x256xf32, #tpu.memory_space<vmem>>, vector<1x24x256xf32>
    %210 = vector.shape_cast %209 : vector<1x24x256xf32> to vector<24x256xf32>
    %211 = vector.broadcast %208 : vector<1x256xf32> to vector<24x256xf32>
    %212 = arith.mulf %211, %210 : vector<24x256xf32>
    %c30 = arith.constant 30 : index
    %c0_158 = arith.constant 0 : index
    %213 = vector.load %arg2[%c30, %c0_158] : memref<49x256xf32, #tpu.memory_space<vmem>>, vector<1x256xf32>
    %c2_159 = arith.constant 2 : index
    %c0_160 = arith.constant 0 : index
    %c0_161 = arith.constant 0 : index
    %214 = vector.load %arg8[%c2_159, %c0_160, %c0_161] : memref<7x24x256xf32, #tpu.memory_space<vmem>>, vector<1x24x256xf32>
    %215 = vector.shape_cast %214 : vector<1x24x256xf32> to vector<24x256xf32>
    %216 = vector.broadcast %213 : vector<1x256xf32> to vector<24x256xf32>
    %217 = arith.mulf %216, %215 : vector<24x256xf32>
    %218 = arith.addf %207, %217 : vector<24x256xf32>
    %c31 = arith.constant 31 : index
    %c0_162 = arith.constant 0 : index
    %219 = vector.load %arg2[%c31, %c0_162] : memref<49x256xf32, #tpu.memory_space<vmem>>, vector<1x256xf32>
    %c3_163 = arith.constant 3 : index
    %c0_164 = arith.constant 0 : index
    %c0_165 = arith.constant 0 : index
    %220 = vector.load %arg8[%c3_163, %c0_164, %c0_165] : memref<7x24x256xf32, #tpu.memory_space<vmem>>, vector<1x24x256xf32>
    %221 = vector.shape_cast %220 : vector<1x24x256xf32> to vector<24x256xf32>
    %222 = vector.broadcast %219 : vector<1x256xf32> to vector<24x256xf32>
    %223 = arith.mulf %222, %221 : vector<24x256xf32>
    %224 = arith.addf %212, %223 : vector<24x256xf32>
    %c32 = arith.constant 32 : index
    %c0_166 = arith.constant 0 : index
    %225 = vector.load %arg2[%c32, %c0_166] : memref<49x256xf32, #tpu.memory_space<vmem>>, vector<1x256xf32>
    %c4_167 = arith.constant 4 : index
    %c0_168 = arith.constant 0 : index
    %c0_169 = arith.constant 0 : index
    %226 = vector.load %arg8[%c4_167, %c0_168, %c0_169] : memref<7x24x256xf32, #tpu.memory_space<vmem>>, vector<1x24x256xf32>
    %227 = vector.shape_cast %226 : vector<1x24x256xf32> to vector<24x256xf32>
    %228 = vector.broadcast %225 : vector<1x256xf32> to vector<24x256xf32>
    %229 = arith.mulf %228, %227 : vector<24x256xf32>
    %230 = arith.addf %218, %229 : vector<24x256xf32>
    %c33 = arith.constant 33 : index
    %c0_170 = arith.constant 0 : index
    %231 = vector.load %arg2[%c33, %c0_170] : memref<49x256xf32, #tpu.memory_space<vmem>>, vector<1x256xf32>
    %c5_171 = arith.constant 5 : index
    %c0_172 = arith.constant 0 : index
    %c0_173 = arith.constant 0 : index
    %232 = vector.load %arg8[%c5_171, %c0_172, %c0_173] : memref<7x24x256xf32, #tpu.memory_space<vmem>>, vector<1x24x256xf32>
    %233 = vector.shape_cast %232 : vector<1x24x256xf32> to vector<24x256xf32>
    %234 = vector.broadcast %231 : vector<1x256xf32> to vector<24x256xf32>
    %235 = arith.mulf %234, %233 : vector<24x256xf32>
    %236 = arith.addf %224, %235 : vector<24x256xf32>
    %c34 = arith.constant 34 : index
    %c0_174 = arith.constant 0 : index
    %237 = vector.load %arg2[%c34, %c0_174] : memref<49x256xf32, #tpu.memory_space<vmem>>, vector<1x256xf32>
    %c6_175 = arith.constant 6 : index
    %c0_176 = arith.constant 0 : index
    %c0_177 = arith.constant 0 : index
    %238 = vector.load %arg8[%c6_175, %c0_176, %c0_177] : memref<7x24x256xf32, #tpu.memory_space<vmem>>, vector<1x24x256xf32>
    %239 = vector.shape_cast %238 : vector<1x24x256xf32> to vector<24x256xf32>
    %240 = vector.broadcast %237 : vector<1x256xf32> to vector<24x256xf32>
    %241 = arith.mulf %240, %239 : vector<24x256xf32>
    %242 = arith.addf %230, %241 : vector<24x256xf32>
    %243 = arith.addf %242, %236 : vector<24x256xf32>
    %c23_i32 = arith.constant 23 : i32
    %244 = tpu.dynamic_rotate %243 by %c23_i32 dim 0 : vector<24x256xf32>, i32 -> vector<24x256xf32>
    %245 = arith.addf %160, %244 : vector<24x256xf32>
    %c35 = arith.constant 35 : index
    %c0_178 = arith.constant 0 : index
    %246 = vector.load %arg2[%c35, %c0_178] : memref<49x256xf32, #tpu.memory_space<vmem>>, vector<1x256xf32>
    %c0_179 = arith.constant 0 : index
    %c0_180 = arith.constant 0 : index
    %c0_181 = arith.constant 0 : index
    %247 = vector.load %arg8[%c0_179, %c0_180, %c0_181] : memref<7x24x256xf32, #tpu.memory_space<vmem>>, vector<1x24x256xf32>
    %248 = vector.shape_cast %247 : vector<1x24x256xf32> to vector<24x256xf32>
    %249 = vector.broadcast %246 : vector<1x256xf32> to vector<24x256xf32>
    %250 = arith.mulf %249, %248 : vector<24x256xf32>
    %c36 = arith.constant 36 : index
    %c0_182 = arith.constant 0 : index
    %251 = vector.load %arg2[%c36, %c0_182] : memref<49x256xf32, #tpu.memory_space<vmem>>, vector<1x256xf32>
    %c1_183 = arith.constant 1 : index
    %c0_184 = arith.constant 0 : index
    %c0_185 = arith.constant 0 : index
    %252 = vector.load %arg8[%c1_183, %c0_184, %c0_185] : memref<7x24x256xf32, #tpu.memory_space<vmem>>, vector<1x24x256xf32>
    %253 = vector.shape_cast %252 : vector<1x24x256xf32> to vector<24x256xf32>
    %254 = vector.broadcast %251 : vector<1x256xf32> to vector<24x256xf32>
    %255 = arith.mulf %254, %253 : vector<24x256xf32>
    %c37 = arith.constant 37 : index
    %c0_186 = arith.constant 0 : index
    %256 = vector.load %arg2[%c37, %c0_186] : memref<49x256xf32, #tpu.memory_space<vmem>>, vector<1x256xf32>
    %c2_187 = arith.constant 2 : index
    %c0_188 = arith.constant 0 : index
    %c0_189 = arith.constant 0 : index
    %257 = vector.load %arg8[%c2_187, %c0_188, %c0_189] : memref<7x24x256xf32, #tpu.memory_space<vmem>>, vector<1x24x256xf32>
    %258 = vector.shape_cast %257 : vector<1x24x256xf32> to vector<24x256xf32>
    %259 = vector.broadcast %256 : vector<1x256xf32> to vector<24x256xf32>
    %260 = arith.mulf %259, %258 : vector<24x256xf32>
    %261 = arith.addf %250, %260 : vector<24x256xf32>
    %c38 = arith.constant 38 : index
    %c0_190 = arith.constant 0 : index
    %262 = vector.load %arg2[%c38, %c0_190] : memref<49x256xf32, #tpu.memory_space<vmem>>, vector<1x256xf32>
    %c3_191 = arith.constant 3 : index
    %c0_192 = arith.constant 0 : index
    %c0_193 = arith.constant 0 : index
    %263 = vector.load %arg8[%c3_191, %c0_192, %c0_193] : memref<7x24x256xf32, #tpu.memory_space<vmem>>, vector<1x24x256xf32>
    %264 = vector.shape_cast %263 : vector<1x24x256xf32> to vector<24x256xf32>
    %265 = vector.broadcast %262 : vector<1x256xf32> to vector<24x256xf32>
    %266 = arith.mulf %265, %264 : vector<24x256xf32>
    %267 = arith.addf %255, %266 : vector<24x256xf32>
    %c39 = arith.constant 39 : index
    %c0_194 = arith.constant 0 : index
    %268 = vector.load %arg2[%c39, %c0_194] : memref<49x256xf32, #tpu.memory_space<vmem>>, vector<1x256xf32>
    %c4_195 = arith.constant 4 : index
    %c0_196 = arith.constant 0 : index
    %c0_197 = arith.constant 0 : index
    %269 = vector.load %arg8[%c4_195, %c0_196, %c0_197] : memref<7x24x256xf32, #tpu.memory_space<vmem>>, vector<1x24x256xf32>
    %270 = vector.shape_cast %269 : vector<1x24x256xf32> to vector<24x256xf32>
    %271 = vector.broadcast %268 : vector<1x256xf32> to vector<24x256xf32>
    %272 = arith.mulf %271, %270 : vector<24x256xf32>
    %273 = arith.addf %261, %272 : vector<24x256xf32>
    %c40 = arith.constant 40 : index
    %c0_198 = arith.constant 0 : index
    %274 = vector.load %arg2[%c40, %c0_198] : memref<49x256xf32, #tpu.memory_space<vmem>>, vector<1x256xf32>
    %c5_199 = arith.constant 5 : index
    %c0_200 = arith.constant 0 : index
    %c0_201 = arith.constant 0 : index
    %275 = vector.load %arg8[%c5_199, %c0_200, %c0_201] : memref<7x24x256xf32, #tpu.memory_space<vmem>>, vector<1x24x256xf32>
    %276 = vector.shape_cast %275 : vector<1x24x256xf32> to vector<24x256xf32>
    %277 = vector.broadcast %274 : vector<1x256xf32> to vector<24x256xf32>
    %278 = arith.mulf %277, %276 : vector<24x256xf32>
    %279 = arith.addf %267, %278 : vector<24x256xf32>
    %c41 = arith.constant 41 : index
    %c0_202 = arith.constant 0 : index
    %280 = vector.load %arg2[%c41, %c0_202] : memref<49x256xf32, #tpu.memory_space<vmem>>, vector<1x256xf32>
    %c6_203 = arith.constant 6 : index
    %c0_204 = arith.constant 0 : index
    %c0_205 = arith.constant 0 : index
    %281 = vector.load %arg8[%c6_203, %c0_204, %c0_205] : memref<7x24x256xf32, #tpu.memory_space<vmem>>, vector<1x24x256xf32>
    %282 = vector.shape_cast %281 : vector<1x24x256xf32> to vector<24x256xf32>
    %283 = vector.broadcast %280 : vector<1x256xf32> to vector<24x256xf32>
    %284 = arith.mulf %283, %282 : vector<24x256xf32>
    %285 = arith.addf %273, %284 : vector<24x256xf32>
    %286 = arith.addf %285, %279 : vector<24x256xf32>
    %c22_i32 = arith.constant 22 : i32
    %287 = tpu.dynamic_rotate %286 by %c22_i32 dim 0 : vector<24x256xf32>, i32 -> vector<24x256xf32>
    %288 = arith.addf %202, %287 : vector<24x256xf32>
    %c42 = arith.constant 42 : index
    %c0_206 = arith.constant 0 : index
    %289 = vector.load %arg2[%c42, %c0_206] : memref<49x256xf32, #tpu.memory_space<vmem>>, vector<1x256xf32>
    %c0_207 = arith.constant 0 : index
    %c0_208 = arith.constant 0 : index
    %c0_209 = arith.constant 0 : index
    %290 = vector.load %arg8[%c0_207, %c0_208, %c0_209] : memref<7x24x256xf32, #tpu.memory_space<vmem>>, vector<1x24x256xf32>
    %291 = vector.shape_cast %290 : vector<1x24x256xf32> to vector<24x256xf32>
    %292 = vector.broadcast %289 : vector<1x256xf32> to vector<24x256xf32>
    %293 = arith.mulf %292, %291 : vector<24x256xf32>
    %c43 = arith.constant 43 : index
    %c0_210 = arith.constant 0 : index
    %294 = vector.load %arg2[%c43, %c0_210] : memref<49x256xf32, #tpu.memory_space<vmem>>, vector<1x256xf32>
    %c1_211 = arith.constant 1 : index
    %c0_212 = arith.constant 0 : index
    %c0_213 = arith.constant 0 : index
    %295 = vector.load %arg8[%c1_211, %c0_212, %c0_213] : memref<7x24x256xf32, #tpu.memory_space<vmem>>, vector<1x24x256xf32>
    %296 = vector.shape_cast %295 : vector<1x24x256xf32> to vector<24x256xf32>
    %297 = vector.broadcast %294 : vector<1x256xf32> to vector<24x256xf32>
    %298 = arith.mulf %297, %296 : vector<24x256xf32>
    %c44 = arith.constant 44 : index
    %c0_214 = arith.constant 0 : index
    %299 = vector.load %arg2[%c44, %c0_214] : memref<49x256xf32, #tpu.memory_space<vmem>>, vector<1x256xf32>
    %c2_215 = arith.constant 2 : index
    %c0_216 = arith.constant 0 : index
    %c0_217 = arith.constant 0 : index
    %300 = vector.load %arg8[%c2_215, %c0_216, %c0_217] : memref<7x24x256xf32, #tpu.memory_space<vmem>>, vector<1x24x256xf32>
    %301 = vector.shape_cast %300 : vector<1x24x256xf32> to vector<24x256xf32>
    %302 = vector.broadcast %299 : vector<1x256xf32> to vector<24x256xf32>
    %303 = arith.mulf %302, %301 : vector<24x256xf32>
    %304 = arith.addf %293, %303 : vector<24x256xf32>
    %c45 = arith.constant 45 : index
    %c0_218 = arith.constant 0 : index
    %305 = vector.load %arg2[%c45, %c0_218] : memref<49x256xf32, #tpu.memory_space<vmem>>, vector<1x256xf32>
    %c3_219 = arith.constant 3 : index
    %c0_220 = arith.constant 0 : index
    %c0_221 = arith.constant 0 : index
    %306 = vector.load %arg8[%c3_219, %c0_220, %c0_221] : memref<7x24x256xf32, #tpu.memory_space<vmem>>, vector<1x24x256xf32>
    %307 = vector.shape_cast %306 : vector<1x24x256xf32> to vector<24x256xf32>
    %308 = vector.broadcast %305 : vector<1x256xf32> to vector<24x256xf32>
    %309 = arith.mulf %308, %307 : vector<24x256xf32>
    %310 = arith.addf %298, %309 : vector<24x256xf32>
    %c46 = arith.constant 46 : index
    %c0_222 = arith.constant 0 : index
    %311 = vector.load %arg2[%c46, %c0_222] : memref<49x256xf32, #tpu.memory_space<vmem>>, vector<1x256xf32>
    %c4_223 = arith.constant 4 : index
    %c0_224 = arith.constant 0 : index
    %c0_225 = arith.constant 0 : index
    %312 = vector.load %arg8[%c4_223, %c0_224, %c0_225] : memref<7x24x256xf32, #tpu.memory_space<vmem>>, vector<1x24x256xf32>
    %313 = vector.shape_cast %312 : vector<1x24x256xf32> to vector<24x256xf32>
    %314 = vector.broadcast %311 : vector<1x256xf32> to vector<24x256xf32>
    %315 = arith.mulf %314, %313 : vector<24x256xf32>
    %316 = arith.addf %304, %315 : vector<24x256xf32>
    %c47 = arith.constant 47 : index
    %c0_226 = arith.constant 0 : index
    %317 = vector.load %arg2[%c47, %c0_226] : memref<49x256xf32, #tpu.memory_space<vmem>>, vector<1x256xf32>
    %c5_227 = arith.constant 5 : index
    %c0_228 = arith.constant 0 : index
    %c0_229 = arith.constant 0 : index
    %318 = vector.load %arg8[%c5_227, %c0_228, %c0_229] : memref<7x24x256xf32, #tpu.memory_space<vmem>>, vector<1x24x256xf32>
    %319 = vector.shape_cast %318 : vector<1x24x256xf32> to vector<24x256xf32>
    %320 = vector.broadcast %317 : vector<1x256xf32> to vector<24x256xf32>
    %321 = arith.mulf %320, %319 : vector<24x256xf32>
    %322 = arith.addf %310, %321 : vector<24x256xf32>
    %c48 = arith.constant 48 : index
    %c0_230 = arith.constant 0 : index
    %323 = vector.load %arg2[%c48, %c0_230] : memref<49x256xf32, #tpu.memory_space<vmem>>, vector<1x256xf32>
    %c6_231 = arith.constant 6 : index
    %c0_232 = arith.constant 0 : index
    %c0_233 = arith.constant 0 : index
    %324 = vector.load %arg8[%c6_231, %c0_232, %c0_233] : memref<7x24x256xf32, #tpu.memory_space<vmem>>, vector<1x24x256xf32>
    %325 = vector.shape_cast %324 : vector<1x24x256xf32> to vector<24x256xf32>
    %326 = vector.broadcast %323 : vector<1x256xf32> to vector<24x256xf32>
    %327 = arith.mulf %326, %325 : vector<24x256xf32>
    %328 = arith.addf %316, %327 : vector<24x256xf32>
    %329 = arith.addf %328, %322 : vector<24x256xf32>
    %c21_i32 = arith.constant 21 : i32
    %330 = tpu.dynamic_rotate %329 by %c21_i32 dim 0 : vector<24x256xf32>, i32 -> vector<24x256xf32>
    %331 = arith.addf %245, %330 : vector<24x256xf32>
    %332 = arith.addf %331, %288 : vector<24x256xf32>
    %c0_234 = arith.constant 0 : index
    %c0_235 = arith.constant 0 : index
    %333 = vector.load %arg6[%c0_234, %c0_235] : memref<24x256xf32, #tpu.memory_space<vmem>>, vector<24x256xf32>
    %334 = arith.mulf %332, %333 : vector<24x256xf32>
    %c0_236 = arith.constant 0 : index
    %c0_237 = arith.constant 0 : index
    %335 = vector.load %arg3[%c0_236, %c0_237] : memref<24x256xf32, #tpu.memory_space<vmem>>, vector<24x256xf32>
    %336 = arith.addf %334, %335 : vector<24x256xf32>
    %c0_238 = arith.constant 0 : index
    %c0_239 = arith.constant 0 : index
    %337 = vector.load %arg9[%c0_238, %c0_239] : memref<24x256xf32, #tpu.memory_space<vmem>>, vector<24x256xf32>
    tpu.vector_store %arg9[%c0_238, %c0_239], %336 {strides = array<i32>} : memref<24x256xf32, #tpu.memory_space<vmem>>, vector<24x256xf32>,
    %c0_240 = arith.constant 0 : index
    %c0_241 = arith.constant 0 : index
    %338 = vector.load %arg9[%c0_240, %c0_241] : memref<24x256xf32, #tpu.memory_space<vmem>>, vector<24x256xf32>
    %c0_242 = arith.constant 0 : index
    %c0_243 = arith.constant 0 : index
    %339 = vector.load %arg1[%c0_242, %c0_243] : memref<24x256xf32, #tpu.memory_space<vmem>>, vector<24x256xf32>
    %340 = arith.addf %338, %339 : vector<24x256xf32>
    %cst = arith.constant 0.000000e+00 : f32
    %341 = vector.broadcast %cst : f32 to vector<24x256xf32>
    %342 = arith.maximumf %340, %341 : vector<24x256xf32>
    %c0_244 = arith.constant 0 : index
    %c0_245 = arith.constant 0 : index
    %343 = vector.load %arg10[%c0_244, %c0_245] : memref<24x256xf32, #tpu.memory_space<vmem>>, vector<24x256xf32>
    tpu.vector_store %arg10[%c0_244, %c0_245], %342 {strides = array<i32>} : memref<24x256xf32, #tpu.memory_space<vmem>>, vector<24x256xf32>,
    %c0_246 = arith.constant 0 : index
    %c0_247 = arith.constant 0 : index
    %344 = vector.load %arg10[%c0_246, %c0_247] : memref<24x256xf32, #tpu.memory_space<vmem>>, vector<24x256xf32>
    %c3_i32_248 = arith.constant 3 : i32
    %345 = tpu.dynamic_rotate %344 by %c3_i32_248 dim 1 : vector<24x256xf32>, i32 -> vector<24x256xf32>
    %c0_249 = arith.constant 0 : index
    %c0_250 = arith.constant 0 : index
    %c0_251 = arith.constant 0 : index
    %346 = vector.load %arg8[%c0_249, %c0_250, %c0_251] : memref<7x24x256xf32, #tpu.memory_space<vmem>>, vector<1x24x256xf32>
    %347 = vector.shape_cast %346 : vector<1x24x256xf32> to vector<24x256xf32>
    %348 = vector.shape_cast %345 : vector<24x256xf32> to vector<1x24x256xf32>
    tpu.vector_store %arg8[%c0_249, %c0_250, %c0_251], %348 {strides = array<i32>} : memref<7x24x256xf32, #tpu.memory_space<vmem>>, vector<1x24x256xf32>,
    %c0_252 = arith.constant 0 : index
    %c0_253 = arith.constant 0 : index
    %349 = vector.load %arg10[%c0_252, %c0_253] : memref<24x256xf32, #tpu.memory_space<vmem>>, vector<24x256xf32>
    %c2_i32_254 = arith.constant 2 : i32
    %350 = tpu.dynamic_rotate %349 by %c2_i32_254 dim 1 : vector<24x256xf32>, i32 -> vector<24x256xf32>
    %c1_255 = arith.constant 1 : index
    %c0_256 = arith.constant 0 : index
    %c0_257 = arith.constant 0 : index
    %351 = vector.load %arg8[%c1_255, %c0_256, %c0_257] : memref<7x24x256xf32, #tpu.memory_space<vmem>>, vector<1x24x256xf32>
    %352 = vector.shape_cast %351 : vector<1x24x256xf32> to vector<24x256xf32>
    %353 = vector.shape_cast %350 : vector<24x256xf32> to vector<1x24x256xf32>
    tpu.vector_store %arg8[%c1_255, %c0_256, %c0_257], %353 {strides = array<i32>} : memref<7x24x256xf32, #tpu.memory_space<vmem>>, vector<1x24x256xf32>,
    %c0_258 = arith.constant 0 : index
    %c0_259 = arith.constant 0 : index
    %354 = vector.load %arg10[%c0_258, %c0_259] : memref<24x256xf32, #tpu.memory_space<vmem>>, vector<24x256xf32>
    %c1_i32_260 = arith.constant 1 : i32
    %355 = tpu.dynamic_rotate %354 by %c1_i32_260 dim 1 : vector<24x256xf32>, i32 -> vector<24x256xf32>
    %c2_261 = arith.constant 2 : index
    %c0_262 = arith.constant 0 : index
    %c0_263 = arith.constant 0 : index
    %356 = vector.load %arg8[%c2_261, %c0_262, %c0_263] : memref<7x24x256xf32, #tpu.memory_space<vmem>>, vector<1x24x256xf32>
    %357 = vector.shape_cast %356 : vector<1x24x256xf32> to vector<24x256xf32>
    %358 = vector.shape_cast %355 : vector<24x256xf32> to vector<1x24x256xf32>
    tpu.vector_store %arg8[%c2_261, %c0_262, %c0_263], %358 {strides = array<i32>} : memref<7x24x256xf32, #tpu.memory_space<vmem>>, vector<1x24x256xf32>,
    %c0_264 = arith.constant 0 : index
    %c0_265 = arith.constant 0 : index
    %359 = vector.load %arg10[%c0_264, %c0_265] : memref<24x256xf32, #tpu.memory_space<vmem>>, vector<24x256xf32>
    %c3_266 = arith.constant 3 : index
    %c0_267 = arith.constant 0 : index
    %c0_268 = arith.constant 0 : index
    %360 = vector.load %arg8[%c3_266, %c0_267, %c0_268] : memref<7x24x256xf32, #tpu.memory_space<vmem>>, vector<1x24x256xf32>
    %361 = vector.shape_cast %360 : vector<1x24x256xf32> to vector<24x256xf32>
    %362 = vector.shape_cast %359 : vector<24x256xf32> to vector<1x24x256xf32>
    tpu.vector_store %arg8[%c3_266, %c0_267, %c0_268], %362 {strides = array<i32>} : memref<7x24x256xf32, #tpu.memory_space<vmem>>, vector<1x24x256xf32>,
    %c0_269 = arith.constant 0 : index
    %c0_270 = arith.constant 0 : index
    %363 = vector.load %arg10[%c0_269, %c0_270] : memref<24x256xf32, #tpu.memory_space<vmem>>, vector<24x256xf32>
    %c255_i32_271 = arith.constant 255 : i32
    %364 = tpu.dynamic_rotate %363 by %c255_i32_271 dim 1 : vector<24x256xf32>, i32 -> vector<24x256xf32>
    %c4_272 = arith.constant 4 : index
    %c0_273 = arith.constant 0 : index
    %c0_274 = arith.constant 0 : index
    %365 = vector.load %arg8[%c4_272, %c0_273, %c0_274] : memref<7x24x256xf32, #tpu.memory_space<vmem>>, vector<1x24x256xf32>
    %366 = vector.shape_cast %365 : vector<1x24x256xf32> to vector<24x256xf32>
    %367 = vector.shape_cast %364 : vector<24x256xf32> to vector<1x24x256xf32>
    tpu.vector_store %arg8[%c4_272, %c0_273, %c0_274], %367 {strides = array<i32>} : memref<7x24x256xf32, #tpu.memory_space<vmem>>, vector<1x24x256xf32>,
    %c0_275 = arith.constant 0 : index
    %c0_276 = arith.constant 0 : index
    %368 = vector.load %arg10[%c0_275, %c0_276] : memref<24x256xf32, #tpu.memory_space<vmem>>, vector<24x256xf32>
    %c254_i32_277 = arith.constant 254 : i32
    %369 = tpu.dynamic_rotate %368 by %c254_i32_277 dim 1 : vector<24x256xf32>, i32 -> vector<24x256xf32>
    %c5_278 = arith.constant 5 : index
    %c0_279 = arith.constant 0 : index
    %c0_280 = arith.constant 0 : index
    %370 = vector.load %arg8[%c5_278, %c0_279, %c0_280] : memref<7x24x256xf32, #tpu.memory_space<vmem>>, vector<1x24x256xf32>
    %371 = vector.shape_cast %370 : vector<1x24x256xf32> to vector<24x256xf32>
    %372 = vector.shape_cast %369 : vector<24x256xf32> to vector<1x24x256xf32>
    tpu.vector_store %arg8[%c5_278, %c0_279, %c0_280], %372 {strides = array<i32>} : memref<7x24x256xf32, #tpu.memory_space<vmem>>, vector<1x24x256xf32>,
    %c0_281 = arith.constant 0 : index
    %c0_282 = arith.constant 0 : index
    %373 = vector.load %arg10[%c0_281, %c0_282] : memref<24x256xf32, #tpu.memory_space<vmem>>, vector<24x256xf32>
    %c253_i32_283 = arith.constant 253 : i32
    %374 = tpu.dynamic_rotate %373 by %c253_i32_283 dim 1 : vector<24x256xf32>, i32 -> vector<24x256xf32>
    %c6_284 = arith.constant 6 : index
    %c0_285 = arith.constant 0 : index
    %c0_286 = arith.constant 0 : index
    %375 = vector.load %arg8[%c6_284, %c0_285, %c0_286] : memref<7x24x256xf32, #tpu.memory_space<vmem>>, vector<1x24x256xf32>
    %376 = vector.shape_cast %375 : vector<1x24x256xf32> to vector<24x256xf32>
    %377 = vector.shape_cast %374 : vector<24x256xf32> to vector<1x24x256xf32>
    tpu.vector_store %arg8[%c6_284, %c0_285, %c0_286], %377 {strides = array<i32>} : memref<7x24x256xf32, #tpu.memory_space<vmem>>, vector<1x24x256xf32>,
    %c0_287 = arith.constant 0 : index
    %c0_288 = arith.constant 0 : index
    %378 = vector.load %arg4[%c0_287, %c0_288] : memref<49x256xf32, #tpu.memory_space<vmem>>, vector<1x256xf32>
    %c0_289 = arith.constant 0 : index
    %c0_290 = arith.constant 0 : index
    %c0_291 = arith.constant 0 : index
    %379 = vector.load %arg8[%c0_289, %c0_290, %c0_291] : memref<7x24x256xf32, #tpu.memory_space<vmem>>, vector<1x24x256xf32>
    %380 = vector.shape_cast %379 : vector<1x24x256xf32> to vector<24x256xf32>
    %381 = vector.broadcast %378 : vector<1x256xf32> to vector<24x256xf32>
    %382 = arith.mulf %381, %380 : vector<24x256xf32>
    %c1_292 = arith.constant 1 : index
    %c0_293 = arith.constant 0 : index
    %383 = vector.load %arg4[%c1_292, %c0_293] : memref<49x256xf32, #tpu.memory_space<vmem>>, vector<1x256xf32>
    %c1_294 = arith.constant 1 : index
    %c0_295 = arith.constant 0 : index
    %c0_296 = arith.constant 0 : index
    %384 = vector.load %arg8[%c1_294, %c0_295, %c0_296] : memref<7x24x256xf32, #tpu.memory_space<vmem>>, vector<1x24x256xf32>
    %385 = vector.shape_cast %384 : vector<1x24x256xf32> to vector<24x256xf32>
    %386 = vector.broadcast %383 : vector<1x256xf32> to vector<24x256xf32>
    %387 = arith.mulf %386, %385 : vector<24x256xf32>
    %c2_297 = arith.constant 2 : index
    %c0_298 = arith.constant 0 : index
    %388 = vector.load %arg4[%c2_297, %c0_298] : memref<49x256xf32, #tpu.memory_space<vmem>>, vector<1x256xf32>
    %c2_299 = arith.constant 2 : index
    %c0_300 = arith.constant 0 : index
    %c0_301 = arith.constant 0 : index
    %389 = vector.load %arg8[%c2_299, %c0_300, %c0_301] : memref<7x24x256xf32, #tpu.memory_space<vmem>>, vector<1x24x256xf32>
    %390 = vector.shape_cast %389 : vector<1x24x256xf32> to vector<24x256xf32>
    %391 = vector.broadcast %388 : vector<1x256xf32> to vector<24x256xf32>
    %392 = arith.mulf %391, %390 : vector<24x256xf32>
    %393 = arith.addf %382, %392 : vector<24x256xf32>
    %c3_302 = arith.constant 3 : index
    %c0_303 = arith.constant 0 : index
    %394 = vector.load %arg4[%c3_302, %c0_303] : memref<49x256xf32, #tpu.memory_space<vmem>>, vector<1x256xf32>
    %c3_304 = arith.constant 3 : index
    %c0_305 = arith.constant 0 : index
    %c0_306 = arith.constant 0 : index
    %395 = vector.load %arg8[%c3_304, %c0_305, %c0_306] : memref<7x24x256xf32, #tpu.memory_space<vmem>>, vector<1x24x256xf32>
    %396 = vector.shape_cast %395 : vector<1x24x256xf32> to vector<24x256xf32>
    %397 = vector.broadcast %394 : vector<1x256xf32> to vector<24x256xf32>
    %398 = arith.mulf %397, %396 : vector<24x256xf32>
    %399 = arith.addf %387, %398 : vector<24x256xf32>
    %c4_307 = arith.constant 4 : index
    %c0_308 = arith.constant 0 : index
    %400 = vector.load %arg4[%c4_307, %c0_308] : memref<49x256xf32, #tpu.memory_space<vmem>>, vector<1x256xf32>
    %c4_309 = arith.constant 4 : index
    %c0_310 = arith.constant 0 : index
    %c0_311 = arith.constant 0 : index
    %401 = vector.load %arg8[%c4_309, %c0_310, %c0_311] : memref<7x24x256xf32, #tpu.memory_space<vmem>>, vector<1x24x256xf32>
    %402 = vector.shape_cast %401 : vector<1x24x256xf32> to vector<24x256xf32>
    %403 = vector.broadcast %400 : vector<1x256xf32> to vector<24x256xf32>
    %404 = arith.mulf %403, %402 : vector<24x256xf32>
    %405 = arith.addf %393, %404 : vector<24x256xf32>
    %c5_312 = arith.constant 5 : index
    %c0_313 = arith.constant 0 : index
    %406 = vector.load %arg4[%c5_312, %c0_313] : memref<49x256xf32, #tpu.memory_space<vmem>>, vector<1x256xf32>
    %c5_314 = arith.constant 5 : index
    %c0_315 = arith.constant 0 : index
    %c0_316 = arith.constant 0 : index
    %407 = vector.load %arg8[%c5_314, %c0_315, %c0_316] : memref<7x24x256xf32, #tpu.memory_space<vmem>>, vector<1x24x256xf32>
    %408 = vector.shape_cast %407 : vector<1x24x256xf32> to vector<24x256xf32>
    %409 = vector.broadcast %406 : vector<1x256xf32> to vector<24x256xf32>
    %410 = arith.mulf %409, %408 : vector<24x256xf32>
    %411 = arith.addf %399, %410 : vector<24x256xf32>
    %c6_317 = arith.constant 6 : index
    %c0_318 = arith.constant 0 : index
    %412 = vector.load %arg4[%c6_317, %c0_318] : memref<49x256xf32, #tpu.memory_space<vmem>>, vector<1x256xf32>
    %c6_319 = arith.constant 6 : index
    %c0_320 = arith.constant 0 : index
    %c0_321 = arith.constant 0 : index
    %413 = vector.load %arg8[%c6_319, %c0_320, %c0_321] : memref<7x24x256xf32, #tpu.memory_space<vmem>>, vector<1x24x256xf32>
    %414 = vector.shape_cast %413 : vector<1x24x256xf32> to vector<24x256xf32>
    %415 = vector.broadcast %412 : vector<1x256xf32> to vector<24x256xf32>
    %416 = arith.mulf %415, %414 : vector<24x256xf32>
    %417 = arith.addf %405, %416 : vector<24x256xf32>
    %418 = arith.addf %417, %411 : vector<24x256xf32>
    %c3_i32_322 = arith.constant 3 : i32
    %419 = tpu.dynamic_rotate %418 by %c3_i32_322 dim 0 : vector<24x256xf32>, i32 -> vector<24x256xf32>
    %c7_323 = arith.constant 7 : index
    %c0_324 = arith.constant 0 : index
    %420 = vector.load %arg4[%c7_323, %c0_324] : memref<49x256xf32, #tpu.memory_space<vmem>>, vector<1x256xf32>
    %c0_325 = arith.constant 0 : index
    %c0_326 = arith.constant 0 : index
    %c0_327 = arith.constant 0 : index
    %421 = vector.load %arg8[%c0_325, %c0_326, %c0_327] : memref<7x24x256xf32, #tpu.memory_space<vmem>>, vector<1x24x256xf32>
    %422 = vector.shape_cast %421 : vector<1x24x256xf32> to vector<24x256xf32>
    %423 = vector.broadcast %420 : vector<1x256xf32> to vector<24x256xf32>
    %424 = arith.mulf %423, %422 : vector<24x256xf32>
    %c8_328 = arith.constant 8 : index
    %c0_329 = arith.constant 0 : index
    %425 = vector.load %arg4[%c8_328, %c0_329] : memref<49x256xf32, #tpu.memory_space<vmem>>, vector<1x256xf32>
    %c1_330 = arith.constant 1 : index
    %c0_331 = arith.constant 0 : index
    %c0_332 = arith.constant 0 : index
    %426 = vector.load %arg8[%c1_330, %c0_331, %c0_332] : memref<7x24x256xf32, #tpu.memory_space<vmem>>, vector<1x24x256xf32>
    %427 = vector.shape_cast %426 : vector<1x24x256xf32> to vector<24x256xf32>
    %428 = vector.broadcast %425 : vector<1x256xf32> to vector<24x256xf32>
    %429 = arith.mulf %428, %427 : vector<24x256xf32>
    %c9_333 = arith.constant 9 : index
    %c0_334 = arith.constant 0 : index
    %430 = vector.load %arg4[%c9_333, %c0_334] : memref<49x256xf32, #tpu.memory_space<vmem>>, vector<1x256xf32>
    %c2_335 = arith.constant 2 : index
    %c0_336 = arith.constant 0 : index
    %c0_337 = arith.constant 0 : index
    %431 = vector.load %arg8[%c2_335, %c0_336, %c0_337] : memref<7x24x256xf32, #tpu.memory_space<vmem>>, vector<1x24x256xf32>
    %432 = vector.shape_cast %431 : vector<1x24x256xf32> to vector<24x256xf32>
    %433 = vector.broadcast %430 : vector<1x256xf32> to vector<24x256xf32>
    %434 = arith.mulf %433, %432 : vector<24x256xf32>
    %435 = arith.addf %424, %434 : vector<24x256xf32>
    %c10_338 = arith.constant 10 : index
    %c0_339 = arith.constant 0 : index
    %436 = vector.load %arg4[%c10_338, %c0_339] : memref<49x256xf32, #tpu.memory_space<vmem>>, vector<1x256xf32>
    %c3_340 = arith.constant 3 : index
    %c0_341 = arith.constant 0 : index
    %c0_342 = arith.constant 0 : index
    %437 = vector.load %arg8[%c3_340, %c0_341, %c0_342] : memref<7x24x256xf32, #tpu.memory_space<vmem>>, vector<1x24x256xf32>
    %438 = vector.shape_cast %437 : vector<1x24x256xf32> to vector<24x256xf32>
    %439 = vector.broadcast %436 : vector<1x256xf32> to vector<24x256xf32>
    %440 = arith.mulf %439, %438 : vector<24x256xf32>
    %441 = arith.addf %429, %440 : vector<24x256xf32>
    %c11_343 = arith.constant 11 : index
    %c0_344 = arith.constant 0 : index
    %442 = vector.load %arg4[%c11_343, %c0_344] : memref<49x256xf32, #tpu.memory_space<vmem>>, vector<1x256xf32>
    %c4_345 = arith.constant 4 : index
    %c0_346 = arith.constant 0 : index
    %c0_347 = arith.constant 0 : index
    %443 = vector.load %arg8[%c4_345, %c0_346, %c0_347] : memref<7x24x256xf32, #tpu.memory_space<vmem>>, vector<1x24x256xf32>
    %444 = vector.shape_cast %443 : vector<1x24x256xf32> to vector<24x256xf32>
    %445 = vector.broadcast %442 : vector<1x256xf32> to vector<24x256xf32>
    %446 = arith.mulf %445, %444 : vector<24x256xf32>
    %447 = arith.addf %435, %446 : vector<24x256xf32>
    %c12_348 = arith.constant 12 : index
    %c0_349 = arith.constant 0 : index
    %448 = vector.load %arg4[%c12_348, %c0_349] : memref<49x256xf32, #tpu.memory_space<vmem>>, vector<1x256xf32>
    %c5_350 = arith.constant 5 : index
    %c0_351 = arith.constant 0 : index
    %c0_352 = arith.constant 0 : index
    %449 = vector.load %arg8[%c5_350, %c0_351, %c0_352] : memref<7x24x256xf32, #tpu.memory_space<vmem>>, vector<1x24x256xf32>
    %450 = vector.shape_cast %449 : vector<1x24x256xf32> to vector<24x256xf32>
    %451 = vector.broadcast %448 : vector<1x256xf32> to vector<24x256xf32>
    %452 = arith.mulf %451, %450 : vector<24x256xf32>
    %453 = arith.addf %441, %452 : vector<24x256xf32>
    %c13_353 = arith.constant 13 : index
    %c0_354 = arith.constant 0 : index
    %454 = vector.load %arg4[%c13_353, %c0_354] : memref<49x256xf32, #tpu.memory_space<vmem>>, vector<1x256xf32>
    %c6_355 = arith.constant 6 : index
    %c0_356 = arith.constant 0 : index
    %c0_357 = arith.constant 0 : index
    %455 = vector.load %arg8[%c6_355, %c0_356, %c0_357] : memref<7x24x256xf32, #tpu.memory_space<vmem>>, vector<1x24x256xf32>
    %456 = vector.shape_cast %455 : vector<1x24x256xf32> to vector<24x256xf32>
    %457 = vector.broadcast %454 : vector<1x256xf32> to vector<24x256xf32>
    %458 = arith.mulf %457, %456 : vector<24x256xf32>
    %459 = arith.addf %447, %458 : vector<24x256xf32>
    %460 = arith.addf %459, %453 : vector<24x256xf32>
    %c2_i32_358 = arith.constant 2 : i32
    %461 = tpu.dynamic_rotate %460 by %c2_i32_358 dim 0 : vector<24x256xf32>, i32 -> vector<24x256xf32>
    %c14_359 = arith.constant 14 : index
    %c0_360 = arith.constant 0 : index
    %462 = vector.load %arg4[%c14_359, %c0_360] : memref<49x256xf32, #tpu.memory_space<vmem>>, vector<1x256xf32>
    %c0_361 = arith.constant 0 : index
    %c0_362 = arith.constant 0 : index
    %c0_363 = arith.constant 0 : index
    %463 = vector.load %arg8[%c0_361, %c0_362, %c0_363] : memref<7x24x256xf32, #tpu.memory_space<vmem>>, vector<1x24x256xf32>
    %464 = vector.shape_cast %463 : vector<1x24x256xf32> to vector<24x256xf32>
    %465 = vector.broadcast %462 : vector<1x256xf32> to vector<24x256xf32>
    %466 = arith.mulf %465, %464 : vector<24x256xf32>
    %c15_364 = arith.constant 15 : index
    %c0_365 = arith.constant 0 : index
    %467 = vector.load %arg4[%c15_364, %c0_365] : memref<49x256xf32, #tpu.memory_space<vmem>>, vector<1x256xf32>
    %c1_366 = arith.constant 1 : index
    %c0_367 = arith.constant 0 : index
    %c0_368 = arith.constant 0 : index
    %468 = vector.load %arg8[%c1_366, %c0_367, %c0_368] : memref<7x24x256xf32, #tpu.memory_space<vmem>>, vector<1x24x256xf32>
    %469 = vector.shape_cast %468 : vector<1x24x256xf32> to vector<24x256xf32>
    %470 = vector.broadcast %467 : vector<1x256xf32> to vector<24x256xf32>
    %471 = arith.mulf %470, %469 : vector<24x256xf32>
    %c16_369 = arith.constant 16 : index
    %c0_370 = arith.constant 0 : index
    %472 = vector.load %arg4[%c16_369, %c0_370] : memref<49x256xf32, #tpu.memory_space<vmem>>, vector<1x256xf32>
    %c2_371 = arith.constant 2 : index
    %c0_372 = arith.constant 0 : index
    %c0_373 = arith.constant 0 : index
    %473 = vector.load %arg8[%c2_371, %c0_372, %c0_373] : memref<7x24x256xf32, #tpu.memory_space<vmem>>, vector<1x24x256xf32>
    %474 = vector.shape_cast %473 : vector<1x24x256xf32> to vector<24x256xf32>
    %475 = vector.broadcast %472 : vector<1x256xf32> to vector<24x256xf32>
    %476 = arith.mulf %475, %474 : vector<24x256xf32>
    %477 = arith.addf %466, %476 : vector<24x256xf32>
    %c17_374 = arith.constant 17 : index
    %c0_375 = arith.constant 0 : index
    %478 = vector.load %arg4[%c17_374, %c0_375] : memref<49x256xf32, #tpu.memory_space<vmem>>, vector<1x256xf32>
    %c3_376 = arith.constant 3 : index
    %c0_377 = arith.constant 0 : index
    %c0_378 = arith.constant 0 : index
    %479 = vector.load %arg8[%c3_376, %c0_377, %c0_378] : memref<7x24x256xf32, #tpu.memory_space<vmem>>, vector<1x24x256xf32>
    %480 = vector.shape_cast %479 : vector<1x24x256xf32> to vector<24x256xf32>
    %481 = vector.broadcast %478 : vector<1x256xf32> to vector<24x256xf32>
    %482 = arith.mulf %481, %480 : vector<24x256xf32>
    %483 = arith.addf %471, %482 : vector<24x256xf32>
    %c18_379 = arith.constant 18 : index
    %c0_380 = arith.constant 0 : index
    %484 = vector.load %arg4[%c18_379, %c0_380] : memref<49x256xf32, #tpu.memory_space<vmem>>, vector<1x256xf32>
    %c4_381 = arith.constant 4 : index
    %c0_382 = arith.constant 0 : index
    %c0_383 = arith.constant 0 : index
    %485 = vector.load %arg8[%c4_381, %c0_382, %c0_383] : memref<7x24x256xf32, #tpu.memory_space<vmem>>, vector<1x24x256xf32>
    %486 = vector.shape_cast %485 : vector<1x24x256xf32> to vector<24x256xf32>
    %487 = vector.broadcast %484 : vector<1x256xf32> to vector<24x256xf32>
    %488 = arith.mulf %487, %486 : vector<24x256xf32>
    %489 = arith.addf %477, %488 : vector<24x256xf32>
    %c19_384 = arith.constant 19 : index
    %c0_385 = arith.constant 0 : index
    %490 = vector.load %arg4[%c19_384, %c0_385] : memref<49x256xf32, #tpu.memory_space<vmem>>, vector<1x256xf32>
    %c5_386 = arith.constant 5 : index
    %c0_387 = arith.constant 0 : index
    %c0_388 = arith.constant 0 : index
    %491 = vector.load %arg8[%c5_386, %c0_387, %c0_388] : memref<7x24x256xf32, #tpu.memory_space<vmem>>, vector<1x24x256xf32>
    %492 = vector.shape_cast %491 : vector<1x24x256xf32> to vector<24x256xf32>
    %493 = vector.broadcast %490 : vector<1x256xf32> to vector<24x256xf32>
    %494 = arith.mulf %493, %492 : vector<24x256xf32>
    %495 = arith.addf %483, %494 : vector<24x256xf32>
    %c20_389 = arith.constant 20 : index
    %c0_390 = arith.constant 0 : index
    %496 = vector.load %arg4[%c20_389, %c0_390] : memref<49x256xf32, #tpu.memory_space<vmem>>, vector<1x256xf32>
    %c6_391 = arith.constant 6 : index
    %c0_392 = arith.constant 0 : index
    %c0_393 = arith.constant 0 : index
    %497 = vector.load %arg8[%c6_391, %c0_392, %c0_393] : memref<7x24x256xf32, #tpu.memory_space<vmem>>, vector<1x24x256xf32>
    %498 = vector.shape_cast %497 : vector<1x24x256xf32> to vector<24x256xf32>
    %499 = vector.broadcast %496 : vector<1x256xf32> to vector<24x256xf32>
    %500 = arith.mulf %499, %498 : vector<24x256xf32>
    %501 = arith.addf %489, %500 : vector<24x256xf32>
    %502 = arith.addf %501, %495 : vector<24x256xf32>
    %c1_i32_394 = arith.constant 1 : i32
    %503 = tpu.dynamic_rotate %502 by %c1_i32_394 dim 0 : vector<24x256xf32>, i32 -> vector<24x256xf32>
    %504 = arith.addf %419, %503 : vector<24x256xf32>
    %c21_395 = arith.constant 21 : index
    %c0_396 = arith.constant 0 : index
    %505 = vector.load %arg4[%c21_395, %c0_396] : memref<49x256xf32, #tpu.memory_space<vmem>>, vector<1x256xf32>
    %c0_397 = arith.constant 0 : index
    %c0_398 = arith.constant 0 : index
    %c0_399 = arith.constant 0 : index
    %506 = vector.load %arg8[%c0_397, %c0_398, %c0_399] : memref<7x24x256xf32, #tpu.memory_space<vmem>>, vector<1x24x256xf32>
    %507 = vector.shape_cast %506 : vector<1x24x256xf32> to vector<24x256xf32>
    %508 = vector.broadcast %505 : vector<1x256xf32> to vector<24x256xf32>
    %509 = arith.mulf %508, %507 : vector<24x256xf32>
    %c22_400 = arith.constant 22 : index
    %c0_401 = arith.constant 0 : index
    %510 = vector.load %arg4[%c22_400, %c0_401] : memref<49x256xf32, #tpu.memory_space<vmem>>, vector<1x256xf32>
    %c1_402 = arith.constant 1 : index
    %c0_403 = arith.constant 0 : index
    %c0_404 = arith.constant 0 : index
    %511 = vector.load %arg8[%c1_402, %c0_403, %c0_404] : memref<7x24x256xf32, #tpu.memory_space<vmem>>, vector<1x24x256xf32>
    %512 = vector.shape_cast %511 : vector<1x24x256xf32> to vector<24x256xf32>
    %513 = vector.broadcast %510 : vector<1x256xf32> to vector<24x256xf32>
    %514 = arith.mulf %513, %512 : vector<24x256xf32>
    %c23_405 = arith.constant 23 : index
    %c0_406 = arith.constant 0 : index
    %515 = vector.load %arg4[%c23_405, %c0_406] : memref<49x256xf32, #tpu.memory_space<vmem>>, vector<1x256xf32>
    %c2_407 = arith.constant 2 : index
    %c0_408 = arith.constant 0 : index
    %c0_409 = arith.constant 0 : index
    %516 = vector.load %arg8[%c2_407, %c0_408, %c0_409] : memref<7x24x256xf32, #tpu.memory_space<vmem>>, vector<1x24x256xf32>
    %517 = vector.shape_cast %516 : vector<1x24x256xf32> to vector<24x256xf32>
    %518 = vector.broadcast %515 : vector<1x256xf32> to vector<24x256xf32>
    %519 = arith.mulf %518, %517 : vector<24x256xf32>
    %520 = arith.addf %509, %519 : vector<24x256xf32>
    %c24_410 = arith.constant 24 : index
    %c0_411 = arith.constant 0 : index
    %521 = vector.load %arg4[%c24_410, %c0_411] : memref<49x256xf32, #tpu.memory_space<vmem>>, vector<1x256xf32>
    %c3_412 = arith.constant 3 : index
    %c0_413 = arith.constant 0 : index
    %c0_414 = arith.constant 0 : index
    %522 = vector.load %arg8[%c3_412, %c0_413, %c0_414] : memref<7x24x256xf32, #tpu.memory_space<vmem>>, vector<1x24x256xf32>
    %523 = vector.shape_cast %522 : vector<1x24x256xf32> to vector<24x256xf32>
    %524 = vector.broadcast %521 : vector<1x256xf32> to vector<24x256xf32>
    %525 = arith.mulf %524, %523 : vector<24x256xf32>
    %526 = arith.addf %514, %525 : vector<24x256xf32>
    %c25_415 = arith.constant 25 : index
    %c0_416 = arith.constant 0 : index
    %527 = vector.load %arg4[%c25_415, %c0_416] : memref<49x256xf32, #tpu.memory_space<vmem>>, vector<1x256xf32>
    %c4_417 = arith.constant 4 : index
    %c0_418 = arith.constant 0 : index
    %c0_419 = arith.constant 0 : index
    %528 = vector.load %arg8[%c4_417, %c0_418, %c0_419] : memref<7x24x256xf32, #tpu.memory_space<vmem>>, vector<1x24x256xf32>
    %529 = vector.shape_cast %528 : vector<1x24x256xf32> to vector<24x256xf32>
    %530 = vector.broadcast %527 : vector<1x256xf32> to vector<24x256xf32>
    %531 = arith.mulf %530, %529 : vector<24x256xf32>
    %532 = arith.addf %520, %531 : vector<24x256xf32>
    %c26_420 = arith.constant 26 : index
    %c0_421 = arith.constant 0 : index
    %533 = vector.load %arg4[%c26_420, %c0_421] : memref<49x256xf32, #tpu.memory_space<vmem>>, vector<1x256xf32>
    %c5_422 = arith.constant 5 : index
    %c0_423 = arith.constant 0 : index
    %c0_424 = arith.constant 0 : index
    %534 = vector.load %arg8[%c5_422, %c0_423, %c0_424] : memref<7x24x256xf32, #tpu.memory_space<vmem>>, vector<1x24x256xf32>
    %535 = vector.shape_cast %534 : vector<1x24x256xf32> to vector<24x256xf32>
    %536 = vector.broadcast %533 : vector<1x256xf32> to vector<24x256xf32>
    %537 = arith.mulf %536, %535 : vector<24x256xf32>
    %538 = arith.addf %526, %537 : vector<24x256xf32>
    %c27_425 = arith.constant 27 : index
    %c0_426 = arith.constant 0 : index
    %539 = vector.load %arg4[%c27_425, %c0_426] : memref<49x256xf32, #tpu.memory_space<vmem>>, vector<1x256xf32>
    %c6_427 = arith.constant 6 : index
    %c0_428 = arith.constant 0 : index
    %c0_429 = arith.constant 0 : index
    %540 = vector.load %arg8[%c6_427, %c0_428, %c0_429] : memref<7x24x256xf32, #tpu.memory_space<vmem>>, vector<1x24x256xf32>
    %541 = vector.shape_cast %540 : vector<1x24x256xf32> to vector<24x256xf32>
    %542 = vector.broadcast %539 : vector<1x256xf32> to vector<24x256xf32>
    %543 = arith.mulf %542, %541 : vector<24x256xf32>
    %544 = arith.addf %532, %543 : vector<24x256xf32>
    %545 = arith.addf %544, %538 : vector<24x256xf32>
    %546 = arith.addf %461, %545 : vector<24x256xf32>
    %c28_430 = arith.constant 28 : index
    %c0_431 = arith.constant 0 : index
    %547 = vector.load %arg4[%c28_430, %c0_431] : memref<49x256xf32, #tpu.memory_space<vmem>>, vector<1x256xf32>
    %c0_432 = arith.constant 0 : index
    %c0_433 = arith.constant 0 : index
    %c0_434 = arith.constant 0 : index
    %548 = vector.load %arg8[%c0_432, %c0_433, %c0_434] : memref<7x24x256xf32, #tpu.memory_space<vmem>>, vector<1x24x256xf32>
    %549 = vector.shape_cast %548 : vector<1x24x256xf32> to vector<24x256xf32>
    %550 = vector.broadcast %547 : vector<1x256xf32> to vector<24x256xf32>
    %551 = arith.mulf %550, %549 : vector<24x256xf32>
    %c29_435 = arith.constant 29 : index
    %c0_436 = arith.constant 0 : index
    %552 = vector.load %arg4[%c29_435, %c0_436] : memref<49x256xf32, #tpu.memory_space<vmem>>, vector<1x256xf32>
    %c1_437 = arith.constant 1 : index
    %c0_438 = arith.constant 0 : index
    %c0_439 = arith.constant 0 : index
    %553 = vector.load %arg8[%c1_437, %c0_438, %c0_439] : memref<7x24x256xf32, #tpu.memory_space<vmem>>, vector<1x24x256xf32>
    %554 = vector.shape_cast %553 : vector<1x24x256xf32> to vector<24x256xf32>
    %555 = vector.broadcast %552 : vector<1x256xf32> to vector<24x256xf32>
    %556 = arith.mulf %555, %554 : vector<24x256xf32>
    %c30_440 = arith.constant 30 : index
    %c0_441 = arith.constant 0 : index
    %557 = vector.load %arg4[%c30_440, %c0_441] : memref<49x256xf32, #tpu.memory_space<vmem>>, vector<1x256xf32>
    %c2_442 = arith.constant 2 : index
    %c0_443 = arith.constant 0 : index
    %c0_444 = arith.constant 0 : index
    %558 = vector.load %arg8[%c2_442, %c0_443, %c0_444] : memref<7x24x256xf32, #tpu.memory_space<vmem>>, vector<1x24x256xf32>
    %559 = vector.shape_cast %558 : vector<1x24x256xf32> to vector<24x256xf32>
    %560 = vector.broadcast %557 : vector<1x256xf32> to vector<24x256xf32>
    %561 = arith.mulf %560, %559 : vector<24x256xf32>
    %562 = arith.addf %551, %561 : vector<24x256xf32>
    %c31_445 = arith.constant 31 : index
    %c0_446 = arith.constant 0 : index
    %563 = vector.load %arg4[%c31_445, %c0_446] : memref<49x256xf32, #tpu.memory_space<vmem>>, vector<1x256xf32>
    %c3_447 = arith.constant 3 : index
    %c0_448 = arith.constant 0 : index
    %c0_449 = arith.constant 0 : index
    %564 = vector.load %arg8[%c3_447, %c0_448, %c0_449] : memref<7x24x256xf32, #tpu.memory_space<vmem>>, vector<1x24x256xf32>
    %565 = vector.shape_cast %564 : vector<1x24x256xf32> to vector<24x256xf32>
    %566 = vector.broadcast %563 : vector<1x256xf32> to vector<24x256xf32>
    %567 = arith.mulf %566, %565 : vector<24x256xf32>
    %568 = arith.addf %556, %567 : vector<24x256xf32>
    %c32_450 = arith.constant 32 : index
    %c0_451 = arith.constant 0 : index
    %569 = vector.load %arg4[%c32_450, %c0_451] : memref<49x256xf32, #tpu.memory_space<vmem>>, vector<1x256xf32>
    %c4_452 = arith.constant 4 : index
    %c0_453 = arith.constant 0 : index
    %c0_454 = arith.constant 0 : index
    %570 = vector.load %arg8[%c4_452, %c0_453, %c0_454] : memref<7x24x256xf32, #tpu.memory_space<vmem>>, vector<1x24x256xf32>
    %571 = vector.shape_cast %570 : vector<1x24x256xf32> to vector<24x256xf32>
    %572 = vector.broadcast %569 : vector<1x256xf32> to vector<24x256xf32>
    %573 = arith.mulf %572, %571 : vector<24x256xf32>
    %574 = arith.addf %562, %573 : vector<24x256xf32>
    %c33_455 = arith.constant 33 : index
    %c0_456 = arith.constant 0 : index
    %575 = vector.load %arg4[%c33_455, %c0_456] : memref<49x256xf32, #tpu.memory_space<vmem>>, vector<1x256xf32>
    %c5_457 = arith.constant 5 : index
    %c0_458 = arith.constant 0 : index
    %c0_459 = arith.constant 0 : index
    %576 = vector.load %arg8[%c5_457, %c0_458, %c0_459] : memref<7x24x256xf32, #tpu.memory_space<vmem>>, vector<1x24x256xf32>
    %577 = vector.shape_cast %576 : vector<1x24x256xf32> to vector<24x256xf32>
    %578 = vector.broadcast %575 : vector<1x256xf32> to vector<24x256xf32>
    %579 = arith.mulf %578, %577 : vector<24x256xf32>
    %580 = arith.addf %568, %579 : vector<24x256xf32>
    %c34_460 = arith.constant 34 : index
    %c0_461 = arith.constant 0 : index
    %581 = vector.load %arg4[%c34_460, %c0_461] : memref<49x256xf32, #tpu.memory_space<vmem>>, vector<1x256xf32>
    %c6_462 = arith.constant 6 : index
    %c0_463 = arith.constant 0 : index
    %c0_464 = arith.constant 0 : index
    %582 = vector.load %arg8[%c6_462, %c0_463, %c0_464] : memref<7x24x256xf32, #tpu.memory_space<vmem>>, vector<1x24x256xf32>
    %583 = vector.shape_cast %582 : vector<1x24x256xf32> to vector<24x256xf32>
    %584 = vector.broadcast %581 : vector<1x256xf32> to vector<24x256xf32>
    %585 = arith.mulf %584, %583 : vector<24x256xf32>
    %586 = arith.addf %574, %585 : vector<24x256xf32>
    %587 = arith.addf %586, %580 : vector<24x256xf32>
    %c23_i32_465 = arith.constant 23 : i32
    %588 = tpu.dynamic_rotate %587 by %c23_i32_465 dim 0 : vector<24x256xf32>, i32 -> vector<24x256xf32>
    %589 = arith.addf %504, %588 : vector<24x256xf32>
    %c35_466 = arith.constant 35 : index
    %c0_467 = arith.constant 0 : index
    %590 = vector.load %arg4[%c35_466, %c0_467] : memref<49x256xf32, #tpu.memory_space<vmem>>, vector<1x256xf32>
    %c0_468 = arith.constant 0 : index
    %c0_469 = arith.constant 0 : index
    %c0_470 = arith.constant 0 : index
    %591 = vector.load %arg8[%c0_468, %c0_469, %c0_470] : memref<7x24x256xf32, #tpu.memory_space<vmem>>, vector<1x24x256xf32>
    %592 = vector.shape_cast %591 : vector<1x24x256xf32> to vector<24x256xf32>
    %593 = vector.broadcast %590 : vector<1x256xf32> to vector<24x256xf32>
    %594 = arith.mulf %593, %592 : vector<24x256xf32>
    %c36_471 = arith.constant 36 : index
    %c0_472 = arith.constant 0 : index
    %595 = vector.load %arg4[%c36_471, %c0_472] : memref<49x256xf32, #tpu.memory_space<vmem>>, vector<1x256xf32>
    %c1_473 = arith.constant 1 : index
    %c0_474 = arith.constant 0 : index
    %c0_475 = arith.constant 0 : index
    %596 = vector.load %arg8[%c1_473, %c0_474, %c0_475] : memref<7x24x256xf32, #tpu.memory_space<vmem>>, vector<1x24x256xf32>
    %597 = vector.shape_cast %596 : vector<1x24x256xf32> to vector<24x256xf32>
    %598 = vector.broadcast %595 : vector<1x256xf32> to vector<24x256xf32>
    %599 = arith.mulf %598, %597 : vector<24x256xf32>
    %c37_476 = arith.constant 37 : index
    %c0_477 = arith.constant 0 : index
    %600 = vector.load %arg4[%c37_476, %c0_477] : memref<49x256xf32, #tpu.memory_space<vmem>>, vector<1x256xf32>
    %c2_478 = arith.constant 2 : index
    %c0_479 = arith.constant 0 : index
    %c0_480 = arith.constant 0 : index
    %601 = vector.load %arg8[%c2_478, %c0_479, %c0_480] : memref<7x24x256xf32, #tpu.memory_space<vmem>>, vector<1x24x256xf32>
    %602 = vector.shape_cast %601 : vector<1x24x256xf32> to vector<24x256xf32>
    %603 = vector.broadcast %600 : vector<1x256xf32> to vector<24x256xf32>
    %604 = arith.mulf %603, %602 : vector<24x256xf32>
    %605 = arith.addf %594, %604 : vector<24x256xf32>
    %c38_481 = arith.constant 38 : index
    %c0_482 = arith.constant 0 : index
    %606 = vector.load %arg4[%c38_481, %c0_482] : memref<49x256xf32, #tpu.memory_space<vmem>>, vector<1x256xf32>
    %c3_483 = arith.constant 3 : index
    %c0_484 = arith.constant 0 : index
    %c0_485 = arith.constant 0 : index
    %607 = vector.load %arg8[%c3_483, %c0_484, %c0_485] : memref<7x24x256xf32, #tpu.memory_space<vmem>>, vector<1x24x256xf32>
    %608 = vector.shape_cast %607 : vector<1x24x256xf32> to vector<24x256xf32>
    %609 = vector.broadcast %606 : vector<1x256xf32> to vector<24x256xf32>
    %610 = arith.mulf %609, %608 : vector<24x256xf32>
    %611 = arith.addf %599, %610 : vector<24x256xf32>
    %c39_486 = arith.constant 39 : index
    %c0_487 = arith.constant 0 : index
    %612 = vector.load %arg4[%c39_486, %c0_487] : memref<49x256xf32, #tpu.memory_space<vmem>>, vector<1x256xf32>
    %c4_488 = arith.constant 4 : index
    %c0_489 = arith.constant 0 : index
    %c0_490 = arith.constant 0 : index
    %613 = vector.load %arg8[%c4_488, %c0_489, %c0_490] : memref<7x24x256xf32, #tpu.memory_space<vmem>>, vector<1x24x256xf32>
    %614 = vector.shape_cast %613 : vector<1x24x256xf32> to vector<24x256xf32>
    %615 = vector.broadcast %612 : vector<1x256xf32> to vector<24x256xf32>
    %616 = arith.mulf %615, %614 : vector<24x256xf32>
    %617 = arith.addf %605, %616 : vector<24x256xf32>
    %c40_491 = arith.constant 40 : index
    %c0_492 = arith.constant 0 : index
    %618 = vector.load %arg4[%c40_491, %c0_492] : memref<49x256xf32, #tpu.memory_space<vmem>>, vector<1x256xf32>
    %c5_493 = arith.constant 5 : index
    %c0_494 = arith.constant 0 : index
    %c0_495 = arith.constant 0 : index
    %619 = vector.load %arg8[%c5_493, %c0_494, %c0_495] : memref<7x24x256xf32, #tpu.memory_space<vmem>>, vector<1x24x256xf32>
    %620 = vector.shape_cast %619 : vector<1x24x256xf32> to vector<24x256xf32>
    %621 = vector.broadcast %618 : vector<1x256xf32> to vector<24x256xf32>
    %622 = arith.mulf %621, %620 : vector<24x256xf32>
    %623 = arith.addf %611, %622 : vector<24x256xf32>
    %c41_496 = arith.constant 41 : index
    %c0_497 = arith.constant 0 : index
    %624 = vector.load %arg4[%c41_496, %c0_497] : memref<49x256xf32, #tpu.memory_space<vmem>>, vector<1x256xf32>
    %c6_498 = arith.constant 6 : index
    %c0_499 = arith.constant 0 : index
    %c0_500 = arith.constant 0 : index
    %625 = vector.load %arg8[%c6_498, %c0_499, %c0_500] : memref<7x24x256xf32, #tpu.memory_space<vmem>>, vector<1x24x256xf32>
    %626 = vector.shape_cast %625 : vector<1x24x256xf32> to vector<24x256xf32>
    %627 = vector.broadcast %624 : vector<1x256xf32> to vector<24x256xf32>
    %628 = arith.mulf %627, %626 : vector<24x256xf32>
    %629 = arith.addf %617, %628 : vector<24x256xf32>
    %630 = arith.addf %629, %623 : vector<24x256xf32>
    %c22_i32_501 = arith.constant 22 : i32
    %631 = tpu.dynamic_rotate %630 by %c22_i32_501 dim 0 : vector<24x256xf32>, i32 -> vector<24x256xf32>
    %632 = arith.addf %546, %631 : vector<24x256xf32>
    %c42_502 = arith.constant 42 : index
    %c0_503 = arith.constant 0 : index
    %633 = vector.load %arg4[%c42_502, %c0_503] : memref<49x256xf32, #tpu.memory_space<vmem>>, vector<1x256xf32>
    %c0_504 = arith.constant 0 : index
    %c0_505 = arith.constant 0 : index
    %c0_506 = arith.constant 0 : index
    %634 = vector.load %arg8[%c0_504, %c0_505, %c0_506] : memref<7x24x256xf32, #tpu.memory_space<vmem>>, vector<1x24x256xf32>
    %635 = vector.shape_cast %634 : vector<1x24x256xf32> to vector<24x256xf32>
    %636 = vector.broadcast %633 : vector<1x256xf32> to vector<24x256xf32>
    %637 = arith.mulf %636, %635 : vector<24x256xf32>
    %c43_507 = arith.constant 43 : index
    %c0_508 = arith.constant 0 : index
    %638 = vector.load %arg4[%c43_507, %c0_508] : memref<49x256xf32, #tpu.memory_space<vmem>>, vector<1x256xf32>
    %c1_509 = arith.constant 1 : index
    %c0_510 = arith.constant 0 : index
    %c0_511 = arith.constant 0 : index
    %639 = vector.load %arg8[%c1_509, %c0_510, %c0_511] : memref<7x24x256xf32, #tpu.memory_space<vmem>>, vector<1x24x256xf32>
    %640 = vector.shape_cast %639 : vector<1x24x256xf32> to vector<24x256xf32>
    %641 = vector.broadcast %638 : vector<1x256xf32> to vector<24x256xf32>
    %642 = arith.mulf %641, %640 : vector<24x256xf32>
    %c44_512 = arith.constant 44 : index
    %c0_513 = arith.constant 0 : index
    %643 = vector.load %arg4[%c44_512, %c0_513] : memref<49x256xf32, #tpu.memory_space<vmem>>, vector<1x256xf32>
    %c2_514 = arith.constant 2 : index
    %c0_515 = arith.constant 0 : index
    %c0_516 = arith.constant 0 : index
    %644 = vector.load %arg8[%c2_514, %c0_515, %c0_516] : memref<7x24x256xf32, #tpu.memory_space<vmem>>, vector<1x24x256xf32>
    %645 = vector.shape_cast %644 : vector<1x24x256xf32> to vector<24x256xf32>
    %646 = vector.broadcast %643 : vector<1x256xf32> to vector<24x256xf32>
    %647 = arith.mulf %646, %645 : vector<24x256xf32>
    %648 = arith.addf %637, %647 : vector<24x256xf32>
    %c45_517 = arith.constant 45 : index
    %c0_518 = arith.constant 0 : index
    %649 = vector.load %arg4[%c45_517, %c0_518] : memref<49x256xf32, #tpu.memory_space<vmem>>, vector<1x256xf32>
    %c3_519 = arith.constant 3 : index
    %c0_520 = arith.constant 0 : index
    %c0_521 = arith.constant 0 : index
    %650 = vector.load %arg8[%c3_519, %c0_520, %c0_521] : memref<7x24x256xf32, #tpu.memory_space<vmem>>, vector<1x24x256xf32>
    %651 = vector.shape_cast %650 : vector<1x24x256xf32> to vector<24x256xf32>
    %652 = vector.broadcast %649 : vector<1x256xf32> to vector<24x256xf32>
    %653 = arith.mulf %652, %651 : vector<24x256xf32>
    %654 = arith.addf %642, %653 : vector<24x256xf32>
    %c46_522 = arith.constant 46 : index
    %c0_523 = arith.constant 0 : index
    %655 = vector.load %arg4[%c46_522, %c0_523] : memref<49x256xf32, #tpu.memory_space<vmem>>, vector<1x256xf32>
    %c4_524 = arith.constant 4 : index
    %c0_525 = arith.constant 0 : index
    %c0_526 = arith.constant 0 : index
    %656 = vector.load %arg8[%c4_524, %c0_525, %c0_526] : memref<7x24x256xf32, #tpu.memory_space<vmem>>, vector<1x24x256xf32>
    %657 = vector.shape_cast %656 : vector<1x24x256xf32> to vector<24x256xf32>
    %658 = vector.broadcast %655 : vector<1x256xf32> to vector<24x256xf32>
    %659 = arith.mulf %658, %657 : vector<24x256xf32>
    %660 = arith.addf %648, %659 : vector<24x256xf32>
    %c47_527 = arith.constant 47 : index
    %c0_528 = arith.constant 0 : index
    %661 = vector.load %arg4[%c47_527, %c0_528] : memref<49x256xf32, #tpu.memory_space<vmem>>, vector<1x256xf32>
    %c5_529 = arith.constant 5 : index
    %c0_530 = arith.constant 0 : index
    %c0_531 = arith.constant 0 : index
    %662 = vector.load %arg8[%c5_529, %c0_530, %c0_531] : memref<7x24x256xf32, #tpu.memory_space<vmem>>, vector<1x24x256xf32>
    %663 = vector.shape_cast %662 : vector<1x24x256xf32> to vector<24x256xf32>
    %664 = vector.broadcast %661 : vector<1x256xf32> to vector<24x256xf32>
    %665 = arith.mulf %664, %663 : vector<24x256xf32>
    %666 = arith.addf %654, %665 : vector<24x256xf32>
    %c48_532 = arith.constant 48 : index
    %c0_533 = arith.constant 0 : index
    %667 = vector.load %arg4[%c48_532, %c0_533] : memref<49x256xf32, #tpu.memory_space<vmem>>, vector<1x256xf32>
    %c6_534 = arith.constant 6 : index
    %c0_535 = arith.constant 0 : index
    %c0_536 = arith.constant 0 : index
    %668 = vector.load %arg8[%c6_534, %c0_535, %c0_536] : memref<7x24x256xf32, #tpu.memory_space<vmem>>, vector<1x24x256xf32>
    %669 = vector.shape_cast %668 : vector<1x24x256xf32> to vector<24x256xf32>
    %670 = vector.broadcast %667 : vector<1x256xf32> to vector<24x256xf32>
    %671 = arith.mulf %670, %669 : vector<24x256xf32>
    %672 = arith.addf %660, %671 : vector<24x256xf32>
    %673 = arith.addf %672, %666 : vector<24x256xf32>
    %c21_i32_537 = arith.constant 21 : i32
    %674 = tpu.dynamic_rotate %673 by %c21_i32_537 dim 0 : vector<24x256xf32>, i32 -> vector<24x256xf32>
    %675 = arith.addf %589, %674 : vector<24x256xf32>
    %676 = arith.addf %675, %632 : vector<24x256xf32>
    %c0_538 = arith.constant 0 : index
    %c0_539 = arith.constant 0 : index
    %677 = vector.load %arg6[%c0_538, %c0_539] : memref<24x256xf32, #tpu.memory_space<vmem>>, vector<24x256xf32>
    %678 = arith.mulf %676, %677 : vector<24x256xf32>
    %c0_540 = arith.constant 0 : index
    %c0_541 = arith.constant 0 : index
    %679 = vector.load %arg5[%c0_540, %c0_541] : memref<24x256xf32, #tpu.memory_space<vmem>>, vector<24x256xf32>
    %680 = arith.addf %678, %679 : vector<24x256xf32>
    %c0_542 = arith.constant 0 : index
    %c0_543 = arith.constant 0 : index
    %681 = vector.load %arg9[%c0_542, %c0_543] : memref<24x256xf32, #tpu.memory_space<vmem>>, vector<24x256xf32>
    %682 = arith.addf %680, %681 : vector<24x256xf32>
    %cst_544 = arith.constant 0.000000e+00 : f32
    %683 = vector.broadcast %cst_544 : f32 to vector<24x256xf32>
    %684 = arith.maximumf %682, %683 : vector<24x256xf32>
    %c0_545 = arith.constant 0 : index
    %c0_546 = arith.constant 0 : index
    %685 = vector.load %arg10[%c0_545, %c0_546] : memref<24x256xf32, #tpu.memory_space<vmem>>, vector<24x256xf32>
    %cst_547 = arith.constant 5.000000e+00 : f32
    %686 = vector.broadcast %cst_547 : f32 to vector<24x256xf32>
    %687 = arith.mulf %686, %685 : vector<24x256xf32>
    %688 = arith.addf %684, %687 : vector<24x256xf32>
    %c0_548 = arith.constant 0 : index
    %c0_549 = arith.constant 0 : index
    %689 = vector.load %arg1[%c0_548, %c0_549] : memref<24x256xf32, #tpu.memory_space<vmem>>, vector<24x256xf32>
    %690 = arith.subf %688, %689 : vector<24x256xf32>
    %c0_550 = arith.constant 0 : index
    %c0_551 = arith.constant 0 : index
    %691 = vector.load %arg9[%c0_550, %c0_551] : memref<24x256xf32, #tpu.memory_space<vmem>>, vector<24x256xf32>
    tpu.vector_store %arg9[%c0_550, %c0_551], %690 {strides = array<i32>} : memref<24x256xf32, #tpu.memory_space<vmem>>, vector<24x256xf32>,
    %c0_552 = arith.constant 0 : index
    %c0_553 = arith.constant 0 : index
    %692 = vector.load %arg9[%c0_552, %c0_553] : memref<24x256xf32, #tpu.memory_space<vmem>>, vector<24x256xf32>
    %c3_i32_554 = arith.constant 3 : i32
    %693 = tpu.dynamic_rotate %692 by %c3_i32_554 dim 1 : vector<24x256xf32>, i32 -> vector<24x256xf32>
    %c0_555 = arith.constant 0 : index
    %c0_556 = arith.constant 0 : index
    %c0_557 = arith.constant 0 : index
    %694 = vector.load %arg8[%c0_555, %c0_556, %c0_557] : memref<7x24x256xf32, #tpu.memory_space<vmem>>, vector<1x24x256xf32>
    %695 = vector.shape_cast %694 : vector<1x24x256xf32> to vector<24x256xf32>
    %696 = vector.shape_cast %693 : vector<24x256xf32> to vector<1x24x256xf32>
    tpu.vector_store %arg8[%c0_555, %c0_556, %c0_557], %696 {strides = array<i32>} : memref<7x24x256xf32, #tpu.memory_space<vmem>>, vector<1x24x256xf32>,
    %c0_558 = arith.constant 0 : index
    %c0_559 = arith.constant 0 : index
    %697 = vector.load %arg9[%c0_558, %c0_559] : memref<24x256xf32, #tpu.memory_space<vmem>>, vector<24x256xf32>
    %c2_i32_560 = arith.constant 2 : i32
    %698 = tpu.dynamic_rotate %697 by %c2_i32_560 dim 1 : vector<24x256xf32>, i32 -> vector<24x256xf32>
    %c1_561 = arith.constant 1 : index
    %c0_562 = arith.constant 0 : index
    %c0_563 = arith.constant 0 : index
    %699 = vector.load %arg8[%c1_561, %c0_562, %c0_563] : memref<7x24x256xf32, #tpu.memory_space<vmem>>, vector<1x24x256xf32>
    %700 = vector.shape_cast %699 : vector<1x24x256xf32> to vector<24x256xf32>
    %701 = vector.shape_cast %698 : vector<24x256xf32> to vector<1x24x256xf32>
    tpu.vector_store %arg8[%c1_561, %c0_562, %c0_563], %701 {strides = array<i32>} : memref<7x24x256xf32, #tpu.memory_space<vmem>>, vector<1x24x256xf32>,
    %c0_564 = arith.constant 0 : index
    %c0_565 = arith.constant 0 : index
    %702 = vector.load %arg9[%c0_564, %c0_565] : memref<24x256xf32, #tpu.memory_space<vmem>>, vector<24x256xf32>
    %c1_i32_566 = arith.constant 1 : i32
    %703 = tpu.dynamic_rotate %702 by %c1_i32_566 dim 1 : vector<24x256xf32>, i32 -> vector<24x256xf32>
    %c2_567 = arith.constant 2 : index
    %c0_568 = arith.constant 0 : index
    %c0_569 = arith.constant 0 : index
    %704 = vector.load %arg8[%c2_567, %c0_568, %c0_569] : memref<7x24x256xf32, #tpu.memory_space<vmem>>, vector<1x24x256xf32>
    %705 = vector.shape_cast %704 : vector<1x24x256xf32> to vector<24x256xf32>
    %706 = vector.shape_cast %703 : vector<24x256xf32> to vector<1x24x256xf32>
    tpu.vector_store %arg8[%c2_567, %c0_568, %c0_569], %706 {strides = array<i32>} : memref<7x24x256xf32, #tpu.memory_space<vmem>>, vector<1x24x256xf32>,
    %c0_570 = arith.constant 0 : index
    %c0_571 = arith.constant 0 : index
    %707 = vector.load %arg9[%c0_570, %c0_571] : memref<24x256xf32, #tpu.memory_space<vmem>>, vector<24x256xf32>
    %c3_572 = arith.constant 3 : index
    %c0_573 = arith.constant 0 : index
    %c0_574 = arith.constant 0 : index
    %708 = vector.load %arg8[%c3_572, %c0_573, %c0_574] : memref<7x24x256xf32, #tpu.memory_space<vmem>>, vector<1x24x256xf32>
    %709 = vector.shape_cast %708 : vector<1x24x256xf32> to vector<24x256xf32>
    %710 = vector.shape_cast %707 : vector<24x256xf32> to vector<1x24x256xf32>
    tpu.vector_store %arg8[%c3_572, %c0_573, %c0_574], %710 {strides = array<i32>} : memref<7x24x256xf32, #tpu.memory_space<vmem>>, vector<1x24x256xf32>,
    %c0_575 = arith.constant 0 : index
    %c0_576 = arith.constant 0 : index
    %711 = vector.load %arg9[%c0_575, %c0_576] : memref<24x256xf32, #tpu.memory_space<vmem>>, vector<24x256xf32>
    %c255_i32_577 = arith.constant 255 : i32
    %712 = tpu.dynamic_rotate %711 by %c255_i32_577 dim 1 : vector<24x256xf32>, i32 -> vector<24x256xf32>
    %c4_578 = arith.constant 4 : index
    %c0_579 = arith.constant 0 : index
    %c0_580 = arith.constant 0 : index
    %713 = vector.load %arg8[%c4_578, %c0_579, %c0_580] : memref<7x24x256xf32, #tpu.memory_space<vmem>>, vector<1x24x256xf32>
    %714 = vector.shape_cast %713 : vector<1x24x256xf32> to vector<24x256xf32>
    %715 = vector.shape_cast %712 : vector<24x256xf32> to vector<1x24x256xf32>
    tpu.vector_store %arg8[%c4_578, %c0_579, %c0_580], %715 {strides = array<i32>} : memref<7x24x256xf32, #tpu.memory_space<vmem>>, vector<1x24x256xf32>,
    %c0_581 = arith.constant 0 : index
    %c0_582 = arith.constant 0 : index
    %716 = vector.load %arg9[%c0_581, %c0_582] : memref<24x256xf32, #tpu.memory_space<vmem>>, vector<24x256xf32>
    %c254_i32_583 = arith.constant 254 : i32
    %717 = tpu.dynamic_rotate %716 by %c254_i32_583 dim 1 : vector<24x256xf32>, i32 -> vector<24x256xf32>
    %c5_584 = arith.constant 5 : index
    %c0_585 = arith.constant 0 : index
    %c0_586 = arith.constant 0 : index
    %718 = vector.load %arg8[%c5_584, %c0_585, %c0_586] : memref<7x24x256xf32, #tpu.memory_space<vmem>>, vector<1x24x256xf32>
    %719 = vector.shape_cast %718 : vector<1x24x256xf32> to vector<24x256xf32>
    %720 = vector.shape_cast %717 : vector<24x256xf32> to vector<1x24x256xf32>
    tpu.vector_store %arg8[%c5_584, %c0_585, %c0_586], %720 {strides = array<i32>} : memref<7x24x256xf32, #tpu.memory_space<vmem>>, vector<1x24x256xf32>,
    %c0_587 = arith.constant 0 : index
    %c0_588 = arith.constant 0 : index
    %721 = vector.load %arg9[%c0_587, %c0_588] : memref<24x256xf32, #tpu.memory_space<vmem>>, vector<24x256xf32>
    %c253_i32_589 = arith.constant 253 : i32
    %722 = tpu.dynamic_rotate %721 by %c253_i32_589 dim 1 : vector<24x256xf32>, i32 -> vector<24x256xf32>
    %c6_590 = arith.constant 6 : index
    %c0_591 = arith.constant 0 : index
    %c0_592 = arith.constant 0 : index
    %723 = vector.load %arg8[%c6_590, %c0_591, %c0_592] : memref<7x24x256xf32, #tpu.memory_space<vmem>>, vector<1x24x256xf32>
    %724 = vector.shape_cast %723 : vector<1x24x256xf32> to vector<24x256xf32>
    %725 = vector.shape_cast %722 : vector<24x256xf32> to vector<1x24x256xf32>
    tpu.vector_store %arg8[%c6_590, %c0_591, %c0_592], %725 {strides = array<i32>} : memref<7x24x256xf32, #tpu.memory_space<vmem>>, vector<1x24x256xf32>,
    %c0_593 = arith.constant 0 : index
    %c0_594 = arith.constant 0 : index
    %726 = vector.load %arg2[%c0_593, %c0_594] : memref<49x256xf32, #tpu.memory_space<vmem>>, vector<1x256xf32>
    %c0_595 = arith.constant 0 : index
    %c0_596 = arith.constant 0 : index
    %c0_597 = arith.constant 0 : index
    %727 = vector.load %arg8[%c0_595, %c0_596, %c0_597] : memref<7x24x256xf32, #tpu.memory_space<vmem>>, vector<1x24x256xf32>
    %728 = vector.shape_cast %727 : vector<1x24x256xf32> to vector<24x256xf32>
    %729 = vector.broadcast %726 : vector<1x256xf32> to vector<24x256xf32>
    %730 = arith.mulf %729, %728 : vector<24x256xf32>
    %c1_598 = arith.constant 1 : index
    %c0_599 = arith.constant 0 : index
    %731 = vector.load %arg2[%c1_598, %c0_599] : memref<49x256xf32, #tpu.memory_space<vmem>>, vector<1x256xf32>
    %c1_600 = arith.constant 1 : index
    %c0_601 = arith.constant 0 : index
    %c0_602 = arith.constant 0 : index
    %732 = vector.load %arg8[%c1_600, %c0_601, %c0_602] : memref<7x24x256xf32, #tpu.memory_space<vmem>>, vector<1x24x256xf32>
    %733 = vector.shape_cast %732 : vector<1x24x256xf32> to vector<24x256xf32>
    %734 = vector.broadcast %731 : vector<1x256xf32> to vector<24x256xf32>
    %735 = arith.mulf %734, %733 : vector<24x256xf32>
    %c2_603 = arith.constant 2 : index
    %c0_604 = arith.constant 0 : index
    %736 = vector.load %arg2[%c2_603, %c0_604] : memref<49x256xf32, #tpu.memory_space<vmem>>, vector<1x256xf32>
    %c2_605 = arith.constant 2 : index
    %c0_606 = arith.constant 0 : index
    %c0_607 = arith.constant 0 : index
    %737 = vector.load %arg8[%c2_605, %c0_606, %c0_607] : memref<7x24x256xf32, #tpu.memory_space<vmem>>, vector<1x24x256xf32>
    %738 = vector.shape_cast %737 : vector<1x24x256xf32> to vector<24x256xf32>
    %739 = vector.broadcast %736 : vector<1x256xf32> to vector<24x256xf32>
    %740 = arith.mulf %739, %738 : vector<24x256xf32>
    %741 = arith.addf %730, %740 : vector<24x256xf32>
    %c3_608 = arith.constant 3 : index
    %c0_609 = arith.constant 0 : index
    %742 = vector.load %arg2[%c3_608, %c0_609] : memref<49x256xf32, #tpu.memory_space<vmem>>, vector<1x256xf32>
    %c3_610 = arith.constant 3 : index
    %c0_611 = arith.constant 0 : index
    %c0_612 = arith.constant 0 : index
    %743 = vector.load %arg8[%c3_610, %c0_611, %c0_612] : memref<7x24x256xf32, #tpu.memory_space<vmem>>, vector<1x24x256xf32>
    %744 = vector.shape_cast %743 : vector<1x24x256xf32> to vector<24x256xf32>
    %745 = vector.broadcast %742 : vector<1x256xf32> to vector<24x256xf32>
    %746 = arith.mulf %745, %744 : vector<24x256xf32>
    %747 = arith.addf %735, %746 : vector<24x256xf32>
    %c4_613 = arith.constant 4 : index
    %c0_614 = arith.constant 0 : index
    %748 = vector.load %arg2[%c4_613, %c0_614] : memref<49x256xf32, #tpu.memory_space<vmem>>, vector<1x256xf32>
    %c4_615 = arith.constant 4 : index
    %c0_616 = arith.constant 0 : index
    %c0_617 = arith.constant 0 : index
    %749 = vector.load %arg8[%c4_615, %c0_616, %c0_617] : memref<7x24x256xf32, #tpu.memory_space<vmem>>, vector<1x24x256xf32>
    %750 = vector.shape_cast %749 : vector<1x24x256xf32> to vector<24x256xf32>
    %751 = vector.broadcast %748 : vector<1x256xf32> to vector<24x256xf32>
    %752 = arith.mulf %751, %750 : vector<24x256xf32>
    %753 = arith.addf %741, %752 : vector<24x256xf32>
    %c5_618 = arith.constant 5 : index
    %c0_619 = arith.constant 0 : index
    %754 = vector.load %arg2[%c5_618, %c0_619] : memref<49x256xf32, #tpu.memory_space<vmem>>, vector<1x256xf32>
    %c5_620 = arith.constant 5 : index
    %c0_621 = arith.constant 0 : index
    %c0_622 = arith.constant 0 : index
    %755 = vector.load %arg8[%c5_620, %c0_621, %c0_622] : memref<7x24x256xf32, #tpu.memory_space<vmem>>, vector<1x24x256xf32>
    %756 = vector.shape_cast %755 : vector<1x24x256xf32> to vector<24x256xf32>
    %757 = vector.broadcast %754 : vector<1x256xf32> to vector<24x256xf32>
    %758 = arith.mulf %757, %756 : vector<24x256xf32>
    %759 = arith.addf %747, %758 : vector<24x256xf32>
    %c6_623 = arith.constant 6 : index
    %c0_624 = arith.constant 0 : index
    %760 = vector.load %arg2[%c6_623, %c0_624] : memref<49x256xf32, #tpu.memory_space<vmem>>, vector<1x256xf32>
    %c6_625 = arith.constant 6 : index
    %c0_626 = arith.constant 0 : index
    %c0_627 = arith.constant 0 : index
    %761 = vector.load %arg8[%c6_625, %c0_626, %c0_627] : memref<7x24x256xf32, #tpu.memory_space<vmem>>, vector<1x24x256xf32>
    %762 = vector.shape_cast %761 : vector<1x24x256xf32> to vector<24x256xf32>
    %763 = vector.broadcast %760 : vector<1x256xf32> to vector<24x256xf32>
    %764 = arith.mulf %763, %762 : vector<24x256xf32>
    %765 = arith.addf %753, %764 : vector<24x256xf32>
    %766 = arith.addf %765, %759 : vector<24x256xf32>
    %c3_i32_628 = arith.constant 3 : i32
    %767 = tpu.dynamic_rotate %766 by %c3_i32_628 dim 0 : vector<24x256xf32>, i32 -> vector<24x256xf32>
    %c7_629 = arith.constant 7 : index
    %c0_630 = arith.constant 0 : index
    %768 = vector.load %arg2[%c7_629, %c0_630] : memref<49x256xf32, #tpu.memory_space<vmem>>, vector<1x256xf32>
    %c0_631 = arith.constant 0 : index
    %c0_632 = arith.constant 0 : index
    %c0_633 = arith.constant 0 : index
    %769 = vector.load %arg8[%c0_631, %c0_632, %c0_633] : memref<7x24x256xf32, #tpu.memory_space<vmem>>, vector<1x24x256xf32>
    %770 = vector.shape_cast %769 : vector<1x24x256xf32> to vector<24x256xf32>
    %771 = vector.broadcast %768 : vector<1x256xf32> to vector<24x256xf32>
    %772 = arith.mulf %771, %770 : vector<24x256xf32>
    %c8_634 = arith.constant 8 : index
    %c0_635 = arith.constant 0 : index
    %773 = vector.load %arg2[%c8_634, %c0_635] : memref<49x256xf32, #tpu.memory_space<vmem>>, vector<1x256xf32>
    %c1_636 = arith.constant 1 : index
    %c0_637 = arith.constant 0 : index
    %c0_638 = arith.constant 0 : index
    %774 = vector.load %arg8[%c1_636, %c0_637, %c0_638] : memref<7x24x256xf32, #tpu.memory_space<vmem>>, vector<1x24x256xf32>
    %775 = vector.shape_cast %774 : vector<1x24x256xf32> to vector<24x256xf32>
    %776 = vector.broadcast %773 : vector<1x256xf32> to vector<24x256xf32>
    %777 = arith.mulf %776, %775 : vector<24x256xf32>
    %c9_639 = arith.constant 9 : index
    %c0_640 = arith.constant 0 : index
    %778 = vector.load %arg2[%c9_639, %c0_640] : memref<49x256xf32, #tpu.memory_space<vmem>>, vector<1x256xf32>
    %c2_641 = arith.constant 2 : index
    %c0_642 = arith.constant 0 : index
    %c0_643 = arith.constant 0 : index
    %779 = vector.load %arg8[%c2_641, %c0_642, %c0_643] : memref<7x24x256xf32, #tpu.memory_space<vmem>>, vector<1x24x256xf32>
    %780 = vector.shape_cast %779 : vector<1x24x256xf32> to vector<24x256xf32>
    %781 = vector.broadcast %778 : vector<1x256xf32> to vector<24x256xf32>
    %782 = arith.mulf %781, %780 : vector<24x256xf32>
    %783 = arith.addf %772, %782 : vector<24x256xf32>
    %c10_644 = arith.constant 10 : index
    %c0_645 = arith.constant 0 : index
    %784 = vector.load %arg2[%c10_644, %c0_645] : memref<49x256xf32, #tpu.memory_space<vmem>>, vector<1x256xf32>
    %c3_646 = arith.constant 3 : index
    %c0_647 = arith.constant 0 : index
    %c0_648 = arith.constant 0 : index
    %785 = vector.load %arg8[%c3_646, %c0_647, %c0_648] : memref<7x24x256xf32, #tpu.memory_space<vmem>>, vector<1x24x256xf32>
    %786 = vector.shape_cast %785 : vector<1x24x256xf32> to vector<24x256xf32>
    %787 = vector.broadcast %784 : vector<1x256xf32> to vector<24x256xf32>
    %788 = arith.mulf %787, %786 : vector<24x256xf32>
    %789 = arith.addf %777, %788 : vector<24x256xf32>
    %c11_649 = arith.constant 11 : index
    %c0_650 = arith.constant 0 : index
    %790 = vector.load %arg2[%c11_649, %c0_650] : memref<49x256xf32, #tpu.memory_space<vmem>>, vector<1x256xf32>
    %c4_651 = arith.constant 4 : index
    %c0_652 = arith.constant 0 : index
    %c0_653 = arith.constant 0 : index
    %791 = vector.load %arg8[%c4_651, %c0_652, %c0_653] : memref<7x24x256xf32, #tpu.memory_space<vmem>>, vector<1x24x256xf32>
    %792 = vector.shape_cast %791 : vector<1x24x256xf32> to vector<24x256xf32>
    %793 = vector.broadcast %790 : vector<1x256xf32> to vector<24x256xf32>
    %794 = arith.mulf %793, %792 : vector<24x256xf32>
    %795 = arith.addf %783, %794 : vector<24x256xf32>
    %c12_654 = arith.constant 12 : index
    %c0_655 = arith.constant 0 : index
    %796 = vector.load %arg2[%c12_654, %c0_655] : memref<49x256xf32, #tpu.memory_space<vmem>>, vector<1x256xf32>
    %c5_656 = arith.constant 5 : index
    %c0_657 = arith.constant 0 : index
    %c0_658 = arith.constant 0 : index
    %797 = vector.load %arg8[%c5_656, %c0_657, %c0_658] : memref<7x24x256xf32, #tpu.memory_space<vmem>>, vector<1x24x256xf32>
    %798 = vector.shape_cast %797 : vector<1x24x256xf32> to vector<24x256xf32>
    %799 = vector.broadcast %796 : vector<1x256xf32> to vector<24x256xf32>
    %800 = arith.mulf %799, %798 : vector<24x256xf32>
    %801 = arith.addf %789, %800 : vector<24x256xf32>
    %c13_659 = arith.constant 13 : index
    %c0_660 = arith.constant 0 : index
    %802 = vector.load %arg2[%c13_659, %c0_660] : memref<49x256xf32, #tpu.memory_space<vmem>>, vector<1x256xf32>
    %c6_661 = arith.constant 6 : index
    %c0_662 = arith.constant 0 : index
    %c0_663 = arith.constant 0 : index
    %803 = vector.load %arg8[%c6_661, %c0_662, %c0_663] : memref<7x24x256xf32, #tpu.memory_space<vmem>>, vector<1x24x256xf32>
    %804 = vector.shape_cast %803 : vector<1x24x256xf32> to vector<24x256xf32>
    %805 = vector.broadcast %802 : vector<1x256xf32> to vector<24x256xf32>
    %806 = arith.mulf %805, %804 : vector<24x256xf32>
    %807 = arith.addf %795, %806 : vector<24x256xf32>
    %808 = arith.addf %807, %801 : vector<24x256xf32>
    %c2_i32_664 = arith.constant 2 : i32
    %809 = tpu.dynamic_rotate %808 by %c2_i32_664 dim 0 : vector<24x256xf32>, i32 -> vector<24x256xf32>
    %c14_665 = arith.constant 14 : index
    %c0_666 = arith.constant 0 : index
    %810 = vector.load %arg2[%c14_665, %c0_666] : memref<49x256xf32, #tpu.memory_space<vmem>>, vector<1x256xf32>
    %c0_667 = arith.constant 0 : index
    %c0_668 = arith.constant 0 : index
    %c0_669 = arith.constant 0 : index
    %811 = vector.load %arg8[%c0_667, %c0_668, %c0_669] : memref<7x24x256xf32, #tpu.memory_space<vmem>>, vector<1x24x256xf32>
    %812 = vector.shape_cast %811 : vector<1x24x256xf32> to vector<24x256xf32>
    %813 = vector.broadcast %810 : vector<1x256xf32> to vector<24x256xf32>
    %814 = arith.mulf %813, %812 : vector<24x256xf32>
    %c15_670 = arith.constant 15 : index
    %c0_671 = arith.constant 0 : index
    %815 = vector.load %arg2[%c15_670, %c0_671] : memref<49x256xf32, #tpu.memory_space<vmem>>, vector<1x256xf32>
    %c1_672 = arith.constant 1 : index
    %c0_673 = arith.constant 0 : index
    %c0_674 = arith.constant 0 : index
    %816 = vector.load %arg8[%c1_672, %c0_673, %c0_674] : memref<7x24x256xf32, #tpu.memory_space<vmem>>, vector<1x24x256xf32>
    %817 = vector.shape_cast %816 : vector<1x24x256xf32> to vector<24x256xf32>
    %818 = vector.broadcast %815 : vector<1x256xf32> to vector<24x256xf32>
    %819 = arith.mulf %818, %817 : vector<24x256xf32>
    %c16_675 = arith.constant 16 : index
    %c0_676 = arith.constant 0 : index
    %820 = vector.load %arg2[%c16_675, %c0_676] : memref<49x256xf32, #tpu.memory_space<vmem>>, vector<1x256xf32>
    %c2_677 = arith.constant 2 : index
    %c0_678 = arith.constant 0 : index
    %c0_679 = arith.constant 0 : index
    %821 = vector.load %arg8[%c2_677, %c0_678, %c0_679] : memref<7x24x256xf32, #tpu.memory_space<vmem>>, vector<1x24x256xf32>
    %822 = vector.shape_cast %821 : vector<1x24x256xf32> to vector<24x256xf32>
    %823 = vector.broadcast %820 : vector<1x256xf32> to vector<24x256xf32>
    %824 = arith.mulf %823, %822 : vector<24x256xf32>
    %825 = arith.addf %814, %824 : vector<24x256xf32>
    %c17_680 = arith.constant 17 : index
    %c0_681 = arith.constant 0 : index
    %826 = vector.load %arg2[%c17_680, %c0_681] : memref<49x256xf32, #tpu.memory_space<vmem>>, vector<1x256xf32>
    %c3_682 = arith.constant 3 : index
    %c0_683 = arith.constant 0 : index
    %c0_684 = arith.constant 0 : index
    %827 = vector.load %arg8[%c3_682, %c0_683, %c0_684] : memref<7x24x256xf32, #tpu.memory_space<vmem>>, vector<1x24x256xf32>
    %828 = vector.shape_cast %827 : vector<1x24x256xf32> to vector<24x256xf32>
    %829 = vector.broadcast %826 : vector<1x256xf32> to vector<24x256xf32>
    %830 = arith.mulf %829, %828 : vector<24x256xf32>
    %831 = arith.addf %819, %830 : vector<24x256xf32>
    %c18_685 = arith.constant 18 : index
    %c0_686 = arith.constant 0 : index
    %832 = vector.load %arg2[%c18_685, %c0_686] : memref<49x256xf32, #tpu.memory_space<vmem>>, vector<1x256xf32>
    %c4_687 = arith.constant 4 : index
    %c0_688 = arith.constant 0 : index
    %c0_689 = arith.constant 0 : index
    %833 = vector.load %arg8[%c4_687, %c0_688, %c0_689] : memref<7x24x256xf32, #tpu.memory_space<vmem>>, vector<1x24x256xf32>
    %834 = vector.shape_cast %833 : vector<1x24x256xf32> to vector<24x256xf32>
    %835 = vector.broadcast %832 : vector<1x256xf32> to vector<24x256xf32>
    %836 = arith.mulf %835, %834 : vector<24x256xf32>
    %837 = arith.addf %825, %836 : vector<24x256xf32>
    %c19_690 = arith.constant 19 : index
    %c0_691 = arith.constant 0 : index
    %838 = vector.load %arg2[%c19_690, %c0_691] : memref<49x256xf32, #tpu.memory_space<vmem>>, vector<1x256xf32>
    %c5_692 = arith.constant 5 : index
    %c0_693 = arith.constant 0 : index
    %c0_694 = arith.constant 0 : index
    %839 = vector.load %arg8[%c5_692, %c0_693, %c0_694] : memref<7x24x256xf32, #tpu.memory_space<vmem>>, vector<1x24x256xf32>
    %840 = vector.shape_cast %839 : vector<1x24x256xf32> to vector<24x256xf32>
    %841 = vector.broadcast %838 : vector<1x256xf32> to vector<24x256xf32>
    %842 = arith.mulf %841, %840 : vector<24x256xf32>
    %843 = arith.addf %831, %842 : vector<24x256xf32>
    %c20_695 = arith.constant 20 : index
    %c0_696 = arith.constant 0 : index
    %844 = vector.load %arg2[%c20_695, %c0_696] : memref<49x256xf32, #tpu.memory_space<vmem>>, vector<1x256xf32>
    %c6_697 = arith.constant 6 : index
    %c0_698 = arith.constant 0 : index
    %c0_699 = arith.constant 0 : index
    %845 = vector.load %arg8[%c6_697, %c0_698, %c0_699] : memref<7x24x256xf32, #tpu.memory_space<vmem>>, vector<1x24x256xf32>
    %846 = vector.shape_cast %845 : vector<1x24x256xf32> to vector<24x256xf32>
    %847 = vector.broadcast %844 : vector<1x256xf32> to vector<24x256xf32>
    %848 = arith.mulf %847, %846 : vector<24x256xf32>
    %849 = arith.addf %837, %848 : vector<24x256xf32>
    %850 = arith.addf %849, %843 : vector<24x256xf32>
    %c1_i32_700 = arith.constant 1 : i32
    %851 = tpu.dynamic_rotate %850 by %c1_i32_700 dim 0 : vector<24x256xf32>, i32 -> vector<24x256xf32>
    %852 = arith.addf %767, %851 : vector<24x256xf32>
    %c21_701 = arith.constant 21 : index
    %c0_702 = arith.constant 0 : index
    %853 = vector.load %arg2[%c21_701, %c0_702] : memref<49x256xf32, #tpu.memory_space<vmem>>, vector<1x256xf32>
    %c0_703 = arith.constant 0 : index
    %c0_704 = arith.constant 0 : index
    %c0_705 = arith.constant 0 : index
    %854 = vector.load %arg8[%c0_703, %c0_704, %c0_705] : memref<7x24x256xf32, #tpu.memory_space<vmem>>, vector<1x24x256xf32>
    %855 = vector.shape_cast %854 : vector<1x24x256xf32> to vector<24x256xf32>
    %856 = vector.broadcast %853 : vector<1x256xf32> to vector<24x256xf32>
    %857 = arith.mulf %856, %855 : vector<24x256xf32>
    %c22_706 = arith.constant 22 : index
    %c0_707 = arith.constant 0 : index
    %858 = vector.load %arg2[%c22_706, %c0_707] : memref<49x256xf32, #tpu.memory_space<vmem>>, vector<1x256xf32>
    %c1_708 = arith.constant 1 : index
    %c0_709 = arith.constant 0 : index
    %c0_710 = arith.constant 0 : index
    %859 = vector.load %arg8[%c1_708, %c0_709, %c0_710] : memref<7x24x256xf32, #tpu.memory_space<vmem>>, vector<1x24x256xf32>
    %860 = vector.shape_cast %859 : vector<1x24x256xf32> to vector<24x256xf32>
    %861 = vector.broadcast %858 : vector<1x256xf32> to vector<24x256xf32>
    %862 = arith.mulf %861, %860 : vector<24x256xf32>
    %c23_711 = arith.constant 23 : index
    %c0_712 = arith.constant 0 : index
    %863 = vector.load %arg2[%c23_711, %c0_712] : memref<49x256xf32, #tpu.memory_space<vmem>>, vector<1x256xf32>
    %c2_713 = arith.constant 2 : index
    %c0_714 = arith.constant 0 : index
    %c0_715 = arith.constant 0 : index
    %864 = vector.load %arg8[%c2_713, %c0_714, %c0_715] : memref<7x24x256xf32, #tpu.memory_space<vmem>>, vector<1x24x256xf32>
    %865 = vector.shape_cast %864 : vector<1x24x256xf32> to vector<24x256xf32>
    %866 = vector.broadcast %863 : vector<1x256xf32> to vector<24x256xf32>
    %867 = arith.mulf %866, %865 : vector<24x256xf32>
    %868 = arith.addf %857, %867 : vector<24x256xf32>
    %c24_716 = arith.constant 24 : index
    %c0_717 = arith.constant 0 : index
    %869 = vector.load %arg2[%c24_716, %c0_717] : memref<49x256xf32, #tpu.memory_space<vmem>>, vector<1x256xf32>
    %c3_718 = arith.constant 3 : index
    %c0_719 = arith.constant 0 : index
    %c0_720 = arith.constant 0 : index
    %870 = vector.load %arg8[%c3_718, %c0_719, %c0_720] : memref<7x24x256xf32, #tpu.memory_space<vmem>>, vector<1x24x256xf32>
    %871 = vector.shape_cast %870 : vector<1x24x256xf32> to vector<24x256xf32>
    %872 = vector.broadcast %869 : vector<1x256xf32> to vector<24x256xf32>
    %873 = arith.mulf %872, %871 : vector<24x256xf32>
    %874 = arith.addf %862, %873 : vector<24x256xf32>
    %c25_721 = arith.constant 25 : index
    %c0_722 = arith.constant 0 : index
    %875 = vector.load %arg2[%c25_721, %c0_722] : memref<49x256xf32, #tpu.memory_space<vmem>>, vector<1x256xf32>
    %c4_723 = arith.constant 4 : index
    %c0_724 = arith.constant 0 : index
    %c0_725 = arith.constant 0 : index
    %876 = vector.load %arg8[%c4_723, %c0_724, %c0_725] : memref<7x24x256xf32, #tpu.memory_space<vmem>>, vector<1x24x256xf32>
    %877 = vector.shape_cast %876 : vector<1x24x256xf32> to vector<24x256xf32>
    %878 = vector.broadcast %875 : vector<1x256xf32> to vector<24x256xf32>
    %879 = arith.mulf %878, %877 : vector<24x256xf32>
    %880 = arith.addf %868, %879 : vector<24x256xf32>
    %c26_726 = arith.constant 26 : index
    %c0_727 = arith.constant 0 : index
    %881 = vector.load %arg2[%c26_726, %c0_727] : memref<49x256xf32, #tpu.memory_space<vmem>>, vector<1x256xf32>
    %c5_728 = arith.constant 5 : index
    %c0_729 = arith.constant 0 : index
    %c0_730 = arith.constant 0 : index
    %882 = vector.load %arg8[%c5_728, %c0_729, %c0_730] : memref<7x24x256xf32, #tpu.memory_space<vmem>>, vector<1x24x256xf32>
    %883 = vector.shape_cast %882 : vector<1x24x256xf32> to vector<24x256xf32>
    %884 = vector.broadcast %881 : vector<1x256xf32> to vector<24x256xf32>
    %885 = arith.mulf %884, %883 : vector<24x256xf32>
    %886 = arith.addf %874, %885 : vector<24x256xf32>
    %c27_731 = arith.constant 27 : index
    %c0_732 = arith.constant 0 : index
    %887 = vector.load %arg2[%c27_731, %c0_732] : memref<49x256xf32, #tpu.memory_space<vmem>>, vector<1x256xf32>
    %c6_733 = arith.constant 6 : index
    %c0_734 = arith.constant 0 : index
    %c0_735 = arith.constant 0 : index
    %888 = vector.load %arg8[%c6_733, %c0_734, %c0_735] : memref<7x24x256xf32, #tpu.memory_space<vmem>>, vector<1x24x256xf32>
    %889 = vector.shape_cast %888 : vector<1x24x256xf32> to vector<24x256xf32>
    %890 = vector.broadcast %887 : vector<1x256xf32> to vector<24x256xf32>
    %891 = arith.mulf %890, %889 : vector<24x256xf32>
    %892 = arith.addf %880, %891 : vector<24x256xf32>
    %893 = arith.addf %892, %886 : vector<24x256xf32>
    %894 = arith.addf %809, %893 : vector<24x256xf32>
    %c28_736 = arith.constant 28 : index
    %c0_737 = arith.constant 0 : index
    %895 = vector.load %arg2[%c28_736, %c0_737] : memref<49x256xf32, #tpu.memory_space<vmem>>, vector<1x256xf32>
    %c0_738 = arith.constant 0 : index
    %c0_739 = arith.constant 0 : index
    %c0_740 = arith.constant 0 : index
    %896 = vector.load %arg8[%c0_738, %c0_739, %c0_740] : memref<7x24x256xf32, #tpu.memory_space<vmem>>, vector<1x24x256xf32>
    %897 = vector.shape_cast %896 : vector<1x24x256xf32> to vector<24x256xf32>
    %898 = vector.broadcast %895 : vector<1x256xf32> to vector<24x256xf32>
    %899 = arith.mulf %898, %897 : vector<24x256xf32>
    %c29_741 = arith.constant 29 : index
    %c0_742 = arith.constant 0 : index
    %900 = vector.load %arg2[%c29_741, %c0_742] : memref<49x256xf32, #tpu.memory_space<vmem>>, vector<1x256xf32>
    %c1_743 = arith.constant 1 : index
    %c0_744 = arith.constant 0 : index
    %c0_745 = arith.constant 0 : index
    %901 = vector.load %arg8[%c1_743, %c0_744, %c0_745] : memref<7x24x256xf32, #tpu.memory_space<vmem>>, vector<1x24x256xf32>
    %902 = vector.shape_cast %901 : vector<1x24x256xf32> to vector<24x256xf32>
    %903 = vector.broadcast %900 : vector<1x256xf32> to vector<24x256xf32>
    %904 = arith.mulf %903, %902 : vector<24x256xf32>
    %c30_746 = arith.constant 30 : index
    %c0_747 = arith.constant 0 : index
    %905 = vector.load %arg2[%c30_746, %c0_747] : memref<49x256xf32, #tpu.memory_space<vmem>>, vector<1x256xf32>
    %c2_748 = arith.constant 2 : index
    %c0_749 = arith.constant 0 : index
    %c0_750 = arith.constant 0 : index
    %906 = vector.load %arg8[%c2_748, %c0_749, %c0_750] : memref<7x24x256xf32, #tpu.memory_space<vmem>>, vector<1x24x256xf32>
    %907 = vector.shape_cast %906 : vector<1x24x256xf32> to vector<24x256xf32>
    %908 = vector.broadcast %905 : vector<1x256xf32> to vector<24x256xf32>
    %909 = arith.mulf %908, %907 : vector<24x256xf32>
    %910 = arith.addf %899, %909 : vector<24x256xf32>
    %c31_751 = arith.constant 31 : index
    %c0_752 = arith.constant 0 : index
    %911 = vector.load %arg2[%c31_751, %c0_752] : memref<49x256xf32, #tpu.memory_space<vmem>>, vector<1x256xf32>
    %c3_753 = arith.constant 3 : index
    %c0_754 = arith.constant 0 : index
    %c0_755 = arith.constant 0 : index
    %912 = vector.load %arg8[%c3_753, %c0_754, %c0_755] : memref<7x24x256xf32, #tpu.memory_space<vmem>>, vector<1x24x256xf32>
    %913 = vector.shape_cast %912 : vector<1x24x256xf32> to vector<24x256xf32>
    %914 = vector.broadcast %911 : vector<1x256xf32> to vector<24x256xf32>
    %915 = arith.mulf %914, %913 : vector<24x256xf32>
    %916 = arith.addf %904, %915 : vector<24x256xf32>
    %c32_756 = arith.constant 32 : index
    %c0_757 = arith.constant 0 : index
    %917 = vector.load %arg2[%c32_756, %c0_757] : memref<49x256xf32, #tpu.memory_space<vmem>>, vector<1x256xf32>
    %c4_758 = arith.constant 4 : index
    %c0_759 = arith.constant 0 : index
    %c0_760 = arith.constant 0 : index
    %918 = vector.load %arg8[%c4_758, %c0_759, %c0_760] : memref<7x24x256xf32, #tpu.memory_space<vmem>>, vector<1x24x256xf32>
    %919 = vector.shape_cast %918 : vector<1x24x256xf32> to vector<24x256xf32>
    %920 = vector.broadcast %917 : vector<1x256xf32> to vector<24x256xf32>
    %921 = arith.mulf %920, %919 : vector<24x256xf32>
    %922 = arith.addf %910, %921 : vector<24x256xf32>
    %c33_761 = arith.constant 33 : index
    %c0_762 = arith.constant 0 : index
    %923 = vector.load %arg2[%c33_761, %c0_762] : memref<49x256xf32, #tpu.memory_space<vmem>>, vector<1x256xf32>
    %c5_763 = arith.constant 5 : index
    %c0_764 = arith.constant 0 : index
    %c0_765 = arith.constant 0 : index
    %924 = vector.load %arg8[%c5_763, %c0_764, %c0_765] : memref<7x24x256xf32, #tpu.memory_space<vmem>>, vector<1x24x256xf32>
    %925 = vector.shape_cast %924 : vector<1x24x256xf32> to vector<24x256xf32>
    %926 = vector.broadcast %923 : vector<1x256xf32> to vector<24x256xf32>
    %927 = arith.mulf %926, %925 : vector<24x256xf32>
    %928 = arith.addf %916, %927 : vector<24x256xf32>
    %c34_766 = arith.constant 34 : index
    %c0_767 = arith.constant 0 : index
    %929 = vector.load %arg2[%c34_766, %c0_767] : memref<49x256xf32, #tpu.memory_space<vmem>>, vector<1x256xf32>
    %c6_768 = arith.constant 6 : index
    %c0_769 = arith.constant 0 : index
    %c0_770 = arith.constant 0 : index
    %930 = vector.load %arg8[%c6_768, %c0_769, %c0_770] : memref<7x24x256xf32, #tpu.memory_space<vmem>>, vector<1x24x256xf32>
    %931 = vector.shape_cast %930 : vector<1x24x256xf32> to vector<24x256xf32>
    %932 = vector.broadcast %929 : vector<1x256xf32> to vector<24x256xf32>
    %933 = arith.mulf %932, %931 : vector<24x256xf32>
    %934 = arith.addf %922, %933 : vector<24x256xf32>
    %935 = arith.addf %934, %928 : vector<24x256xf32>
    %c23_i32_771 = arith.constant 23 : i32
    %936 = tpu.dynamic_rotate %935 by %c23_i32_771 dim 0 : vector<24x256xf32>, i32 -> vector<24x256xf32>
    %937 = arith.addf %852, %936 : vector<24x256xf32>
    %c35_772 = arith.constant 35 : index
    %c0_773 = arith.constant 0 : index
    %938 = vector.load %arg2[%c35_772, %c0_773] : memref<49x256xf32, #tpu.memory_space<vmem>>, vector<1x256xf32>
    %c0_774 = arith.constant 0 : index
    %c0_775 = arith.constant 0 : index
    %c0_776 = arith.constant 0 : index
    %939 = vector.load %arg8[%c0_774, %c0_775, %c0_776] : memref<7x24x256xf32, #tpu.memory_space<vmem>>, vector<1x24x256xf32>
    %940 = vector.shape_cast %939 : vector<1x24x256xf32> to vector<24x256xf32>
    %941 = vector.broadcast %938 : vector<1x256xf32> to vector<24x256xf32>
    %942 = arith.mulf %941, %940 : vector<24x256xf32>
    %c36_777 = arith.constant 36 : index
    %c0_778 = arith.constant 0 : index
    %943 = vector.load %arg2[%c36_777, %c0_778] : memref<49x256xf32, #tpu.memory_space<vmem>>, vector<1x256xf32>
    %c1_779 = arith.constant 1 : index
    %c0_780 = arith.constant 0 : index
    %c0_781 = arith.constant 0 : index
    %944 = vector.load %arg8[%c1_779, %c0_780, %c0_781] : memref<7x24x256xf32, #tpu.memory_space<vmem>>, vector<1x24x256xf32>
    %945 = vector.shape_cast %944 : vector<1x24x256xf32> to vector<24x256xf32>
    %946 = vector.broadcast %943 : vector<1x256xf32> to vector<24x256xf32>
    %947 = arith.mulf %946, %945 : vector<24x256xf32>
    %c37_782 = arith.constant 37 : index
    %c0_783 = arith.constant 0 : index
    %948 = vector.load %arg2[%c37_782, %c0_783] : memref<49x256xf32, #tpu.memory_space<vmem>>, vector<1x256xf32>
    %c2_784 = arith.constant 2 : index
    %c0_785 = arith.constant 0 : index
    %c0_786 = arith.constant 0 : index
    %949 = vector.load %arg8[%c2_784, %c0_785, %c0_786] : memref<7x24x256xf32, #tpu.memory_space<vmem>>, vector<1x24x256xf32>
    %950 = vector.shape_cast %949 : vector<1x24x256xf32> to vector<24x256xf32>
    %951 = vector.broadcast %948 : vector<1x256xf32> to vector<24x256xf32>
    %952 = arith.mulf %951, %950 : vector<24x256xf32>
    %953 = arith.addf %942, %952 : vector<24x256xf32>
    %c38_787 = arith.constant 38 : index
    %c0_788 = arith.constant 0 : index
    %954 = vector.load %arg2[%c38_787, %c0_788] : memref<49x256xf32, #tpu.memory_space<vmem>>, vector<1x256xf32>
    %c3_789 = arith.constant 3 : index
    %c0_790 = arith.constant 0 : index
    %c0_791 = arith.constant 0 : index
    %955 = vector.load %arg8[%c3_789, %c0_790, %c0_791] : memref<7x24x256xf32, #tpu.memory_space<vmem>>, vector<1x24x256xf32>
    %956 = vector.shape_cast %955 : vector<1x24x256xf32> to vector<24x256xf32>
    %957 = vector.broadcast %954 : vector<1x256xf32> to vector<24x256xf32>
    %958 = arith.mulf %957, %956 : vector<24x256xf32>
    %959 = arith.addf %947, %958 : vector<24x256xf32>
    %c39_792 = arith.constant 39 : index
    %c0_793 = arith.constant 0 : index
    %960 = vector.load %arg2[%c39_792, %c0_793] : memref<49x256xf32, #tpu.memory_space<vmem>>, vector<1x256xf32>
    %c4_794 = arith.constant 4 : index
    %c0_795 = arith.constant 0 : index
    %c0_796 = arith.constant 0 : index
    %961 = vector.load %arg8[%c4_794, %c0_795, %c0_796] : memref<7x24x256xf32, #tpu.memory_space<vmem>>, vector<1x24x256xf32>
    %962 = vector.shape_cast %961 : vector<1x24x256xf32> to vector<24x256xf32>
    %963 = vector.broadcast %960 : vector<1x256xf32> to vector<24x256xf32>
    %964 = arith.mulf %963, %962 : vector<24x256xf32>
    %965 = arith.addf %953, %964 : vector<24x256xf32>
    %c40_797 = arith.constant 40 : index
    %c0_798 = arith.constant 0 : index
    %966 = vector.load %arg2[%c40_797, %c0_798] : memref<49x256xf32, #tpu.memory_space<vmem>>, vector<1x256xf32>
    %c5_799 = arith.constant 5 : index
    %c0_800 = arith.constant 0 : index
    %c0_801 = arith.constant 0 : index
    %967 = vector.load %arg8[%c5_799, %c0_800, %c0_801] : memref<7x24x256xf32, #tpu.memory_space<vmem>>, vector<1x24x256xf32>
    %968 = vector.shape_cast %967 : vector<1x24x256xf32> to vector<24x256xf32>
    %969 = vector.broadcast %966 : vector<1x256xf32> to vector<24x256xf32>
    %970 = arith.mulf %969, %968 : vector<24x256xf32>
    %971 = arith.addf %959, %970 : vector<24x256xf32>
    %c41_802 = arith.constant 41 : index
    %c0_803 = arith.constant 0 : index
    %972 = vector.load %arg2[%c41_802, %c0_803] : memref<49x256xf32, #tpu.memory_space<vmem>>, vector<1x256xf32>
    %c6_804 = arith.constant 6 : index
    %c0_805 = arith.constant 0 : index
    %c0_806 = arith.constant 0 : index
    %973 = vector.load %arg8[%c6_804, %c0_805, %c0_806] : memref<7x24x256xf32, #tpu.memory_space<vmem>>, vector<1x24x256xf32>
    %974 = vector.shape_cast %973 : vector<1x24x256xf32> to vector<24x256xf32>
    %975 = vector.broadcast %972 : vector<1x256xf32> to vector<24x256xf32>
    %976 = arith.mulf %975, %974 : vector<24x256xf32>
    %977 = arith.addf %965, %976 : vector<24x256xf32>
    %978 = arith.addf %977, %971 : vector<24x256xf32>
    %c22_i32_807 = arith.constant 22 : i32
    %979 = tpu.dynamic_rotate %978 by %c22_i32_807 dim 0 : vector<24x256xf32>, i32 -> vector<24x256xf32>
    %980 = arith.addf %894, %979 : vector<24x256xf32>
    %c42_808 = arith.constant 42 : index
    %c0_809 = arith.constant 0 : index
    %981 = vector.load %arg2[%c42_808, %c0_809] : memref<49x256xf32, #tpu.memory_space<vmem>>, vector<1x256xf32>
    %c0_810 = arith.constant 0 : index
    %c0_811 = arith.constant 0 : index
    %c0_812 = arith.constant 0 : index
    %982 = vector.load %arg8[%c0_810, %c0_811, %c0_812] : memref<7x24x256xf32, #tpu.memory_space<vmem>>, vector<1x24x256xf32>
    %983 = vector.shape_cast %982 : vector<1x24x256xf32> to vector<24x256xf32>
    %984 = vector.broadcast %981 : vector<1x256xf32> to vector<24x256xf32>
    %985 = arith.mulf %984, %983 : vector<24x256xf32>
    %c43_813 = arith.constant 43 : index
    %c0_814 = arith.constant 0 : index
    %986 = vector.load %arg2[%c43_813, %c0_814] : memref<49x256xf32, #tpu.memory_space<vmem>>, vector<1x256xf32>
    %c1_815 = arith.constant 1 : index
    %c0_816 = arith.constant 0 : index
    %c0_817 = arith.constant 0 : index
    %987 = vector.load %arg8[%c1_815, %c0_816, %c0_817] : memref<7x24x256xf32, #tpu.memory_space<vmem>>, vector<1x24x256xf32>
    %988 = vector.shape_cast %987 : vector<1x24x256xf32> to vector<24x256xf32>
    %989 = vector.broadcast %986 : vector<1x256xf32> to vector<24x256xf32>
    %990 = arith.mulf %989, %988 : vector<24x256xf32>
    %c44_818 = arith.constant 44 : index
    %c0_819 = arith.constant 0 : index
    %991 = vector.load %arg2[%c44_818, %c0_819] : memref<49x256xf32, #tpu.memory_space<vmem>>, vector<1x256xf32>
    %c2_820 = arith.constant 2 : index
    %c0_821 = arith.constant 0 : index
    %c0_822 = arith.constant 0 : index
    %992 = vector.load %arg8[%c2_820, %c0_821, %c0_822] : memref<7x24x256xf32, #tpu.memory_space<vmem>>, vector<1x24x256xf32>
    %993 = vector.shape_cast %992 : vector<1x24x256xf32> to vector<24x256xf32>
    %994 = vector.broadcast %991 : vector<1x256xf32> to vector<24x256xf32>
    %995 = arith.mulf %994, %993 : vector<24x256xf32>
    %996 = arith.addf %985, %995 : vector<24x256xf32>
    %c45_823 = arith.constant 45 : index
    %c0_824 = arith.constant 0 : index
    %997 = vector.load %arg2[%c45_823, %c0_824] : memref<49x256xf32, #tpu.memory_space<vmem>>, vector<1x256xf32>
    %c3_825 = arith.constant 3 : index
    %c0_826 = arith.constant 0 : index
    %c0_827 = arith.constant 0 : index
    %998 = vector.load %arg8[%c3_825, %c0_826, %c0_827] : memref<7x24x256xf32, #tpu.memory_space<vmem>>, vector<1x24x256xf32>
    %999 = vector.shape_cast %998 : vector<1x24x256xf32> to vector<24x256xf32>
    %1000 = vector.broadcast %997 : vector<1x256xf32> to vector<24x256xf32>
    %1001 = arith.mulf %1000, %999 : vector<24x256xf32>
    %1002 = arith.addf %990, %1001 : vector<24x256xf32>
    %c46_828 = arith.constant 46 : index
    %c0_829 = arith.constant 0 : index
    %1003 = vector.load %arg2[%c46_828, %c0_829] : memref<49x256xf32, #tpu.memory_space<vmem>>, vector<1x256xf32>
    %c4_830 = arith.constant 4 : index
    %c0_831 = arith.constant 0 : index
    %c0_832 = arith.constant 0 : index
    %1004 = vector.load %arg8[%c4_830, %c0_831, %c0_832] : memref<7x24x256xf32, #tpu.memory_space<vmem>>, vector<1x24x256xf32>
    %1005 = vector.shape_cast %1004 : vector<1x24x256xf32> to vector<24x256xf32>
    %1006 = vector.broadcast %1003 : vector<1x256xf32> to vector<24x256xf32>
    %1007 = arith.mulf %1006, %1005 : vector<24x256xf32>
    %1008 = arith.addf %996, %1007 : vector<24x256xf32>
    %c47_833 = arith.constant 47 : index
    %c0_834 = arith.constant 0 : index
    %1009 = vector.load %arg2[%c47_833, %c0_834] : memref<49x256xf32, #tpu.memory_space<vmem>>, vector<1x256xf32>
    %c5_835 = arith.constant 5 : index
    %c0_836 = arith.constant 0 : index
    %c0_837 = arith.constant 0 : index
    %1010 = vector.load %arg8[%c5_835, %c0_836, %c0_837] : memref<7x24x256xf32, #tpu.memory_space<vmem>>, vector<1x24x256xf32>
    %1011 = vector.shape_cast %1010 : vector<1x24x256xf32> to vector<24x256xf32>
    %1012 = vector.broadcast %1009 : vector<1x256xf32> to vector<24x256xf32>
    %1013 = arith.mulf %1012, %1011 : vector<24x256xf32>
    %1014 = arith.addf %1002, %1013 : vector<24x256xf32>
    %c48_838 = arith.constant 48 : index
    %c0_839 = arith.constant 0 : index
    %1015 = vector.load %arg2[%c48_838, %c0_839] : memref<49x256xf32, #tpu.memory_space<vmem>>, vector<1x256xf32>
    %c6_840 = arith.constant 6 : index
    %c0_841 = arith.constant 0 : index
    %c0_842 = arith.constant 0 : index
    %1016 = vector.load %arg8[%c6_840, %c0_841, %c0_842] : memref<7x24x256xf32, #tpu.memory_space<vmem>>, vector<1x24x256xf32>
    %1017 = vector.shape_cast %1016 : vector<1x24x256xf32> to vector<24x256xf32>
    %1018 = vector.broadcast %1015 : vector<1x256xf32> to vector<24x256xf32>
    %1019 = arith.mulf %1018, %1017 : vector<24x256xf32>
    %1020 = arith.addf %1008, %1019 : vector<24x256xf32>
    %1021 = arith.addf %1020, %1014 : vector<24x256xf32>
    %c21_i32_843 = arith.constant 21 : i32
    %1022 = tpu.dynamic_rotate %1021 by %c21_i32_843 dim 0 : vector<24x256xf32>, i32 -> vector<24x256xf32>
    %1023 = arith.addf %937, %1022 : vector<24x256xf32>
    %1024 = arith.addf %1023, %980 : vector<24x256xf32>
    %c0_844 = arith.constant 0 : index
    %c0_845 = arith.constant 0 : index
    %1025 = vector.load %arg6[%c0_844, %c0_845] : memref<24x256xf32, #tpu.memory_space<vmem>>, vector<24x256xf32>
    %1026 = arith.mulf %1024, %1025 : vector<24x256xf32>
    %c0_846 = arith.constant 0 : index
    %c0_847 = arith.constant 0 : index
    %1027 = vector.load %arg3[%c0_846, %c0_847] : memref<24x256xf32, #tpu.memory_space<vmem>>, vector<24x256xf32>
    %1028 = arith.addf %1026, %1027 : vector<24x256xf32>
    %cst_848 = arith.constant 2.000000e+00 : f32
    %1029 = vector.broadcast %cst_848 : f32 to vector<24x256xf32>
    %1030 = arith.addf %1028, %1029 : vector<24x256xf32>
    %cst_849 = arith.constant 0.000000e+00 : f32
    %1031 = vector.broadcast %cst_849 : f32 to vector<24x256xf32>
    %1032 = arith.maximumf %1030, %1031 : vector<24x256xf32>
    %c0_850 = arith.constant 0 : index
    %c0_851 = arith.constant 0 : index
    %1033 = vector.load %arg7[%c0_850, %c0_851] : memref<24x256xf32, #tpu.memory_space<vmem>>, vector<24x256xf32>
    tpu.vector_store %arg7[%c0_850, %c0_851], %1032 {strides = array<i32>} : memref<24x256xf32, #tpu.memory_space<vmem>>, vector<24x256xf32>,
    return
  }
  func.func @transform_0(%arg0: i32) -> (i32, i32) {
    %c0_i32 = arith.constant 0 : i32
    %c0_i32_0 = arith.constant 0 : i32
    return %c0_i32, %arg0 : i32, i32
  }
  func.func @transform_1(%arg0: i32) -> (i32, i32) {
    %c0_i32 = arith.constant 0 : i32
    %c0_i32_0 = arith.constant 0 : i32
    return %c0_i32, %arg0 : i32, i32
  }
  func.func @transform_2(%arg0: i32) -> (i32, i32) {
    %c0_i32 = arith.constant 0 : i32
    %c0_i32_0 = arith.constant 0 : i32
    return %c0_i32, %arg0 : i32, i32
  }
  func.func @transform_3(%arg0: i32) -> (i32, i32) {
    %c0_i32 = arith.constant 0 : i32
    %c0_i32_0 = arith.constant 0 : i32
    return %c0_i32, %arg0 : i32, i32
  }
  func.func @transform_4(%arg0: i32) -> (i32, i32) {
    %c0_i32 = arith.constant 0 : i32
    %c0_i32_0 = arith.constant 0 : i32
    return %c0_i32, %arg0 : i32, i32
  }
  func.func @transform_5(%arg0: i32) -> (i32, i32) {
    %c0_i32 = arith.constant 0 : i32
    %c0_i32_0 = arith.constant 0 : i32
    return %c0_i32, %arg0 : i32, i32
  }
  func.func @transform_6(%arg0: i32) -> (i32, i32) {
    %c0_i32 = arith.constant 0 : i32
    %c0_i32_0 = arith.constant 0 : i32
    return %c0_i32, %arg0 : i32, i32
  }
}

</mosaic_0001>

<bundles_post_ra>
// kernel: model_forward.1
= control target key start
LH: loop header
LB: loop body
LE: loop exit
PB: predicated region body
PF: predicated region fallthrough
CT: control target
= control target key end

     0   :  { %s5749_s21 = smov 0   ;;  %s5751_s22 = smov 0   ;;  %s11620_s0 = inlined_call_operand.vmem [shape: f32[24,512], index: 0, kind: input, shape index: {}]   ;;  %s11621_s1 = inlined_call_operand.vmem [shape: f32[49,512], index: 1, kind: input, shape index: {}]   ;;  %s11622_s2 = inlined_call_operand.vmem [shape: f32[24,512], index: 2, kind: input, shape index: {}]   ;;  %s11623_s3 = inlined_call_operand.vmem [shape: f32[49,512], index: 3, kind: input, shape index: {}]   ;;  %s11624_s4 = inlined_call_operand.vmem [shape: f32[24,512], index: 4, kind: input, shape index: {}]   ;;  %s11625_s5 = inlined_call_operand.vmem [shape: f32[24,512], index: 5, kind: input, shape index: {}]   ;;  %s11626_s6 = inlined_call_operand.vmem [shape: f32[24,512], index: 6, kind: output, shape index: {}]  }
   0x1   :  { %s5753_s23 = smov 0  }
   0x2 LB: > { %s5474_s24 = sadd.s32 4294967295, %s5706_s23   ;;  %s5766_s25 = sadd.s32 1, %s5706_s23   ;;  %s5706_s23 = sphi %s5753_s23, %s13357_s23   ;;  %s5702_s22 = sphi %s5751_s22, %s13356_s22   ;;  %s5698_s21 = sphi %s5749_s21, %s13355_s21  }
   0x3   : > { %s20_s26 = ssub.s32 %s5706_s23, %s5766_s25  ;;  %s23_s27 = sadd.s32 1, %s5702_s22 }
   0x4   : > { %p21_p0 = scmp.eq.s32.totalorder %s20_s26, 0  ;;  %p30_p1 = scmp.ne.s32.totalorder %s5702_s22, %s5698_s21 }
   0x5   : > { %p31_p2 = scmp.eq.s32.totalorder %s5706_s23, 0  ;;  %p190_p3 = scmp.eq.s32.totalorder %s5474_s24, 1 }
   0x6   : > { %s5777_s28 = scalar_select %p21_p0, %s5702_s22, %s23_s27  }
   0x7   : > { %p5779_p4 = por %p31_p2, %p30_p1  ;;  %p5783_p5 = por %p190_p3, %p30_p1 }
   0x8   : > { %p5477_p6 = scmp.ge.s32.totalorder %s5706_s23, 2 }
   0xa   : > { %212 = sbr.rel (%p5477_p6) target bundleno = 65 (0x41), region = 16 }
   0xf   : > { %215 = sbr.rel (!%p5779_p4) target bundleno = 22 (0x16), region = 20  ;;  %s217_s7 = sand.u32 (%p5779_p4), 1, %s5702_s22  }
  0x10   : > { %s5639_s8 = sshll.u32 (%p5779_p4), %s5706_s23, 4  ;;  %s5646_s9 = smul.u32 (%p5779_p4), 48, %s217_s7 }
  0x11   : > { %s222_s12 = scalar_lea.vmem (%p5779_p4), %s11620_s0, %s5639_s8 }
  0x12   : > { %v235_v0 = vld [vmem:[%s222_s12] sm:$0xff] (%p5779_p4)  ;;  %v237_v1 = vld [vmem:[%s222_s12 + $0x8] sm:$0xff] (%p5779_p4)  ;;  %s219_s13 = scalar_lea.vmem (%p5779_p4), [#allocation5], %s5646_s9 }
  0x13   : > { %v239_v2 = vld [vmem:[%s222_s12 + $0x20] sm:$0xff] (%p5779_p4)  ;;  %v241_v3 = vld [vmem:[%s222_s12 + $0x28] sm:$0xff] (%p5779_p4)  ;;  %236 = vst [vmem:[%s219_s13] sm:$0xff] (%p5779_p4), %v235_v0  ;;  %238 = vst [vmem:[%s219_s13 + $0x8] sm:$0xff] (%p5779_p4), %v237_v1 }
  0x14   : > { %v243_v4 = vld [vmem:[%s222_s12 + $0x40] sm:$0xff]  ;;  %v245_v5 = vld [vmem:[%s222_s12 + $0x48] sm:$0xff]  ;;  %240 = vst [vmem:[%s219_s13 + $0x10] sm:$0xff] %v239_v2  ;;  %242 = vst [vmem:[%s219_s13 + $0x18] sm:$0xff] %v241_v3 }
  0x15   : > { %244 = vst [vmem:[%s219_s13 + $0x20] sm:$0xff] %v243_v4  ;;  %246 = vst [vmem:[%s219_s13 + $0x28] sm:$0xff] %v245_v5 }
  0x16 PF: > { %252 = sbr.rel (!%p5779_p4) target bundleno = 33 (0x21), region = 43  ;;  %s254_s14 = sand.u32 (%p5779_p4), 1, %s5702_s22  }
  0x17   : > { %s5640_s15 = sshll.u32 (%p5779_p4), %s5706_s23, 4  ;;  %s5647_s16 = smul.u32 (%p5779_p4), 112, %s254_s14 }
  0x18   : > { %s259_s19 = scalar_lea.vmem (%p5779_p4), %s11621_s1, %s5640_s15 }
  0x19   : > { %v272_v6 = vld [vmem:[%s259_s19] sm:$0xff] (%p5779_p4)  ;;  %v274_v7 = vld [vmem:[%s259_s19 + $0x8] sm:$0xff] (%p5779_p4)  ;;  %s256_s20 = scalar_lea.vmem (%p5779_p4), [#allocation6], %s5647_s16 }
  0x1a   : > { %v276_v8 = vld [vmem:[%s259_s19 + $0x20] sm:$0xff] (%p5779_p4)  ;;  %v278_v9 = vld [vmem:[%s259_s19 + $0x28] sm:$0xff] (%p5779_p4)  ;;  %273 = vst [vmem:[%s256_s20] sm:$0xff] (%p5779_p4), %v272_v6  ;;  %275 = vst [vmem:[%s256_s20 + $0x8] sm:$0xff] (%p5779_p4), %v274_v7 }
  0x1b   : > { %v280_v10 = vld [vmem:[%s259_s19 + $0x40] sm:$0xff]  ;;  %v282_v11 = vld [vmem:[%s259_s19 + $0x48] sm:$0xff]  ;;  %277 = vst [vmem:[%s256_s20 + $0x10] sm:$0xff] %v276_v8  ;;  %279 = vst [vmem:[%s256_s20 + $0x18] sm:$0xff] %v278_v9 }
  0x1c   : > { %281 = vst [vmem:[%s256_s20 + $0x20] sm:$0xff] %v280_v10  ;;  %283 = vst [vmem:[%s256_s20 + $0x28] sm:$0xff] %v282_v11  ;;  %v284_v12 = vld [vmem:[%s259_s19 + $0x60] sm:$0xff]  ;;  %v286_v13 = vld [vmem:[%s259_s19 + $0x68] sm:$0xff] }
  0x1d   : > { %v288_v14 = vld [vmem:[%s259_s19 + $0x80] sm:$0xff]  ;;  %285 = vst [vmem:[%s256_s20 + $0x30] sm:$0xff] %v284_v12  ;;  %287 = vst [vmem:[%s256_s20 + $0x38] sm:$0xff] %v286_v13  ;;  %v290_v15 = vld [vmem:[%s259_s19 + $0x88] sm:$0xff] }
  0x1e   : > { %289 = vst [vmem:[%s256_s20 + $0x40] sm:$0xff] %v288_v14  ;;  %v292_v16 = vld [vmem:[%s259_s19 + $0xa0] sm:$0xff]  ;;  %v294_v17 = vld [vmem:[%s259_s19 + $0xa8] sm:$0xff]  ;;  %291 = vst [vmem:[%s256_s20 + $0x48] sm:$0xff] %v290_v15 }
  0x1f   : > { %293 = vst [vmem:[%s256_s20 + $0x50] sm:$0xff] %v292_v16  ;;  %295 = vst [vmem:[%s256_s20 + $0x58] sm:$0xff] %v294_v17  ;;  %v296_v18 = vld [vmem:[%s259_s19 + $0xc0] sm:$0xff]  ;;  %v298_v19 = vld [vmem:[%s259_s19 + $0xc8] sm:$0xff] }
  0x20   : > { %297 = vst [vmem:[%s256_s20 + $0x60] sm:$0xff] %v296_v18  ;;  %299 = vst [vmem:[%s256_s20 + $0x68] sm:$0xff] %v298_v19 }
  0x21 PF: > { %305 = sbr.rel (!%p5779_p4) target bundleno = 40 (0x28), region = 66  ;;  %s307_s26 = sand.u32 (%p5779_p4), 1, %s5702_s22  }
  0x22   : > { %s5641_s27 = sshll.u32 (%p5779_p4), %s5706_s23, 4  ;;  %s5648_s7 = smul.u32 (%p5779_p4), 48, %s307_s26 }
  0x23   : > { %s312_s10 = scalar_lea.vmem (%p5779_p4), %s11622_s2, %s5641_s27 }
  0x24   : > { %v325_v20 = vld [vmem:[%s312_s10] sm:$0xff] (%p5779_p4)  ;;  %v327_v21 = vld [vmem:[%s312_s10 + $0x8] sm:$0xff] (%p5779_p4)  ;;  %s309_s11 = scalar_lea.vmem (%p5779_p4), [#allocation7], %s5648_s7 }
  0x25   : > { %v329_v22 = vld [vmem:[%s312_s10 + $0x20] sm:$0xff] (%p5779_p4)  ;;  %v331_v23 = vld [vmem:[%s312_s10 + $0x28] sm:$0xff] (%p5779_p4)  ;;  %326 = vst [vmem:[%s309_s11] sm:$0xff] (%p5779_p4), %v325_v20  ;;  %328 = vst [vmem:[%s309_s11 + $0x8] sm:$0xff] (%p5779_p4), %v327_v21 }
  0x26   : > { %v333_v24 = vld [vmem:[%s312_s10 + $0x40] sm:$0xff]  ;;  %v335_v25 = vld [vmem:[%s312_s10 + $0x48] sm:$0xff]  ;;  %330 = vst [vmem:[%s309_s11 + $0x10] sm:$0xff] %v329_v22  ;;  %332 = vst [vmem:[%s309_s11 + $0x18] sm:$0xff] %v331_v23 }
  0x27   : > { %334 = vst [vmem:[%s309_s11 + $0x20] sm:$0xff] %v333_v24  ;;  %336 = vst [vmem:[%s309_s11 + $0x28] sm:$0xff] %v335_v25 }
  0x28 PF: > { %342 = sbr.rel (!%p5779_p4) target bundleno = 51 (0x33), region = 89  ;;  %s344_s12 = sand.u32 (%p5779_p4), 1, %s5702_s22  }
  0x29   : > { %s5642_s13 = sshll.u32 (%p5779_p4), %s5706_s23, 4  ;;  %s5649_s14 = smul.u32 (%p5779_p4), 112, %s344_s12 }
  0x2a   : > { %s349_s17 = scalar_lea.vmem (%p5779_p4), %s11623_s3, %s5642_s13 }
  0x2b   : > { %v362_v26 = vld [vmem:[%s349_s17] sm:$0xff] (%p5779_p4)  ;;  %v364_v27 = vld [vmem:[%s349_s17 + $0x8] sm:$0xff] (%p5779_p4)  ;;  %s346_s18 = scalar_lea.vmem (%p5779_p4), [#allocation8], %s5649_s14 }
  0x2c   : > { %v366_v28 = vld [vmem:[%s349_s17 + $0x20] sm:$0xff] (%p5779_p4)  ;;  %v368_v29 = vld [vmem:[%s349_s17 + $0x28] sm:$0xff] (%p5779_p4)  ;;  %363 = vst [vmem:[%s346_s18] sm:$0xff] (%p5779_p4), %v362_v26  ;;  %365 = vst [vmem:[%s346_s18 + $0x8] sm:$0xff] (%p5779_p4), %v364_v27 }
  0x2d   : > { %v370_v30 = vld [vmem:[%s349_s17 + $0x40] sm:$0xff]  ;;  %v372_v31 = vld [vmem:[%s349_s17 + $0x48] sm:$0xff]  ;;  %367 = vst [vmem:[%s346_s18 + $0x10] sm:$0xff] %v366_v28  ;;  %369 = vst [vmem:[%s346_s18 + $0x18] sm:$0xff] %v368_v29 }
  0x2e   : > { %371 = vst [vmem:[%s346_s18 + $0x20] sm:$0xff] %v370_v30  ;;  %373 = vst [vmem:[%s346_s18 + $0x28] sm:$0xff] %v372_v31  ;;  %v374_v32 = vld [vmem:[%s349_s17 + $0x60] sm:$0xff]  ;;  %v376_v33 = vld [vmem:[%s349_s17 + $0x68] sm:$0xff] }
  0x2f   : > { %v378_v34 = vld [vmem:[%s349_s17 + $0x80] sm:$0xff]  ;;  %375 = vst [vmem:[%s346_s18 + $0x30] sm:$0xff] %v374_v32  ;;  %377 = vst [vmem:[%s346_s18 + $0x38] sm:$0xff] %v376_v33  ;;  %v380_v35 = vld [vmem:[%s349_s17 + $0x88] sm:$0xff] }
  0x30   : > { %379 = vst [vmem:[%s346_s18 + $0x40] sm:$0xff] %v378_v34  ;;  %v382_v36 = vld [vmem:[%s349_s17 + $0xa0] sm:$0xff]  ;;  %v384_v37 = vld [vmem:[%s349_s17 + $0xa8] sm:$0xff]  ;;  %381 = vst [vmem:[%s346_s18 + $0x48] sm:$0xff] %v380_v35 }
  0x31   : > { %383 = vst [vmem:[%s346_s18 + $0x50] sm:$0xff] %v382_v36  ;;  %385 = vst [vmem:[%s346_s18 + $0x58] sm:$0xff] %v384_v37  ;;  %v386_v38 = vld [vmem:[%s349_s17 + $0xc0] sm:$0xff]  ;;  %v388_v39 = vld [vmem:[%s349_s17 + $0xc8] sm:$0xff] }
  0x32   : > { %387 = vst [vmem:[%s346_s18 + $0x60] sm:$0xff] %v386_v38  ;;  %389 = vst [vmem:[%s346_s18 + $0x68] sm:$0xff] %v388_v39 }
  0x33 PF: > { %395 = sbr.rel (!%p5779_p4) target bundleno = 58 (0x3a), region = 112  ;;  %s397_s19 = sand.u32 (%p5779_p4), 1, %s5702_s22  }
  0x34   : > { %s5643_s20 = sshll.u32 (%p5779_p4), %s5706_s23, 4  ;;  %s5650_s26 = smul.u32 (%p5779_p4), 48, %s397_s19 }
  0x35   : > { %s402_s8 = scalar_lea.vmem (%p5779_p4), %s11624_s4, %s5643_s20 }
  0x36   : > { %v415_v40 = vld [vmem:[%s402_s8] sm:$0xff] (%p5779_p4)  ;;  %v417_v41 = vld [vmem:[%s402_s8 + $0x8] sm:$0xff] (%p5779_p4)  ;;  %s399_s9 = scalar_lea.vmem (%p5779_p4), [#allocation9], %s5650_s26 }
  0x37   : > { %v419_v42 = vld [vmem:[%s402_s8 + $0x20] sm:$0xff] (%p5779_p4)  ;;  %v421_v43 = vld [vmem:[%s402_s8 + $0x28] sm:$0xff] (%p5779_p4)  ;;  %416 = vst [vmem:[%s399_s9] sm:$0xff] (%p5779_p4), %v415_v40  ;;  %418 = vst [vmem:[%s399_s9 + $0x8] sm:$0xff] (%p5779_p4), %v417_v41 }
  0x38   : > { %v423_v44 = vld [vmem:[%s402_s8 + $0x40] sm:$0xff]  ;;  %v425_v45 = vld [vmem:[%s402_s8 + $0x48] sm:$0xff]  ;;  %420 = vst [vmem:[%s399_s9 + $0x10] sm:$0xff] %v419_v42  ;;  %422 = vst [vmem:[%s399_s9 + $0x18] sm:$0xff] %v421_v43 }
  0x39   : > { %424 = vst [vmem:[%s399_s9 + $0x20] sm:$0xff] %v423_v44  ;;  %426 = vst [vmem:[%s399_s9 + $0x28] sm:$0xff] %v425_v45 }
  0x3a PF: > { %432 = sbr.rel (!%p5779_p4) target bundleno = 65 (0x41), region = 135  ;;  %s434_s10 = sand.u32 (%p5779_p4), 1, %s5702_s22  }
  0x3b   : > { %s5644_s11 = sshll.u32 (%p5779_p4), %s5706_s23, 4  ;;  %s5651_s12 = smul.u32 (%p5779_p4), 48, %s434_s10 }
  0x3c   : > { %s439_s15 = scalar_lea.vmem (%p5779_p4), %s11625_s5, %s5644_s11 }
  0x3d   : > { %v452_v46 = vld [vmem:[%s439_s15] sm:$0xff] (%p5779_p4)  ;;  %v454_v47 = vld [vmem:[%s439_s15 + $0x8] sm:$0xff] (%p5779_p4)  ;;  %s436_s16 = scalar_lea.vmem (%p5779_p4), [#allocation10], %s5651_s12 }
  0x3e   : > { %v456_v48 = vld [vmem:[%s439_s15 + $0x20] sm:$0xff] (%p5779_p4)  ;;  %v458_v49 = vld [vmem:[%s439_s15 + $0x28] sm:$0xff] (%p5779_p4)  ;;  %453 = vst [vmem:[%s436_s16] sm:$0xff] (%p5779_p4), %v452_v46  ;;  %455 = vst [vmem:[%s436_s16 + $0x8] sm:$0xff] (%p5779_p4), %v454_v47 }
  0x3f   : > { %v460_v50 = vld [vmem:[%s439_s15 + $0x40] sm:$0xff]  ;;  %v462_v51 = vld [vmem:[%s439_s15 + $0x48] sm:$0xff]  ;;  %457 = vst [vmem:[%s436_s16 + $0x10] sm:$0xff] %v456_v48  ;;  %459 = vst [vmem:[%s436_s16 + $0x18] sm:$0xff] %v458_v49 }
  0x40   : > { %461 = vst [vmem:[%s436_s16 + $0x20] sm:$0xff] %v460_v50  ;;  %463 = vst [vmem:[%s436_s16 + $0x28] sm:$0xff] %v462_v51 }
  0x41 PF: > { %p5490_p7 = scmp.ge.s32.totalorder %s5706_s23, 1  ;;  %p468_p8 = scmp.lt.s32.totalorder %s5706_s23, 3 }
  0x43   : > { %p469_p9 = pnand %p5490_p7, %p468_p8 }
  0x45   : > { %472 = sbr.rel (%p469_p9) target bundleno = 1031 (0x407), region = 158 }
  0x4a   : > { %s475_s29 = sand.u32 1, %s5698_s21   ;;  %s5708_s19 = smov 3   ;;  %v583_v58 = vlaneseq }
  0x4b   : > { %s5835_s17 = smul.u32 48, %s475_s29  ;;  %s5709_s20 = smov 1  }
  0x4c   : > { %s5710_s26 = smov 2   ;;  %s5711_s27 = smov 127   ;;  %v5934_v59 = vshrl.u32 %v583_v58, 7  ;;  %v5942_v62 = vand.u32 127, %v583_v58 }
  0x4d   : > { %s5838_s18 = scalar_lea.vmem [#allocation5], %s5835_s17  ;;  %s5712_s7 = smov 126  }
  0x4e   : > { %v5841_v52 = vld [vmem:[%s5838_s18 + $0x20] sm:$0xff]  ;;  %v5851_v54 = vld [vmem:[%s5838_s18 + $0x8] sm:$0xff]  ;;  %v5854_v55 = vld [vmem:[%s5838_s18 + $0x10] sm:$0xff]  ;;  %s5713_s8 = smov 125   ;;  %s5932_s9 = smul.u32 112, %s475_s29  ;;  %11881 = vst [vmem:[#allocation12_spill] sm:$0xff] %v5934_v59 }
  0x4f   : > { %v5844_v53 = vld [vmem:[%s5838_s18] sm:$0xff]  ;;  %575 = vrot.lane.b32.xlu1 %v5841_v52, %s5708_s19  ;;  %v5861_v56 = vld [vmem:[%s5838_s18 + $0x28] sm:$0xff]  ;;  %v5864_v57 = vld [vmem:[%s5838_s18 + $0x18] sm:$0xff]  ;;  %v5937_v60 = vsub.s32 0, %v5934_v59  ;;  %v5940_v61 = vsub.s32 1, %v5934_v59  ;;  %11884 = vst [vmem:[#allocation15_spill] sm:$0xff] %v5942_v62 }
  0x50   : > { %571 = vrot.lane.b32.xlu0 %v5844_v53, %s5708_s19  ;;  %s5945_s10 = scalar_lea.vmem [#allocation6], %s5932_s9  ;;  %vm585_vm0 = vcmp.lt.s32.totalorder %v5942_v62, 3  ;;  %vm648_vm1 = vcmp.lt.s32.totalorder %v5942_v62, 1  ;;  %vm616_vm2 = vcmp.lt.s32.totalorder %v5942_v62, 2  ;;  %vm693_vm3 = vcmp.lt.s32.totalorder %v5942_v62, 127  ;;  %s7709_s21 = scalar_lea.vmem [#allocation10], %s5835_s17 }
  0x51   : > { %11882 = vst [vmem:[#allocation13_spill] sm:$0xff] %v5937_v60  ;;  %11883 = vst [vmem:[#allocation14_spill] sm:$0xff] %v5940_v61  ;;  %v771_v63 = vld [vmem:[%s5945_s10] ss:$8 sm:$0x3]  ;;  %vm725_vm4 = vcmp.lt.s32.totalorder %v5942_v62, 126 }
  0x52   : > { %v5497_v0 = vld [vmem:[%s5945_s10 + $0x7] ss:$8 sm:$0x3]  ;;  %v5504_v1 = vld [vmem:[%s5945_s10 + $0x16] ss:$8 sm:$0x3]  ;;  %v5953_v4 = vrot.slane %v771_v63, %v5937_v60  ;;  %v5956_v5 = vrot.slane %v771_v63, %v5940_v61 }
  0x53   : > { %577 = vrot.lane.b32.xlu1 %v5851_v54, %s5708_s19  ;;  %v5511_v2 = vld [vmem:[%s5945_s10 + $0x25] ss:$8 sm:$0x3]  ;;  %v5518_v3 = vld [vmem:[%s5945_s10 + $0x34] ss:$8 sm:$0x3]  ;;  %v5961_v8 = vrot.slane %v5497_v0, %v5937_v60  ;;  %v5964_v9 = vrot.slane %v5497_v0, %v5940_v61  ;;  %v5967_v10 = vrot.slane %v5504_v1, %v5937_v60  ;;  %v5970_v11 = vrot.slane %v5504_v1, %v5940_v61 }
  0x54   : > { %573 = vrot.lane.b32.xlu0 %v5854_v55, %s5708_s19  ;;  %v5525_v6 = vld [vmem:[%s5945_s10 + $0x43] ss:$8 sm:$0x3]  ;;  %v5532_v7 = vld [vmem:[%s5945_s10 + $0x52] ss:$8 sm:$0x3]  ;;  %v5975_v14 = vrot.slane %v5511_v2, %v5937_v60  ;;  %v5978_v15 = vrot.slane %v5511_v2, %v5940_v61  ;;  %v5981_v16 = vrot.slane %v5518_v3, %v5937_v60  ;;  %v5984_v17 = vrot.slane %v5518_v3, %v5940_v61 }
  0x55   : > { %v5492_v12 = vld [vmem:[%s5945_s10 + $0x2] ss:$8 sm:$0x3]  ;;  %v5499_v13 = vld [vmem:[%s5945_s10 + $0x11] ss:$8 sm:$0x3]  ;;  %v5989_v20 = vrot.slane %v5525_v6, %v5937_v60  ;;  %v5992_v21 = vrot.slane %v5525_v6, %v5940_v61  ;;  %v5995_v22 = vrot.slane %v5532_v7, %v5937_v60  ;;  %v5998_v23 = vrot.slane %v5532_v7, %v5940_v61 }
  0x56   : > { %v5506_v18 = vld [vmem:[%s5945_s10 + $0x20] ss:$8 sm:$0x3]  ;;  %v5513_v19 = vld [vmem:[%s5945_s10 + $0x27] ss:$8 sm:$0x3]  ;;  %v6003_v26 = vrot.slane %v5492_v12, %v5937_v60  ;;  %v6006_v27 = vrot.slane %v5492_v12, %v5940_v61  ;;  %v6009_v28 = vrot.slane %v5499_v13, %v5937_v60  ;;  %v6012_v29 = vrot.slane %v5499_v13, %v5940_v61 }
  0x57   : > { %581 = vrot.lane.b32.xlu1 %v5861_v56, %s5708_s19  ;;  %v5520_v24 = vld [vmem:[%s5945_s10 + $0x36] ss:$8 sm:$0x3]  ;;  %v5493_v25 = vld [vmem:[%s5945_s10 + $0x3] ss:$8 sm:$0x3]  ;;  %v6017_v32 = vrot.slane %v5506_v18, %v5937_v60  ;;  %v6020_v33 = vrot.slane %v5506_v18, %v5940_v61  ;;  %v6023_v34 = vrot.slane %v5513_v19, %v5937_v60  ;;  %v6026_v35 = vrot.slane %v5513_v19, %v5940_v61 }
  0x58   : > { %579 = vrot.lane.b32.xlu0 %v5864_v57, %s5708_s19  ;;  %v5527_v30 = vld [vmem:[%s5945_s10 + $0x45] ss:$8 sm:$0x3]  ;;  %v5500_v31 = vld [vmem:[%s5945_s10 + $0x12] ss:$8 sm:$0x3]  ;;  %v6031_v38 = vrot.slane %v5520_v24, %v5937_v60  ;;  %v6034_v39 = vrot.slane %v5520_v24, %v5940_v61  ;;  %v6037_v40 = vrot.slane %v5493_v25, %v5937_v60  ;;  %v6040_v41 = vrot.slane %v5493_v25, %v5940_v61 }
  0x59   : > { %v5534_v36 = vld [vmem:[%s5945_s10 + $0x54] ss:$8 sm:$0x3]  ;;  %v5491_v37 = vld [vmem:[%s5945_s10 + $0x1] ss:$8 sm:$0x3]  ;;  %v6045_v44 = vrot.slane %v5527_v30, %v5937_v60  ;;  %v6048_v45 = vrot.slane %v5527_v30, %v5940_v61  ;;  %v6051_v46 = vrot.slane %v5500_v31, %v5937_v60  ;;  %v6054_v47 = vrot.slane %v5500_v31, %v5940_v61 }
  0x5a   : > { %v5498_v42 = vld [vmem:[%s5945_s10 + $0x10] ss:$8 sm:$0x3]  ;;  %v5507_v43 = vld [vmem:[%s5945_s10 + $0x21] ss:$8 sm:$0x3]  ;;  %v6059_v50 = vrot.slane %v5534_v36, %v5937_v60  ;;  %v6062_v51 = vrot.slane %v5534_v36, %v5940_v61  ;;  %v6065_v58 = vrot.slane %v5491_v37, %v5937_v60  ;;  %v6068_v63 = vrot.slane %v5491_v37, %v5940_v61 }
  0x5b   : > { %638 = vrot.lane.b32.xlu1 %v5854_v55, %s5709_s20  ;;  %v5505_v48 = vld [vmem:[%s5945_s10 + $0x17] ss:$8 sm:$0x3]  ;;  %v5514_v49 = vld [vmem:[%s5945_s10 + $0x30] ss:$8 sm:$0x3]  ;;  %v6072_v1 = vrot.slane %v5498_v42, %v5937_v60  ;;  %v6075_v2 = vrot.slane %v5498_v42, %v5940_v61  ;;  %v1247_v3 = vrot.slane %v5507_v43, %v5937_v60  ;;  %v1251_v6 = vrot.slane %v5507_v43, %v5940_v61 }
  0x5c   : > { %636 = vrot.lane.b32.xlu0 %v5844_v53, %s5709_s20  ;;  %11885 = vst [vmem:[#allocation16_spill] sm:$0xff] %v6065_v58  ;;  %11886 = vst [vmem:[#allocation17_spill] sm:$0xff] %v6068_v63  ;;  %v5512_v0 = vld [vmem:[%s5945_s10 + $0x26] ss:$8 sm:$0x3]  ;;  %v6083_v13 = vmul.f32 %v6037_v40, %v5844_v53  ;;  %v6087_v18 = vmul.f32 %v6040_v41, %v5851_v54  ;;  %v6090_v19 = vrot.slane %v5505_v48, %v5937_v60  ;;  %s7734_s11 = scalar_lea.vmem [#allocation7], %s5835_s17 }
  0x5d   : > { %11887 = vst [vmem:[#allocation18_spill] sm:$0xff] %v6072_v1  ;;  %11888 = vst [vmem:[#allocation19_spill] sm:$0xff] %v6075_v2  ;;  %v5521_v7 = vld [vmem:[%s5945_s10 + $0x37] ss:$8 sm:$0x3]  ;;  %v1435_v24 = vrot.slane %v5514_v49, %v5937_v60  ;;  %v6095_v25 = vmul.f32 %v6051_v46, %v5844_v53  ;;  %v6099_v30 = vmul.f32 %v6054_v47, %v5851_v54  ;;  %vm757_vm5 = vcmp.lt.s32.totalorder %v5942_v62, 125 }
  0x5e   : > { %v5528_v12 = vld [vmem:[%s5945_s10 + $0x46] ss:$8 sm:$0x3]  ;;  %11889 = vst [vmem:[#allocation20_spill] sm:$0xff] %v6083_v13  ;;  %11890 = vst [vmem:[#allocation21_spill] sm:$0xff] %v6087_v18  ;;  %v6102_v31 = vrot.slane %v5505_v48, %v5940_v61  ;;  %v1439_v36 = vrot.slane %v5514_v49, %v5940_v61  ;;  %v6108_v43 = vrot.slane %v5512_v0, %v5937_v60  ;;  %s7851_s12 = scalar_lea.vmem [#allocation8], %s5932_s9 }
  0x5f   : > { %642 = vrot.lane.b32.xlu1 %v5851_v54, %s5709_s20  ;;  %11891 = vst [vmem:[#allocation22_spill] sm:$0xff] %v6090_v19  ;;  %11892 = vst [vmem:[#allocation23_spill] sm:$0xff] %v6095_v25  ;;  %v5519_v37 = vld [vmem:[%s5945_s10 + $0x35] ss:$8 sm:$0x3]  ;;  %v1610_v59 = vrot.slane %v5521_v7, %v5937_v60  ;;  %v1614_v18 = vrot.slane %v5521_v7, %v5940_v61  ;;  %v1798_v25 = vrot.slane %v5528_v12, %v5937_v60  ;;  %s505_s13 = scalar_lea.vmem [#allocation9], %s5835_s17 }
  0x60   : > { %640 = vrot.lane.b32.xlu0 %v5841_v52, %s5709_s20  ;;  %11893 = vst [vmem:[#allocation24_spill] sm:$0xff] %v6099_v30  ;;  %11894 = vst [vmem:[#allocation25_spill] sm:$0xff] %v6102_v31  ;;  %v5535_v42 = vld [vmem:[%s5945_s10 + $0x55] ss:$8 sm:$0x3]  ;;  %v6115_v19 = vmul.f32 %v1247_v3, %v5844_v53  ;;  %v6118_v48 = vmul.f32 %v1251_v6, %v5851_v54  ;;  %v6121_v49 = vrot.slane %v5512_v0, %v5940_v61  ;;  %s557_s14 = scalar_lea.vmem [#allocation11], %s5835_s17 }
  0x61   : > { %11895 = vst [vmem:[#allocation26_spill] sm:$0xff] %v6108_v43  ;;  %v5526_v13 = vld [vmem:[%s5945_s10 + $0x44] ss:$8 sm:$0x3]  ;;  %v1802_v30 = vrot.slane %v5528_v12, %v5940_v61  ;;  %v6126_v43 = vmul.f32 %v1435_v24, %v5844_v53  ;;  %v6129_v7 = vrot.slane %v5519_v37, %v5937_v60  ;;  %v6132_v2 = vrot.slane %v5519_v37, %v5940_v61  ;;  %s5645_s15 = sshll.u32 (%p5783_p5), %s5474_s24, 4 }
  0x62   : > { %11896 = vst [vmem:[#allocation27_spill] sm:$0xff] %v6115_v19  ;;  %11897 = vst [vmem:[#allocation28_spill] sm:$0xff] %v6118_v48  ;;  %v5533_v31 = vld [vmem:[%s5945_s10 + $0x53] ss:$8 sm:$0x3]  ;;  %v1986_v19 = vrot.slane %v5535_v42, %v5937_v60  ;;  %v6136_v1 = vmul.f32 %v1439_v36, %v5851_v54  ;;  %v6139_v0 = vrot.slane %v5526_v13, %v5937_v60  ;;  %s5300_s17 = scalar_lea.vmem (%p5783_p5), %s11626_s6, %s5645_s15 }
  0x63   : > { %646 = vrot.lane.b32.xlu1 %v5861_v56, %s5709_s20  ;;  %11898 = vst [vmem:[#allocation29_spill] sm:$0xff] %v6121_v49  ;;  %11899 = vst [vmem:[#allocation30_spill] sm:$0xff] %v6126_v43  ;;  %v6142_v12 = vrot.slane %v5526_v13, %v5940_v61  ;;  %v1990_v48 = vrot.slane %v5535_v42, %v5940_v61  ;;  %v6146_v43 = vmul.f32 %v1610_v59, %v5844_v53 }
  0x64   : > { %644 = vrot.lane.b32.xlu0 %v5864_v57, %s5709_s20  ;;  %11900 = vst [vmem:[#allocation31_spill] sm:$0xff] %v6129_v7  ;;  %11901 = vst [vmem:[#allocation32_spill] sm:$0xff] %v6132_v2  ;;  %v6149_v7 = vmul.f32 %v1614_v18, %v5851_v54  ;;  %v6152_v37 = vmul.f32 %v1798_v25, %v5844_v53  ;;  %v6155_v2 = vrot.slane %v5533_v31, %v5937_v60 }
  0x65   : > { %11902 = vst [vmem:[#allocation33_spill] sm:$0xff] %v6136_v1  ;;  %11903 = vst [vmem:[#allocation34_spill] sm:$0xff] %v6139_v0  ;;  %v6158_v1 = vmul.f32 %v1802_v30, %v5851_v54  ;;  %v6161_v13 = vrot.slane %v5533_v31, %v5940_v61  ;;  %v6165_v42 = vmul.f32 %v6037_v40, %v5841_v52 }
  0x66   : > { %11904 = vst [vmem:[#allocation35_spill] sm:$0xff] %v6142_v12  ;;  %11905 = vst [vmem:[#allocation36_spill] sm:$0xff] %v6146_v43  ;;  %v6169_v43 = vmul.f32 %v6040_v41, %v5861_v56  ;;  %v6183_v31 = vmul.f32 %v1247_v3, %v5841_v52 }
  0x67   : > { %606 = vrot.lane.b32.xlu1 %v5854_v55, %s5710_s26  ;;  %11906 = vst [vmem:[#allocation37_spill] sm:$0xff] %v6149_v7  ;;  %11907 = vst [vmem:[#allocation38_spill] sm:$0xff] %v6152_v37  ;;  %v6172_v7 = vmul.f32 %v1986_v19, %v5844_v53  ;;  %v6176_v37 = vmul.f32 %v6051_v46, %v5841_v52 }
  0x68   : > { %604 = vrot.lane.b32.xlu0 %v5844_v53, %s5710_s26  ;;  %11908 = vst [vmem:[#allocation39_spill] sm:$0xff] %v6155_v2  ;;  %11909 = vst [vmem:[#allocation40_spill] sm:$0xff] %v6158_v1  ;;  %v6180_v1 = vmul.f32 %v6054_v47, %v5861_v56 }
  0x69   : > { %11910 = vst [vmem:[#allocation41_spill] sm:$0xff] %v6161_v13  ;;  %11911 = vst [vmem:[#allocation42_spill] sm:$0xff] %v6165_v42  ;;  %v6186_v42 = vmul.f32 %v1990_v48, %v5851_v54 }
  0x6a   : > { %11912 = vst [vmem:[#allocation43_spill] sm:$0xff] %v6169_v43  ;;  %11913 = vst [vmem:[#allocation44_spill] sm:$0xff] %v6172_v7  ;;  %v6189_v43 = vmul.f32 %v1251_v6, %v5861_v56  ;;  %v6198_v7 = vmul.f32 %v1610_v59, %v5841_v52 }
  0x6b   : > { %610 = vrot.lane.b32.xlu1 %v5851_v54, %s5710_s26  ;;  %11914 = vst [vmem:[#allocation45_spill] sm:$0xff] %v6176_v37  ;;  %11915 = vst [vmem:[#allocation46_spill] sm:$0xff] %v6180_v1  ;;  %v6195_v37 = vmul.f32 %v1439_v36, %v5861_v56  ;;  %v6201_v1 = vmul.f32 %v1614_v18, %v5861_v56 }
  0x6c   : > { %608 = vrot.lane.b32.xlu0 %v5841_v52, %s5710_s26  ;;  %11916 = vst [vmem:[#allocation47_spill] sm:$0xff] %v6183_v31  ;;  %11917 = vst [vmem:[#allocation48_spill] sm:$0xff] %v6186_v42  ;;  %v6207_v31 = vmul.f32 %v1802_v30, %v5861_v56 }
  0x6d   : > { %11918 = vst [vmem:[#allocation49_spill] sm:$0xff] %v6189_v43  ;;  %11920 = vst [vmem:[#allocation51_spill] sm:$0xff] %v6195_v37  ;;  %v6210_v43 = vmul.f32 %v1986_v19, %v5841_v52 }
  0x6e   : > { %11921 = vst [vmem:[#allocation52_spill] sm:$0xff] %v6198_v7  ;;  %11922 = vst [vmem:[#allocation53_spill] sm:$0xff] %v6201_v1  ;;  %v6217_v7 = vmul.f32 %v6037_v40, %v5854_v55  ;;  %v6221_v1 = vmul.f32 %v6040_v41, %v5864_v57  ;;  %v5494_v40 = vld [vmem:[%s5945_s10 + $0x4] ss:$8 sm:$0x3]  ;;  %v6240_v41 = vmul.f32 %v1435_v24, %v5854_v55 }
  0x6f   : > { %614 = vrot.lane.b32.xlu1 %v5861_v56, %s5710_s26  ;;  %11924 = vst [vmem:[#allocation55_spill] sm:$0xff] %v6207_v31  ;;  %11925 = vst [vmem:[#allocation56_spill] sm:$0xff] %v6210_v43  ;;  %v6229_v31 = vmul.f32 %v6054_v47, %v5864_v57  ;;  %v6246_v47 = vmul.f32 %v1610_v59, %v5854_v55  ;;  %v6264_v59 = vmul.f32 %v1990_v48, %v5864_v57 }
  0x70   : > { %612 = vrot.lane.b32.xlu0 %v5864_v57, %s5710_s26  ;;  %11927 = vst [vmem:[#allocation58_spill] sm:$0xff] %v6217_v7  ;;  %11928 = vst [vmem:[#allocation59_spill] sm:$0xff] %v6221_v1  ;;  %v5501_v7 = vld [vmem:[%s5945_s10 + $0x13] ss:$8 sm:$0x3] }
  0x71   : > { %11930 = vst [vmem:[#allocation61_spill] sm:$0xff] %v6229_v31  ;;  %11933 = vst [vmem:[#allocation64_spill] sm:$0xff] %v6240_v41  ;;  %v5515_v31 = vld [vmem:[%s5945_s10 + $0x31] ss:$8 sm:$0x3] }
  0x72   : > { %11935 = vst [vmem:[#allocation66_spill] sm:$0xff] %v6246_v47  ;;  %11940 = vst [vmem:[#allocation71_spill] sm:$0xff] %v6264_v59  ;;  %v6269_v47 = vrot.slane %v5494_v40, %v5937_v60 }
  0x73   : > { %683 = vrot.lane.b32.xlu1 %v5854_v55, %s5711_s27 }
  0x74   : > { %681 = vrot.lane.b32.xlu0 %v5844_v53, %s5711_s27  ;;  %11941 = vst [vmem:[#allocation72_spill] sm:$0xff] %v6269_v47  ;;  %v5509_v47 = vld [vmem:[%s5945_s10 + $0x23] ss:$8 sm:$0x3] }
  0x77   : > { %687 = vrot.lane.b32.xlu1 %v5851_v54, %s5711_s27 }
  0x78   : > { %685 = vrot.lane.b32.xlu0 %v5841_v52, %s5711_s27 }
  0x7b   : > { %691 = vrot.lane.b32.xlu1 %v5861_v56, %s5711_s27 }
  0x7c   : > { %689 = vrot.lane.b32.xlu0 %v5864_v57, %s5711_s27 }
  0x7f   : > { %715 = vrot.lane.b32.xlu1 %v5854_v55, %s5712_s7 }
  0x80   : > { %713 = vrot.lane.b32.xlu0 %v5844_v53, %s5712_s7 }
  0x83   : > { %719 = vrot.lane.b32.xlu1 %v5851_v54, %s5712_s7 }
  0x84   : > { %717 = vrot.lane.b32.xlu0 %v5841_v52, %s5712_s7 }
  0x87   : > { %723 = vrot.lane.b32.xlu1 %v5861_v56, %s5712_s7 }
  0x88   : > { %721 = vrot.lane.b32.xlu0 %v5864_v57, %s5712_s7 }
  0x8b   : > { %747 = vrot.lane.b32.xlu1 %v5854_v55, %s5713_s8 }
  0x8c   : > { %745 = vrot.lane.b32.xlu0 %v5844_v53, %s5713_s8  ;;  %v6192_v53 = vmul.f32 %v1435_v24, %v5841_v52  ;;  %v6258_v24 = vmul.f32 %v1802_v30, %v5864_v57  ;;  %v6275_v30 = vrot.slane %v5501_v7, %v5937_v60 }
  0x8e   : > { %11919 = vst [vmem:[#allocation50_spill] sm:$0xff] %v6192_v53  ;;  %v6213_v53 = vmul.f32 %v1990_v48, %v5861_v56  ;;  %11938 = vst [vmem:[#allocation69_spill] sm:$0xff] %v6258_v24  ;;  %v6278_v24 = vrot.slane %v5501_v7, %v5940_v61 }
  0x8f   : > { %751 = vrot.lane.b32.xlu1 %v5851_v54, %s5713_s8  ;;  %v6204_v54 = vmul.f32 %v1798_v25, %v5841_v52  ;;  %11943 = vst [vmem:[#allocation74_spill] sm:$0xff] %v6275_v30  ;;  %v5502_v30 = vld [vmem:[%s5945_s10 + $0x14] ss:$8 sm:$0x3] }
  0x90   : > { %749 = vrot.lane.b32.xlu0 %v5841_v52, %s5713_s8  ;;  %11926 = vst [vmem:[#allocation57_spill] sm:$0xff] %v6213_v53  ;;  %v6232_v52 = vmul.f32 %v1247_v3, %v5854_v55  ;;  %v6249_v3 = vmul.f32 %v1614_v18, %v5864_v57  ;;  %v5522_v18 = vld [vmem:[%s5945_s10 + $0x40] ss:$8 sm:$0x3]  ;;  %11944 = vst [vmem:[#allocation75_spill] sm:$0xff] %v6278_v24 }
  0x91   : > { %11923 = vst [vmem:[#allocation54_spill] sm:$0xff] %v6204_v54  ;;  %v6225_v54 = vmul.f32 %v6051_v46, %v5854_v55  ;;  %v6243_v46 = vmul.f32 %v1439_v36, %v5864_v57  ;;  %v6261_v36 = vmul.f32 %v1986_v19, %v5854_v55  ;;  %v5495_v19 = vld [vmem:[%s5945_s10 + $0x5] ss:$8 sm:$0x3]  ;;  %v6297_v7 = vrot.slane %v5522_v18, %v5937_v60 }
  0x92   : > { %11931 = vst [vmem:[#allocation62_spill] sm:$0xff] %v6232_v52  ;;  %11936 = vst [vmem:[#allocation67_spill] sm:$0xff] %v6249_v3  ;;  %v5508_v52 = vld [vmem:[%s5945_s10 + $0x22] ss:$8 sm:$0x3]  ;;  %v6300_v24 = vrot.slane %v5522_v18, %v5940_v61  ;;  %v6320_v18 = vrot.slane %v5495_v19, %v5940_v61 }
  0x93   : > { %755 = vrot.lane.b32.xlu1 %v5861_v56, %s5713_s8  ;;  %11929 = vst [vmem:[#allocation60_spill] sm:$0xff] %v6225_v54  ;;  %v6235_v56 = vmul.f32 %v1251_v6, %v5864_v57  ;;  %11934 = vst [vmem:[#allocation65_spill] sm:$0xff] %v6243_v46  ;;  %v6255_v6 = vmul.f32 %v1798_v25, %v5854_v55  ;;  %v5529_v3 = vld [vmem:[%s5945_s10 + $0x47] ss:$8 sm:$0x3]  ;;  %v6272_v25 = vrot.slane %v5494_v40, %v5940_v61 }
  0x94   : > { %753 = vrot.lane.b32.xlu0 %v5864_v57, %s5713_s8  ;;  %11939 = vst [vmem:[#allocation70_spill] sm:$0xff] %v6261_v36  ;;  %v5536_v55 = vld [vmem:[%s5945_s10 + $0x56] ss:$8 sm:$0x3]  ;;  %v6283_v57 = vrot.slane %v5508_v52, %v5937_v60  ;;  %v6286_v48 = vrot.slane %v5508_v52, %v5940_v61  ;;  %v6289_v40 = vrot.slane %v5515_v31, %v5937_v60  ;;  %11949 = vst [vmem:[#allocation80_spill] sm:$0xff] %v6297_v7 }
  0x95   : > { %11932 = vst [vmem:[#allocation63_spill] sm:$0xff] %v6235_v56  ;;  %11937 = vst [vmem:[#allocation68_spill] sm:$0xff] %v6255_v6  ;;  %v6303_v52 = vrot.slane %v5529_v3, %v5937_v60  ;;  %v6317_v7 = vrot.slane %v5495_v19, %v5937_v60  ;;  %v5503_v19 = vld [vmem:[%s5945_s10 + $0x15] ss:$8 sm:$0x3] }
  0x96   : > { %11942 = vst [vmem:[#allocation73_spill] sm:$0xff] %v6272_v25  ;;  %11945 = vst [vmem:[#allocation76_spill] sm:$0xff] %v6283_v57  ;;  %v6292_v25 = vrot.slane %v5515_v31, %v5940_v61  ;;  %v5523_v57 = vld [vmem:[%s5945_s10 + $0x41] ss:$8 sm:$0x3]  ;;  %v6311_v31 = vrot.slane %v5536_v55, %v5937_v60 }
  0x97   : > { %11946 = vst [vmem:[#allocation77_spill] sm:$0xff] %v6286_v48  ;;  %11947 = vst [vmem:[#allocation78_spill] sm:$0xff] %v6289_v40  ;;  %v6306_v48 = vrot.slane %v5529_v3, %v5940_v61  ;;  %v5516_v40 = vld [vmem:[%s5945_s10 + $0x32] ss:$8 sm:$0x3]  ;;  %v6325_v3 = vrot.slane %v5502_v30, %v5937_v60 }
  0x98   : > { %11948 = vst [vmem:[#allocation79_spill] sm:$0xff] %v6292_v25  ;;  %11950 = vst [vmem:[#allocation81_spill] sm:$0xff] %v6300_v24  ;;  %v6314_v25 = vrot.slane %v5536_v55, %v5940_v61  ;;  %v5537_v24 = vld [vmem:[%s5945_s10 + $0x57] ss:$8 sm:$0x3]  ;;  %v6334_v55 = vrot.slane %v5509_v47, %v5940_v61  ;;  %v6339_v59 = vrot.slane %v5516_v40, %v5937_v60 }
  0x99   : > { %11951 = vst [vmem:[#allocation82_spill] sm:$0xff] %v6303_v52  ;;  %11952 = vst [vmem:[#allocation83_spill] sm:$0xff] %v6306_v48  ;;  %v5530_v52 = vld [vmem:[%s5945_s10 + $0x50] ss:$8 sm:$0x3]  ;;  %v6328_v48 = vrot.slane %v5502_v30, %v5940_v61  ;;  %v6345_v30 = vrot.slane %v5523_v57, %v5937_v60 }
  0x9a   : > { %11953 = vst [vmem:[#allocation84_spill] sm:$0xff] %v6311_v31  ;;  %11954 = vst [vmem:[#allocation85_spill] sm:$0xff] %v6314_v25  ;;  %v6331_v31 = vrot.slane %v5509_v47, %v5937_v60  ;;  %v5510_v47 = vld [vmem:[%s5945_s10 + $0x24] ss:$8 sm:$0x3]  ;;  %v6356_v36 = vrot.slane %v5530_v52, %v5940_v61 }
  0x9b   : > { %11955 = vst [vmem:[#allocation86_spill] sm:$0xff] %v6317_v7  ;;  %11956 = vst [vmem:[#allocation87_spill] sm:$0xff] %v6320_v18  ;;  %v5496_v7 = vld [vmem:[%s5945_s10 + $0x6] ss:$8 sm:$0x3] }
  0x9c   : > { %11957 = vst [vmem:[#allocation88_spill] sm:$0xff] %v6325_v3  ;;  %11958 = vst [vmem:[#allocation89_spill] sm:$0xff] %v6328_v48  ;;  %v6342_v3 = vrot.slane %v5516_v40, %v5940_v61  ;;  %v6353_v48 = vrot.slane %v5530_v52, %v5937_v60  ;;  %v6362_v40 = vrot.slane %v5537_v24, %v5940_v61  ;;  %v5531_v6 = vld [vmem:[%s5945_s10 + $0x51] ss:$8 sm:$0x3] }
  0x9d   : > { %11959 = vst [vmem:[#allocation90_spill] sm:$0xff] %v6331_v31  ;;  %11960 = vst [vmem:[#allocation91_spill] sm:$0xff] %v6334_v55  ;;  %v6348_v31 = vrot.slane %v5523_v57, %v5940_v61  ;;  %v5517_v55 = vld [vmem:[%s5945_s10 + $0x33] ss:$8 sm:$0x3]  ;;  %v6370_v57 = vrot.slane %v5496_v7, %v5940_v61  ;;  %v6376_v52 = vrot.slane %v5503_v19, %v5940_v61 }
  0x9e   : > { %11961 = vst [vmem:[#allocation92_spill] sm:$0xff] %v6339_v59  ;;  %11962 = vst [vmem:[#allocation93_spill] sm:$0xff] %v6342_v3  ;;  %v6359_v59 = vrot.slane %v5537_v24, %v5937_v60  ;;  %v5524_v3 = vld [vmem:[%s5945_s10 + $0x42] ss:$8 sm:$0x3]  ;;  %v6383_v24 = vrot.slane %v5510_v47, %v5940_v61 }
  0x9f   : > { %11963 = vst [vmem:[#allocation94_spill] sm:$0xff] %v6345_v30  ;;  %11964 = vst [vmem:[#allocation95_spill] sm:$0xff] %v6348_v31  ;;  %v6367_v30 = vrot.slane %v5496_v7, %v5937_v60  ;;  %v6373_v31 = vrot.slane %v5503_v19, %v5937_v60  ;;  %v6395_v19 = vrot.slane %v5524_v3, %v5940_v61 }
  0xa0   : > { %11965 = vst [vmem:[#allocation96_spill] sm:$0xff] %v6353_v48  ;;  %11966 = vst [vmem:[#allocation97_spill] sm:$0xff] %v6356_v36  ;;  %v5538_v36 = vld [vmem:[%s5945_s10 + $0x60] ss:$8 sm:$0x3] }
  0xa1   : > { %11967 = vst [vmem:[#allocation98_spill] sm:$0xff] %v6359_v59  ;;  %11968 = vst [vmem:[#allocation99_spill] sm:$0xff] %v6362_v40  ;;  %v6380_v59 = vrot.slane %v5510_v47, %v5937_v60  ;;  %v6386_v40 = vrot.slane %v5517_v55, %v5937_v60  ;;  %v6401_v47 = vrot.slane %v5531_v6, %v5940_v61 }
  0xa2   : > { %11969 = vst [vmem:[#allocation100_spill] sm:$0xff] %v6367_v30  ;;  %11970 = vst [vmem:[#allocation101_spill] sm:$0xff] %v6370_v57  ;;  %v6389_v30 = vrot.slane %v5517_v55, %v5940_v61 }
  0xa3   : > { %11971 = vst [vmem:[#allocation102_spill] sm:$0xff] %v6373_v31  ;;  %11972 = vst [vmem:[#allocation103_spill] sm:$0xff] %v6376_v52  ;;  %v6392_v31 = vrot.slane %v5524_v3, %v5937_v60  ;;  %v6398_v52 = vrot.slane %v5531_v6, %v5937_v60 }
  0xa4   : > { %11973 = vst [vmem:[#allocation104_spill] sm:$0xff] %v6380_v59  ;;  %11974 = vst [vmem:[#allocation105_spill] sm:$0xff] %v6383_v24 }
  0xa5   : > { %11975 = vst [vmem:[#allocation106_spill] sm:$0xff] %v6386_v40  ;;  %11976 = vst [vmem:[#allocation107_spill] sm:$0xff] %v6389_v30  ;;  %v6408_v30 = vrot.slane %v5538_v36, %v5937_v60 }
  0xa6   : > { %11977 = vst [vmem:[#allocation108_spill] sm:$0xff] %v6392_v31  ;;  %11978 = vst [vmem:[#allocation109_spill] sm:$0xff] %v6395_v19  ;;  %v6411_v31 = vrot.slane %v5538_v36, %v5940_v61 }
  0xa7   : > { %11979 = vst [vmem:[#allocation110_spill] sm:$0xff] %v6398_v52  ;;  %11980 = vst [vmem:[#allocation111_spill] sm:$0xff] %v6401_v47 }
  0xa8   : > { %11981 = vst [vmem:[#allocation112_spill] sm:$0xff] %v6408_v30  ;;  %11982 = vst [vmem:[#allocation113_spill] sm:$0xff] %v6411_v31 }
  0xc1   : > { %v576_v18 = vpop.permute.xlu1 %575 }
  0xc2   : > { %v572_v25 = vpop.permute.xlu0 %571 }
  0xc5   : > { %v578_v7 = vpop.permute.xlu1 %577 }
  0xc6   : > { %v574_v57 = vpop.permute.xlu0 %573  ;;  %v586_v40 = vsel %vm585_vm0, %v572_v25, %v578_v7  ;;  %v589_v55 = vsel %vm585_vm0, %v578_v7, %v572_v25 }
  0xc7   : > { %v789_v3 = vmul.f32 %v5953_v4, %v589_v55  ;;  %v790_v19 = vmul.f32 %v5956_v5, %v586_v40  ;;  %v1009_v52 = vmul.f32 %v5961_v8, %v589_v55  ;;  %v1010_v6 = vmul.f32 %v5964_v9, %v586_v40 }
  0xc8   : > { %v1191_v47 = vmul.f32 %v5967_v10, %v589_v55  ;;  %v1192_v25 = vmul.f32 %v5970_v11, %v586_v40  ;;  %v1379_v7 = vmul.f32 %v5975_v14, %v589_v55  ;;  %v1380_v60 = vmul.f32 %v5978_v15, %v586_v40 }
  0xc9   : > { %v6423_v36 = vmul.f32 %v5981_v16, %v589_v55  ;;  %v6426_v61 = vmul.f32 %v5984_v17, %v586_v40  ;;  %v6429_v31 = vmul.f32 %v5989_v20, %v589_v55  ;;  %v6432_v30 = vmul.f32 %v5992_v21, %v586_v40  ;;  %v582_v24 = vpop.permute.xlu1 %581 }
  0xca   : > { %v6435_v59 = vmul.f32 %v5995_v22, %v589_v55  ;;  %v6438_v48 = vmul.f32 %v5998_v23, %v586_v40  ;;  %v588_v46 = vsel %vm585_vm0, %v576_v18, %v582_v24  ;;  %v591_v41 = vsel %vm585_vm0, %v582_v24, %v576_v18  ;;  %v580_v40 = vpop.permute.xlu0 %579 }
  0xcb   : > { %v6445_v56 = vmul.f32 %v5953_v4, %v591_v41  ;;  %v6448_v54 = vmul.f32 %v5956_v5, %v588_v46  ;;  %v6451_v1 = vmul.f32 %v5961_v8, %v591_v41  ;;  %v6454_v55 = vmul.f32 %v5964_v9, %v588_v46 }
  0xcc   : > { %v6457_v53 = vmul.f32 %v5967_v10, %v591_v41  ;;  %v6460_v43 = vmul.f32 %v5970_v11, %v588_v46  ;;  %v6463_v18 = vmul.f32 %v5975_v14, %v591_v41  ;;  %v6466_v24 = vmul.f32 %v5978_v15, %v588_v46 }
  0xcd   : > { %v6469_v37 = vmul.f32 %v5981_v16, %v591_v41  ;;  %v6472_v42 = vmul.f32 %v5984_v17, %v588_v46  ;;  %v6475_v13 = vmul.f32 %v5989_v20, %v591_v41  ;;  %v6478_v2 = vmul.f32 %v5992_v21, %v588_v46  ;;  %v6480_v12 = vpop.permute.xlu1 %638 }
  0xce   : > { %v6483_v0 = vmul.f32 %v5995_v22, %v591_v41  ;;  %v6486_v49 = vmul.f32 %v5998_v23, %v588_v46  ;;  %v587_v63 = vsel %vm585_vm0, %v574_v57, %v580_v40  ;;  %v590_v58 = vsel %vm585_vm0, %v580_v40, %v574_v57 }
  0xcf   : > { %11983 = vst [vmem:[#allocation114_spill] sm:$0xff] %v6472_v42  ;;  %11984 = vst [vmem:[#allocation115_spill] sm:$0xff] %v6475_v13  ;;  %v6493_v42 = vmul.f32 %v5953_v4, %v590_v58  ;;  %v6496_v13 = vmul.f32 %v5956_v5, %v587_v63  ;;  %v6502_v41 = vmul.f32 %v5964_v9, %v587_v63 }
  0xd0   : > { %11985 = vst [vmem:[#allocation116_spill] sm:$0xff] %v6478_v2  ;;  %11986 = vst [vmem:[#allocation117_spill] sm:$0xff] %v6486_v49  ;;  %v6499_v2 = vmul.f32 %v5961_v8, %v590_v58  ;;  %v6505_v46 = vmul.f32 %v5967_v10, %v590_v58  ;;  %v6508_v49 = vmul.f32 %v5970_v11, %v587_v63  ;;  %v637_v11 = vpop.permute.xlu0 %636 }
  0xd1   : > { %v6511_v57 = vmul.f32 %v5975_v14, %v590_v58  ;;  %v6514_v4 = vmul.f32 %v5978_v15, %v587_v63  ;;  %v6517_v5 = vmul.f32 %v5981_v16, %v590_v58  ;;  %v6520_v8 = vmul.f32 %v5984_v17, %v587_v63  ;;  %v643_v40 = vpop.permute.xlu1 %642 }
  0xd2   : > { %11987 = vst [vmem:[#allocation118_spill] sm:$0xff] %v6505_v46  ;;  %11988 = vst [vmem:[#allocation119_spill] sm:$0xff] %v6508_v49  ;;  %v6523_v9 = vmul.f32 %v5989_v20, %v590_v58  ;;  %v6526_v10 = vmul.f32 %v5992_v21, %v587_v63  ;;  %v6529_v14 = vmul.f32 %v5995_v22, %v590_v58 }
  0xd3   : > { %11989 = vst [vmem:[#allocation120_spill] sm:$0xff] %v6511_v57  ;;  %11990 = vst [vmem:[#allocation121_spill] sm:$0xff] %v6514_v4  ;;  %v6532_v15 = vmul.f32 %v5998_v23, %v587_v63  ;;  %v649_v16 = vsel %vm648_vm1, %v637_v11, %v643_v40  ;;  %v652_v17 = vsel %vm648_vm1, %v643_v40, %v637_v11 }
  0xd4   : > { %11991 = vst [vmem:[#allocation122_spill] sm:$0xff] %v6517_v5  ;;  %11992 = vst [vmem:[#allocation123_spill] sm:$0xff] %v6520_v8  ;;  %v839_v20 = vmul.f32 %v6003_v26, %v652_v17  ;;  %v1047_v21 = vmul.f32 %v6009_v28, %v652_v17  ;;  %v1229_v22 = vmul.f32 %v6017_v32, %v652_v17 }
  0xd5   : > { %11993 = vst [vmem:[#allocation124_spill] sm:$0xff] %v6523_v9  ;;  %11994 = vst [vmem:[#allocation125_spill] sm:$0xff] %v6526_v10  ;;  %v840_v9 = vmul.f32 %v6006_v27, %v649_v16  ;;  %v1048_v10 = vmul.f32 %v6012_v29, %v649_v16  ;;  %v1230_v58 = vmul.f32 %v6020_v33, %v649_v16  ;;  %v647_v8 = vpop.permute.xlu1 %646 }
  0xd6   : > { %11995 = vst [vmem:[#allocation126_spill] sm:$0xff] %v6529_v14  ;;  %11996 = vst [vmem:[#allocation127_spill] sm:$0xff] %v6532_v15  ;;  %v1417_v23 = vmul.f32 %v6023_v34, %v652_v17  ;;  %v1418_v63 = vmul.f32 %v6026_v35, %v649_v16  ;;  %v6546_v15 = vadd.f32 %v839_v20, %v789_v3 }
  0xd7   : > { %v6548_v14 = vadd.f32 %v840_v9, %v790_v19  ;;  %v6550_v11 = vadd.f32 %v1047_v21, %v1009_v52  ;;  %v6552_v40 = vadd.f32 %v1048_v10, %v1010_v6  ;;  %v6554_v5 = vadd.f32 %v1229_v22, %v1191_v47  ;;  %v641_v9 = vpop.permute.xlu0 %640 }
  0xd8   : > { %v6556_v4 = vadd.f32 %v1230_v58, %v1192_v25  ;;  %v6558_v57 = vadd.f32 %v1417_v23, %v1379_v7  ;;  %v6560_v49 = vadd.f32 %v1418_v63, %v1380_v60  ;;  %v1592_v46 = vmul.f32 %v6031_v38, %v652_v17 }
  0xd9   : > { %v1593_v3 = vmul.f32 %v6034_v39, %v649_v16  ;;  %v1780_v19 = vmul.f32 %v6045_v44, %v652_v17  ;;  %v1781_v52 = vmul.f32 %v6048_v45, %v649_v16  ;;  %v1968_v6 = vmul.f32 %v6059_v50, %v652_v17 }
  0xda   : > { %v1969_v47 = vmul.f32 %v6062_v51, %v649_v16  ;;  %v651_v25 = vsel %vm648_vm1, %v641_v9, %v647_v8  ;;  %v654_v60 = vsel %vm648_vm1, %v647_v8, %v641_v9  ;;  %v6573_v7 = vadd.f32 %v1592_v46, %v6423_v36 }
  0xdb   : > { %v6576_v10 = vadd.f32 %v1593_v3, %v6426_v61  ;;  %v6579_v20 = vadd.f32 %v1780_v19, %v6429_v31  ;;  %v6582_v21 = vadd.f32 %v1781_v52, %v6432_v30  ;;  %v6585_v16 = vadd.f32 %v1968_v6, %v6435_v59  ;;  %v6625_v6 = vpop.permute.xlu1 %606 }
  0xdc   : > { %v6588_v17 = vadd.f32 %v1969_v47, %v6438_v48  ;;  %v843_v8 = vmul.f32 %v6003_v26, %v654_v60  ;;  %v844_v36 = vmul.f32 %v6006_v27, %v651_v25  ;;  %v1051_v46 = vmul.f32 %v6009_v28, %v654_v60 }
  0xdd   : > { %v1052_v61 = vmul.f32 %v6012_v29, %v651_v25  ;;  %v1233_v31 = vmul.f32 %v6017_v32, %v654_v60  ;;  %v1234_v22 = vmul.f32 %v6020_v33, %v651_v25  ;;  %v1421_v48 = vmul.f32 %v6023_v34, %v654_v60 }
  0xde   : > { %v6597_v30 = vadd.f32 %v843_v8, %v6445_v56  ;;  %v6600_v59 = vadd.f32 %v844_v36, %v6448_v54  ;;  %v1422_v58 = vmul.f32 %v6026_v35, %v651_v25  ;;  %v6606_v23 = vadd.f32 %v1051_v46, %v6451_v1  ;;  %v645_v54 = vpop.permute.xlu0 %644  ;;  %v11997_v8 = vld [vmem:[#allocation114_spill] sm:$0xff] }
  0xdf   : > { %v6609_v63 = vadd.f32 %v1052_v61, %v6454_v55  ;;  %v6612_v3 = vadd.f32 %v1233_v31, %v6457_v53  ;;  %v6615_v56 = vadd.f32 %v1234_v22, %v6460_v43  ;;  %v6618_v19 = vadd.f32 %v1421_v48, %v6463_v18  ;;  %v11998_v61 = vld [vmem:[#allocation115_spill] sm:$0xff] }
  0xe0   : > { %v6621_v52 = vadd.f32 %v1422_v58, %v6466_v24  ;;  %v1596_v9 = vmul.f32 %v6031_v38, %v654_v60  ;;  %v1597_v1 = vmul.f32 %v6034_v39, %v651_v25  ;;  %v1784_v55 = vmul.f32 %v6045_v44, %v654_v60 }
  0xe1   : > { %v1785_v53 = vmul.f32 %v6048_v45, %v651_v25  ;;  %v1972_v43 = vmul.f32 %v6059_v50, %v654_v60  ;;  %v1973_v47 = vmul.f32 %v6062_v51, %v651_v25  ;;  %v650_v36 = vsel %vm648_vm1, %v6480_v12, %v645_v54  ;;  %v11999_v60 = vld [vmem:[#allocation116_spill] sm:$0xff]  ;;  %v12002_v25 = vld [vmem:[#allocation117_spill] sm:$0xff] }
  0xe2   : > { %v6632_v18 = vadd.f32 %v1596_v9, %v6469_v37  ;;  %v6635_v24 = vadd.f32 %v1597_v1, %v11997_v8  ;;  %v653_v46 = vsel %vm648_vm1, %v645_v54, %v6480_v12  ;;  %v6644_v31 = vadd.f32 %v1784_v55, %v11998_v61 }
  0xe3   : > { %v6647_v22 = vadd.f32 %v1785_v53, %v11999_v60  ;;  %v6650_v37 = vadd.f32 %v1972_v43, %v6483_v0  ;;  %v6653_v48 = vadd.f32 %v1973_v47, %v12002_v25  ;;  %v841_v58 = vmul.f32 %v6003_v26, %v653_v46  ;;  %v605_v25 = vpop.permute.xlu0 %604 }
  0xe4   : > { %v842_v9 = vmul.f32 %v6006_v27, %v650_v36  ;;  %v1049_v1 = vmul.f32 %v6009_v28, %v653_v46  ;;  %v1050_v12 = vmul.f32 %v6012_v29, %v650_v36  ;;  %v1231_v54 = vmul.f32 %v6017_v32, %v653_v46  ;;  %v611_v28 = vpop.permute.xlu1 %610  ;;  %v12008_v29 = vld [vmem:[#allocation118_spill] sm:$0xff] }
  0xe5   : > { %12000 = vst [vmem:[#allocation114_spill] sm:$0xff] %v6647_v22  ;;  %12001 = vst [vmem:[#allocation115_spill] sm:$0xff] %v6650_v37  ;;  %v1232_v55 = vmul.f32 %v6020_v33, %v650_v36  ;;  %v1419_v53 = vmul.f32 %v6023_v34, %v653_v46  ;;  %v1420_v0 = vmul.f32 %v6026_v35, %v650_v36  ;;  %v12010_v33 = vld [vmem:[#allocation119_spill] sm:$0xff]  ;;  %v12012_v35 = vld [vmem:[#allocation120_spill] sm:$0xff] }
  0xe6   : > { %12003 = vst [vmem:[#allocation116_spill] sm:$0xff] %v6653_v48  ;;  %v6664_v43 = vadd.f32 %v841_v58, %v6493_v42  ;;  %v6667_v47 = vadd.f32 %v842_v9, %v6496_v13  ;;  %v6670_v26 = vadd.f32 %v1049_v1, %v6499_v2  ;;  %v6673_v27 = vadd.f32 %v1050_v12, %v6502_v41  ;;  %v12014_v42 = vld [vmem:[#allocation121_spill] sm:$0xff] }
  0xe7   : > { %v6676_v32 = vadd.f32 %v1231_v54, %v12008_v29  ;;  %v6679_v34 = vadd.f32 %v1232_v55, %v12010_v33  ;;  %v6682_v8 = vadd.f32 %v1419_v53, %v12012_v35  ;;  %v6685_v61 = vadd.f32 %v1420_v0, %v12014_v42  ;;  %v12016_v54 = vld [vmem:[#allocation122_spill] sm:$0xff]  ;;  %v12028_v29 = vld [vmem:[#allocation16_spill] sm:$0xff]  ;;  %v12029_v33 = vld [vmem:[#allocation17_spill] sm:$0xff] }
  0xe8   : > { %12004 = vst [vmem:[#allocation117_spill] sm:$0xff] %v6664_v43  ;;  %12005 = vst [vmem:[#allocation128_spill] sm:$0xff] %v6667_v47  ;;  %v1594_v13 = vmul.f32 %v6031_v38, %v653_v46  ;;  %v1595_v2 = vmul.f32 %v6034_v39, %v650_v36  ;;  %v1782_v41 = vmul.f32 %v6045_v44, %v653_v46  ;;  %v12018_v38 = vld [vmem:[#allocation123_spill] sm:$0xff]  ;;  %v12020_v44 = vld [vmem:[#allocation124_spill] sm:$0xff] }
  0xe9   : > { %12006 = vst [vmem:[#allocation129_spill] sm:$0xff] %v6670_v26  ;;  %12007 = vst [vmem:[#allocation130_spill] sm:$0xff] %v6673_v27  ;;  %v1783_v60 = vmul.f32 %v6048_v45, %v650_v36  ;;  %v1970_v58 = vmul.f32 %v6059_v50, %v653_v46  ;;  %v1971_v9 = vmul.f32 %v6062_v51, %v650_v36  ;;  %v12022_v45 = vld [vmem:[#allocation125_spill] sm:$0xff]  ;;  %v12024_v50 = vld [vmem:[#allocation126_spill] sm:$0xff] }
  0xea   : > { %12009 = vst [vmem:[#allocation118_spill] sm:$0xff] %v6676_v32  ;;  %12011 = vst [vmem:[#allocation119_spill] sm:$0xff] %v6679_v34  ;;  %v617_v1 = vsel %vm616_vm2, %v605_v25, %v611_v28  ;;  %v620_v12 = vsel %vm616_vm2, %v611_v28, %v605_v25  ;;  %v6698_v55 = vadd.f32 %v1594_v13, %v12016_v54  ;;  %v12026_v36 = vld [vmem:[#allocation127_spill] sm:$0xff]  ;;  %v12030_v42 = vld [vmem:[#allocation18_spill] sm:$0xff] }
  0xeb   : > { %12013 = vst [vmem:[#allocation120_spill] sm:$0xff] %v6682_v8  ;;  %12015 = vst [vmem:[#allocation121_spill] sm:$0xff] %v6685_v61  ;;  %v6701_v39 = vadd.f32 %v1595_v2, %v12018_v38  ;;  %v6704_v53 = vadd.f32 %v1782_v41, %v12020_v44  ;;  %v6707_v0 = vadd.f32 %v1783_v60, %v12022_v45  ;;  %v12031_v2 = vld [vmem:[#allocation19_spill] sm:$0xff]  ;;  %v12032_v54 = vld [vmem:[#allocation22_spill] sm:$0xff] }
  0xec   : > { %12017 = vst [vmem:[#allocation122_spill] sm:$0xff] %v6698_v55  ;;  %v6710_v51 = vadd.f32 %v1970_v58, %v12024_v50  ;;  %v6713_v46 = vadd.f32 %v1971_v9, %v12026_v36  ;;  %v814_v28 = vmul.f32 %v12028_v29, %v620_v12  ;;  %v815_v35 = vmul.f32 %v12029_v33, %v617_v1  ;;  %v12033_v38 = vld [vmem:[#allocation25_spill] sm:$0xff]  ;;  %v12034_v60 = vld [vmem:[#allocation20_spill] sm:$0xff]  ;;  %v12038_v9 = vld [vmem:[#allocation26_spill] sm:$0xff] }
  0xed   : > { %12019 = vst [vmem:[#allocation123_spill] sm:$0xff] %v6701_v39  ;;  %12021 = vst [vmem:[#allocation124_spill] sm:$0xff] %v6704_v53  ;;  %v1028_v13 = vmul.f32 %v12030_v42, %v620_v12  ;;  %v1029_v25 = vmul.f32 %v12031_v2, %v617_v1  ;;  %v1210_v41 = vmul.f32 %v12032_v54, %v620_v12  ;;  %v12036_v58 = vld [vmem:[#allocation21_spill] sm:$0xff]  ;;  %v12042_v39 = vld [vmem:[#allocation24_spill] sm:$0xff] }
  0xee   : > { %12023 = vst [vmem:[#allocation125_spill] sm:$0xff] %v6707_v0  ;;  %12025 = vst [vmem:[#allocation126_spill] sm:$0xff] %v6710_v51  ;;  %v1211_v44 = vmul.f32 %v12033_v38, %v617_v1  ;;  %v6722_v45 = vadd.f32 %v12034_v60, %v814_v28  ;;  %v6725_v50 = vadd.f32 %v12036_v58, %v815_v35  ;;  %v12040_v0 = vld [vmem:[#allocation23_spill] sm:$0xff]  ;;  %v12046_v34 = vld [vmem:[#allocation28_spill] sm:$0xff]  ;;  %v615_v28 = vpop.permute.xlu1 %614 }
  0xef   : > { %12027 = vst [vmem:[#allocation127_spill] sm:$0xff] %v6713_v46  ;;  %v1398_v36 = vmul.f32 %v12038_v9, %v620_v12  ;;  %v12039_v46 = vld [vmem:[#allocation29_spill] sm:$0xff]  ;;  %v6730_v53 = vadd.f32 %v12040_v0, %v1028_v13  ;;  %v6733_v55 = vadd.f32 %v12042_v39, %v1029_v25  ;;  %v12044_v61 = vld [vmem:[#allocation27_spill] sm:$0xff]  ;;  %v12048_v60 = vld [vmem:[#allocation30_spill] sm:$0xff] }
  0xf0   : > { %12035 = vst [vmem:[#allocation16_spill] sm:$0xff] %v6722_v45  ;;  %12037 = vst [vmem:[#allocation17_spill] sm:$0xff] %v6725_v50  ;;  %v1399_v51 = vmul.f32 %v12039_v46, %v617_v1  ;;  %v6736_v8 = vadd.f32 %v12044_v61, %v1210_v41  ;;  %v6739_v32 = vadd.f32 %v12046_v34, %v1211_v44  ;;  %v12050_v58 = vld [vmem:[#allocation33_spill] sm:$0xff]  ;;  %v12052_v45 = vld [vmem:[#allocation31_spill] sm:$0xff] }
  0xf1   : > { %12041 = vst [vmem:[#allocation18_spill] sm:$0xff] %v6730_v53  ;;  %12043 = vst [vmem:[#allocation19_spill] sm:$0xff] %v6733_v55  ;;  %v6742_v35 = vadd.f32 %v12048_v60, %v1398_v36  ;;  %v1573_v27 = vmul.f32 %v12052_v45, %v620_v12  ;;  %v12053_v0 = vld [vmem:[#allocation32_spill] sm:$0xff]  ;;  %v609_v53 = vpop.permute.xlu0 %608  ;;  %v12054_v39 = vld [vmem:[#allocation34_spill] sm:$0xff] }
  0xf2   : > { %12045 = vst [vmem:[#allocation22_spill] sm:$0xff] %v6736_v8  ;;  %12047 = vst [vmem:[#allocation25_spill] sm:$0xff] %v6739_v32  ;;  %v6745_v50 = vadd.f32 %v12050_v58, %v1399_v51  ;;  %v1574_v13 = vmul.f32 %v12053_v0, %v617_v1  ;;  %v1761_v25 = vmul.f32 %v12054_v39, %v620_v12  ;;  %v12055_v55 = vld [vmem:[#allocation35_spill] sm:$0xff]  ;;  %v12057_v34 = vld [vmem:[#allocation41_spill] sm:$0xff] }
  0xf3   : > { %12049 = vst [vmem:[#allocation20_spill] sm:$0xff] %v6742_v35  ;;  %v1762_v61 = vmul.f32 %v12055_v55, %v617_v1  ;;  %v12056_v41 = vld [vmem:[#allocation39_spill] sm:$0xff]  ;;  %v1950_v44 = vmul.f32 %v12057_v34, %v617_v1  ;;  %v12058_v32 = vld [vmem:[#allocation36_spill] sm:$0xff]  ;;  %v12060_v36 = vld [vmem:[#allocation37_spill] sm:$0xff]  ;;  %v619_v51 = vsel %vm616_vm2, %v609_v53, %v615_v28  ;;  %v622_v58 = vsel %vm616_vm2, %v615_v28, %v609_v53 }
  0xf4   : > { %12051 = vst [vmem:[#allocation21_spill] sm:$0xff] %v6745_v50  ;;  %v1949_v8 = vmul.f32 %v12056_v41, %v620_v12  ;;  %v6754_v26 = vadd.f32 %v12058_v32, %v1573_v27  ;;  %v6757_v60 = vadd.f32 %v12060_v36, %v1574_v13  ;;  %v12062_v50 = vld [vmem:[#allocation38_spill] sm:$0xff]  ;;  %v12064_v47 = vld [vmem:[#allocation40_spill] sm:$0xff]  ;;  %v818_v13 = vmul.f32 %v12028_v29, %v622_v58  ;;  %v12079_v37 = vld [vmem:[#allocation49_spill] sm:$0xff] }
  0xf5   : > { %v6764_v35 = vadd.f32 %v12062_v50, %v1761_v25  ;;  %v6767_v43 = vadd.f32 %v12064_v47, %v1762_v61  ;;  %v12066_v12 = vld [vmem:[#allocation44_spill] sm:$0xff]  ;;  %v819_v36 = vmul.f32 %v12029_v33, %v619_v51  ;;  %v1033_v53 = vmul.f32 %v12031_v2, %v619_v51  ;;  %v12070_v25 = vld [vmem:[#allocation42_spill] sm:$0xff] }
  0xf6   : > { %12059 = vst [vmem:[#allocation26_spill] sm:$0xff] %v6754_v26  ;;  %12061 = vst [vmem:[#allocation29_spill] sm:$0xff] %v6757_v60  ;;  %v6770_v1 = vadd.f32 %v12066_v12, %v1949_v8  ;;  %v12068_v27 = vld [vmem:[#allocation48_spill] sm:$0xff]  ;;  %v1032_v60 = vmul.f32 %v12030_v42, %v622_v58  ;;  %v1214_v50 = vmul.f32 %v12032_v54, %v622_v58  ;;  %v12077_v26 = vld [vmem:[#allocation47_spill] sm:$0xff] }
  0xf7   : > { %12063 = vst [vmem:[#allocation23_spill] sm:$0xff] %v6764_v35  ;;  %12065 = vst [vmem:[#allocation24_spill] sm:$0xff] %v6767_v43  ;;  %v6773_v32 = vadd.f32 %v12068_v27, %v1950_v44  ;;  %v1215_v28 = vmul.f32 %v12033_v38, %v619_v51  ;;  %v1402_v47 = vmul.f32 %v12038_v9, %v622_v58  ;;  %v12071_v44 = vld [vmem:[#allocation43_spill] sm:$0xff]  ;;  %v12073_v27 = vld [vmem:[#allocation45_spill] sm:$0xff]  ;;  %v613_v35 = vpop.permute.xlu0 %612 }
  0xf8   : > { %12067 = vst [vmem:[#allocation27_spill] sm:$0xff] %v6770_v1  ;;  %v1403_v8 = vmul.f32 %v12039_v46, %v619_v51  ;;  %v6784_v61 = vadd.f32 %v12070_v25, %v818_v13  ;;  %v6787_v12 = vadd.f32 %v12071_v44, %v819_v36  ;;  %v12075_v1 = vld [vmem:[#allocation46_spill] sm:$0xff]  ;;  %v6797_v48 = vadd.f32 %v12077_v26, %v1214_v50  ;;  %v12083_v36 = vld [vmem:[#allocation51_spill] sm:$0xff] }
  0xf9   : > { %12069 = vst [vmem:[#allocation28_spill] sm:$0xff] %v6773_v32  ;;  %v6790_v32 = vadd.f32 %v12073_v27, %v1032_v60  ;;  %v6793_v43 = vadd.f32 %v12075_v1, %v1033_v53  ;;  %v6800_v22 = vadd.f32 %v12079_v37, %v1215_v28  ;;  %v12081_v13 = vld [vmem:[#allocation50_spill] sm:$0xff]  ;;  %v1577_v60 = vmul.f32 %v12052_v45, %v622_v58 }
  0xfa   : > { %12072 = vst [vmem:[#allocation30_spill] sm:$0xff] %v6787_v12  ;;  %12078 = vst [vmem:[#allocation32_spill] sm:$0xff] %v6797_v48  ;;  %v6803_v25 = vadd.f32 %v12081_v13, %v1402_v47  ;;  %v6806_v44 = vadd.f32 %v12083_v36, %v1403_v8  ;;  %v1578_v1 = vmul.f32 %v12053_v0, %v619_v51  ;;  %v12085_v47 = vld [vmem:[#allocation52_spill] sm:$0xff]  ;;  %v12086_v13 = vld [vmem:[#allocation53_spill] sm:$0xff] }
  0xfb   : > { %12074 = vst [vmem:[#allocation33_spill] sm:$0xff] %v6790_v32  ;;  %12076 = vst [vmem:[#allocation31_spill] sm:$0xff] %v6793_v43  ;;  %v1765_v53 = vmul.f32 %v12054_v39, %v622_v58  ;;  %v1766_v27 = vmul.f32 %v12055_v55, %v619_v51  ;;  %v6812_v43 = vpop.permute.xlu1 %683  ;;  %v1953_v26 = vmul.f32 %v12056_v41, %v622_v58  ;;  %v12088_v58 = vld [vmem:[#allocation55_spill] sm:$0xff]  ;;  %v12090_v32 = vld [vmem:[#allocation57_spill] sm:$0xff] }
  0xfc   : > { %12080 = vst [vmem:[#allocation34_spill] sm:$0xff] %v6800_v22  ;;  %12082 = vst [vmem:[#allocation35_spill] sm:$0xff] %v6803_v25  ;;  %v1954_v37 = vmul.f32 %v12057_v34, %v619_v51  ;;  %v618_v50 = vsel %vm616_vm2, %v6625_v6, %v613_v35  ;;  %v621_v28 = vsel %vm616_vm2, %v613_v35, %v6625_v6  ;;  %v12089_v51 = vld [vmem:[#allocation56_spill] sm:$0xff] }
  0xfd   : > { %12084 = vst [vmem:[#allocation39_spill] sm:$0xff] %v6806_v44  ;;  %v6823_v8 = vadd.f32 %v12085_v47, %v1577_v60  ;;  %v6826_v36 = vadd.f32 %v12086_v13, %v1578_v1  ;;  %v12087_v44 = vld [vmem:[#allocation54_spill] sm:$0xff]  ;;  %v6832_v22 = vadd.f32 %v12088_v58, %v1766_v27  ;;  %v6835_v48 = vadd.f32 %v12089_v51, %v1953_v26  ;;  %v12092_v26 = vld [vmem:[#allocation59_spill] sm:$0xff] }
  0xfe   : > { %v6829_v25 = vadd.f32 %v12087_v44, %v1765_v53  ;;  %v6838_v12 = vadd.f32 %v12090_v32, %v1954_v37  ;;  %v816_v6 = vmul.f32 %v12028_v29, %v621_v28  ;;  %v817_v35 = vmul.f32 %v12029_v33, %v618_v50  ;;  %v12091_v27 = vld [vmem:[#allocation58_spill] sm:$0xff]  ;;  %v12093_v37 = vld [vmem:[#allocation60_spill] sm:$0xff] }
  0xff   : > { %v1030_v60 = vmul.f32 %v12030_v42, %v621_v28  ;;  %v1031_v1 = vmul.f32 %v12031_v2, %v618_v50  ;;  %v1212_v44 = vmul.f32 %v12032_v54, %v621_v28  ;;  %v1213_v53 = vmul.f32 %v12033_v38, %v618_v50  ;;  %v12094_v42 = vld [vmem:[#allocation61_spill] sm:$0xff]  ;;  %v12095_v2 = vld [vmem:[#allocation62_spill] sm:$0xff]  ;;  %v12097_v38 = vld [vmem:[#allocation63_spill] sm:$0xff] }
 0x100   : > { %v6847_v47 = vadd.f32 %v12091_v27, %v816_v6  ;;  %v6850_v13 = vadd.f32 %v12092_v26, %v817_v35  ;;  %v1400_v32 = vmul.f32 %v12038_v9, %v621_v28  ;;  %v1401_v29 = vmul.f32 %v12039_v46, %v618_v50  ;;  %v688_v6 = vpop.permute.xlu1 %687  ;;  %v12099_v27 = vld [vmem:[#allocation64_spill] sm:$0xff]  ;;  %v12101_v26 = vld [vmem:[#allocation65_spill] sm:$0xff] }
 0x101   : > { %v6855_v33 = vadd.f32 %v12093_v37, %v1030_v60  ;;  %v6858_v58 = vadd.f32 %v12094_v42, %v1031_v1  ;;  %v6861_v54 = vadd.f32 %v12095_v2, %v1212_v44  ;;  %v6864_v51 = vadd.f32 %v12097_v38, %v1213_v53  ;;  %v682_v42 = vpop.permute.xlu0 %681  ;;  %v12103_v2 = vld [vmem:[#allocation66_spill] sm:$0xff] }
 0x102   : > { %v6867_v35 = vadd.f32 %v12099_v27, %v1400_v32  ;;  %v6870_v9 = vadd.f32 %v12101_v26, %v1401_v29  ;;  %v1575_v46 = vmul.f32 %v12052_v45, %v621_v28  ;;  %v1576_v60 = vmul.f32 %v12053_v0, %v618_v50  ;;  %v12105_v32 = vld [vmem:[#allocation67_spill] sm:$0xff] }
 0x103   : > { %12096 = vst [vmem:[#allocation41_spill] sm:$0xff] %v6861_v54  ;;  %12098 = vst [vmem:[#allocation36_spill] sm:$0xff] %v6864_v51  ;;  %v1763_v1 = vmul.f32 %v12054_v39, %v621_v28  ;;  %v1764_v37 = vmul.f32 %v12055_v55, %v618_v50  ;;  %v1951_v44 = vmul.f32 %v12056_v41, %v621_v28  ;;  %v12107_v39 = vld [vmem:[#allocation68_spill] sm:$0xff]  ;;  %v12109_v55 = vld [vmem:[#allocation69_spill] sm:$0xff] }
 0x104   : > { %12100 = vst [vmem:[#allocation37_spill] sm:$0xff] %v6867_v35  ;;  %12102 = vst [vmem:[#allocation38_spill] sm:$0xff] %v6870_v9  ;;  %v1952_v53 = vmul.f32 %v12057_v34, %v618_v50  ;;  %v6879_v38 = vadd.f32 %v12103_v2, %v1575_v46  ;;  %v6882_v27 = vadd.f32 %v12105_v32, %v1576_v60  ;;  %v12111_v34 = vld [vmem:[#allocation70_spill] sm:$0xff]  ;;  %v12113_v28 = vld [vmem:[#allocation71_spill] sm:$0xff] }
 0x105   : > { %v694_v45 = vsel %vm693_vm3, %v682_v42, %v688_v6  ;;  %v697_v0 = vsel %vm693_vm3, %v688_v6, %v682_v42  ;;  %v6889_v29 = vadd.f32 %v12107_v39, %v1763_v1  ;;  %v6892_v41 = vadd.f32 %v12109_v55, %v1764_v37  ;;  %v12115_v46 = vld [vmem:[#allocation72_spill] sm:$0xff]  ;;  %v12116_v2 = vld [vmem:[#allocation73_spill] sm:$0xff]  ;;  %v12118_v9 = vld [vmem:[#allocation75_spill] sm:$0xff] }
 0x106   : > { %12104 = vst [vmem:[#allocation40_spill] sm:$0xff] %v6879_v38  ;;  %12106 = vst [vmem:[#allocation44_spill] sm:$0xff] %v6882_v27  ;;  %v6895_v50 = vadd.f32 %v12111_v34, %v1951_v44  ;;  %v6898_v26 = vadd.f32 %v12113_v28, %v1952_v53  ;;  %v901_v60 = vmul.f32 %v12115_v46, %v694_v45  ;;  %v12117_v27 = vld [vmem:[#allocation74_spill] sm:$0xff]  ;;  %v12119_v42 = vld [vmem:[#allocation76_spill] sm:$0xff] }
 0x107   : > { %12108 = vst [vmem:[#allocation48_spill] sm:$0xff] %v6889_v29  ;;  %12110 = vst [vmem:[#allocation42_spill] sm:$0xff] %v6892_v41  ;;  %v902_v32 = vmul.f32 %v12116_v2, %v697_v0  ;;  %v1097_v38 = vmul.f32 %v12117_v27, %v694_v45  ;;  %v1098_v6 = vmul.f32 %v12118_v9, %v697_v0  ;;  %v12120_v39 = vld [vmem:[#allocation77_spill] sm:$0xff]  ;;  %v12121_v37 = vld [vmem:[#allocation78_spill] sm:$0xff] }
 0x108   : > { %12112 = vst [vmem:[#allocation43_spill] sm:$0xff] %v6895_v50  ;;  %12114 = vst [vmem:[#allocation45_spill] sm:$0xff] %v6898_v26  ;;  %v1279_v1 = vmul.f32 %v12119_v42, %v694_v45  ;;  %v1280_v29 = vmul.f32 %v12120_v39, %v697_v0  ;;  %v1467_v55 = vmul.f32 %v12121_v37, %v694_v45  ;;  %v12122_v41 = vld [vmem:[#allocation79_spill] sm:$0xff]  ;;  %v692_v50 = vpop.permute.xlu1 %691 }
 0x109   : > { %v1468_v44 = vmul.f32 %v12122_v41, %v697_v0  ;;  %v6909_v34 = vadd.f32 %v901_v60, %v6546_v15  ;;  %v6912_v53 = vadd.f32 %v902_v32, %v6548_v14  ;;  %v6915_v28 = vadd.f32 %v1097_v38, %v6550_v11  ;;  %v12127_v14 = vld [vmem:[#allocation80_spill] sm:$0xff]  ;;  %v12128_v11 = vld [vmem:[#allocation81_spill] sm:$0xff]  ;;  %v12129_v32 = vld [vmem:[#allocation82_spill] sm:$0xff] }
 0x10a   : > { %v6918_v26 = vadd.f32 %v1098_v6, %v6552_v40  ;;  %v6921_v35 = vadd.f32 %v1279_v1, %v6554_v5  ;;  %v6924_v51 = vadd.f32 %v1280_v29, %v6556_v4  ;;  %v6927_v54 = vadd.f32 %v1467_v55, %v6558_v57  ;;  %v12130_v6 = vld [vmem:[#allocation83_spill] sm:$0xff]  ;;  %v12131_v5 = vld [vmem:[#allocation84_spill] sm:$0xff] }
 0x10b   : > { %12123 = vst [vmem:[#allocation46_spill] sm:$0xff] %v6915_v28  ;;  %v6930_v15 = vadd.f32 %v1468_v44, %v6560_v49  ;;  %v1642_v60 = vmul.f32 %v12127_v14, %v694_v45  ;;  %v1643_v38 = vmul.f32 %v12128_v11, %v697_v0  ;;  %v1830_v40 = vmul.f32 %v12129_v32, %v694_v45  ;;  %v686_v28 = vpop.permute.xlu0 %685 }
 0x10c   : > { %12124 = vst [vmem:[#allocation47_spill] sm:$0xff] %v6918_v26  ;;  %12125 = vst [vmem:[#allocation49_spill] sm:$0xff] %v6921_v35  ;;  %v1831_v26 = vmul.f32 %v12130_v6, %v697_v0  ;;  %v2018_v1 = vmul.f32 %v12131_v5, %v694_v45  ;;  %v12132_v35 = vld [vmem:[#allocation85_spill] sm:$0xff]  ;;  %v696_v57 = vsel %vm693_vm3, %v686_v28, %v692_v50 }
 0x10d   : > { %12126 = vst [vmem:[#allocation50_spill] sm:$0xff] %v6930_v15  ;;  %v2019_v4 = vmul.f32 %v12132_v35, %v697_v0  ;;  %v699_v49 = vsel %vm693_vm3, %v692_v50, %v686_v28  ;;  %v6943_v29 = vadd.f32 %v1642_v60, %v6573_v7  ;;  %v6946_v55 = vadd.f32 %v1643_v38, %v6576_v10 }
 0x10e   : > { %v6949_v44 = vadd.f32 %v1830_v40, %v6579_v20  ;;  %v6952_v15 = vadd.f32 %v1831_v26, %v6582_v21  ;;  %v6955_v45 = vadd.f32 %v2018_v1, %v6585_v16  ;;  %v905_v50 = vmul.f32 %v12115_v46, %v696_v57 }
 0x10f   : > { %v6958_v0 = vadd.f32 %v2019_v4, %v6588_v17  ;;  %v906_v7 = vmul.f32 %v12116_v2, %v699_v49  ;;  %v1101_v28 = vmul.f32 %v12117_v27, %v696_v57  ;;  %v1102_v10 = vmul.f32 %v12118_v9, %v699_v49 }
 0x110   : > { %12133 = vst [vmem:[#allocation51_spill] sm:$0xff] %v6952_v15  ;;  %12134 = vst [vmem:[#allocation52_spill] sm:$0xff] %v6955_v45  ;;  %v1283_v20 = vmul.f32 %v12119_v42, %v696_v57  ;;  %v1284_v60 = vmul.f32 %v12120_v39, %v699_v49  ;;  %v6967_v21 = vadd.f32 %v905_v50, %v6597_v30  ;;  %v12220_v45 = vld [vmem:[#allocation34_spill] sm:$0xff] }
 0x111   : > { %12135 = vst [vmem:[#allocation53_spill] sm:$0xff] %v6958_v0  ;;  %v6970_v16 = vadd.f32 %v906_v7, %v6600_v59  ;;  %v1471_v17 = vmul.f32 %v12121_v37, %v696_v57  ;;  %v1472_v26 = vmul.f32 %v12122_v41, %v699_v49  ;;  %v6976_v38 = vadd.f32 %v1101_v28, %v6606_v23  ;;  %v690_v59 = vpop.permute.xlu0 %689  ;;  %v6995_v28 = vpop.permute.xlu1 %715 }
 0x112   : > { %12136 = vst [vmem:[#allocation54_spill] sm:$0xff] %v6967_v21  ;;  %v6979_v40 = vadd.f32 %v1102_v10, %v6609_v63  ;;  %v6982_v1 = vadd.f32 %v1283_v20, %v6612_v3  ;;  %v6985_v30 = vadd.f32 %v1284_v60, %v6615_v56  ;;  %v1646_v7 = vmul.f32 %v12127_v14, %v696_v57  ;;  %v12209_v21 = vld [vmem:[#allocation24_spill] sm:$0xff] }
 0x113   : > { %12137 = vst [vmem:[#allocation55_spill] sm:$0xff] %v6970_v16  ;;  %12138 = vst [vmem:[#allocation56_spill] sm:$0xff] %v6976_v38  ;;  %v6988_v4 = vadd.f32 %v1471_v17, %v6618_v19  ;;  %v6991_v50 = vadd.f32 %v1472_v26, %v6621_v52  ;;  %v1647_v23 = vmul.f32 %v12128_v11, %v699_v49  ;;  %v12207_v38 = vld [vmem:[#allocation23_spill] sm:$0xff] }
 0x114   : > { %12139 = vst [vmem:[#allocation57_spill] sm:$0xff] %v6979_v40  ;;  %12140 = vst [vmem:[#allocation58_spill] sm:$0xff] %v6982_v1  ;;  %v1834_v63 = vmul.f32 %v12129_v32, %v696_v57  ;;  %v1835_v3 = vmul.f32 %v12130_v6, %v699_v49  ;;  %v2022_v56 = vmul.f32 %v12131_v5, %v696_v57  ;;  %v12147_v57 = vld [vmem:[#allocation114_spill] sm:$0xff] }
 0x115   : > { %12141 = vst [vmem:[#allocation59_spill] sm:$0xff] %v6985_v30  ;;  %12142 = vst [vmem:[#allocation60_spill] sm:$0xff] %v6988_v4  ;;  %v2023_v10 = vmul.f32 %v12132_v35, %v699_v49  ;;  %v7002_v19 = vadd.f32 %v1646_v7, %v6632_v18  ;;  %v7005_v52 = vadd.f32 %v1647_v23, %v6635_v24  ;;  %v12149_v49 = vld [vmem:[#allocation115_spill] sm:$0xff]  ;;  %v12151_v7 = vld [vmem:[#allocation116_spill] sm:$0xff] }
 0x116   : > { %12143 = vst [vmem:[#allocation61_spill] sm:$0xff] %v6991_v50  ;;  %v695_v20 = vsel %vm693_vm3, %v6812_v43, %v690_v59  ;;  %v698_v60 = vsel %vm693_vm3, %v690_v59, %v6812_v43  ;;  %v7014_v17 = vadd.f32 %v1834_v63, %v6644_v31  ;;  %v7017_v26 = vadd.f32 %v1835_v3, %v12147_v57  ;;  %v12200_v4 = vld [vmem:[#allocation97_spill] sm:$0xff]  ;;  %v12203_v1 = vld [vmem:[#allocation26_spill] sm:$0xff] }
 0x117   : > { %12144 = vst [vmem:[#allocation62_spill] sm:$0xff] %v7002_v19  ;;  %12145 = vst [vmem:[#allocation63_spill] sm:$0xff] %v7005_v52  ;;  %v7020_v18 = vadd.f32 %v2022_v56, %v12149_v49  ;;  %v7023_v24 = vadd.f32 %v2023_v10, %v12151_v7  ;;  %v903_v23 = vmul.f32 %v12115_v46, %v695_v20  ;;  %v12153_v56 = vld [vmem:[#allocation117_spill] sm:$0xff]  ;;  %v12155_v10 = vld [vmem:[#allocation128_spill] sm:$0xff] }
 0x118   : > { %12146 = vst [vmem:[#allocation64_spill] sm:$0xff] %v7014_v17  ;;  %12148 = vst [vmem:[#allocation65_spill] sm:$0xff] %v7017_v26  ;;  %v904_v52 = vmul.f32 %v12116_v2, %v698_v60  ;;  %v1099_v19 = vmul.f32 %v12117_v27, %v695_v20  ;;  %v1100_v43 = vmul.f32 %v12118_v9, %v698_v60  ;;  %v12157_v46 = vld [vmem:[#allocation129_spill] sm:$0xff]  ;;  %v12159_v27 = vld [vmem:[#allocation130_spill] sm:$0xff]  ;;  %v720_v9 = vpop.permute.xlu1 %719 }
 0x119   : > { %12150 = vst [vmem:[#allocation66_spill] sm:$0xff] %v7020_v18  ;;  %12152 = vst [vmem:[#allocation67_spill] sm:$0xff] %v7023_v24  ;;  %v1281_v31 = vmul.f32 %v12119_v42, %v695_v20  ;;  %v1282_v59 = vmul.f32 %v12120_v39, %v698_v60  ;;  %v1469_v63 = vmul.f32 %v12121_v37, %v695_v20  ;;  %v12161_v42 = vld [vmem:[#allocation118_spill] sm:$0xff]  ;;  %v12163_v39 = vld [vmem:[#allocation119_spill] sm:$0xff] }
 0x11a   : > { %v1470_v3 = vmul.f32 %v12122_v41, %v698_v60  ;;  %v7034_v57 = vadd.f32 %v903_v23, %v12153_v56  ;;  %v7037_v49 = vadd.f32 %v904_v52, %v12155_v10  ;;  %v7040_v2 = vadd.f32 %v1099_v19, %v12157_v46  ;;  %v12165_v41 = vld [vmem:[#allocation120_spill] sm:$0xff]  ;;  %v12167_v23 = vld [vmem:[#allocation121_spill] sm:$0xff]  ;;  %v714_v46 = vpop.permute.xlu0 %713  ;;  %v12197_v26 = vld [vmem:[#allocation94_spill] sm:$0xff] }
 0x11b   : > { %v7043_v7 = vadd.f32 %v1100_v43, %v12159_v27  ;;  %v7046_v24 = vadd.f32 %v1281_v31, %v12161_v42  ;;  %v7049_v37 = vadd.f32 %v1282_v59, %v12163_v39  ;;  %v7052_v18 = vadd.f32 %v1469_v63, %v12165_v41  ;;  %v12169_v27 = vld [vmem:[#allocation122_spill] sm:$0xff] }
 0x11c   : > { %12154 = vst [vmem:[#allocation68_spill] sm:$0xff] %v7034_v57  ;;  %12156 = vst [vmem:[#allocation69_spill] sm:$0xff] %v7037_v49  ;;  %v7055_v56 = vadd.f32 %v1470_v3, %v12167_v23  ;;  %v1644_v52 = vmul.f32 %v12127_v14, %v695_v20  ;;  %v1645_v19 = vmul.f32 %v12128_v11, %v698_v60  ;;  %v12171_v14 = vld [vmem:[#allocation123_spill] sm:$0xff]  ;;  %v12181_v23 = vld [vmem:[#allocation86_spill] sm:$0xff] }
 0x11d   : > { %12158 = vst [vmem:[#allocation70_spill] sm:$0xff] %v7040_v2  ;;  %12160 = vst [vmem:[#allocation71_spill] sm:$0xff] %v7043_v7  ;;  %v1832_v43 = vmul.f32 %v12129_v32, %v695_v20  ;;  %v1833_v10 = vmul.f32 %v12130_v6, %v698_v60  ;;  %v2020_v31 = vmul.f32 %v12131_v5, %v695_v20  ;;  %v12173_v32 = vld [vmem:[#allocation124_spill] sm:$0xff]  ;;  %v12175_v6 = vld [vmem:[#allocation125_spill] sm:$0xff] }
 0x11e   : > { %12162 = vst [vmem:[#allocation72_spill] sm:$0xff] %v7046_v24  ;;  %12164 = vst [vmem:[#allocation73_spill] sm:$0xff] %v7049_v37  ;;  %v2021_v59 = vmul.f32 %v12132_v35, %v698_v60  ;;  %v726_v63 = vsel %vm725_vm4, %v714_v46, %v720_v9  ;;  %v729_v3 = vsel %vm725_vm4, %v720_v9, %v714_v46  ;;  %v12177_v5 = vld [vmem:[#allocation126_spill] sm:$0xff]  ;;  %v12179_v20 = vld [vmem:[#allocation127_spill] sm:$0xff]  ;;  %v718_v50 = vpop.permute.xlu0 %717 }
 0x11f   : > { %12166 = vst [vmem:[#allocation74_spill] sm:$0xff] %v7052_v18  ;;  %12168 = vst [vmem:[#allocation75_spill] sm:$0xff] %v7055_v56  ;;  %v7068_v42 = vadd.f32 %v1644_v52, %v12169_v27  ;;  %v7071_v11 = vadd.f32 %v1645_v19, %v12171_v14  ;;  %v7074_v39 = vadd.f32 %v1832_v43, %v12173_v32  ;;  %v12182_v46 = vld [vmem:[#allocation87_spill] sm:$0xff]  ;;  %v12183_v27 = vld [vmem:[#allocation88_spill] sm:$0xff] }
 0x120   : > { %v7077_v41 = vadd.f32 %v1833_v10, %v12175_v6  ;;  %v7080_v35 = vadd.f32 %v2020_v31, %v12177_v5  ;;  %v7083_v60 = vadd.f32 %v2021_v59, %v12179_v20  ;;  %v932_v9 = vmul.f32 %v12181_v23, %v726_v63  ;;  %v12184_v19 = vld [vmem:[#allocation89_spill] sm:$0xff]  ;;  %v12186_v32 = vld [vmem:[#allocation91_spill] sm:$0xff]  ;;  %v12187_v10 = vld [vmem:[#allocation16_spill] sm:$0xff] }
 0x121   : > { %12170 = vst [vmem:[#allocation76_spill] sm:$0xff] %v7068_v42  ;;  %12172 = vst [vmem:[#allocation77_spill] sm:$0xff] %v7071_v11  ;;  %v933_v52 = vmul.f32 %v12182_v46, %v729_v3  ;;  %v1122_v42 = vmul.f32 %v12183_v27, %v726_v63  ;;  %v1123_v14 = vmul.f32 %v12184_v19, %v729_v3  ;;  %v12185_v11 = vld [vmem:[#allocation90_spill] sm:$0xff]  ;;  %v12188_v31 = vld [vmem:[#allocation17_spill] sm:$0xff] }
 0x122   : > { %12174 = vst [vmem:[#allocation78_spill] sm:$0xff] %v7074_v39  ;;  %12176 = vst [vmem:[#allocation79_spill] sm:$0xff] %v7077_v41  ;;  %v1304_v43 = vmul.f32 %v12185_v11, %v726_v63  ;;  %v1305_v39 = vmul.f32 %v12186_v32, %v729_v3  ;;  %v7092_v6 = vadd.f32 %v932_v9, %v12187_v10  ;;  %v12189_v59 = vld [vmem:[#allocation92_spill] sm:$0xff]  ;;  %v12191_v41 = vld [vmem:[#allocation18_spill] sm:$0xff]  ;;  %v724_v9 = vpop.permute.xlu1 %723 }
 0x123   : > { %12178 = vst [vmem:[#allocation80_spill] sm:$0xff] %v7080_v35  ;;  %12180 = vst [vmem:[#allocation81_spill] sm:$0xff] %v7083_v60  ;;  %v7095_v5 = vadd.f32 %v933_v52, %v12188_v31  ;;  %v1492_v20 = vmul.f32 %v12189_v59, %v726_v63  ;;  %v12190_v60 = vld [vmem:[#allocation93_spill] sm:$0xff]  ;;  %v7100_v56 = vadd.f32 %v1122_v42, %v12191_v41  ;;  %v12192_v18 = vld [vmem:[#allocation19_spill] sm:$0xff] }
 0x124   : > { %v1493_v35 = vmul.f32 %v12190_v60, %v729_v3  ;;  %v7103_v37 = vadd.f32 %v1123_v14, %v12192_v18  ;;  %v12193_v24 = vld [vmem:[#allocation22_spill] sm:$0xff]  ;;  %v12194_v2 = vld [vmem:[#allocation25_spill] sm:$0xff]  ;;  %v12195_v10 = vld [vmem:[#allocation20_spill] sm:$0xff]  ;;  %v1667_v17 = vmul.f32 %v12197_v26, %v726_v63 }
 0x125   : > { %v7106_v7 = vadd.f32 %v1304_v43, %v12193_v24  ;;  %v7109_v49 = vadd.f32 %v1305_v39, %v12194_v2  ;;  %v7112_v52 = vadd.f32 %v1492_v20, %v12195_v10  ;;  %v12196_v31 = vld [vmem:[#allocation21_spill] sm:$0xff]  ;;  %v12198_v42 = vld [vmem:[#allocation95_spill] sm:$0xff]  ;;  %v12199_v18 = vld [vmem:[#allocation96_spill] sm:$0xff]  ;;  %v1856_v24 = vmul.f32 %v12200_v4, %v729_v3 }
 0x126   : > { %v7115_v57 = vadd.f32 %v1493_v35, %v12196_v31  ;;  %v1668_v41 = vmul.f32 %v12198_v42, %v729_v3  ;;  %v1855_v14 = vmul.f32 %v12199_v18, %v726_v63  ;;  %v12201_v43 = vld [vmem:[#allocation98_spill] sm:$0xff]  ;;  %v12202_v2 = vld [vmem:[#allocation99_spill] sm:$0xff]  ;;  %v7124_v40 = vadd.f32 %v1667_v17, %v12203_v1  ;;  %v12205_v20 = vld [vmem:[#allocation29_spill] sm:$0xff] }
 0x127   : > { %v2043_v30 = vmul.f32 %v12201_v43, %v726_v63  ;;  %v2044_v39 = vmul.f32 %v12202_v2, %v729_v3  ;;  %v728_v35 = vsel %vm725_vm4, %v718_v50, %v724_v9  ;;  %v731_v31 = vsel %vm725_vm4, %v724_v9, %v718_v50  ;;  %v12211_v63 = vld [vmem:[#allocation27_spill] sm:$0xff]  ;;  %v12213_v1 = vld [vmem:[#allocation28_spill] sm:$0xff] }
 0x128   : > { %12204 = vst [vmem:[#allocation82_spill] sm:$0xff] %v7124_v40  ;;  %v7127_v10 = vadd.f32 %v1668_v41, %v12205_v20  ;;  %v7134_v16 = vadd.f32 %v1855_v14, %v12207_v38  ;;  %v7137_v0 = vadd.f32 %v1856_v24, %v12209_v21  ;;  %v936_v41 = vmul.f32 %v12181_v23, %v728_v35  ;;  %v12215_v24 = vld [vmem:[#allocation30_spill] sm:$0xff] }
 0x129   : > { %v7140_v3 = vadd.f32 %v2043_v30, %v12211_v63  ;;  %v7143_v17 = vadd.f32 %v2044_v39, %v12213_v1  ;;  %v937_v20 = vmul.f32 %v12182_v46, %v731_v31  ;;  %v1127_v50 = vmul.f32 %v12184_v19, %v731_v31  ;;  %v12216_v63 = vld [vmem:[#allocation33_spill] sm:$0xff] }
 0x12a   : > { %12206 = vst [vmem:[#allocation83_spill] sm:$0xff] %v7127_v10  ;;  %12208 = vst [vmem:[#allocation84_spill] sm:$0xff] %v7134_v16  ;;  %v1126_v10 = vmul.f32 %v12183_v27, %v728_v35  ;;  %v1308_v38 = vmul.f32 %v12185_v11, %v728_v35  ;;  %v1309_v9 = vmul.f32 %v12186_v32, %v731_v31  ;;  %v12219_v16 = vld [vmem:[#allocation32_spill] sm:$0xff] }
 0x12b   : > { %12210 = vst [vmem:[#allocation85_spill] sm:$0xff] %v7137_v0  ;;  %12212 = vst [vmem:[#allocation114_spill] sm:$0xff] %v7140_v3  ;;  %v1496_v21 = vmul.f32 %v12189_v59, %v728_v35  ;;  %v1497_v30 = vmul.f32 %v12190_v60, %v731_v31  ;;  %v7154_v14 = vadd.f32 %v936_v41, %v6784_v61  ;;  %v722_v0 = vpop.permute.xlu0 %721  ;;  %v12221_v61 = vld [vmem:[#allocation35_spill] sm:$0xff] }
 0x12c   : > { %12214 = vst [vmem:[#allocation115_spill] sm:$0xff] %v7143_v17  ;;  %v7157_v39 = vadd.f32 %v937_v20, %v12215_v24  ;;  %v7160_v1 = vadd.f32 %v1126_v10, %v12216_v63  ;;  %v12217_v17 = vld [vmem:[#allocation31_spill] sm:$0xff]  ;;  %v7167_v40 = vadd.f32 %v1308_v38, %v12219_v16  ;;  %v7170_v15 = vadd.f32 %v1309_v9, %v12220_v45 }
 0x12d   : > { %v7163_v3 = vadd.f32 %v1127_v50, %v12217_v17  ;;  %v7173_v41 = vadd.f32 %v1496_v21, %v12221_v61  ;;  %v12222_v20 = vld [vmem:[#allocation39_spill] sm:$0xff]  ;;  %v1671_v10 = vmul.f32 %v12197_v26, %v728_v35  ;;  %v1672_v17 = vmul.f32 %v12198_v42, %v731_v31 }
 0x12e   : > { %v7176_v24 = vadd.f32 %v1497_v30, %v12222_v20  ;;  %v1859_v50 = vmul.f32 %v12199_v18, %v728_v35  ;;  %v1860_v63 = vmul.f32 %v12200_v4, %v731_v31  ;;  %v2047_v16 = vmul.f32 %v12201_v43, %v728_v35 }
 0x12f   : > { %12218 = vst [vmem:[#allocation116_spill] sm:$0xff] %v7163_v3  ;;  %v7182_v3 = vpop.permute.xlu1 %747  ;;  %v2048_v45 = vmul.f32 %v12202_v2, %v731_v31  ;;  %v727_v38 = vsel %vm725_vm4, %v6995_v28, %v722_v0  ;;  %v730_v9 = vsel %vm725_vm4, %v722_v0, %v6995_v28  ;;  %v7193_v21 = vadd.f32 %v1671_v10, %v6823_v8 }
 0x130   : > { %v7196_v30 = vadd.f32 %v1672_v17, %v6826_v36  ;;  %v7199_v61 = vadd.f32 %v1859_v50, %v6829_v25  ;;  %v7202_v35 = vadd.f32 %v1860_v63, %v6832_v22  ;;  %v7205_v31 = vadd.f32 %v2047_v16, %v6835_v48  ;;  %v12229_v50 = vld [vmem:[#allocation37_spill] sm:$0xff]  ;;  %v12231_v63 = vld [vmem:[#allocation38_spill] sm:$0xff] }
 0x131   : > { %v7208_v20 = vadd.f32 %v2048_v45, %v6838_v12  ;;  %v934_v0 = vmul.f32 %v12181_v23, %v727_v38  ;;  %v935_v8 = vmul.f32 %v12182_v46, %v730_v9  ;;  %v1124_v28 = vmul.f32 %v12183_v27, %v727_v38 }
 0x132   : > { %v1125_v36 = vmul.f32 %v12184_v19, %v730_v9  ;;  %v1306_v25 = vmul.f32 %v12185_v11, %v727_v38  ;;  %v1307_v10 = vmul.f32 %v12186_v32, %v730_v9  ;;  %v1494_v12 = vmul.f32 %v12189_v59, %v727_v38  ;;  %v12225_v19 = vld [vmem:[#allocation41_spill] sm:$0xff]  ;;  %v12227_v32 = vld [vmem:[#allocation36_spill] sm:$0xff] }
 0x133   : > { %v7217_v22 = vadd.f32 %v934_v0, %v6847_v47  ;;  %v7220_v48 = vadd.f32 %v935_v8, %v6850_v13  ;;  %v1495_v23 = vmul.f32 %v12190_v60, %v730_v9  ;;  %v7225_v46 = vadd.f32 %v1124_v28, %v6855_v33  ;;  %v752_v47 = vpop.permute.xlu1 %751  ;;  %v746_v8 = vpop.permute.xlu0 %745  ;;  %v12233_v28 = vld [vmem:[#allocation40_spill] sm:$0xff] }
 0x134   : > { %v7228_v27 = vadd.f32 %v1125_v36, %v6858_v58  ;;  %v7231_v11 = vadd.f32 %v1306_v25, %v12225_v19  ;;  %v7234_v17 = vadd.f32 %v1307_v10, %v12227_v32  ;;  %v7237_v13 = vadd.f32 %v1494_v12, %v12229_v50  ;;  %v12235_v25 = vld [vmem:[#allocation44_spill] sm:$0xff]  ;;  %v12246_v50 = vld [vmem:[#allocation101_spill] sm:$0xff] }
 0x135   : > { %12223 = vst [vmem:[#allocation117_spill] sm:$0xff] %v7225_v46  ;;  %v7240_v59 = vadd.f32 %v1495_v23, %v12231_v63  ;;  %v1669_v60 = vmul.f32 %v12197_v26, %v727_v38  ;;  %v1670_v33 = vmul.f32 %v12198_v42, %v730_v9  ;;  %v1857_v58 = vmul.f32 %v12199_v18, %v727_v38  ;;  %v12237_v18 = vld [vmem:[#allocation48_spill] sm:$0xff] }
 0x136   : > { %12224 = vst [vmem:[#allocation128_spill] sm:$0xff] %v7228_v27  ;;  %12226 = vst [vmem:[#allocation129_spill] sm:$0xff] %v7231_v11  ;;  %v1858_v16 = vmul.f32 %v12200_v4, %v730_v9  ;;  %v2045_v45 = vmul.f32 %v12201_v43, %v727_v38  ;;  %v2046_v0 = vmul.f32 %v12202_v2, %v730_v9  ;;  %v12239_v4 = vld [vmem:[#allocation42_spill] sm:$0xff]  ;;  %v12241_v2 = vld [vmem:[#allocation43_spill] sm:$0xff] }
 0x137   : > { %12228 = vst [vmem:[#allocation130_spill] sm:$0xff] %v7234_v17  ;;  %12230 = vst [vmem:[#allocation118_spill] sm:$0xff] %v7237_v13  ;;  %v7249_v36 = vadd.f32 %v1669_v60, %v12233_v28  ;;  %v7252_v10 = vadd.f32 %v1670_v33, %v12235_v25  ;;  %v758_v26 = vsel %vm757_vm5, %v746_v8, %v752_v47  ;;  %v12243_v9 = vld [vmem:[#allocation45_spill] sm:$0xff]  ;;  %v12245_v19 = vld [vmem:[#allocation100_spill] sm:$0xff] }
 0x138   : > { %12232 = vst [vmem:[#allocation119_spill] sm:$0xff] %v7240_v59  ;;  %v761_v42 = vsel %vm757_vm5, %v752_v47, %v746_v8  ;;  %v7259_v12 = vadd.f32 %v1857_v58, %v12237_v18  ;;  %v7262_v43 = vadd.f32 %v1858_v16, %v12239_v4  ;;  %v7265_v38 = vadd.f32 %v2045_v45, %v12241_v2  ;;  %v12247_v60 = vld [vmem:[#allocation102_spill] sm:$0xff]  ;;  %v12248_v28 = vld [vmem:[#allocation103_spill] sm:$0xff]  ;;  %v12249_v8 = vld [vmem:[#allocation104_spill] sm:$0xff] }
 0x139   : > { %12234 = vst [vmem:[#allocation120_spill] sm:$0xff] %v7249_v36  ;;  %12236 = vst [vmem:[#allocation121_spill] sm:$0xff] %v7252_v10  ;;  %v7268_v23 = vadd.f32 %v2046_v0, %v12243_v9  ;;  %v963_v32 = vmul.f32 %v12245_v19, %v758_v26  ;;  %v964_v63 = vmul.f32 %v12246_v50, %v761_v42  ;;  %v12250_v25 = vld [vmem:[#allocation105_spill] sm:$0xff]  ;;  %v12251_v16 = vld [vmem:[#allocation106_spill] sm:$0xff] }
 0x13a   : > { %12238 = vst [vmem:[#allocation122_spill] sm:$0xff] %v7259_v12  ;;  %12240 = vst [vmem:[#allocation123_spill] sm:$0xff] %v7262_v43  ;;  %v1147_v33 = vmul.f32 %v12247_v60, %v758_v26  ;;  %v1148_v47 = vmul.f32 %v12248_v28, %v761_v42  ;;  %v1329_v58 = vmul.f32 %v12249_v8, %v758_v26  ;;  %v12252_v43 = vld [vmem:[#allocation107_spill] sm:$0xff]  ;;  %v12253_v9 = vld [vmem:[#allocation46_spill] sm:$0xff] }
 0x13b   : > { %12242 = vst [vmem:[#allocation124_spill] sm:$0xff] %v7265_v38  ;;  %12244 = vst [vmem:[#allocation125_spill] sm:$0xff] %v7268_v23  ;;  %v1330_v18 = vmul.f32 %v12250_v25, %v761_v42  ;;  %v1517_v4 = vmul.f32 %v12251_v16, %v758_v26  ;;  %v1518_v45 = vmul.f32 %v12252_v43, %v761_v42  ;;  %v12254_v38 = vld [vmem:[#allocation47_spill] sm:$0xff]  ;;  %v12255_v10 = vld [vmem:[#allocation49_spill] sm:$0xff] }
 0x13c   : > { %v969_v2 = vadd.f32 %v963_v32, %v6909_v34  ;;  %v970_v0 = vadd.f32 %v964_v63, %v6912_v53  ;;  %v1153_v23 = vadd.f32 %v1147_v33, %v12253_v9  ;;  %v1154_v12 = vadd.f32 %v1148_v47, %v12254_v38  ;;  %v12256_v17 = vld [vmem:[#allocation50_spill] sm:$0xff]  ;;  %v12261_v32 = vld [vmem:[#allocation112_spill] sm:$0xff]  ;;  %v12262_v33 = vld [vmem:[#allocation113_spill] sm:$0xff] }
 0x13d   : > { %v1335_v36 = vadd.f32 %v1329_v58, %v12255_v10  ;;  %v1336_v59 = vadd.f32 %v1330_v18, %v6924_v51  ;;  %v1523_v13 = vadd.f32 %v1517_v4, %v6927_v54  ;;  %v1524_v11 = vadd.f32 %v1518_v45, %v12256_v17  ;;  %v12259_v38 = vld [vmem:[#allocation110_spill] sm:$0xff]  ;;  %v750_v58 = vpop.permute.xlu0 %749  ;;  %v12263_v18 = vld [vmem:[#allocation12_spill] sm:$0xff] }
 0x13e   : > { %v7287_v27 = vadd.f32 %v969_v2, %v7092_v6  ;;  %v7290_v46 = vadd.f32 %v970_v0, %v7095_v5  ;;  %v7293_v34 = vadd.f32 %v1153_v23, %v7100_v56  ;;  %v7296_v53 = vadd.f32 %v1154_v12, %v7103_v37  ;;  %v756_v12 = vpop.permute.xlu1 %755  ;;  %v12266_v37 = vld [vmem:[#allocation53_spill] sm:$0xff]  ;;  %v12267_v56 = vld [vmem:[#allocation82_spill] sm:$0xff] }
 0x13f   : > { %v7299_v10 = vadd.f32 %v1335_v36, %v7106_v7  ;;  %v7302_v51 = vadd.f32 %v1336_v59, %v7109_v49  ;;  %v7305_v54 = vadd.f32 %v1523_v13, %v7112_v52  ;;  %v7308_v6 = vadd.f32 %v1524_v11, %v7115_v57  ;;  %v12257_v59 = vld [vmem:[#allocation108_spill] sm:$0xff]  ;;  %v12258_v52 = vld [vmem:[#allocation109_spill] sm:$0xff]  ;;  %v12260_v11 = vld [vmem:[#allocation111_spill] sm:$0xff] }
 0x140   : > { %v1692_v36 = vmul.f32 %v12257_v59, %v758_v26  ;;  %v1693_v13 = vmul.f32 %v12258_v52, %v761_v42  ;;  %v1880_v57 = vmul.f32 %v12259_v38, %v758_v26  ;;  %v1881_v23 = vmul.f32 %v12260_v11, %v761_v42 }
 0x141   : > { %v2068_v63 = vmul.f32 %v12261_v32, %v758_v26  ;;  %v2069_v47 = vmul.f32 %v12262_v33, %v761_v42  ;;  %vm989_vm6 = vcmp.lt.s32.totalorder %v12263_v18, 3  ;;  %v7327_v2 = vsel %vm757_vm5, %v750_v58, %v756_v12  ;;  %v12264_v26 = vld [vmem:[#allocation51_spill] sm:$0xff]  ;;  %v12265_v42 = vld [vmem:[#allocation52_spill] sm:$0xff] }
 0x142   : > { %v1698_v4 = vadd.f32 %v1692_v36, %v6943_v29  ;;  %v1699_v45 = vadd.f32 %v1693_v13, %v6946_v55  ;;  %v7331_v0 = vsel %vm757_vm5, %v756_v12, %v750_v58  ;;  %v1886_v9 = vadd.f32 %v1880_v57, %v6949_v44  ;;  %v12268_v55 = vld [vmem:[#allocation83_spill] sm:$0xff]  ;;  %v12269_v58 = vld [vmem:[#allocation84_spill] sm:$0xff]  ;;  %v12270_v57 = vld [vmem:[#allocation85_spill] sm:$0xff] }
 0x143   : > { %v1887_v49 = vadd.f32 %v1881_v23, %v12264_v26  ;;  %v2074_v7 = vadd.f32 %v2068_v63, %v12265_v42  ;;  %v2075_v17 = vadd.f32 %v2069_v47, %v12266_v37  ;;  %v967_v13 = vmul.f32 %v12245_v19, %v7327_v2  ;;  %v12271_v63 = vld [vmem:[#allocation114_spill] sm:$0xff]  ;;  %v12276_v42 = vld [vmem:[#allocation55_spill] sm:$0xff] }
 0x144   : > { %v7338_v29 = vadd.f32 %v1698_v4, %v12267_v56  ;;  %v7341_v36 = vadd.f32 %v1699_v45, %v12268_v55  ;;  %v968_v12 = vmul.f32 %v12246_v50, %v7331_v0  ;;  %v7348_v44 = vadd.f32 %v1886_v9, %v12269_v58  ;;  %v12273_v56 = vld [vmem:[#allocation115_spill] sm:$0xff]  ;;  %v12275_v26 = vld [vmem:[#allocation54_spill] sm:$0xff]  ;;  %v12278_v58 = vld [vmem:[#allocation57_spill] sm:$0xff] }
 0x145   : > { %v7351_v23 = vadd.f32 %v1887_v49, %v12270_v57  ;;  %v7354_v37 = vadd.f32 %v2074_v7, %v12271_v63  ;;  %v7357_v47 = vadd.f32 %v2075_v17, %v12273_v56  ;;  %vm1171_vm7 = vcmp.lt.s32.totalorder %v12263_v18, 2  ;;  %v12279_v49 = vld [vmem:[#allocation58_spill] sm:$0xff]  ;;  %v12280_v4 = vld [vmem:[#allocation59_spill] sm:$0xff] }
 0x146   : > { %vm1353_vm8 = vcmp.lt.s32.totalorder %v12263_v18, 1  ;;  %v973_v9 = vadd.f32 %v967_v13, %v12275_v26  ;;  %v974_v55 = vadd.f32 %v968_v12, %v12276_v42  ;;  %v1151_v56 = vmul.f32 %v12247_v60, %v7327_v2 }
 0x147   : > { %12272 = vst [vmem:[#allocation126_spill] sm:$0xff] %v7354_v37  ;;  %12274 = vst [vmem:[#allocation127_spill] sm:$0xff] %v7357_v47  ;;  %v1152_v13 = vmul.f32 %v12248_v28, %v7331_v0  ;;  %v1333_v12 = vmul.f32 %v12249_v8, %v7327_v2  ;;  %v1334_v26 = vmul.f32 %v12250_v25, %v7331_v0  ;;  %vm1716_vm9 = vcmp.lt.s32.totalorder %v12263_v18, 7  ;;  %v12281_v25 = vld [vmem:[#allocation60_spill] sm:$0xff] }
 0x148   : > { %v7370_v57 = vadd.f32 %v973_v9, %v7154_v14  ;;  %v7373_v63 = vadd.f32 %v974_v55, %v7157_v39  ;;  %v1521_v42 = vmul.f32 %v12251_v16, %v7327_v2  ;;  %v1522_v14 = vmul.f32 %v12252_v43, %v7331_v0  ;;  %v12277_v55 = vld [vmem:[#allocation56_spill] sm:$0xff]  ;;  %v12282_v16 = vld [vmem:[#allocation61_spill] sm:$0xff] }
 0x149   : > { %v1157_v17 = vadd.f32 %v1151_v56, %v12277_v55  ;;  %v1158_v7 = vadd.f32 %v1152_v13, %v12278_v58  ;;  %v1339_v45 = vadd.f32 %v1333_v12, %v12279_v49  ;;  %v1340_v5 = vadd.f32 %v1334_v26, %v12280_v4 }
 0x14a   : > { %v11695_v39 = vrot.slane %v7370_v57, 5  ;;  %v1527_v8 = vadd.f32 %v1521_v42, %v12281_v25  ;;  %v1528_v47 = vadd.f32 %v1522_v14, %v12282_v16  ;;  %v12283_v43 = vrot.slane %v7287_v27, 5  ;;  %v12286_v25 = vld [vmem:[#allocation116_spill] sm:$0xff]  ;;  %v12289_v14 = vld [vmem:[#allocation62_spill] sm:$0xff] }
 0x14b   : > { %v12284_v56 = vrot.slane %v7290_v46, 5  ;;  %v12285_v58 = vrot.slane %v7373_v63, 5  ;;  %v7409_v4 = vadd.f32 %v1157_v17, %v7160_v1  ;;  %v7412_v13 = vadd.f32 %v1158_v7, %v12286_v25 }
 0x14c   : > { %v994_v9 = vsel %vm989_vm6, %v11695_v39, %v12283_v43  ;;  %v7415_v16 = vadd.f32 %v1339_v45, %v7167_v40  ;;  %v7418_v12 = vadd.f32 %v1340_v5, %v7170_v15  ;;  %v7421_v43 = vadd.f32 %v1527_v8, %v7173_v41 }
 0x14d   : > { %v995_v49 = vsel %vm989_vm6, %v12285_v58, %v12284_v56  ;;  %v7424_v26 = vadd.f32 %v1528_v47, %v7176_v24  ;;  %vm1904_vm10 = vcmp.lt.s32.totalorder %v12263_v18, 6  ;;  %v11696_v1 = vrot.slane %v7409_v4, 6  ;;  %v12290_v56 = vld [vmem:[#allocation63_spill] sm:$0xff] }
 0x14e   : > { %v11698_v17 = vrot.slane %v7412_v13, 6  ;;  %v1696_v7 = vmul.f32 %v12257_v59, %v7327_v2  ;;  %v1697_v40 = vmul.f32 %v12258_v52, %v7331_v0  ;;  %v11697_v15 = vrot.slane %v7415_v16, 7 }
 0x14f   : > { %v11700_v41 = vrot.slane %v7418_v12, 7  ;;  %v1884_v24 = vmul.f32 %v12259_v38, %v7327_v2  ;;  %v1885_v8 = vmul.f32 %v12260_v11, %v7331_v0  ;;  %vm2092_vm11 = vcmp.lt.s32.totalorder %v12263_v18, 5 }
 0x150   : > { %v12287_v5 = vrot.slane %v7293_v34, 6  ;;  %v12288_v45 = vrot.slane %v7296_v53, 6  ;;  %v1702_v55 = vadd.f32 %v1696_v7, %v12289_v14  ;;  %v1703_v58 = vadd.f32 %v1697_v40, %v12290_v56  ;;  %v754_v40 = vpop.permute.xlu0 %753 }
 0x151   : > { %v12291_v25 = vrot.slane %v7299_v10, 7 }
 0x152   : > { %v1176_v47 = vsel %vm1171_vm7, %v11696_v1, %v12287_v5  ;;  %v1177_v42 = vsel %vm1171_vm7, %v11698_v17, %v12288_v45  ;;  %v12292_v5 = vrot.slane %v7302_v51, 7  ;;  %v12293_v17 = vld [vmem:[#allocation64_spill] sm:$0xff] }
 0x153   : > { %v1358_v39 = vsel %vm1353_vm8, %v11697_v15, %v12291_v25  ;;  %v7467_v45 = vadd.f32 %v7305_v54, %v1176_v47  ;;  %v7470_v7 = vadd.f32 %v7308_v6, %v1177_v42  ;;  %v7477_v25 = vadd.f32 %v1702_v55, %v7193_v21 }
 0x154   : > { %v1359_v1 = vsel %vm1353_vm8, %v11700_v41, %v12292_v5  ;;  %v7472_v14 = vadd.f32 %v1358_v39, %v994_v9  ;;  %v7480_v15 = vadd.f32 %v1703_v58, %v7196_v30  ;;  %v1890_v11 = vadd.f32 %v1884_v24, %v12293_v17  ;;  %v12294_v5 = vld [vmem:[#allocation65_spill] sm:$0xff]  ;;  %v12296_v17 = vld [vmem:[#allocation67_spill] sm:$0xff] }
 0x155   : > { %v7474_v56 = vadd.f32 %v1359_v1, %v995_v49  ;;  %v1891_v41 = vadd.f32 %v1885_v8, %v12294_v5  ;;  %v2072_v54 = vmul.f32 %v12261_v32, %v7327_v2  ;;  %v2073_v6 = vmul.f32 %v12262_v33, %v7331_v0  ;;  %v12295_v0 = vld [vmem:[#allocation66_spill] sm:$0xff] }
 0x156   : > { %v11705_v39 = vrot.slane %v7477_v25, 1  ;;  %v11704_v9 = vrot.slane %v7480_v15, 1  ;;  %v7493_v21 = vsel %vm757_vm5, %v7182_v3, %v754_v40  ;;  %v7498_v30 = vsel %vm757_vm5, %v754_v40, %v7182_v3  ;;  %v12299_v40 = vld [vmem:[#allocation68_spill] sm:$0xff] }
 0x157   : > { %v7501_v49 = vadd.f32 %v1890_v11, %v7199_v61  ;;  %v7504_v2 = vadd.f32 %v1891_v41, %v7202_v35  ;;  %v2078_v1 = vadd.f32 %v2072_v54, %v12295_v0  ;;  %v2079_v24 = vadd.f32 %v2073_v6, %v12296_v17  ;;  %v12300_v54 = vld [vmem:[#allocation69_spill] sm:$0xff] }
 0x158   : > { %v12297_v8 = vrot.slane %v7338_v29, 1  ;;  %v12298_v3 = vrot.slane %v7341_v36, 1  ;;  %v965_v35 = vmul.f32 %v12245_v19, %v7493_v21  ;;  %v966_v11 = vmul.f32 %v12246_v50, %v7498_v30 }
 0x159   : > { %v11703_v41 = vrot.slane %v7501_v49, 2  ;;  %v11701_v42 = vrot.slane %v7504_v2, 2  ;;  %v7531_v55 = vadd.f32 %v2078_v1, %v7205_v31  ;;  %v7534_v58 = vadd.f32 %v2079_v24, %v7208_v20 }
 0x15a   : > { %v7514_v47 = vsel %vm1716_vm9, %v11705_v39, %v12297_v8  ;;  %v7522_v61 = vsel %vm1716_vm9, %v11704_v9, %v12298_v3  ;;  %v971_v5 = vadd.f32 %v965_v35, %v12299_v40  ;;  %v972_v6 = vadd.f32 %v966_v11, %v12300_v54  ;;  %v12303_v8 = vld [vmem:[#allocation70_spill] sm:$0xff]  ;;  %v12304_v35 = vld [vmem:[#allocation71_spill] sm:$0xff]  ;;  %v12313_v39 = vld [vmem:[#allocation73_spill] sm:$0xff] }
 0x15b   : > { %v1149_v19 = vmul.f32 %v12247_v60, %v7493_v21  ;;  %v1150_v50 = vmul.f32 %v12248_v28, %v7498_v30  ;;  %v12301_v0 = vrot.slane %v7348_v44, 2  ;;  %v12302_v20 = vrot.slane %v7351_v23, 2 }
 0x15c   : > { %v11702_v17 = vrot.slane %v7531_v55, 3  ;;  %v11708_v60 = vrot.slane %v7534_v58, 3  ;;  %v977_v28 = vadd.f32 %v971_v5, %v7217_v22  ;;  %v978_v24 = vadd.f32 %v972_v6, %v7220_v48  ;;  %v12308_v48 = vld [vmem:[#allocation104_spill] sm:$0xff]  ;;  %v12309_v6 = vld [vmem:[#allocation105_spill] sm:$0xff] }
 0x15d   : > { %v1909_v31 = vsel %vm1904_vm10, %v11703_v41, %v12301_v0  ;;  %v1910_v1 = vsel %vm1904_vm10, %v11701_v42, %v12302_v20  ;;  %v1155_v3 = vadd.f32 %v1149_v19, %v12303_v8  ;;  %v1156_v11 = vadd.f32 %v1150_v50, %v12304_v35  ;;  %v12306_v0 = vld [vmem:[#allocation127_spill] sm:$0xff]  ;;  %v12310_v35 = vld [vmem:[#allocation117_spill] sm:$0xff]  ;;  %v12312_v41 = vld [vmem:[#allocation72_spill] sm:$0xff] }
 0x15e   : > { %v12305_v40 = vrot.slane %v7354_v37, 3  ;;  %v12307_v20 = vrot.slane %v12306_v0, 3  ;;  %v1331_v5 = vmul.f32 %v12308_v48, %v7493_v21  ;;  %v1332_v19 = vmul.f32 %v12309_v6, %v7498_v30  ;;  %v12314_v0 = vld [vmem:[#allocation106_spill] sm:$0xff] }
 0x15f   : > { %v983_v50 = vrot.slane %v977_v28, 5  ;;  %v984_v8 = vrot.slane %v978_v24, 5  ;;  %v1161_v42 = vadd.f32 %v1155_v3, %v12310_v35  ;;  %v12316_v48 = vrot.slane %v7370_v57, 5 }
 0x160   : > { %v7566_v54 = vsel %vm2092_vm11, %v11702_v17, %v12305_v40  ;;  %v7574_v22 = vsel %vm2092_vm11, %v11708_v60, %v12307_v20  ;;  %v12311_v40 = vld [vmem:[#allocation128_spill] sm:$0xff]  ;;  %v1337_v9 = vadd.f32 %v1331_v5, %v12312_v41  ;;  %v1338_v62 = vadd.f32 %v1332_v19, %v12313_v39  ;;  %v12315_v60 = vld [vmem:[#allocation107_spill] sm:$0xff]  ;;  %v12320_v5 = vld [vmem:[#allocation129_spill] sm:$0xff] }
 0x161   : > { %v1162_v17 = vadd.f32 %v1156_v11, %v12311_v40  ;;  %v1519_v20 = vmul.f32 %v12314_v0, %v7493_v21  ;;  %v1520_v37 = vmul.f32 %v12315_v60, %v7498_v30  ;;  %v990_v28 = vsel %vm989_vm6, %v983_v50, %v12316_v48  ;;  %v12321_v19 = vld [vmem:[#allocation130_spill] sm:$0xff]  ;;  %v12323_v48 = vld [vmem:[#allocation75_spill] sm:$0xff] }
 0x162   : > { %v12317_v24 = vrot.slane %v7373_v63, 5  ;;  %v12318_v41 = vrot.slane %v7287_v27, 5  ;;  %v12319_v11 = vrot.slane %v7290_v46, 5  ;;  %v1167_v0 = vrot.slane %v1161_v42, 6  ;;  %v12322_v63 = vld [vmem:[#allocation74_spill] sm:$0xff] }
 0x163   : > { %v1168_v57 = vrot.slane %v1162_v17, 6  ;;  %v1343_v6 = vadd.f32 %v1337_v9, %v12320_v5  ;;  %v1344_v35 = vadd.f32 %v1338_v62, %v12321_v19  ;;  %v1525_v40 = vadd.f32 %v1519_v20, %v12322_v63  ;;  %v12328_v20 = vld [vmem:[#allocation118_spill] sm:$0xff]  ;;  %v12330_v63 = vld [vmem:[#allocation76_spill] sm:$0xff] }
 0x164   : > { %v991_v3 = vsel %vm989_vm6, %v984_v8, %v12317_v24  ;;  %v992_v39 = vsel %vm989_vm6, %v12318_v41, %v983_v50  ;;  %v993_v60 = vsel %vm989_vm6, %v12319_v11, %v984_v8  ;;  %v1526_v24 = vadd.f32 %v1520_v37, %v12323_v48  ;;  %v12329_v11 = vld [vmem:[#allocation119_spill] sm:$0xff]  ;;  %v12331_v48 = vld [vmem:[#allocation77_spill] sm:$0xff] }
 0x165   : > { %v1694_v27 = vmul.f32 %v12257_v59, %v7493_v21  ;;  %v1695_v50 = vmul.f32 %v12258_v52, %v7498_v30  ;;  %v12324_v46 = vrot.slane %v7409_v4, 6  ;;  %v12325_v17 = vrot.slane %v7412_v13, 6 }
 0x166   : > { %v12326_v9 = vrot.slane %v7293_v34, 6  ;;  %v12327_v59 = vrot.slane %v7296_v53, 6  ;;  %v1349_v8 = vrot.slane %v1343_v6, 7  ;;  %v1350_v4 = vrot.slane %v1344_v35, 7 }
 0x167   : > { %v1172_v42 = vsel %vm1171_vm7, %v1167_v0, %v12324_v46  ;;  %v1173_v62 = vsel %vm1171_vm7, %v1168_v57, %v12325_v17  ;;  %v1531_v41 = vadd.f32 %v1525_v40, %v12328_v20  ;;  %v1532_v5 = vadd.f32 %v1526_v24, %v12329_v11 }
 0x168   : > { %v1174_v37 = vsel %vm1171_vm7, %v12326_v9, %v1167_v0  ;;  %v1175_v52 = vsel %vm1171_vm7, %v12327_v59, %v1168_v57  ;;  %v1539_v13 = vadd.f32 %v7421_v43, %v1172_v42  ;;  %v1540_v19 = vadd.f32 %v7424_v26, %v1173_v62  ;;  %v12337_v9 = vld [vmem:[#allocation121_spill] sm:$0xff] }
 0x169   : > { %v1700_v34 = vadd.f32 %v1694_v27, %v12330_v63  ;;  %v1701_v46 = vadd.f32 %v1695_v50, %v12331_v48  ;;  %v12332_v0 = vrot.slane %v7415_v16, 7  ;;  %v12333_v57 = vrot.slane %v7418_v12, 7  ;;  %v12336_v12 = vld [vmem:[#allocation120_spill] sm:$0xff]  ;;  %v12346_v48 = vld [vmem:[#allocation123_spill] sm:$0xff] }
 0x16a   : > { %v12334_v35 = vrot.slane %v7299_v10, 7  ;;  %v12335_v26 = vrot.slane %v7302_v51, 7  ;;  %v1537_v42 = vadd.f32 %v1531_v41, %v1174_v37  ;;  %v1538_v17 = vadd.f32 %v1532_v5, %v1175_v52  ;;  %v12339_v37 = vld [vmem:[#allocation78_spill] sm:$0xff]  ;;  %v12340_v41 = vld [vmem:[#allocation79_spill] sm:$0xff] }
 0x16b   : > { %v1354_v53 = vsel %vm1353_vm8, %v1349_v8, %v12332_v0  ;;  %v1355_v6 = vsel %vm1353_vm8, %v1350_v4, %v12333_v57  ;;  %v1706_v62 = vadd.f32 %v1700_v34, %v12336_v12  ;;  %v1707_v59 = vadd.f32 %v1701_v46, %v12337_v9  ;;  %v12347_v0 = vld [vmem:[#allocation80_spill] sm:$0xff] }
 0x16c   : > { %v1356_v43 = vsel %vm1353_vm8, %v12334_v35, %v1349_v8  ;;  %v1357_v40 = vsel %vm1353_vm8, %v12335_v26, %v1350_v4  ;;  %v1364_v27 = vadd.f32 %v1354_v53, %v990_v28  ;;  %v1365_v50 = vadd.f32 %v1355_v6, %v991_v3  ;;  %v12338_v8 = vld [vmem:[#allocation111_spill] sm:$0xff]  ;;  %v12348_v53 = vld [vmem:[#allocation81_spill] sm:$0xff] }
 0x16d   : > { %v1362_v24 = vadd.f32 %v1356_v43, %v992_v39  ;;  %v1363_v16 = vadd.f32 %v1357_v40, %v993_v60  ;;  %v1882_v51 = vmul.f32 %v12259_v38, %v7493_v21  ;;  %v1883_v4 = vmul.f32 %v12338_v8, %v7498_v30 }
 0x16e   : > { %v1727_v10 = vadd.f32 %v7514_v47, %v1364_v27  ;;  %v1728_v20 = vadd.f32 %v7522_v61, %v1365_v50  ;;  %v1712_v39 = vrot.slane %v1706_v62, 1  ;;  %v1713_v60 = vrot.slane %v1707_v59, 1 }
 0x16f   : > { %v1915_v28 = vadd.f32 %v1909_v31, %v1539_v13  ;;  %v1916_v3 = vadd.f32 %v1910_v1, %v1540_v19  ;;  %v1888_v52 = vadd.f32 %v1882_v51, %v12339_v37  ;;  %v1889_v11 = vadd.f32 %v1883_v4, %v12340_v41 }
 0x170   : > { %v2070_v5 = vmul.f32 %v12261_v32, %v7493_v21  ;;  %v2071_v47 = vmul.f32 %v12262_v33, %v7498_v30  ;;  %v12341_v61 = vrot.slane %v7477_v25, 1  ;;  %v12342_v63 = vrot.slane %v7480_v15, 1  ;;  %v12345_v15 = vld [vmem:[#allocation122_spill] sm:$0xff] }
 0x171   : > { %v12343_v1 = vrot.slane %v7338_v29, 1  ;;  %v12344_v32 = vrot.slane %v7341_v36, 1  ;;  %v1894_v34 = vadd.f32 %v1888_v52, %v12345_v15  ;;  %v1895_v46 = vadd.f32 %v1889_v11, %v12346_v48  ;;  %v2111_v11 = vld [vmem:[%s7709_s21] sm:$0xff]  ;;  %v2149_v48 = vld [vmem:[%s5838_s18 + $0x10] sm:$0xff] }
 0x172   : > { %v1717_v38 = vsel %vm1716_vm9, %v1712_v39, %v12341_v61  ;;  %v1718_v31 = vsel %vm1716_vm9, %v1713_v60, %v12342_v63  ;;  %v2076_v29 = vadd.f32 %v2070_v5, %v12347_v0  ;;  %v2077_v57 = vadd.f32 %v2071_v47, %v12348_v53  ;;  %v2112_v5 = vld [vmem:[%s7709_s21 + $0x8] sm:$0xff]  ;;  %v2114_v61 = vld [vmem:[%s7709_s21 + $0x18] sm:$0xff]  ;;  %v2127_v63 = vld [vmem:[%s7734_s11 + $0x20] sm:$0xff] }
 0x173   : > { %v1719_v13 = vsel %vm1716_vm9, %v12343_v1, %v1712_v39  ;;  %v1720_v33 = vsel %vm1716_vm9, %v12344_v32, %v1713_v60  ;;  %v1725_v30 = vadd.f32 %v1717_v38, %v1362_v24  ;;  %v1726_v19 = vadd.f32 %v1718_v31, %v1363_v16  ;;  %v12359_v60 = vld [vmem:[#allocation127_spill] sm:$0xff]  ;;  %v2151_v53 = vld [vmem:[%s5838_s18 + $0x20] sm:$0xff] }
 0x174   : > { %v1723_v25 = vadd.f32 %v1719_v13, %v7472_v14  ;;  %v1724_v21 = vadd.f32 %v1720_v33, %v7474_v56  ;;  %v2103_v6 = vadd.f32 %v7566_v54, %v1727_v10  ;;  %v2104_v36 = vadd.f32 %v7574_v22, %v1728_v20  ;;  %v12349_v14 = vld [vmem:[#allocation124_spill] sm:$0xff]  ;;  %v12350_v56 = vld [vmem:[#allocation125_spill] sm:$0xff] }
 0x175   : > { %v1900_v35 = vrot.slane %v1894_v34, 2  ;;  %v1901_v43 = vrot.slane %v1895_v46, 2  ;;  %v2082_v26 = vadd.f32 %v2076_v29, %v12349_v14  ;;  %v2083_v40 = vadd.f32 %v2077_v57, %v12350_v56  ;;  %v2116_v38 = vld [vmem:[%s7709_s21 + $0x28] sm:$0xff]  ;;  %v2123_v33 = vld [vmem:[%s7734_s11] sm:$0xff] }
 0x176   : > { %v2109_v24 = vadd.f32 %v2103_v6, %v1915_v28  ;;  %v2110_v16 = vadd.f32 %v2104_v36, %v1916_v3  ;;  %v12351_v27 = vrot.slane %v7501_v49, 2  ;;  %v12352_v12 = vrot.slane %v7504_v2, 2  ;;  %v2147_v34 = vld [vmem:[%s5838_s18] sm:$0xff]  ;;  %v2128_v29 = vld [vmem:[%s7734_s11 + $0x28] sm:$0xff] }
 0x177   : > { %v12353_v22 = vrot.slane %v7348_v44, 2  ;;  %v12354_v9 = vrot.slane %v7351_v23, 2  ;;  %v2088_v2 = vrot.slane %v2082_v26, 3  ;;  %v2089_v8 = vrot.slane %v2083_v40, 3  ;;  %v2115_v44 = vld [vmem:[%s7709_s21 + $0x20] sm:$0xff]  ;;  %v2148_v14 = vld [vmem:[%s5838_s18 + $0x8] sm:$0xff] }
 0x178   : > { %v1905_v50 = vsel %vm1904_vm10, %v1900_v35, %v12351_v27  ;;  %v1906_v54 = vsel %vm1904_vm10, %v1901_v43, %v12352_v12  ;;  %v12355_v23 = vrot.slane %v7531_v55, 3  ;;  %v12360_v28 = vrot.slane %v12359_v60, 3  ;;  %v5559_v60 = vld [vmem:[%s7851_s12 + $0x25] ss:$8 sm:$0x3] }
 0x179   : > { %v1907_v62 = vsel %vm1904_vm10, %v12353_v22, %v1900_v35  ;;  %v1908_v59 = vsel %vm1904_vm10, %v12354_v9, %v1901_v43  ;;  %v1913_v20 = vadd.f32 %v1905_v50, %v1537_v42  ;;  %v1914_v51 = vadd.f32 %v1906_v54, %v1538_v17  ;;  %v12357_v17 = vld [vmem:[#allocation126_spill] sm:$0xff]  ;;  %v2126_v43 = vld [vmem:[%s7734_s11 + $0x18] sm:$0xff]  ;;  %v2152_v22 = vld [vmem:[%s5838_s18 + $0x28] sm:$0xff] }
 0x17a   : > { %v1911_v49 = vadd.f32 %v1907_v62, %v7467_v45  ;;  %v1912_v10 = vadd.f32 %v1908_v59, %v7470_v7  ;;  %v2093_v45 = vsel %vm2092_vm11, %v2088_v2, %v12355_v23  ;;  %v12356_v7 = vrot.slane %v7534_v58, 3  ;;  %v2113_v58 = vld [vmem:[%s7709_s21 + $0x10] sm:$0xff]  ;;  %v2150_v54 = vld [vmem:[%s5838_s18 + $0x18] sm:$0xff] }
 0x17b   : > { %v12358_v4 = vrot.slane %v12357_v17, 3  ;;  %v2096_v3 = vsel %vm2092_vm11, %v12360_v28, %v2089_v8  ;;  %v2101_v52 = vadd.f32 %v2093_v45, %v1725_v30  ;;  %v2121_v47 = vmul.f32 %v2115_v44, %v2109_v24  ;;  %v2363_v44 = vld [vmem:[%s7851_s12] ss:$8 sm:$0x3] }
 0x17c   : > { %v2094_v42 = vsel %vm2092_vm11, %v2089_v8, %v12356_v7  ;;  %v2100_v55 = vadd.f32 %v2096_v3, %v1724_v21  ;;  %v2125_v21 = vld [vmem:[%s7734_s11 + $0x10] sm:$0xff]  ;;  %v2122_v46 = vmul.f32 %v2116_v38, %v2110_v16  ;;  %v5555_v8 = vld [vmem:[%s7851_s12 + $0x21] ss:$8 sm:$0x3] }
 0x17d   : > { %v2095_v39 = vsel %vm2092_vm11, %v12358_v4, %v2088_v2  ;;  %v2102_v41 = vadd.f32 %v2094_v42, %v1726_v19  ;;  %v2107_v13 = vadd.f32 %v2101_v52, %v1913_v20  ;;  %v7742_v0 = vadd.f32 %v2127_v63, %v2121_v47  ;;  %v5548_v2 = vld [vmem:[%s7851_s12 + $0x12] ss:$8 sm:$0x3]  ;;  %v5562_v23 = vld [vmem:[%s7851_s12 + $0x30] ss:$8 sm:$0x3] }
 0x17e   : > { %v2099_v37 = vadd.f32 %v2095_v39, %v1723_v25  ;;  %v2106_v1 = vadd.f32 %v2100_v55, %v1912_v10  ;;  %v2124_v25 = vld [vmem:[%s7734_s11 + $0x8] sm:$0xff]  ;;  %v7756_v40 = vadd.f32 %v2128_v29, %v2122_v46  ;;  %v5552_v7 = vld [vmem:[%s7851_s12 + $0x16] ss:$8 sm:$0x3] }
 0x17f   : > { %v2108_v32 = vadd.f32 %v2102_v41, %v1914_v51  ;;  %v2119_v15 = vmul.f32 %v2113_v58, %v2107_v13  ;;  %12361 = vst [vmem:[#allocation86_spill] sm:$0xff] %v7742_v0  ;;  %v2157_v24 = vadd.f32 %v2151_v53, %v7742_v0  ;;  %v5541_v51 = vld [vmem:[%s7851_s12 + $0x3] ss:$8 sm:$0x3] }
 0x180   : > { %v2105_v31 = vadd.f32 %v2099_v37, %v1911_v49  ;;  %v2118_v19 = vmul.f32 %v2112_v5, %v2106_v1  ;;  %12365 = vst [vmem:[#allocation90_spill] sm:$0xff] %v7756_v40  ;;  %v2158_v9 = vadd.f32 %v2152_v22, %v7756_v40  ;;  %v5545_v45 = vld [vmem:[%s7851_s12 + $0x7] ss:$8 sm:$0x3] }
 0x181   : > { %v2120_v57 = vmul.f32 %v2114_v61, %v2108_v32  ;;  %v7750_v35 = vadd.f32 %v2125_v21, %v2119_v15  ;;  %v7776_v49 = vmax.f32 %v2157_v24, 0.0  ;;  %v12373_v42 = vld [vmem:[#allocation13_spill] sm:$0xff]  ;;  %v12374_v4 = vld [vmem:[#allocation14_spill] sm:$0xff] }
 0x182   : > { %v2117_v30 = vmul.f32 %v2111_v11, %v2105_v31  ;;  %v7748_v36 = vadd.f32 %v2124_v25, %v2118_v19  ;;  %v7784_v20 = vmax.f32 %v2158_v9, 0.0  ;;  %v7861_v17 = vrot.slane %v5541_v51, %v12373_v42  ;;  %v5566_v28 = vld [vmem:[%s7851_s12 + $0x34] ss:$8 sm:$0x3] }
 0x183   : > { %12364 = vst [vmem:[#allocation89_spill] sm:$0xff] %v7750_v35  ;;  %v2155_v56 = vadd.f32 %v2149_v48, %v7750_v35  ;;  %v7759_v16 = vadd.f32 %v2126_v43, %v2120_v57  ;;  %12370 = vst [vmem:[#allocation93_spill] sm:$0xff] %v7776_v49  ;;  %v7864_v39 = vrot.slane %v5541_v51, %v12374_v4  ;;  %v5569_v47 = vld [vmem:[%s7851_s12 + $0x37] ss:$8 sm:$0x3] }
 0x184   : > { %v7746_v6 = vadd.f32 %v2123_v33, %v2117_v30  ;;  %12363 = vst [vmem:[#allocation88_spill] sm:$0xff] %v7748_v36  ;;  %v2154_v27 = vadd.f32 %v2148_v14, %v7748_v36  ;;  %12372 = vst [vmem:[#allocation19_spill] sm:$0xff] %v7784_v20  ;;  %v7869_v3 = vrot.slane %v5548_v2, %v12373_v42  ;;  %v5576_v61 = vld [vmem:[%s7851_s12 + $0x46] ss:$8 sm:$0x3] }
 0x185   : > { %12366 = vst [vmem:[#allocation91_spill] sm:$0xff] %v7759_v16  ;;  %v7764_v12 = vmax.f32 %v2155_v56, 0.0  ;;  %v2156_v62 = vadd.f32 %v2150_v54, %v7759_v16  ;;  %v7872_v37 = vrot.slane %v5548_v2, %v12374_v4  ;;  %v7875_v55 = vrot.slane %v5555_v8, %v12373_v42  ;;  %v5573_v13 = vld [vmem:[%s7851_s12 + $0x43] ss:$8 sm:$0x3] }
 0x186   : > { %12362 = vst [vmem:[#allocation87_spill] sm:$0xff] %v7746_v6  ;;  %v2153_v26 = vadd.f32 %v2147_v34, %v7746_v6  ;;  %v7774_v59 = vmax.f32 %v2154_v27, 0.0  ;;  %v7878_v52 = vrot.slane %v5555_v8, %v12374_v4  ;;  %v7881_v41 = vrot.slane %v2363_v44, %v12373_v42  ;;  %v5580_v32 = vld [vmem:[%s7851_s12 + $0x52] ss:$8 sm:$0x3] }
 0x187   : > { %12368 = vst [vmem:[#allocation17_spill] sm:$0xff] %v7764_v12  ;;  %2179 = vrot.lane.b32.xlu1 %v7764_v12, %s5708_s19  ;;  %v7782_v10 = vmax.f32 %v2156_v62, 0.0  ;;  %v7884_v11 = vrot.slane %v2363_v44, %v12374_v4  ;;  %v7887_v5 = vrot.slane %v5562_v23, %v12373_v42  ;;  %v7890_v58 = vrot.slane %v5562_v23, %v12374_v4  ;;  %v5540_v43 = vld [vmem:[%s7851_s12 + $0x2] ss:$8 sm:$0x3] }
 0x188   : > { %v7762_v50 = vmax.f32 %v2153_v26, 0.0  ;;  %12369 = vst [vmem:[#allocation92_spill] sm:$0xff] %v7774_v59  ;;  %v7895_v38 = vrot.slane %v5545_v45, %v12373_v42  ;;  %v7898_v63 = vrot.slane %v5545_v45, %v12374_v4  ;;  %v7901_v31 = vrot.slane %v5552_v7, %v12373_v42  ;;  %v5583_v27 = vld [vmem:[%s7851_s12 + $0x55] ss:$8 sm:$0x3] }
 0x189   : > { %12371 = vst [vmem:[#allocation18_spill] sm:$0xff] %v7782_v10  ;;  %v7904_v1 = vrot.slane %v5552_v7, %v12374_v4  ;;  %v7909_v33 = vrot.slane %v5559_v60, %v12373_v42  ;;  %v7912_v25 = vrot.slane %v5559_v60, %v12374_v4  ;;  %v7915_v21 = vrot.slane %v5566_v28, %v12373_v42  ;;  %v5547_v54 = vld [vmem:[%s7851_s12 + $0x11] ss:$8 sm:$0x3] }
 0x18a   : > { %12367 = vst [vmem:[#allocation16_spill] sm:$0xff] %v7762_v50  ;;  %2177 = vrot.lane.b32.xlu0 %v7762_v50, %s5708_s19  ;;  %v7918_v30 = vrot.slane %v5566_v28, %v12374_v4  ;;  %v7921_v19 = vrot.slane %v5569_v47, %v12373_v42  ;;  %v7924_v15 = vrot.slane %v5569_v47, %v12374_v4  ;;  %v5554_v22 = vld [vmem:[%s7851_s12 + $0x20] ss:$8 sm:$0x3] }
 0x18b   : > { %2183 = vrot.lane.b32.xlu1 %v7774_v59, %s5708_s19  ;;  %v7927_v34 = vrot.slane %v5576_v61, %v12373_v42  ;;  %v7930_v48 = vrot.slane %v5576_v61, %v12374_v4  ;;  %v7933_v46 = vrot.slane %v5573_v13, %v12373_v42  ;;  %v7936_v29 = vrot.slane %v5573_v13, %v12374_v4  ;;  %v5561_v8 = vld [vmem:[%s7851_s12 + $0x27] ss:$8 sm:$0x3]  ;;  %v5568_v44 = vld [vmem:[%s7851_s12 + $0x36] ss:$8 sm:$0x3] }
 0x18c   : > { %v7939_v53 = vrot.slane %v5580_v32, %v12373_v42  ;;  %v7942_v57 = vrot.slane %v5580_v32, %v12374_v4  ;;  %v7947_v14 = vmul.f32 %v7861_v17, %v7762_v50  ;;  %v7951_v26 = vmul.f32 %v7864_v39, %v7774_v59  ;;  %v5575_v47 = vld [vmem:[%s7851_s12 + $0x45] ss:$8 sm:$0x3]  ;;  %v5582_v61 = vld [vmem:[%s7851_s12 + $0x54] ss:$8 sm:$0x3] }
 0x18d   : > { %v7955_v56 = vmul.f32 %v7869_v3, %v7762_v50  ;;  %v7959_v24 = vmul.f32 %v7872_v37, %v7774_v59  ;;  %v7966_v62 = vmul.f32 %v7875_v55, %v7762_v50  ;;  %v7970_v9 = vmul.f32 %v7878_v52, %v7774_v59 }
 0x18e   : > { %2181 = vrot.lane.b32.xlu0 %v7776_v49, %s5708_s19  ;;  %12375 = vst [vmem:[#allocation22_spill] sm:$0xff] %v7947_v14  ;;  %12376 = vst [vmem:[#allocation25_spill] sm:$0xff] %v7951_v26  ;;  %v7974_v51 = vmul.f32 %v7887_v5, %v7762_v50  ;;  %v7978_v2 = vmul.f32 %v7890_v58, %v7774_v59  ;;  %v7984_v23 = vmul.f32 %v7921_v19, %v7762_v50 }
 0x18f   : > { %2187 = vrot.lane.b32.xlu1 %v7784_v20, %s5708_s19  ;;  %12377 = vst [vmem:[#allocation20_spill] sm:$0xff] %v7955_v56  ;;  %12378 = vst [vmem:[#allocation21_spill] sm:$0xff] %v7959_v24  ;;  %v7988_v45 = vmul.f32 %v7924_v15, %v7774_v59  ;;  %v7992_v7 = vmul.f32 %v7927_v34, %v7762_v50  ;;  %v7996_v60 = vmul.f32 %v7930_v48, %v7774_v59 }
 0x190   : > { %12379 = vst [vmem:[#allocation94_spill] sm:$0xff] %v7966_v62  ;;  %12380 = vst [vmem:[#allocation95_spill] sm:$0xff] %v7970_v9  ;;  %v7999_v28 = vrot.slane %v5540_v43, %v12373_v42  ;;  %v3571_v13 = vrot.slane %v5583_v27, %v12373_v42  ;;  %v3575_v32 = vrot.slane %v5583_v27, %v12374_v4 }
 0x191   : > { %12381 = vst [vmem:[#allocation96_spill] sm:$0xff] %v7974_v51  ;;  %12382 = vst [vmem:[#allocation97_spill] sm:$0xff] %v7978_v2  ;;  %v8007_v40 = vmul.f32 %v7864_v39, %v7784_v20  ;;  %v8010_v16 = vrot.slane %v5540_v43, %v12374_v4  ;;  %v8013_v35 = vrot.slane %v5547_v54, %v12373_v42 }
 0x192   : > { %2185 = vrot.lane.b32.xlu0 %v7782_v10, %s5708_s19  ;;  %12383 = vst [vmem:[#allocation98_spill] sm:$0xff] %v7984_v23  ;;  %12384 = vst [vmem:[#allocation99_spill] sm:$0xff] %v7988_v45  ;;  %v8016_v36 = vrot.slane %v5547_v54, %v12374_v4  ;;  %v8019_v6 = vrot.slane %v5554_v22, %v12373_v42  ;;  %v8022_v0 = vrot.slane %v5554_v22, %v12374_v4 }
 0x193   : > { %2239 = vrot.lane.b32.xlu1 %v7764_v12, %s5709_s20  ;;  %12385 = vst [vmem:[#allocation26_spill] sm:$0xff] %v7992_v7  ;;  %12386 = vst [vmem:[#allocation29_spill] sm:$0xff] %v7996_v60  ;;  %v8025_v27 = vrot.slane %v5561_v8, %v12373_v42  ;;  %v8028_v18 = vrot.slane %v5561_v8, %v12374_v4  ;;  %v8031_v43 = vrot.slane %v5568_v44, %v12373_v42 }
 0x194   : > { %12387 = vst [vmem:[#allocation23_spill] sm:$0xff] %v8007_v40  ;;  %v8034_v40 = vrot.slane %v5568_v44, %v12374_v4  ;;  %v8037_v54 = vrot.slane %v5575_v47, %v12373_v42  ;;  %v8040_v60 = vrot.slane %v5575_v47, %v12374_v4  ;;  %v8043_v22 = vrot.slane %v5582_v61, %v12373_v42 }
 0x195   : > { %v8046_v7 = vrot.slane %v5582_v61, %v12374_v4  ;;  %v8049_v8 = vmul.f32 %v3571_v13, %v7762_v50  ;;  %v8052_v45 = vmul.f32 %v3575_v32, %v7774_v59  ;;  %v8056_v44 = vmul.f32 %v7872_v37, %v7784_v20 }
 0x196   : > { %2237 = vrot.lane.b32.xlu0 %v7762_v50, %s5709_s20  ;;  %v8060_v47 = vmul.f32 %v7878_v52, %v7784_v20  ;;  %v8064_v23 = vmul.f32 %v7890_v58, %v7784_v20  ;;  %v8068_v61 = vmul.f32 %v7924_v15, %v7784_v20 }
 0x197   : > { %2243 = vrot.lane.b32.xlu1 %v7774_v59, %s5709_s20  ;;  %12388 = vst [vmem:[#allocation24_spill] sm:$0xff] %v8049_v8  ;;  %12389 = vst [vmem:[#allocation27_spill] sm:$0xff] %v8052_v45  ;;  %v5584_v8 = vld [vmem:[%s7851_s12 + $0x56] ss:$8 sm:$0x3] }
 0x198   : > { %12390 = vst [vmem:[#allocation28_spill] sm:$0xff] %v8056_v44  ;;  %12391 = vst [vmem:[#allocation30_spill] sm:$0xff] %v8060_v47  ;;  %v8079_v47 = vmul.f32 %v7861_v17, %v7776_v49  ;;  %v8087_v44 = vmul.f32 %v7875_v55, %v7776_v49 }
 0x199   : > { %12392 = vst [vmem:[#allocation33_spill] sm:$0xff] %v8064_v23  ;;  %12393 = vst [vmem:[#allocation31_spill] sm:$0xff] %v8068_v61  ;;  %v8083_v23 = vmul.f32 %v7869_v3, %v7776_v49  ;;  %v8091_v61 = vmul.f32 %v7887_v5, %v7776_v49 }
 0x19a   : > { %2241 = vrot.lane.b32.xlu0 %v7776_v49, %s5709_s20  ;;  %12396 = vst [vmem:[#allocation35_spill] sm:$0xff] %v8079_v47  ;;  %12398 = vst [vmem:[#allocation41_spill] sm:$0xff] %v8087_v44  ;;  %v8107_v44 = vmul.f32 %v7861_v17, %v7764_v12  ;;  %v8115_v47 = vmul.f32 %v7869_v3, %v7764_v12  ;;  %v8125_v17 = vmul.f32 %v7875_v55, %v7764_v12 }
 0x19b   : > { %2247 = vrot.lane.b32.xlu1 %v7784_v20, %s5709_s20  ;;  %12397 = vst [vmem:[#allocation39_spill] sm:$0xff] %v8083_v23  ;;  %12399 = vst [vmem:[#allocation36_spill] sm:$0xff] %v8091_v61  ;;  %v5539_v23 = vld [vmem:[%s7851_s12 + $0x1] ss:$8 sm:$0x3]  ;;  %v8111_v61 = vmul.f32 %v7864_v39, %v7782_v10  ;;  %v8129_v39 = vmul.f32 %v7878_v52, %v7782_v10  ;;  %v8133_v3 = vmul.f32 %v7887_v5, %v7764_v12 }
 0x19c   : > { %12403 = vst [vmem:[#allocation44_spill] sm:$0xff] %v8107_v44  ;;  %12405 = vst [vmem:[#allocation42_spill] sm:$0xff] %v8115_v47  ;;  %v8137_v47 = vmul.f32 %v7890_v58, %v7782_v10  ;;  %v8143_v55 = vmul.f32 %v7921_v19, %v7764_v12  ;;  %v8147_v52 = vmul.f32 %v7924_v15, %v7782_v10  ;;  %v5577_v44 = vld [vmem:[%s7851_s12 + $0x47] ss:$8 sm:$0x3] }
 0x19d   : > { %12404 = vst [vmem:[#allocation48_spill] sm:$0xff] %v8111_v61  ;;  %12407 = vst [vmem:[#allocation45_spill] sm:$0xff] %v8125_v17  ;;  %v8151_v5 = vmul.f32 %v7927_v34, %v7764_v12  ;;  %v8155_v58 = vmul.f32 %v7930_v48, %v7782_v10  ;;  %v8166_v15 = vmul.f32 %v3571_v13, %v7764_v12  ;;  %v5570_v61 = vld [vmem:[%s7851_s12 + $0x40] ss:$8 sm:$0x3] }
 0x19e   : > { %2245 = vrot.lane.b32.xlu0 %v7782_v10, %s5709_s20  ;;  %12408 = vst [vmem:[#allocation100_spill] sm:$0xff] %v8129_v39  ;;  %12409 = vst [vmem:[#allocation101_spill] sm:$0xff] %v8133_v3  ;;  %v8161_v3 = vrot.slane %v5539_v23, %v12374_v4 }
 0x19f   : > { %2209 = vrot.lane.b32.xlu1 %v7764_v12, %s5710_s26  ;;  %12410 = vst [vmem:[#allocation102_spill] sm:$0xff] %v8137_v47  ;;  %12411 = vst [vmem:[#allocation103_spill] sm:$0xff] %v8143_v55  ;;  %v8158_v47 = vrot.slane %v5539_v23, %v12373_v42  ;;  %v5581_v55 = vld [vmem:[%s7851_s12 + $0x53] ss:$8 sm:$0x3] }
 0x1a0   : > { %12412 = vst [vmem:[#allocation46_spill] sm:$0xff] %v8147_v52  ;;  %12413 = vst [vmem:[#allocation47_spill] sm:$0xff] %v8151_v5  ;;  %v5542_v52 = vld [vmem:[%s7851_s12 + $0x4] ss:$8 sm:$0x3]  ;;  %v8209_v17 = vrot.slane %v5581_v55, %v12374_v4 }
 0x1a1   : > { %12414 = vst [vmem:[#allocation49_spill] sm:$0xff] %v8155_v58  ;;  %12415 = vst [vmem:[#allocation50_spill] sm:$0xff] %v8158_v47 }
 0x1a2   : > { %2207 = vrot.lane.b32.xlu0 %v7762_v50, %s5710_s26  ;;  %12416 = vst [vmem:[#allocation108_spill] sm:$0xff] %v8161_v3  ;;  %12417 = vst [vmem:[#allocation109_spill] sm:$0xff] %v8166_v15  ;;  %v5563_v15 = vld [vmem:[%s7851_s12 + $0x31] ss:$8 sm:$0x3] }
 0x1a3   : > { %2213 = vrot.lane.b32.xlu1 %v7774_v59, %s5710_s26  ;;  %12430 = vst [vmem:[#allocation54_spill] sm:$0xff] %v8209_v17 }
 0x1a6   : > { %2211 = vrot.lane.b32.xlu0 %v7776_v49, %s5710_s26 }
 0x1a7   : > { %2217 = vrot.lane.b32.xlu1 %v7784_v20, %s5710_s26 }
 0x1aa   : > { %2215 = vrot.lane.b32.xlu0 %v7782_v10, %s5710_s26 }
 0x1ab   : > { %2281 = vrot.lane.b32.xlu1 %v7764_v12, %s5711_s27 }
 0x1ae   : > { %2279 = vrot.lane.b32.xlu0 %v7762_v50, %s5711_s27 }
 0x1af   : > { %2285 = vrot.lane.b32.xlu1 %v7774_v59, %s5711_s27 }
 0x1b2   : > { %2283 = vrot.lane.b32.xlu0 %v7776_v49, %s5711_s27 }
 0x1b3   : > { %2289 = vrot.lane.b32.xlu1 %v7784_v20, %s5711_s27 }
 0x1b6   : > { %2287 = vrot.lane.b32.xlu0 %v7782_v10, %s5711_s27 }
 0x1b7   : > { %2311 = vrot.lane.b32.xlu1 %v7764_v12, %s5712_s7 }
 0x1ba   : > { %2309 = vrot.lane.b32.xlu0 %v7762_v50, %s5712_s7 }
 0x1bb   : > { %2315 = vrot.lane.b32.xlu1 %v7774_v59, %s5712_s7 }
 0x1be   : > { %2313 = vrot.lane.b32.xlu0 %v7776_v49, %s5712_s7 }
 0x1bf   : > { %2319 = vrot.lane.b32.xlu1 %v7784_v20, %s5712_s7 }
 0x1c2   : > { %2317 = vrot.lane.b32.xlu0 %v7782_v10, %s5712_s7 }
 0x1c3   : > { %2341 = vrot.lane.b32.xlu1 %v7764_v12, %s5713_s8 }
 0x1c6   : > { %2339 = vrot.lane.b32.xlu0 %v7762_v50, %s5713_s8  ;;  %v8075_v50 = vmul.f32 %v3575_v32, %v7784_v20 }
 0x1c7   : > { %2345 = vrot.lane.b32.xlu1 %v7774_v59, %s5713_s8  ;;  %v8072_v59 = vmul.f32 %v7930_v48, %v7784_v20 }
 0x1c8   : > { %12395 = vst [vmem:[#allocation34_spill] sm:$0xff] %v8075_v50  ;;  %v8099_v50 = vmul.f32 %v7927_v34, %v7776_v49  ;;  %v8169_v34 = vmul.f32 %v3575_v32, %v7782_v10 }
 0x1c9   : > { %12394 = vst [vmem:[#allocation32_spill] sm:$0xff] %v8072_v59  ;;  %v8102_v59 = vmul.f32 %v3571_v13, %v7776_v49  ;;  %v5549_v13 = vld [vmem:[%s7851_s12 + $0x13] ss:$8 sm:$0x3] }
 0x1ca   : > { %2343 = vrot.lane.b32.xlu0 %v7776_v49, %s5713_s8  ;;  %12401 = vst [vmem:[#allocation38_spill] sm:$0xff] %v8099_v50  ;;  %v8119_v50 = vmul.f32 %v7872_v37, %v7782_v10  ;;  %v5560_v37 = vld [vmem:[%s7851_s12 + $0x26] ss:$8 sm:$0x3]  ;;  %12418 = vst [vmem:[#allocation110_spill] sm:$0xff] %v8169_v34  ;;  %v8223_v45 = vrot.slane %v5549_v13, %v12374_v4 }
 0x1cb   : > { %2349 = vrot.lane.b32.xlu1 %v7784_v20, %s5713_s8  ;;  %v8095_v20 = vmul.f32 %v7921_v19, %v7776_v49  ;;  %12402 = vst [vmem:[#allocation40_spill] sm:$0xff] %v8102_v59  ;;  %v5546_v49 = vld [vmem:[%s7851_s12 + $0x10] ss:$8 sm:$0x3]  ;;  %v8186_v12 = vrot.slane %v5560_v37, %v12373_v42  ;;  %v8189_v32 = vrot.slane %v5560_v37, %v12374_v4 }
 0x1cc   : > { %12406 = vst [vmem:[#allocation43_spill] sm:$0xff] %v8119_v50  ;;  %v5553_v59 = vld [vmem:[%s7851_s12 + $0x17] ss:$8 sm:$0x3]  ;;  %v8172_v5 = vrot.slane %v5546_v49, %v12373_v42  ;;  %v8175_v48 = vrot.slane %v5546_v49, %v12374_v4  ;;  %v8206_v37 = vrot.slane %v5581_v55, %v12373_v42  ;;  %12434 = vst [vmem:[#allocation58_spill] sm:$0xff] %v8223_v45 }
 0x1cd   : > { %12400 = vst [vmem:[#allocation37_spill] sm:$0xff] %v8095_v20  ;;  %v5567_v50 = vld [vmem:[%s7851_s12 + $0x35] ss:$8 sm:$0x3]  ;;  %v8178_v23 = vrot.slane %v5553_v59, %v12373_v42  ;;  %v8181_v58 = vrot.slane %v5553_v59, %v12374_v4  ;;  %12423 = vst [vmem:[#allocation53_spill] sm:$0xff] %v8186_v12  ;;  %v8217_v20 = vrot.slane %v5542_v52, %v12374_v4 }
 0x1ce   : > { %2347 = vrot.lane.b32.xlu0 %v7782_v10, %s5713_s8  ;;  %v5574_v19 = vld [vmem:[%s7851_s12 + $0x44] ss:$8 sm:$0x3]  ;;  %12419 = vst [vmem:[#allocation112_spill] sm:$0xff] %v8172_v5  ;;  %12420 = vst [vmem:[#allocation113_spill] sm:$0xff] %v8175_v48  ;;  %v8192_v49 = vrot.slane %v5567_v50, %v12373_v42  ;;  %v8195_v10 = vrot.slane %v5567_v50, %v12374_v4  ;;  %v8214_v50 = vrot.slane %v5542_v52, %v12373_v42 }
 0x1cf   : > { %12421 = vst [vmem:[#allocation51_spill] sm:$0xff] %v8178_v23  ;;  %12422 = vst [vmem:[#allocation52_spill] sm:$0xff] %v8181_v58  ;;  %v5556_v34 = vld [vmem:[%s7851_s12 + $0x22] ss:$8 sm:$0x3]  ;;  %v8200_v59 = vrot.slane %v5574_v19, %v12373_v42  ;;  %v8203_v39 = vrot.slane %v5574_v19, %v12374_v4  ;;  %v8220_v19 = vrot.slane %v5549_v13, %v12373_v42 }
 0x1d0   : > { %12424 = vst [vmem:[#allocation82_spill] sm:$0xff] %v8189_v32  ;;  %12425 = vst [vmem:[#allocation83_spill] sm:$0xff] %v8192_v49  ;;  %v8228_v55 = vrot.slane %v5556_v34, %v12373_v42  ;;  %v8231_v17 = vrot.slane %v5556_v34, %v12374_v4  ;;  %v8234_v52 = vrot.slane %v5563_v15, %v12373_v42 }
 0x1d1   : > { %12426 = vst [vmem:[#allocation84_spill] sm:$0xff] %v8195_v10  ;;  %12427 = vst [vmem:[#allocation85_spill] sm:$0xff] %v8200_v59  ;;  %v8242_v13 = vrot.slane %v5570_v61, %v12373_v42  ;;  %v8245_v45 = vrot.slane %v5570_v61, %v12374_v4  ;;  %v8248_v34 = vrot.slane %v5577_v44, %v12373_v42  ;;  %v5579_v10 = vld [vmem:[%s7851_s12 + $0x51] ss:$8 sm:$0x3] }
 0x1d2   : > { %12428 = vst [vmem:[#allocation114_spill] sm:$0xff] %v8203_v39  ;;  %12429 = vst [vmem:[#allocation115_spill] sm:$0xff] %v8206_v37  ;;  %v5543_v37 = vld [vmem:[%s7851_s12 + $0x5] ss:$8 sm:$0x3] }
 0x1d3   : > { %12431 = vst [vmem:[#allocation55_spill] sm:$0xff] %v8214_v50  ;;  %12432 = vst [vmem:[#allocation56_spill] sm:$0xff] %v8217_v20  ;;  %v8237_v20 = vrot.slane %v5563_v15, %v12374_v4  ;;  %v5557_v50 = vld [vmem:[%s7851_s12 + $0x23] ss:$8 sm:$0x3]  ;;  %v8256_v15 = vrot.slane %v5584_v8, %v12373_v42  ;;  %v8265_v61 = vrot.slane %v5543_v37, %v12374_v4 }
 0x1d4   : > { %12433 = vst [vmem:[#allocation57_spill] sm:$0xff] %v8220_v19  ;;  %12435 = vst [vmem:[#allocation59_spill] sm:$0xff] %v8228_v55  ;;  %v5550_v19 = vld [vmem:[%s7851_s12 + $0x14] ss:$8 sm:$0x3] }
 0x1d5   : > { %12436 = vst [vmem:[#allocation60_spill] sm:$0xff] %v8231_v17  ;;  %12437 = vst [vmem:[#allocation61_spill] sm:$0xff] %v8234_v52  ;;  %v8251_v17 = vrot.slane %v5577_v44, %v12374_v4  ;;  %v5564_v52 = vld [vmem:[%s7851_s12 + $0x32] ss:$8 sm:$0x3]  ;;  %v8270_v44 = vrot.slane %v5550_v19, %v12373_v42 }
 0x1d6   : > { %12438 = vst [vmem:[#allocation116_spill] sm:$0xff] %v8237_v20  ;;  %12439 = vst [vmem:[#allocation62_spill] sm:$0xff] %v8242_v13  ;;  %v5571_v55 = vld [vmem:[%s7851_s12 + $0x41] ss:$8 sm:$0x3]  ;;  %v8259_v20 = vrot.slane %v5584_v8, %v12374_v4  ;;  %v8262_v13 = vrot.slane %v5543_v37, %v12373_v42  ;;  %v8279_v8 = vrot.slane %v5557_v50, %v12374_v4 }
 0x1d7   : > { %12440 = vst [vmem:[#allocation63_spill] sm:$0xff] %v8245_v45  ;;  %12441 = vst [vmem:[#allocation64_spill] sm:$0xff] %v8248_v34  ;;  %v5578_v34 = vld [vmem:[%s7851_s12 + $0x50] ss:$8 sm:$0x3]  ;;  %v8286_v39 = vrot.slane %v5564_v52, %v12373_v42 }
 0x1d8   : > { %12442 = vst [vmem:[#allocation65_spill] sm:$0xff] %v8251_v17  ;;  %12443 = vst [vmem:[#allocation66_spill] sm:$0xff] %v8256_v15  ;;  %v5585_v45 = vld [vmem:[%s7851_s12 + $0x57] ss:$8 sm:$0x3]  ;;  %v8273_v17 = vrot.slane %v5550_v19, %v12374_v4  ;;  %v8276_v15 = vrot.slane %v5557_v50, %v12373_v42  ;;  %v8289_v19 = vrot.slane %v5564_v52, %v12374_v4 }
 0x1d9   : > { %12444 = vst [vmem:[#allocation67_spill] sm:$0xff] %v8259_v20  ;;  %12445 = vst [vmem:[#allocation68_spill] sm:$0xff] %v8262_v13  ;;  %v5544_v13 = vld [vmem:[%s7851_s12 + $0x6] ss:$8 sm:$0x3]  ;;  %v8303_v59 = vrot.slane %v5578_v34, %v12374_v4  ;;  %v8309_v52 = vrot.slane %v5585_v45, %v12374_v4 }
 0x1da   : > { %12446 = vst [vmem:[#allocation69_spill] sm:$0xff] %v8265_v61  ;;  %12447 = vst [vmem:[#allocation70_spill] sm:$0xff] %v8270_v44  ;;  %v5551_v37 = vld [vmem:[%s7851_s12 + $0x15] ss:$8 sm:$0x3]  ;;  %v8300_v44 = vrot.slane %v5578_v34, %v12373_v42 }
 0x1db   : > { %12448 = vst [vmem:[#allocation71_spill] sm:$0xff] %v8273_v17  ;;  %12449 = vst [vmem:[#allocation104_spill] sm:$0xff] %v8276_v15  ;;  %v8292_v17 = vrot.slane %v5571_v55, %v12373_v42  ;;  %v8295_v15 = vrot.slane %v5571_v55, %v12374_v4  ;;  %v5558_v50 = vld [vmem:[%s7851_s12 + $0x24] ss:$8 sm:$0x3]  ;;  %v8317_v55 = vrot.slane %v5544_v13, %v12374_v4 }
 0x1dc   : > { %12450 = vst [vmem:[#allocation105_spill] sm:$0xff] %v8279_v8  ;;  %12451 = vst [vmem:[#allocation117_spill] sm:$0xff] %v8286_v39  ;;  %v5565_v8 = vld [vmem:[%s7851_s12 + $0x33] ss:$8 sm:$0x3]  ;;  %v8306_v39 = vrot.slane %v5585_v45, %v12373_v42  ;;  %v8323_v34 = vrot.slane %v5551_v37, %v12374_v4  ;;  %v8330_v45 = vrot.slane %v5558_v50, %v12374_v4 }
 0x1dd   : > { %12452 = vst [vmem:[#allocation128_spill] sm:$0xff] %v8289_v19  ;;  %12453 = vst [vmem:[#allocation72_spill] sm:$0xff] %v8292_v17  ;;  %v5572_v19 = vld [vmem:[%s7851_s12 + $0x42] ss:$8 sm:$0x3]  ;;  %v8314_v17 = vrot.slane %v5544_v13, %v12373_v42 }
 0x1de   : > { %12454 = vst [vmem:[#allocation73_spill] sm:$0xff] %v8295_v15  ;;  %12455 = vst [vmem:[#allocation106_spill] sm:$0xff] %v8300_v44  ;;  %v8320_v15 = vrot.slane %v5551_v37, %v12373_v42  ;;  %v8342_v37 = vrot.slane %v5572_v19, %v12374_v4 }
 0x1df   : > { %12456 = vst [vmem:[#allocation107_spill] sm:$0xff] %v8303_v59  ;;  %12457 = vst [vmem:[#allocation129_spill] sm:$0xff] %v8306_v39  ;;  %v5586_v59 = vld [vmem:[%s7851_s12 + $0x60] ss:$8 sm:$0x3]  ;;  %v8327_v39 = vrot.slane %v5558_v50, %v12373_v42  ;;  %v8348_v50 = vrot.slane %v5579_v10, %v12374_v4 }
 0x1e0   : > { %12458 = vst [vmem:[#allocation130_spill] sm:$0xff] %v8309_v52  ;;  %12459 = vst [vmem:[#allocation74_spill] sm:$0xff] %v8314_v17  ;;  %v8333_v52 = vrot.slane %v5565_v8, %v12373_v42  ;;  %v8336_v17 = vrot.slane %v5565_v8, %v12374_v4 }
 0x1e1   : > { %12460 = vst [vmem:[#allocation75_spill] sm:$0xff] %v8317_v55  ;;  %12461 = vst [vmem:[#allocation118_spill] sm:$0xff] %v8320_v15  ;;  %v8339_v15 = vrot.slane %v5572_v19, %v12373_v42 }
 0x1e2   : > { %12462 = vst [vmem:[#allocation119_spill] sm:$0xff] %v8323_v34  ;;  %12463 = vst [vmem:[#allocation76_spill] sm:$0xff] %v8327_v39  ;;  %v8345_v34 = vrot.slane %v5579_v10, %v12373_v42 }
 0x1e3   : > { %12464 = vst [vmem:[#allocation77_spill] sm:$0xff] %v8330_v45  ;;  %12465 = vst [vmem:[#allocation120_spill] sm:$0xff] %v8333_v52 }
 0x1e4   : > { %12466 = vst [vmem:[#allocation121_spill] sm:$0xff] %v8336_v17  ;;  %12467 = vst [vmem:[#allocation111_spill] sm:$0xff] %v8339_v15  ;;  %v8355_v17 = vrot.slane %v5586_v59, %v12373_v42  ;;  %v8358_v15 = vrot.slane %v5586_v59, %v12374_v4 }
 0x1e5   : > { %12468 = vst [vmem:[#allocation78_spill] sm:$0xff] %v8342_v37  ;;  %12469 = vst [vmem:[#allocation79_spill] sm:$0xff] %v8345_v34 }
 0x1e6   : > { %12470 = vst [vmem:[#allocation122_spill] sm:$0xff] %v8348_v50  ;;  %12472 = vst [vmem:[#allocation123_spill] sm:$0xff] %v8355_v17 }
 0x1e7   : > { %12473 = vst [vmem:[#allocation80_spill] sm:$0xff] %v8358_v15 }
 0x1f9   : > { %v8283_v20 = vpop.permute.xlu1 %2179 }
 0x1fc   : > { %v2178_v61 = vpop.permute.xlu0 %2177 }
 0x1fd   : > { %v2184_v13 = vpop.permute.xlu1 %2183 }
 0x1fe   : > { %v2189_v52 = vsel %vm585_vm0, %v2178_v61, %v2184_v13  ;;  %v2192_v8 = vsel %vm585_vm0, %v2184_v13, %v2178_v61 }
 0x1ff   : > { %v2381_v19 = vmul.f32 %v7881_v41, %v2192_v8  ;;  %v2382_v37 = vmul.f32 %v7884_v11, %v2189_v52  ;;  %v2598_v34 = vmul.f32 %v7895_v38, %v2192_v8  ;;  %v2599_v10 = vmul.f32 %v7898_v63, %v2189_v52 }
 0x200   : > { %v2182_v55 = vpop.permute.xlu0 %2181  ;;  %v2779_v50 = vmul.f32 %v7901_v31, %v2192_v8  ;;  %v2780_v39 = vmul.f32 %v7904_v1, %v2189_v52  ;;  %v2966_v61 = vmul.f32 %v7909_v33, %v2192_v8  ;;  %v2967_v13 = vmul.f32 %v7912_v25, %v2189_v52 }
 0x201   : > { %v8369_v42 = vmul.f32 %v7915_v21, %v2192_v8  ;;  %v8372_v59 = vmul.f32 %v7918_v30, %v2189_v52  ;;  %v8375_v4 = vmul.f32 %v7933_v46, %v2192_v8  ;;  %v8378_v15 = vmul.f32 %v7936_v29, %v2189_v52  ;;  %v2188_v17 = vpop.permute.xlu1 %2187 }
 0x202   : > { %v8381_v44 = vmul.f32 %v7939_v53, %v2192_v8  ;;  %v8384_v49 = vmul.f32 %v7942_v57, %v2189_v52  ;;  %v2191_v2 = vsel %vm585_vm0, %v2182_v55, %v2188_v17  ;;  %v2194_v51 = vsel %vm585_vm0, %v2188_v17, %v2182_v55 }
 0x203   : > { %v8391_v9 = vmul.f32 %v7881_v41, %v2194_v51  ;;  %v8394_v62 = vmul.f32 %v7884_v11, %v2191_v2  ;;  %v8397_v24 = vmul.f32 %v7895_v38, %v2194_v51  ;;  %v8400_v8 = vmul.f32 %v7898_v63, %v2191_v2 }
 0x204   : > { %v2186_v52 = vpop.permute.xlu0 %2185  ;;  %v8403_v56 = vmul.f32 %v7901_v31, %v2194_v51  ;;  %v8406_v32 = vmul.f32 %v7904_v1, %v2191_v2  ;;  %v8409_v17 = vmul.f32 %v7909_v33, %v2194_v51  ;;  %v8412_v55 = vmul.f32 %v7912_v25, %v2191_v2 }
 0x205   : > { %v8415_v12 = vmul.f32 %v7915_v21, %v2194_v51  ;;  %v8418_v26 = vmul.f32 %v7918_v30, %v2191_v2  ;;  %v8421_v14 = vmul.f32 %v7933_v46, %v2194_v51  ;;  %v8424_v58 = vmul.f32 %v7936_v29, %v2191_v2  ;;  %v8426_v23 = vpop.permute.xlu1 %2239 }
 0x206   : > { %v8429_v48 = vmul.f32 %v7939_v53, %v2194_v51  ;;  %v8432_v5 = vmul.f32 %v7942_v57, %v2191_v2  ;;  %v2190_v3 = vsel %vm585_vm0, %v8283_v20, %v2186_v52  ;;  %v2193_v47 = vsel %vm585_vm0, %v2186_v52, %v8283_v20 }
 0x207   : > { %12474 = vst [vmem:[#allocation81_spill] sm:$0xff] %v8421_v14  ;;  %12475 = vst [vmem:[#allocation124_spill] sm:$0xff] %v8424_v58  ;;  %v8441_v14 = vmul.f32 %v7881_v41, %v2193_v47  ;;  %v8444_v58 = vmul.f32 %v7884_v11, %v2190_v3  ;;  %v8447_v51 = vmul.f32 %v7895_v38, %v2193_v47 }
 0x208   : > { %12476 = vst [vmem:[#allocation125_spill] sm:$0xff] %v8429_v48  ;;  %12477 = vst [vmem:[#allocation126_spill] sm:$0xff] %v8432_v5  ;;  %v8450_v2 = vmul.f32 %v7898_v63, %v2190_v3  ;;  %v8453_v5 = vmul.f32 %v7901_v31, %v2193_v47  ;;  %v8456_v48 = vmul.f32 %v7904_v1, %v2190_v3  ;;  %v2238_v1 = vpop.permute.xlu0 %2237 }
 0x209   : > { %v8459_v20 = vmul.f32 %v7909_v33, %v2193_v47  ;;  %v8462_v41 = vmul.f32 %v7912_v25, %v2190_v3  ;;  %v8465_v11 = vmul.f32 %v7915_v21, %v2193_v47  ;;  %v8468_v38 = vmul.f32 %v7918_v30, %v2190_v3  ;;  %v2244_v52 = vpop.permute.xlu1 %2243 }
 0x20a   : > { %12478 = vst [vmem:[#allocation127_spill] sm:$0xff] %v8453_v5  ;;  %12479 = vst [vmem:[#allocation131_spill] sm:$0xff] %v8456_v48  ;;  %v8471_v63 = vmul.f32 %v7933_v46, %v2193_v47  ;;  %v8474_v31 = vmul.f32 %v7936_v29, %v2190_v3  ;;  %v8477_v33 = vmul.f32 %v7939_v53, %v2193_v47 }
 0x20b   : > { %12480 = vst [vmem:[#allocation132_spill] sm:$0xff] %v8459_v20  ;;  %12481 = vst [vmem:[#allocation133_spill] sm:$0xff] %v8462_v41  ;;  %v8480_v25 = vmul.f32 %v7942_v57, %v2190_v3  ;;  %v2249_v21 = vsel %vm648_vm1, %v2238_v1, %v2244_v52  ;;  %v2252_v30 = vsel %vm648_vm1, %v2244_v52, %v2238_v1 }
 0x20c   : > { %12482 = vst [vmem:[#allocation134_spill] sm:$0xff] %v8465_v11  ;;  %12483 = vst [vmem:[#allocation135_spill] sm:$0xff] %v8468_v38  ;;  %v2431_v46 = vmul.f32 %v7999_v28, %v2252_v30  ;;  %v2636_v29 = vmul.f32 %v8013_v35, %v2252_v30  ;;  %v2817_v53 = vmul.f32 %v8019_v6, %v2252_v30 }
 0x20d   : > { %12484 = vst [vmem:[#allocation136_spill] sm:$0xff] %v8471_v63  ;;  %12485 = vst [vmem:[#allocation137_spill] sm:$0xff] %v8474_v31  ;;  %v2432_v63 = vmul.f32 %v8010_v16, %v2249_v21  ;;  %v2637_v31 = vmul.f32 %v8016_v36, %v2249_v21  ;;  %v2818_v47 = vmul.f32 %v8022_v0, %v2249_v21  ;;  %v2248_v38 = vpop.permute.xlu1 %2247 }
 0x20e   : > { %12486 = vst [vmem:[#allocation138_spill] sm:$0xff] %v8477_v33  ;;  %12487 = vst [vmem:[#allocation139_spill] sm:$0xff] %v8480_v25  ;;  %v3004_v57 = vmul.f32 %v8025_v27, %v2252_v30  ;;  %v3005_v3 = vmul.f32 %v8028_v18, %v2249_v21  ;;  %v8494_v25 = vadd.f32 %v2431_v46, %v2381_v19 }
 0x20f   : > { %v8496_v33 = vadd.f32 %v2432_v63, %v2382_v37  ;;  %v8498_v1 = vadd.f32 %v2636_v29, %v2598_v34  ;;  %v8500_v52 = vadd.f32 %v2637_v31, %v2599_v10  ;;  %v8502_v11 = vadd.f32 %v2817_v53, %v2779_v50  ;;  %v2242_v63 = vpop.permute.xlu0 %2241 }
 0x210   : > { %v8504_v41 = vadd.f32 %v2818_v47, %v2780_v39  ;;  %v8506_v20 = vadd.f32 %v3004_v57, %v2966_v61  ;;  %v8508_v48 = vadd.f32 %v3005_v3, %v2967_v13  ;;  %v3179_v5 = vmul.f32 %v8031_v43, %v2252_v30 }
 0x211   : > { %v3180_v19 = vmul.f32 %v8034_v40, %v2249_v21  ;;  %v3366_v37 = vmul.f32 %v8037_v54, %v2252_v30  ;;  %v3367_v34 = vmul.f32 %v8040_v60, %v2249_v21  ;;  %v3553_v10 = vmul.f32 %v8043_v22, %v2252_v30 }
 0x212   : > { %v3554_v50 = vmul.f32 %v8046_v7, %v2249_v21  ;;  %v2251_v39 = vsel %vm648_vm1, %v2242_v63, %v2248_v38  ;;  %v2254_v61 = vsel %vm648_vm1, %v2248_v38, %v2242_v63  ;;  %v8521_v13 = vadd.f32 %v3179_v5, %v8369_v42 }
 0x213   : > { %v8524_v31 = vadd.f32 %v3180_v19, %v8372_v59  ;;  %v8527_v46 = vadd.f32 %v3366_v37, %v8375_v4  ;;  %v8530_v29 = vadd.f32 %v3367_v34, %v8378_v15  ;;  %v8533_v21 = vadd.f32 %v3553_v10, %v8381_v44  ;;  %v8572_v10 = vpop.permute.xlu1 %2209 }
 0x214   : > { %v8536_v30 = vadd.f32 %v3554_v50, %v8384_v49  ;;  %v2435_v38 = vmul.f32 %v7999_v28, %v2254_v61  ;;  %v2436_v42 = vmul.f32 %v8010_v16, %v2251_v39  ;;  %v2640_v5 = vmul.f32 %v8013_v35, %v2254_v61 }
 0x215   : > { %v2641_v59 = vmul.f32 %v8016_v36, %v2251_v39  ;;  %v2821_v4 = vmul.f32 %v8019_v6, %v2254_v61  ;;  %v2822_v53 = vmul.f32 %v8022_v0, %v2251_v39  ;;  %v3008_v49 = vmul.f32 %v8025_v27, %v2254_v61 }
 0x216   : > { %v8545_v15 = vadd.f32 %v2435_v38, %v8391_v9  ;;  %v8548_v44 = vadd.f32 %v2436_v42, %v8394_v62  ;;  %v3009_v47 = vmul.f32 %v8028_v18, %v2251_v39  ;;  %v8553_v57 = vadd.f32 %v2640_v5, %v8397_v24  ;;  %v2246_v9 = vpop.permute.xlu0 %2245  ;;  %v12489_v5 = vld [vmem:[#allocation81_spill] sm:$0xff] }
 0x217   : > { %v8556_v3 = vadd.f32 %v2641_v59, %v8400_v8  ;;  %v8559_v19 = vadd.f32 %v2821_v4, %v8403_v56  ;;  %v8562_v37 = vadd.f32 %v2822_v53, %v8406_v32  ;;  %v8565_v62 = vadd.f32 %v3008_v49, %v8409_v17  ;;  %v12495_v53 = vld [vmem:[#allocation126_spill] sm:$0xff] }
 0x218   : > { %v8568_v34 = vadd.f32 %v3009_v47, %v8412_v55  ;;  %v3183_v63 = vmul.f32 %v8031_v43, %v2254_v61  ;;  %v3184_v24 = vmul.f32 %v8034_v40, %v2251_v39  ;;  %v3370_v8 = vmul.f32 %v8037_v54, %v2254_v61 }
 0x219   : > { %v3371_v56 = vmul.f32 %v8040_v60, %v2251_v39  ;;  %v3557_v32 = vmul.f32 %v8043_v22, %v2254_v61  ;;  %v3558_v50 = vmul.f32 %v8046_v7, %v2251_v39  ;;  %v2250_v38 = vsel %vm648_vm1, %v8426_v23, %v2246_v9  ;;  %v12491_v61 = vld [vmem:[#allocation124_spill] sm:$0xff]  ;;  %v12493_v39 = vld [vmem:[#allocation125_spill] sm:$0xff] }
 0x21a   : > { %v8579_v17 = vadd.f32 %v3183_v63, %v8415_v12  ;;  %v8582_v55 = vadd.f32 %v3184_v24, %v8418_v26  ;;  %v2253_v42 = vsel %vm648_vm1, %v2246_v9, %v8426_v23  ;;  %v8591_v59 = vadd.f32 %v3370_v8, %v12489_v5 }
 0x21b   : > { %v8594_v4 = vadd.f32 %v3371_v56, %v12491_v61  ;;  %v8597_v12 = vadd.f32 %v3557_v32, %v12493_v39  ;;  %v8600_v26 = vadd.f32 %v3558_v50, %v12495_v53  ;;  %v2433_v49 = vmul.f32 %v7999_v28, %v2253_v42  ;;  %v2208_v53 = vpop.permute.xlu0 %2207 }
 0x21c   : > { %12488 = vst [vmem:[#allocation140_spill] sm:$0xff] %v8582_v55  ;;  %12490 = vst [vmem:[#allocation81_spill] sm:$0xff] %v8591_v59  ;;  %v2434_v47 = vmul.f32 %v8010_v16, %v2250_v38  ;;  %v2638_v63 = vmul.f32 %v8013_v35, %v2253_v42  ;;  %v2639_v23 = vmul.f32 %v8016_v36, %v2250_v38  ;;  %v2214_v36 = vpop.permute.xlu1 %2213  ;;  %v12572_v59 = vld [vmem:[#allocation36_spill] sm:$0xff] }
 0x21d   : > { %12492 = vst [vmem:[#allocation124_spill] sm:$0xff] %v8594_v4  ;;  %12494 = vst [vmem:[#allocation125_spill] sm:$0xff] %v8597_v12  ;;  %v2819_v9 = vmul.f32 %v8019_v6, %v2253_v42  ;;  %v2820_v24 = vmul.f32 %v8022_v0, %v2250_v38  ;;  %v3006_v8 = vmul.f32 %v8025_v27, %v2253_v42  ;;  %v12501_v6 = vld [vmem:[#allocation127_spill] sm:$0xff]  ;;  %v12570_v12 = vld [vmem:[#allocation30_spill] sm:$0xff] }
 0x21e   : > { %12496 = vst [vmem:[#allocation126_spill] sm:$0xff] %v8600_v26  ;;  %v3007_v56 = vmul.f32 %v8028_v18, %v2250_v38  ;;  %v8611_v32 = vadd.f32 %v2433_v49, %v8441_v14  ;;  %v8614_v50 = vadd.f32 %v2434_v47, %v8444_v58  ;;  %v8617_v16 = vadd.f32 %v2638_v63, %v8447_v51  ;;  %v12503_v0 = vld [vmem:[#allocation131_spill] sm:$0xff]  ;;  %v12505_v18 = vld [vmem:[#allocation132_spill] sm:$0xff]  ;;  %v12507_v14 = vld [vmem:[#allocation133_spill] sm:$0xff] }
 0x21f   : > { %v8620_v35 = vadd.f32 %v2639_v23, %v8450_v2  ;;  %v8623_v28 = vadd.f32 %v2819_v9, %v12501_v6  ;;  %v8626_v27 = vadd.f32 %v2820_v24, %v12503_v0  ;;  %v8629_v5 = vadd.f32 %v3006_v8, %v12505_v18  ;;  %v12509_v9 = vld [vmem:[#allocation134_spill] sm:$0xff]  ;;  %v12522_v0 = vld [vmem:[#allocation108_spill] sm:$0xff] }
 0x220   : > { %12497 = vst [vmem:[#allocation141_spill] sm:$0xff] %v8611_v32  ;;  %12498 = vst [vmem:[#allocation142_spill] sm:$0xff] %v8614_v50  ;;  %v8632_v61 = vadd.f32 %v3007_v56, %v12507_v14  ;;  %v3181_v58 = vmul.f32 %v8031_v43, %v2253_v42  ;;  %v3182_v51 = vmul.f32 %v8034_v40, %v2250_v38  ;;  %v12511_v43 = vld [vmem:[#allocation135_spill] sm:$0xff]  ;;  %v12521_v6 = vld [vmem:[#allocation50_spill] sm:$0xff] }
 0x221   : > { %12499 = vst [vmem:[#allocation143_spill] sm:$0xff] %v8617_v16  ;;  %12500 = vst [vmem:[#allocation144_spill] sm:$0xff] %v8620_v35  ;;  %v3368_v2 = vmul.f32 %v8037_v54, %v2253_v42  ;;  %v3369_v39 = vmul.f32 %v8040_v60, %v2250_v38  ;;  %v3555_v49 = vmul.f32 %v8043_v22, %v2253_v42  ;;  %v12513_v54 = vld [vmem:[#allocation136_spill] sm:$0xff]  ;;  %v12515_v60 = vld [vmem:[#allocation137_spill] sm:$0xff] }
 0x222   : > { %12502 = vst [vmem:[#allocation127_spill] sm:$0xff] %v8623_v28  ;;  %12504 = vst [vmem:[#allocation131_spill] sm:$0xff] %v8626_v27  ;;  %v3556_v47 = vmul.f32 %v8046_v7, %v2250_v38  ;;  %v2219_v63 = vsel %vm616_vm2, %v2208_v53, %v2214_v36  ;;  %v2222_v23 = vsel %vm616_vm2, %v2214_v36, %v2208_v53  ;;  %v12517_v22 = vld [vmem:[#allocation138_spill] sm:$0xff]  ;;  %v12519_v38 = vld [vmem:[#allocation139_spill] sm:$0xff] }
 0x223   : > { %12506 = vst [vmem:[#allocation132_spill] sm:$0xff] %v8629_v5  ;;  %12508 = vst [vmem:[#allocation133_spill] sm:$0xff] %v8632_v61  ;;  %v8645_v24 = vadd.f32 %v3181_v58, %v12509_v9  ;;  %v8648_v40 = vadd.f32 %v3182_v51, %v12511_v43  ;;  %v8651_v8 = vadd.f32 %v3368_v2, %v12513_v54  ;;  %v12523_v14 = vld [vmem:[#allocation112_spill] sm:$0xff]  ;;  %v12524_v51 = vld [vmem:[#allocation113_spill] sm:$0xff] }
 0x224   : > { %v8654_v56 = vadd.f32 %v3369_v39, %v12515_v60  ;;  %v8657_v7 = vadd.f32 %v3555_v49, %v12517_v22  ;;  %v8660_v42 = vadd.f32 %v3556_v47, %v12519_v38  ;;  %v2406_v36 = vmul.f32 %v12521_v6, %v2222_v23  ;;  %v12525_v9 = vld [vmem:[#allocation51_spill] sm:$0xff]  ;;  %v12526_v43 = vld [vmem:[#allocation52_spill] sm:$0xff]  ;;  %v12527_v39 = vld [vmem:[#allocation22_spill] sm:$0xff] }
 0x225   : > { %12510 = vst [vmem:[#allocation134_spill] sm:$0xff] %v8645_v24  ;;  %12512 = vst [vmem:[#allocation135_spill] sm:$0xff] %v8648_v40  ;;  %v2407_v18 = vmul.f32 %v12522_v0, %v2219_v63  ;;  %v2617_v58 = vmul.f32 %v12523_v14, %v2222_v23  ;;  %v2618_v53 = vmul.f32 %v12524_v51, %v2219_v63  ;;  %v12529_v49 = vld [vmem:[#allocation25_spill] sm:$0xff]  ;;  %v12537_v61 = vld [vmem:[#allocation94_spill] sm:$0xff] }
 0x226   : > { %12514 = vst [vmem:[#allocation136_spill] sm:$0xff] %v8651_v8  ;;  %12516 = vst [vmem:[#allocation137_spill] sm:$0xff] %v8654_v56  ;;  %v2798_v2 = vmul.f32 %v12525_v9, %v2222_v23  ;;  %v2799_v54 = vmul.f32 %v12526_v43, %v2219_v63  ;;  %v8669_v60 = vadd.f32 %v12527_v39, %v2406_v36  ;;  %v12531_v47 = vld [vmem:[#allocation53_spill] sm:$0xff]  ;;  %v12533_v56 = vld [vmem:[#allocation20_spill] sm:$0xff]  ;;  %v2218_v36 = vpop.permute.xlu1 %2217 }
 0x227   : > { %12518 = vst [vmem:[#allocation138_spill] sm:$0xff] %v8657_v7  ;;  %12520 = vst [vmem:[#allocation139_spill] sm:$0xff] %v8660_v42  ;;  %v8672_v22 = vadd.f32 %v12529_v49, %v2407_v18  ;;  %v2985_v38 = vmul.f32 %v12531_v47, %v2222_v23  ;;  %v12532_v42 = vld [vmem:[#allocation82_spill] sm:$0xff]  ;;  %v8677_v8 = vadd.f32 %v12533_v56, %v2617_v58  ;;  %v12535_v40 = vld [vmem:[#allocation21_spill] sm:$0xff] }
 0x228   : > { %12528 = vst [vmem:[#allocation50_spill] sm:$0xff] %v8669_v60  ;;  %v2986_v7 = vmul.f32 %v12532_v42, %v2219_v63  ;;  %v8680_v24 = vadd.f32 %v12535_v40, %v2618_v53  ;;  %v8683_v5 = vadd.f32 %v12537_v61, %v2798_v2  ;;  %v12539_v27 = vld [vmem:[#allocation95_spill] sm:$0xff]  ;;  %v12541_v39 = vld [vmem:[#allocation96_spill] sm:$0xff]  ;;  %v12543_v49 = vld [vmem:[#allocation97_spill] sm:$0xff] }
 0x229   : > { %12530 = vst [vmem:[#allocation108_spill] sm:$0xff] %v8672_v22  ;;  %12534 = vst [vmem:[#allocation112_spill] sm:$0xff] %v8677_v8  ;;  %v8686_v28 = vadd.f32 %v12539_v27, %v2799_v54  ;;  %v8689_v18 = vadd.f32 %v12541_v39, %v2985_v38  ;;  %v12545_v60 = vld [vmem:[#allocation83_spill] sm:$0xff]  ;;  %v12546_v56 = vld [vmem:[#allocation84_spill] sm:$0xff]  ;;  %v2212_v8 = vpop.permute.xlu0 %2211 }
 0x22a   : > { %12536 = vst [vmem:[#allocation113_spill] sm:$0xff] %v8680_v24  ;;  %12538 = vst [vmem:[#allocation51_spill] sm:$0xff] %v8683_v5  ;;  %v8692_v22 = vadd.f32 %v12543_v49, %v2986_v7  ;;  %v3160_v35 = vmul.f32 %v12545_v60, %v2222_v23  ;;  %v3161_v58 = vmul.f32 %v12546_v56, %v2219_v63  ;;  %v12547_v40 = vld [vmem:[#allocation85_spill] sm:$0xff]  ;;  %v12548_v24 = vld [vmem:[#allocation114_spill] sm:$0xff] }
 0x22b   : > { %12540 = vst [vmem:[#allocation52_spill] sm:$0xff] %v8686_v28  ;;  %12542 = vst [vmem:[#allocation22_spill] sm:$0xff] %v8689_v18  ;;  %v3347_v53 = vmul.f32 %v12547_v40, %v2222_v23  ;;  %v3348_v61 = vmul.f32 %v12548_v24, %v2219_v63  ;;  %v12549_v2 = vld [vmem:[#allocation115_spill] sm:$0xff]  ;;  %v12550_v27 = vld [vmem:[#allocation54_spill] sm:$0xff]  ;;  %v2221_v7 = vsel %vm616_vm2, %v2212_v8, %v2218_v36 }
 0x22c   : > { %12544 = vst [vmem:[#allocation25_spill] sm:$0xff] %v8692_v22  ;;  %v3534_v5 = vmul.f32 %v12549_v2, %v2222_v23  ;;  %v3535_v54 = vmul.f32 %v12550_v27, %v2219_v63  ;;  %v12551_v28 = vld [vmem:[#allocation98_spill] sm:$0xff]  ;;  %v12553_v38 = vld [vmem:[#allocation99_spill] sm:$0xff]  ;;  %v2224_v49 = vsel %vm616_vm2, %v2218_v36, %v2212_v8  ;;  %v12557_v50 = vld [vmem:[#allocation29_spill] sm:$0xff]  ;;  %v2622_v8 = vmul.f32 %v12524_v51, %v2221_v7 }
 0x22d   : > { %v8701_v16 = vadd.f32 %v12551_v28, %v3160_v35  ;;  %v8704_v39 = vadd.f32 %v12553_v38, %v3161_v58  ;;  %v12555_v22 = vld [vmem:[#allocation26_spill] sm:$0xff]  ;;  %v8714_v32 = vadd.f32 %v12557_v50, %v3348_v61  ;;  %v12559_v23 = vld [vmem:[#allocation24_spill] sm:$0xff]  ;;  %v12561_v35 = vld [vmem:[#allocation27_spill] sm:$0xff]  ;;  %v2410_v58 = vmul.f32 %v12521_v6, %v2224_v49 }
 0x22e   : > { %v8711_v18 = vadd.f32 %v12555_v22, %v3347_v53  ;;  %v8717_v63 = vadd.f32 %v12559_v23, %v3534_v5  ;;  %v8720_v28 = vadd.f32 %v12561_v35, %v3535_v54  ;;  %v2411_v38 = vmul.f32 %v12522_v0, %v2221_v7  ;;  %v12563_v53 = vld [vmem:[#allocation35_spill] sm:$0xff] }
 0x22f   : > { %12552 = vst [vmem:[#allocation53_spill] sm:$0xff] %v8701_v16  ;;  %12554 = vst [vmem:[#allocation82_spill] sm:$0xff] %v8704_v39  ;;  %v2621_v39 = vmul.f32 %v12523_v14, %v2224_v49  ;;  %v2802_v22 = vmul.f32 %v12525_v9, %v2224_v49  ;;  %v2803_v36 = vmul.f32 %v12526_v43, %v2221_v7  ;;  %v12564_v54 = vld [vmem:[#allocation23_spill] sm:$0xff]  ;;  %v12568_v16 = vld [vmem:[#allocation41_spill] sm:$0xff] }
 0x230   : > { %12556 = vst [vmem:[#allocation20_spill] sm:$0xff] %v8711_v18  ;;  %12558 = vst [vmem:[#allocation21_spill] sm:$0xff] %v8714_v32  ;;  %v2989_v50 = vmul.f32 %v12531_v47, %v2224_v49  ;;  %v2990_v5 = vmul.f32 %v12532_v42, %v2221_v7  ;;  %v8731_v61 = vadd.f32 %v12563_v53, %v2410_v58  ;;  %v12565_v35 = vld [vmem:[#allocation39_spill] sm:$0xff]  ;;  %v2216_v18 = vpop.permute.xlu0 %2215  ;;  %v12574_v58 = vld [vmem:[#allocation33_spill] sm:$0xff] }
 0x231   : > { %12560 = vst [vmem:[#allocation94_spill] sm:$0xff] %v8717_v63  ;;  %12562 = vst [vmem:[#allocation95_spill] sm:$0xff] %v8720_v28  ;;  %v8734_v23 = vadd.f32 %v12564_v54, %v2411_v38  ;;  %v8737_v28 = vadd.f32 %v12565_v35, %v2621_v39  ;;  %v12566_v63 = vld [vmem:[#allocation28_spill] sm:$0xff]  ;;  %v8743_v26 = vadd.f32 %v12568_v16, %v2802_v22  ;;  %v8758_v54 = vpop.permute.xlu1 %2281 }
 0x232   : > { %v8740_v32 = vadd.f32 %v12566_v63, %v2622_v8  ;;  %v8746_v4 = vadd.f32 %v12570_v12, %v2803_v36  ;;  %v8749_v55 = vadd.f32 %v12572_v59, %v2989_v50  ;;  %v8752_v53 = vadd.f32 %v12574_v58, %v2990_v5  ;;  %v12576_v36 = vld [vmem:[#allocation37_spill] sm:$0xff]  ;;  %v12577_v5 = vld [vmem:[#allocation31_spill] sm:$0xff]  ;;  %v12578_v58 = vld [vmem:[#allocation38_spill] sm:$0xff] }
 0x233   : > { %12569 = vst [vmem:[#allocation97_spill] sm:$0xff] %v8743_v26  ;;  %v3164_v38 = vmul.f32 %v12545_v60, %v2224_v49  ;;  %v3165_v39 = vmul.f32 %v12546_v56, %v2221_v7  ;;  %v3351_v63 = vmul.f32 %v12547_v40, %v2224_v49  ;;  %v3352_v8 = vmul.f32 %v12548_v24, %v2221_v7  ;;  %v12581_v26 = vld [vmem:[#allocation34_spill] sm:$0xff] }
 0x234   : > { %12567 = vst [vmem:[#allocation96_spill] sm:$0xff] %v8740_v32  ;;  %12571 = vst [vmem:[#allocation83_spill] sm:$0xff] %v8746_v4  ;;  %v3538_v16 = vmul.f32 %v12549_v2, %v2224_v49  ;;  %v3539_v12 = vmul.f32 %v12550_v27, %v2221_v7  ;;  %v2220_v59 = vsel %vm616_vm2, %v8572_v10, %v2216_v18  ;;  %v12579_v49 = vld [vmem:[#allocation32_spill] sm:$0xff] }
 0x235   : > { %12573 = vst [vmem:[#allocation84_spill] sm:$0xff] %v8749_v55  ;;  %12575 = vst [vmem:[#allocation85_spill] sm:$0xff] %v8752_v53  ;;  %v2223_v22 = vsel %vm616_vm2, %v2216_v18, %v8572_v10  ;;  %v8769_v50 = vadd.f32 %v12576_v36, %v3164_v38  ;;  %v8772_v35 = vadd.f32 %v12577_v5, %v3165_v39  ;;  %v12580_v7 = vld [vmem:[#allocation40_spill] sm:$0xff] }
 0x236   : > { %v8775_v53 = vadd.f32 %v12578_v58, %v3351_v63  ;;  %v8778_v55 = vadd.f32 %v12579_v49, %v3352_v8  ;;  %v8781_v4 = vadd.f32 %v12580_v7, %v3538_v16  ;;  %v8784_v32 = vadd.f32 %v12581_v26, %v3539_v12  ;;  %v12582_v8 = vld [vmem:[#allocation44_spill] sm:$0xff]  ;;  %v12584_v12 = vld [vmem:[#allocation42_spill] sm:$0xff] }
 0x237   : > { %v2408_v10 = vmul.f32 %v12521_v6, %v2223_v22  ;;  %v2409_v18 = vmul.f32 %v12522_v0, %v2220_v59  ;;  %v2619_v38 = vmul.f32 %v12523_v14, %v2223_v22  ;;  %v2620_v39 = vmul.f32 %v12524_v51, %v2220_v59  ;;  %v12583_v16 = vld [vmem:[#allocation48_spill] sm:$0xff]  ;;  %v12585_v14 = vld [vmem:[#allocation43_spill] sm:$0xff]  ;;  %v12586_v51 = vld [vmem:[#allocation45_spill] sm:$0xff] }
 0x238   : > { %v2800_v63 = vmul.f32 %v12525_v9, %v2223_v22  ;;  %v2801_v36 = vmul.f32 %v12526_v43, %v2220_v59  ;;  %v2987_v26 = vmul.f32 %v12531_v47, %v2223_v22  ;;  %v2988_v6 = vmul.f32 %v12532_v42, %v2220_v59  ;;  %v12588_v43 = vld [vmem:[#allocation100_spill] sm:$0xff] }
 0x239   : > { %v8793_v5 = vadd.f32 %v12582_v8, %v2408_v10  ;;  %v8796_v58 = vadd.f32 %v12583_v16, %v2409_v18  ;;  %v8801_v0 = vadd.f32 %v12584_v12, %v2619_v38  ;;  %v8804_v49 = vadd.f32 %v12585_v14, %v2620_v39  ;;  %v2286_v10 = vpop.permute.xlu1 %2285  ;;  %v12590_v8 = vld [vmem:[#allocation101_spill] sm:$0xff]  ;;  %v12592_v16 = vld [vmem:[#allocation102_spill] sm:$0xff]  ;;  %v2280_v14 = vpop.permute.xlu0 %2279 }
 0x23a   : > { %v8807_v9 = vadd.f32 %v12586_v51, %v2800_v63  ;;  %v8810_v7 = vadd.f32 %v12588_v43, %v2801_v36  ;;  %v8813_v18 = vadd.f32 %v12590_v8, %v2987_v26  ;;  %v8816_v47 = vadd.f32 %v12592_v16, %v2988_v6  ;;  %v12594_v51 = vld [vmem:[#allocation103_spill] sm:$0xff]  ;;  %v12596_v26 = vld [vmem:[#allocation46_spill] sm:$0xff] }
 0x23b   : > { %v3162_v42 = vmul.f32 %v12545_v60, %v2223_v22  ;;  %v3163_v38 = vmul.f32 %v12546_v56, %v2220_v59  ;;  %v3349_v39 = vmul.f32 %v12547_v40, %v2223_v22  ;;  %v3350_v12 = vmul.f32 %v12548_v24, %v2220_v59  ;;  %v12598_v40 = vld [vmem:[#allocation47_spill] sm:$0xff]  ;;  %v12600_v24 = vld [vmem:[#allocation49_spill] sm:$0xff] }
 0x23c   : > { %12587 = vst [vmem:[#allocation114_spill] sm:$0xff] %v8807_v9  ;;  %12589 = vst [vmem:[#allocation115_spill] sm:$0xff] %v8810_v7  ;;  %v3536_v63 = vmul.f32 %v12549_v2, %v2223_v22  ;;  %v3537_v36 = vmul.f32 %v12550_v27, %v2220_v59  ;;  %v2291_v60 = vsel %vm693_vm3, %v2280_v14, %v2286_v10  ;;  %v12602_v27 = vld [vmem:[#allocation109_spill] sm:$0xff]  ;;  %v12604_v22 = vld [vmem:[#allocation110_spill] sm:$0xff] }
 0x23d   : > { %12591 = vst [vmem:[#allocation54_spill] sm:$0xff] %v8813_v18  ;;  %12593 = vst [vmem:[#allocation98_spill] sm:$0xff] %v8816_v47  ;;  %v8825_v43 = vadd.f32 %v12594_v51, %v3162_v42  ;;  %v8828_v8 = vadd.f32 %v12596_v26, %v3163_v38  ;;  %v2294_v56 = vsel %vm693_vm3, %v2286_v10, %v2280_v14  ;;  %v12606_v42 = vld [vmem:[#allocation55_spill] sm:$0xff]  ;;  %v12607_v51 = vld [vmem:[#allocation56_spill] sm:$0xff] }
 0x23e   : > { %v8835_v6 = vadd.f32 %v12598_v40, %v3349_v39  ;;  %v8838_v2 = vadd.f32 %v12600_v24, %v3350_v12  ;;  %v8841_v59 = vadd.f32 %v12602_v27, %v3536_v63  ;;  %v8844_v16 = vadd.f32 %v12604_v22, %v3537_v36  ;;  %v12609_v47 = vld [vmem:[#allocation58_spill] sm:$0xff]  ;;  %v12610_v14 = vld [vmem:[#allocation59_spill] sm:$0xff]  ;;  %v12611_v40 = vld [vmem:[#allocation60_spill] sm:$0xff] }
 0x23f   : > { %12595 = vst [vmem:[#allocation99_spill] sm:$0xff] %v8825_v43  ;;  %12597 = vst [vmem:[#allocation26_spill] sm:$0xff] %v8828_v8  ;;  %v2493_v38 = vmul.f32 %v12606_v42, %v2291_v60  ;;  %v2494_v26 = vmul.f32 %v12607_v51, %v2294_v56  ;;  %v12608_v8 = vld [vmem:[#allocation57_spill] sm:$0xff]  ;;  %v2687_v10 = vmul.f32 %v12609_v47, %v2294_v56 }
 0x240   : > { %12599 = vst [vmem:[#allocation29_spill] sm:$0xff] %v8835_v6  ;;  %12601 = vst [vmem:[#allocation24_spill] sm:$0xff] %v8838_v2  ;;  %v2686_v43 = vmul.f32 %v12608_v8, %v2291_v60  ;;  %v2867_v39 = vmul.f32 %v12610_v14, %v2291_v60  ;;  %v2868_v6 = vmul.f32 %v12611_v40, %v2294_v56  ;;  %v12612_v12 = vld [vmem:[#allocation61_spill] sm:$0xff]  ;;  %v12613_v2 = vld [vmem:[#allocation116_spill] sm:$0xff] }
 0x241   : > { %12603 = vst [vmem:[#allocation27_spill] sm:$0xff] %v8841_v59  ;;  %12605 = vst [vmem:[#allocation35_spill] sm:$0xff] %v8844_v16  ;;  %v3054_v24 = vmul.f32 %v12612_v12, %v2291_v60  ;;  %v3055_v63 = vmul.f32 %v12613_v2, %v2294_v56  ;;  %v8855_v27 = vadd.f32 %v2493_v38, %v8494_v25  ;;  %v2290_v59 = vpop.permute.xlu1 %2289 }
 0x242   : > { %v8858_v36 = vadd.f32 %v2494_v26, %v8496_v33  ;;  %v8861_v22 = vadd.f32 %v2686_v43, %v8498_v1  ;;  %v8864_v16 = vadd.f32 %v2687_v10, %v8500_v52  ;;  %v8867_v18 = vadd.f32 %v2867_v39, %v8502_v11  ;;  %v12618_v33 = vld [vmem:[#allocation62_spill] sm:$0xff]  ;;  %v12619_v1 = vld [vmem:[#allocation63_spill] sm:$0xff]  ;;  %v12620_v26 = vld [vmem:[#allocation64_spill] sm:$0xff] }
 0x243   : > { %v8870_v7 = vadd.f32 %v2868_v6, %v8504_v41  ;;  %v8873_v9 = vadd.f32 %v3054_v24, %v8506_v20  ;;  %v8876_v25 = vadd.f32 %v3055_v63, %v8508_v48  ;;  %v3229_v38 = vmul.f32 %v12618_v33, %v2291_v60  ;;  %v12621_v10 = vld [vmem:[#allocation65_spill] sm:$0xff]  ;;  %v12622_v11 = vld [vmem:[#allocation66_spill] sm:$0xff] }
 0x244   : > { %12614 = vst [vmem:[#allocation23_spill] sm:$0xff] %v8861_v22  ;;  %12615 = vst [vmem:[#allocation39_spill] sm:$0xff] %v8864_v16  ;;  %v3230_v43 = vmul.f32 %v12619_v1, %v2294_v56  ;;  %v3416_v52 = vmul.f32 %v12620_v26, %v2291_v60  ;;  %v3417_v16 = vmul.f32 %v12621_v10, %v2294_v56  ;;  %v2284_v22 = vpop.permute.xlu0 %2283 }
 0x245   : > { %12616 = vst [vmem:[#allocation28_spill] sm:$0xff] %v8867_v18  ;;  %12617 = vst [vmem:[#allocation41_spill] sm:$0xff] %v8876_v25  ;;  %v3603_v39 = vmul.f32 %v12622_v11, %v2291_v60  ;;  %v12623_v18 = vld [vmem:[#allocation67_spill] sm:$0xff]  ;;  %v2293_v20 = vsel %vm693_vm3, %v2284_v22, %v2290_v59  ;;  %v2296_v48 = vsel %vm693_vm3, %v2290_v59, %v2284_v22 }
 0x246   : > { %v3604_v41 = vmul.f32 %v12623_v18, %v2294_v56  ;;  %v8889_v6 = vadd.f32 %v3229_v38, %v8521_v13  ;;  %v8892_v24 = vadd.f32 %v3230_v43, %v8524_v31  ;;  %v8895_v63 = vadd.f32 %v3416_v52, %v8527_v46 }
 0x247   : > { %v8898_v25 = vadd.f32 %v3417_v16, %v8530_v29  ;;  %v8901_v60 = vadd.f32 %v3603_v39, %v8533_v21  ;;  %v2497_v59 = vmul.f32 %v12606_v42, %v2293_v20  ;;  %v2498_v13 = vmul.f32 %v12607_v51, %v2296_v48 }
 0x248   : > { %12624 = vst [vmem:[#allocation30_spill] sm:$0xff] %v8892_v24  ;;  %12625 = vst [vmem:[#allocation36_spill] sm:$0xff] %v8895_v63  ;;  %v8904_v56 = vadd.f32 %v3604_v41, %v8536_v30  ;;  %v2690_v22 = vmul.f32 %v12608_v8, %v2293_v20  ;;  %v2691_v31 = vmul.f32 %v12609_v47, %v2296_v48  ;;  %v12713_v63 = vld [vmem:[#allocation84_spill] sm:$0xff] }
 0x249   : > { %12626 = vst [vmem:[#allocation33_spill] sm:$0xff] %v8898_v25  ;;  %12627 = vst [vmem:[#allocation37_spill] sm:$0xff] %v8901_v60  ;;  %v2871_v46 = vmul.f32 %v12610_v14, %v2293_v20  ;;  %v2872_v38 = vmul.f32 %v12611_v40, %v2296_v48  ;;  %v8913_v29 = vadd.f32 %v2497_v59, %v8545_v15  ;;  %v2288_v15 = vpop.permute.xlu0 %2287  ;;  %v12704_v60 = vld [vmem:[#allocation21_spill] sm:$0xff] }
 0x24a   : > { %12628 = vst [vmem:[#allocation31_spill] sm:$0xff] %v8904_v56  ;;  %v8916_v21 = vadd.f32 %v2498_v13, %v8548_v44  ;;  %v3058_v30 = vmul.f32 %v12612_v12, %v2293_v20  ;;  %v3059_v16 = vmul.f32 %v12613_v2, %v2296_v48  ;;  %v8921_v43 = vadd.f32 %v2690_v22, %v8553_v57  ;;  %v8940_v22 = vpop.permute.xlu1 %2311 }
 0x24b   : > { %12629 = vst [vmem:[#allocation38_spill] sm:$0xff] %v8913_v29  ;;  %v8924_v52 = vadd.f32 %v2691_v31, %v8556_v3  ;;  %v8927_v39 = vadd.f32 %v2871_v46, %v8559_v19  ;;  %v8930_v41 = vadd.f32 %v2872_v38, %v8562_v37  ;;  %v3233_v13 = vmul.f32 %v12618_v33, %v2293_v20  ;;  %v12638_v46 = vld [vmem:[#allocation140_spill] sm:$0xff] }
 0x24c   : > { %12630 = vst [vmem:[#allocation32_spill] sm:$0xff] %v8916_v21  ;;  %12631 = vst [vmem:[#allocation40_spill] sm:$0xff] %v8921_v43  ;;  %v8933_v44 = vadd.f32 %v3058_v30, %v8565_v62  ;;  %v8936_v59 = vadd.f32 %v3059_v16, %v8568_v34  ;;  %v3234_v57 = vmul.f32 %v12619_v1, %v2296_v48  ;;  %v12640_v16 = vld [vmem:[#allocation81_spill] sm:$0xff]  ;;  %v12702_v29 = vld [vmem:[#allocation20_spill] sm:$0xff] }
 0x24d   : > { %12632 = vst [vmem:[#allocation34_spill] sm:$0xff] %v8924_v52  ;;  %12633 = vst [vmem:[#allocation44_spill] sm:$0xff] %v8927_v39  ;;  %v3420_v3 = vmul.f32 %v12620_v26, %v2293_v20  ;;  %v3421_v19 = vmul.f32 %v12621_v10, %v2296_v48  ;;  %v3607_v37 = vmul.f32 %v12622_v11, %v2293_v20  ;;  %v12642_v20 = vld [vmem:[#allocation124_spill] sm:$0xff]  ;;  %v12695_v39 = vld [vmem:[#allocation107_spill] sm:$0xff] }
 0x24e   : > { %12634 = vst [vmem:[#allocation48_spill] sm:$0xff] %v8930_v41  ;;  %12635 = vst [vmem:[#allocation42_spill] sm:$0xff] %v8933_v44  ;;  %v3608_v31 = vmul.f32 %v12623_v18, %v2296_v48  ;;  %v8947_v62 = vadd.f32 %v3233_v13, %v8579_v17  ;;  %v8950_v34 = vadd.f32 %v3234_v57, %v12638_v46  ;;  %v12644_v48 = vld [vmem:[#allocation125_spill] sm:$0xff]  ;;  %v12646_v13 = vld [vmem:[#allocation126_spill] sm:$0xff] }
 0x24f   : > { %12636 = vst [vmem:[#allocation43_spill] sm:$0xff] %v8936_v59  ;;  %v2292_v38 = vsel %vm693_vm3, %v8758_v54, %v2288_v15  ;;  %v2295_v30 = vsel %vm693_vm3, %v2288_v15, %v8758_v54  ;;  %v8959_v59 = vadd.f32 %v3420_v3, %v12640_v16  ;;  %v8962_v44 = vadd.f32 %v3421_v19, %v12642_v20  ;;  %v12648_v16 = vld [vmem:[#allocation141_spill] sm:$0xff] }
 0x250   : > { %12637 = vst [vmem:[#allocation45_spill] sm:$0xff] %v8947_v62  ;;  %12639 = vst [vmem:[#allocation100_spill] sm:$0xff] %v8950_v34  ;;  %v8965_v17 = vadd.f32 %v3607_v37, %v12644_v48  ;;  %v8968_v57 = vadd.f32 %v3608_v31, %v12646_v13  ;;  %v2495_v46 = vmul.f32 %v12606_v42, %v2292_v38  ;;  %v12650_v31 = vld [vmem:[#allocation142_spill] sm:$0xff]  ;;  %v12652_v42 = vld [vmem:[#allocation143_spill] sm:$0xff] }
 0x251   : > { %12641 = vst [vmem:[#allocation101_spill] sm:$0xff] %v8959_v59  ;;  %12643 = vst [vmem:[#allocation102_spill] sm:$0xff] %v8962_v44  ;;  %v2496_v34 = vmul.f32 %v12607_v51, %v2295_v30  ;;  %v2688_v62 = vmul.f32 %v12608_v8, %v2292_v38  ;;  %v2689_v54 = vmul.f32 %v12609_v47, %v2295_v30  ;;  %v12654_v8 = vld [vmem:[#allocation144_spill] sm:$0xff]  ;;  %v2316_v47 = vpop.permute.xlu1 %2315  ;;  %v12698_v43 = vld [vmem:[#allocation53_spill] sm:$0xff] }
 0x252   : > { %12645 = vst [vmem:[#allocation103_spill] sm:$0xff] %v8965_v17  ;;  %12647 = vst [vmem:[#allocation46_spill] sm:$0xff] %v8968_v57  ;;  %v2869_v15 = vmul.f32 %v12610_v14, %v2292_v38  ;;  %v2870_v3 = vmul.f32 %v12611_v40, %v2295_v30  ;;  %v3056_v19 = vmul.f32 %v12612_v12, %v2292_v38  ;;  %v12656_v14 = vld [vmem:[#allocation127_spill] sm:$0xff]  ;;  %v12692_v44 = vld [vmem:[#allocation72_spill] sm:$0xff] }
 0x253   : > { %v3057_v37 = vmul.f32 %v12613_v2, %v2295_v30  ;;  %v8979_v20 = vadd.f32 %v2495_v46, %v12648_v16  ;;  %v8982_v48 = vadd.f32 %v2496_v34, %v12650_v31  ;;  %v8985_v51 = vadd.f32 %v2688_v62, %v12652_v42  ;;  %v12658_v40 = vld [vmem:[#allocation131_spill] sm:$0xff]  ;;  %v12660_v2 = vld [vmem:[#allocation132_spill] sm:$0xff]  ;;  %v12662_v46 = vld [vmem:[#allocation133_spill] sm:$0xff]  ;;  %v2310_v42 = vpop.permute.xlu0 %2309 }
 0x254   : > { %v8988_v13 = vadd.f32 %v2689_v54, %v12654_v8  ;;  %v8991_v57 = vadd.f32 %v2869_v15, %v12656_v14  ;;  %v8994_v12 = vadd.f32 %v2870_v3, %v12658_v40  ;;  %v8997_v17 = vadd.f32 %v3056_v19, %v12660_v2  ;;  %v12664_v8 = vld [vmem:[#allocation134_spill] sm:$0xff] }
 0x255   : > { %12649 = vst [vmem:[#allocation47_spill] sm:$0xff] %v8979_v20  ;;  %12651 = vst [vmem:[#allocation49_spill] sm:$0xff] %v8982_v48  ;;  %v9000_v16 = vadd.f32 %v3057_v37, %v12662_v46  ;;  %v3231_v34 = vmul.f32 %v12618_v33, %v2292_v38  ;;  %v3232_v62 = vmul.f32 %v12619_v1, %v2295_v30  ;;  %v12666_v33 = vld [vmem:[#allocation135_spill] sm:$0xff]  ;;  %v12676_v46 = vld [vmem:[#allocation68_spill] sm:$0xff] }
 0x256   : > { %12653 = vst [vmem:[#allocation109_spill] sm:$0xff] %v8985_v51  ;;  %12655 = vst [vmem:[#allocation110_spill] sm:$0xff] %v8988_v13  ;;  %v3418_v54 = vmul.f32 %v12620_v26, %v2292_v38  ;;  %v3419_v31 = vmul.f32 %v12621_v10, %v2295_v30  ;;  %v3605_v15 = vmul.f32 %v12622_v11, %v2292_v38  ;;  %v12668_v26 = vld [vmem:[#allocation136_spill] sm:$0xff]  ;;  %v12670_v10 = vld [vmem:[#allocation137_spill] sm:$0xff] }
 0x257   : > { %12657 = vst [vmem:[#allocation55_spill] sm:$0xff] %v8991_v57  ;;  %12659 = vst [vmem:[#allocation56_spill] sm:$0xff] %v8994_v12  ;;  %v3606_v3 = vmul.f32 %v12623_v18, %v2295_v30  ;;  %v2321_v19 = vsel %vm725_vm4, %v2310_v42, %v2316_v47  ;;  %v2324_v37 = vsel %vm725_vm4, %v2316_v47, %v2310_v42  ;;  %v12672_v11 = vld [vmem:[#allocation138_spill] sm:$0xff]  ;;  %v12674_v38 = vld [vmem:[#allocation139_spill] sm:$0xff]  ;;  %v2314_v41 = vpop.permute.xlu0 %2313 }
 0x258   : > { %12661 = vst [vmem:[#allocation57_spill] sm:$0xff] %v8997_v17  ;;  %12663 = vst [vmem:[#allocation58_spill] sm:$0xff] %v9000_v16  ;;  %v9013_v14 = vadd.f32 %v3231_v34, %v12664_v8  ;;  %v9016_v1 = vadd.f32 %v3232_v62, %v12666_v33  ;;  %v9019_v40 = vadd.f32 %v3418_v54, %v12668_v26  ;;  %v12677_v42 = vld [vmem:[#allocation69_spill] sm:$0xff]  ;;  %v12678_v8 = vld [vmem:[#allocation70_spill] sm:$0xff] }
 0x259   : > { %v9022_v2 = vadd.f32 %v3419_v31, %v12670_v10  ;;  %v9025_v18 = vadd.f32 %v3605_v15, %v12672_v11  ;;  %v9028_v30 = vadd.f32 %v3606_v3, %v12674_v38  ;;  %v2524_v47 = vmul.f32 %v12676_v46, %v2321_v19  ;;  %v12679_v62 = vld [vmem:[#allocation71_spill] sm:$0xff]  ;;  %v12681_v26 = vld [vmem:[#allocation105_spill] sm:$0xff]  ;;  %v12682_v31 = vld [vmem:[#allocation50_spill] sm:$0xff] }
 0x25a   : > { %12665 = vst [vmem:[#allocation59_spill] sm:$0xff] %v9013_v14  ;;  %12667 = vst [vmem:[#allocation60_spill] sm:$0xff] %v9016_v1  ;;  %v2525_v34 = vmul.f32 %v12677_v42, %v2324_v37  ;;  %v2711_v14 = vmul.f32 %v12678_v8, %v2321_v19  ;;  %v2712_v33 = vmul.f32 %v12679_v62, %v2324_v37  ;;  %v12680_v1 = vld [vmem:[#allocation104_spill] sm:$0xff]  ;;  %v12684_v3 = vld [vmem:[#allocation117_spill] sm:$0xff] }
 0x25b   : > { %12669 = vst [vmem:[#allocation61_spill] sm:$0xff] %v9019_v40  ;;  %12671 = vst [vmem:[#allocation116_spill] sm:$0xff] %v9022_v2  ;;  %v2892_v54 = vmul.f32 %v12680_v1, %v2321_v19  ;;  %v2893_v40 = vmul.f32 %v12681_v26, %v2324_v37  ;;  %v9037_v10 = vadd.f32 %v2524_v47, %v12682_v31  ;;  %v12683_v15 = vld [vmem:[#allocation108_spill] sm:$0xff]  ;;  %v12687_v17 = vld [vmem:[#allocation113_spill] sm:$0xff]  ;;  %v2320_v47 = vpop.permute.xlu1 %2319 }
 0x25c   : > { %12673 = vst [vmem:[#allocation62_spill] sm:$0xff] %v9025_v18  ;;  %12675 = vst [vmem:[#allocation63_spill] sm:$0xff] %v9028_v30  ;;  %v9040_v11 = vadd.f32 %v2525_v34, %v12683_v15  ;;  %v3079_v38 = vmul.f32 %v12684_v3, %v2321_v19  ;;  %v12685_v30 = vld [vmem:[#allocation128_spill] sm:$0xff]  ;;  %v9048_v12 = vadd.f32 %v2712_v33, %v12687_v17  ;;  %v12688_v57 = vld [vmem:[#allocation51_spill] sm:$0xff] }
 0x25d   : > { %v3080_v18 = vmul.f32 %v12685_v30, %v2324_v37  ;;  %v12686_v2 = vld [vmem:[#allocation112_spill] sm:$0xff]  ;;  %v9051_v13 = vadd.f32 %v2892_v54, %v12688_v57  ;;  %v12690_v31 = vld [vmem:[#allocation22_spill] sm:$0xff]  ;;  %v12691_v15 = vld [vmem:[#allocation25_spill] sm:$0xff]  ;;  %v3254_v59 = vmul.f32 %v12692_v44, %v2321_v19  ;;  %v3442_v57 = vmul.f32 %v12695_v39, %v2324_v37 }
 0x25e   : > { %v9045_v16 = vadd.f32 %v2711_v14, %v12686_v2  ;;  %v12689_v51 = vld [vmem:[#allocation52_spill] sm:$0xff]  ;;  %v9057_v34 = vadd.f32 %v3079_v38, %v12690_v31  ;;  %v12693_v14 = vld [vmem:[#allocation73_spill] sm:$0xff]  ;;  %v12694_v17 = vld [vmem:[#allocation106_spill] sm:$0xff] }
 0x25f   : > { %v9054_v48 = vadd.f32 %v2893_v40, %v12689_v51  ;;  %v9060_v20 = vadd.f32 %v3080_v18, %v12691_v15  ;;  %v3255_v2 = vmul.f32 %v12693_v14, %v2324_v37  ;;  %v3441_v33 = vmul.f32 %v12694_v17, %v2321_v19  ;;  %v12696_v54 = vld [vmem:[#allocation129_spill] sm:$0xff]  ;;  %v12697_v51 = vld [vmem:[#allocation130_spill] sm:$0xff]  ;;  %v12810_v45 = vld [vmem:[#allocation56_spill] sm:$0xff] }
 0x260   : > { %v3628_v52 = vmul.f32 %v12696_v54, %v2321_v19  ;;  %v3629_v40 = vmul.f32 %v12697_v51, %v2324_v37  ;;  %v9069_v21 = vadd.f32 %v3254_v59, %v12698_v43  ;;  %v12700_v38 = vld [vmem:[#allocation82_spill] sm:$0xff]  ;;  %v2323_v18 = vsel %vm725_vm4, %v2314_v41, %v2320_v47  ;;  %v12708_v43 = vld [vmem:[#allocation95_spill] sm:$0xff] }
 0x261   : > { %v9072_v31 = vadd.f32 %v3255_v2, %v12700_v38  ;;  %v2326_v15 = vsel %vm725_vm4, %v2320_v47, %v2314_v41  ;;  %v9079_v56 = vadd.f32 %v3441_v33, %v12702_v29  ;;  %v9082_v25 = vadd.f32 %v3442_v57, %v12704_v60  ;;  %v12706_v19 = vld [vmem:[#allocation94_spill] sm:$0xff] }
 0x262   : > { %12699 = vst [vmem:[#allocation64_spill] sm:$0xff] %v9069_v21  ;;  %v9085_v37 = vadd.f32 %v3628_v52, %v12706_v19  ;;  %v9088_v59 = vadd.f32 %v3629_v40, %v12708_v43  ;;  %v2528_v2 = vmul.f32 %v12676_v46, %v2323_v18  ;;  %v2529_v38 = vmul.f32 %v12677_v42, %v2326_v15  ;;  %v12710_v19 = vld [vmem:[#allocation96_spill] sm:$0xff] }
 0x263   : > { %12701 = vst [vmem:[#allocation65_spill] sm:$0xff] %v9072_v31  ;;  %12703 = vst [vmem:[#allocation66_spill] sm:$0xff] %v9079_v56  ;;  %v2715_v31 = vmul.f32 %v12678_v8, %v2323_v18  ;;  %v2716_v41 = vmul.f32 %v12679_v62, %v2326_v15  ;;  %v2896_v29 = vmul.f32 %v12680_v1, %v2323_v18  ;;  %v12712_v56 = vld [vmem:[#allocation83_spill] sm:$0xff] }
 0x264   : > { %12705 = vst [vmem:[#allocation67_spill] sm:$0xff] %v9082_v25  ;;  %12707 = vst [vmem:[#allocation140_spill] sm:$0xff] %v9085_v37  ;;  %v2897_v47 = vmul.f32 %v12681_v26, %v2326_v15  ;;  %v3083_v60 = vmul.f32 %v12684_v3, %v2323_v18  ;;  %v3084_v52 = vmul.f32 %v12685_v30, %v2326_v15  ;;  %v12711_v37 = vld [vmem:[#allocation97_spill] sm:$0xff] }
 0x265   : > { %12709 = vst [vmem:[#allocation81_spill] sm:$0xff] %v9088_v59  ;;  %v9099_v33 = vadd.f32 %v2528_v2, %v8731_v61  ;;  %v9102_v57 = vadd.f32 %v2529_v38, %v8734_v23  ;;  %v9105_v40 = vadd.f32 %v2715_v31, %v8737_v28  ;;  %v9108_v43 = vadd.f32 %v2716_v41, %v12710_v19  ;;  %v2318_v59 = vpop.permute.xlu0 %2317  ;;  %v12714_v61 = vld [vmem:[#allocation85_spill] sm:$0xff]  ;;  %v9126_v41 = vpop.permute.xlu1 %2341 }
 0x266   : > { %v9111_v25 = vadd.f32 %v2896_v29, %v12711_v37  ;;  %v9114_v21 = vadd.f32 %v2897_v47, %v12712_v56  ;;  %v9117_v24 = vadd.f32 %v3083_v60, %v12713_v63  ;;  %v9120_v2 = vadd.f32 %v3084_v52, %v12714_v61 }
 0x267   : > { %v3258_v23 = vmul.f32 %v12692_v44, %v2323_v18  ;;  %v3259_v28 = vmul.f32 %v12693_v14, %v2326_v15  ;;  %v3445_v31 = vmul.f32 %v12694_v17, %v2323_v18  ;;  %v3446_v38 = vmul.f32 %v12695_v39, %v2326_v15 }
 0x268   : > { %v3632_v37 = vmul.f32 %v12696_v54, %v2323_v18  ;;  %v3633_v56 = vmul.f32 %v12697_v51, %v2326_v15  ;;  %v2322_v63 = vsel %vm725_vm4, %v8940_v22, %v2318_v59  ;;  %v2325_v29 = vsel %vm725_vm4, %v2318_v59, %v8940_v22 }
 0x269   : > { %v9137_v47 = vadd.f32 %v3258_v23, %v8769_v50  ;;  %v9140_v60 = vadd.f32 %v3259_v28, %v8772_v35  ;;  %v9143_v52 = vadd.f32 %v3445_v31, %v8775_v53  ;;  %v9146_v18 = vadd.f32 %v3446_v38, %v8778_v55  ;;  %v12722_v28 = vld [vmem:[#allocation54_spill] sm:$0xff] }
 0x26a   : > { %v9149_v15 = vadd.f32 %v3632_v37, %v8781_v4  ;;  %v9152_v19 = vadd.f32 %v3633_v56, %v8784_v32  ;;  %v2526_v22 = vmul.f32 %v12676_v46, %v2322_v63  ;;  %v2527_v50 = vmul.f32 %v12677_v42, %v2325_v29  ;;  %v12724_v31 = vld [vmem:[#allocation98_spill] sm:$0xff] }
 0x26b   : > { %v2713_v59 = vmul.f32 %v12678_v8, %v2322_v63  ;;  %v2714_v35 = vmul.f32 %v12679_v62, %v2325_v29  ;;  %v2894_v53 = vmul.f32 %v12680_v1, %v2322_v63  ;;  %v2895_v61 = vmul.f32 %v12681_v26, %v2325_v29  ;;  %v12718_v62 = vld [vmem:[#allocation114_spill] sm:$0xff]  ;;  %v12720_v26 = vld [vmem:[#allocation115_spill] sm:$0xff] }
 0x26c   : > { %v9161_v55 = vadd.f32 %v2526_v22, %v8793_v5  ;;  %v9164_v4 = vadd.f32 %v2527_v50, %v8796_v58  ;;  %v3081_v32 = vmul.f32 %v12684_v3, %v2322_v63  ;;  %v3082_v46 = vmul.f32 %v12685_v30, %v2325_v29  ;;  %v2346_v5 = vpop.permute.xlu1 %2345  ;;  %v2340_v22 = vpop.permute.xlu0 %2339  ;;  %v12726_v50 = vld [vmem:[#allocation99_spill] sm:$0xff] }
 0x26d   : > { %v9169_v42 = vadd.f32 %v2713_v59, %v8801_v0  ;;  %v9172_v8 = vadd.f32 %v2714_v35, %v8804_v49  ;;  %v9175_v1 = vadd.f32 %v2894_v53, %v12718_v62  ;;  %v9178_v23 = vadd.f32 %v2895_v61, %v12720_v26  ;;  %v12728_v35 = vld [vmem:[#allocation26_spill] sm:$0xff]  ;;  %v12739_v26 = vld [vmem:[#allocation75_spill] sm:$0xff] }
 0x26e   : > { %12715 = vst [vmem:[#allocation124_spill] sm:$0xff] %v9164_v4  ;;  %v9181_v58 = vadd.f32 %v3081_v32, %v12722_v28  ;;  %v9184_v3 = vadd.f32 %v3082_v46, %v12724_v31  ;;  %v3256_v30 = vmul.f32 %v12692_v44, %v2322_v63  ;;  %v3257_v0 = vmul.f32 %v12693_v14, %v2325_v29  ;;  %v12738_v46 = vld [vmem:[#allocation74_spill] sm:$0xff] }
 0x26f   : > { %12716 = vst [vmem:[#allocation125_spill] sm:$0xff] %v9169_v42  ;;  %12717 = vst [vmem:[#allocation126_spill] sm:$0xff] %v9172_v8  ;;  %v3443_v49 = vmul.f32 %v12694_v17, %v2322_v63  ;;  %v3444_v38 = vmul.f32 %v12695_v39, %v2325_v29  ;;  %v3630_v37 = vmul.f32 %v12696_v54, %v2322_v63  ;;  %v12730_v17 = vld [vmem:[#allocation29_spill] sm:$0xff]  ;;  %v12732_v39 = vld [vmem:[#allocation24_spill] sm:$0xff] }
 0x270   : > { %12719 = vst [vmem:[#allocation141_spill] sm:$0xff] %v9175_v1  ;;  %12721 = vst [vmem:[#allocation142_spill] sm:$0xff] %v9178_v23  ;;  %v3631_v56 = vmul.f32 %v12697_v51, %v2325_v29  ;;  %v9193_v59 = vadd.f32 %v3256_v30, %v12726_v50  ;;  %v9196_v53 = vadd.f32 %v3257_v0, %v12728_v35  ;;  %v12734_v51 = vld [vmem:[#allocation27_spill] sm:$0xff]  ;;  %v12740_v31 = vld [vmem:[#allocation118_spill] sm:$0xff] }
 0x271   : > { %12723 = vst [vmem:[#allocation143_spill] sm:$0xff] %v9181_v58  ;;  %12725 = vst [vmem:[#allocation144_spill] sm:$0xff] %v9184_v3  ;;  %v2351_v44 = vsel %vm757_vm5, %v2340_v22, %v2346_v5  ;;  %v2354_v14 = vsel %vm757_vm5, %v2346_v5, %v2340_v22  ;;  %v9203_v61 = vadd.f32 %v3443_v49, %v12730_v17  ;;  %v12736_v29 = vld [vmem:[#allocation35_spill] sm:$0xff]  ;;  %v12742_v22 = vld [vmem:[#allocation76_spill] sm:$0xff] }
 0x272   : > { %12727 = vst [vmem:[#allocation127_spill] sm:$0xff] %v9193_v59  ;;  %12729 = vst [vmem:[#allocation131_spill] sm:$0xff] %v9196_v53  ;;  %v9206_v54 = vadd.f32 %v3444_v38, %v12732_v39  ;;  %v9209_v63 = vadd.f32 %v3630_v37, %v12734_v51  ;;  %v9212_v32 = vadd.f32 %v3631_v56, %v12736_v29  ;;  %v12741_v0 = vld [vmem:[#allocation119_spill] sm:$0xff]  ;;  %v12743_v50 = vld [vmem:[#allocation77_spill] sm:$0xff] }
 0x273   : > { %12731 = vst [vmem:[#allocation132_spill] sm:$0xff] %v9203_v61  ;;  %v2555_v62 = vmul.f32 %v12738_v46, %v2351_v44  ;;  %v2556_v28 = vmul.f32 %v12739_v26, %v2354_v14  ;;  %v2736_v30 = vmul.f32 %v12740_v31, %v2351_v44  ;;  %v2737_v5 = vmul.f32 %v12741_v0, %v2354_v14  ;;  %v12744_v38 = vld [vmem:[#allocation120_spill] sm:$0xff]  ;;  %v12745_v39 = vld [vmem:[#allocation121_spill] sm:$0xff]  ;;  %v12746_v29 = vld [vmem:[#allocation23_spill] sm:$0xff] }
 0x274   : > { %12733 = vst [vmem:[#allocation133_spill] sm:$0xff] %v9206_v54  ;;  %12735 = vst [vmem:[#allocation134_spill] sm:$0xff] %v9209_v63  ;;  %v2917_v49 = vmul.f32 %v12742_v22, %v2351_v44  ;;  %v2918_v35 = vmul.f32 %v12743_v50, %v2354_v14  ;;  %v3104_v17 = vmul.f32 %v12744_v38, %v2351_v44  ;;  %v12747_v63 = vld [vmem:[#allocation39_spill] sm:$0xff]  ;;  %v12748_v61 = vld [vmem:[#allocation28_spill] sm:$0xff] }
 0x275   : > { %12737 = vst [vmem:[#allocation135_spill] sm:$0xff] %v9212_v32  ;;  %v3105_v37 = vmul.f32 %v12745_v39, %v2354_v14  ;;  %v2561_v51 = vadd.f32 %v2555_v62, %v8855_v27  ;;  %v2562_v56 = vadd.f32 %v2556_v28, %v8858_v36  ;;  %v2742_v32 = vadd.f32 %v2736_v30, %v12746_v29  ;;  %v12749_v58 = vld [vmem:[#allocation41_spill] sm:$0xff]  ;;  %v12754_v62 = vld [vmem:[#allocation123_spill] sm:$0xff]  ;;  %v12755_v30 = vld [vmem:[#allocation80_spill] sm:$0xff] }
 0x276   : > { %v2743_v54 = vadd.f32 %v2737_v5, %v12747_v63  ;;  %v2923_v53 = vadd.f32 %v2917_v49, %v12748_v61  ;;  %v2924_v59 = vadd.f32 %v2918_v35, %v8870_v7  ;;  %v3110_v3 = vadd.f32 %v3104_v17, %v8873_v9  ;;  %v12752_v63 = vld [vmem:[#allocation79_spill] sm:$0xff]  ;;  %v2344_v49 = vpop.permute.xlu0 %2343  ;;  %v12756_v17 = vld [vmem:[#allocation30_spill] sm:$0xff]  ;;  %v12757_v29 = vld [vmem:[#allocation36_spill] sm:$0xff] }
 0x277   : > { %v3111_v23 = vadd.f32 %v3105_v37, %v12749_v58  ;;  %v9231_v1 = vadd.f32 %v2561_v51, %v9037_v10  ;;  %v9234_v8 = vadd.f32 %v2562_v56, %v9040_v11  ;;  %v9237_v27 = vadd.f32 %v2742_v32, %v9045_v16  ;;  %v12761_v11 = vld [vmem:[#allocation64_spill] sm:$0xff] }
 0x278   : > { %v9240_v36 = vadd.f32 %v2743_v54, %v9048_v12  ;;  %v9243_v61 = vadd.f32 %v2923_v53, %v9051_v13  ;;  %v9246_v7 = vadd.f32 %v2924_v59, %v9054_v48  ;;  %v9249_v9 = vadd.f32 %v3110_v3, %v9057_v34  ;;  %v2350_v54 = vpop.permute.xlu1 %2349  ;;  %v12750_v59 = vld [vmem:[#allocation111_spill] sm:$0xff]  ;;  %v12751_v34 = vld [vmem:[#allocation78_spill] sm:$0xff]  ;;  %v12758_v13 = vld [vmem:[#allocation33_spill] sm:$0xff] }
 0x279   : > { %v9252_v10 = vadd.f32 %v3111_v23, %v9060_v20  ;;  %v3279_v53 = vmul.f32 %v12750_v59, %v2351_v44  ;;  %v3280_v3 = vmul.f32 %v12751_v34, %v2354_v14  ;;  %v3466_v20 = vmul.f32 %v12752_v63, %v2351_v44  ;;  %v12753_v23 = vld [vmem:[#allocation122_spill] sm:$0xff] }
 0x27a   : > { %v3467_v32 = vmul.f32 %v12753_v23, %v2354_v14  ;;  %v3653_v28 = vmul.f32 %v12754_v62, %v2351_v44  ;;  %v3654_v5 = vmul.f32 %v12755_v30, %v2354_v14  ;;  %v9270_v51 = vsel %vm757_vm5, %v2344_v49, %v2350_v54  ;;  %v12759_v44 = vld [vmem:[#allocation37_spill] sm:$0xff]  ;;  %v12760_v14 = vld [vmem:[#allocation31_spill] sm:$0xff] }
 0x27b   : > { %v3285_v35 = vadd.f32 %v3279_v53, %v8889_v6  ;;  %v3286_v37 = vadd.f32 %v3280_v3, %v12756_v17  ;;  %v9274_v56 = vsel %vm757_vm5, %v2350_v54, %v2344_v49  ;;  %v3472_v48 = vadd.f32 %v3466_v20, %v12757_v29  ;;  %v12762_v53 = vld [vmem:[#allocation65_spill] sm:$0xff]  ;;  %v12763_v49 = vld [vmem:[#allocation66_spill] sm:$0xff]  ;;  %v12774_v29 = vld [vmem:[#allocation48_spill] sm:$0xff] }
 0x27c   : > { %v3473_v12 = vadd.f32 %v3467_v32, %v12758_v13  ;;  %v3659_v58 = vadd.f32 %v3653_v28, %v12759_v44  ;;  %v3660_v16 = vadd.f32 %v3654_v5, %v12760_v14  ;;  %v2559_v17 = vmul.f32 %v12738_v46, %v9270_v51  ;;  %v12764_v13 = vld [vmem:[#allocation67_spill] sm:$0xff]  ;;  %v12765_v28 = vld [vmem:[#allocation140_spill] sm:$0xff]  ;;  %v12769_v44 = vld [vmem:[#allocation38_spill] sm:$0xff] }
 0x27d   : > { %v9281_v6 = vadd.f32 %v3285_v35, %v12761_v11  ;;  %v9284_v3 = vadd.f32 %v3286_v37, %v12762_v53  ;;  %v2560_v54 = vmul.f32 %v12739_v26, %v9274_v56  ;;  %v9291_v20 = vadd.f32 %v3472_v48, %v12763_v49  ;;  %v12767_v11 = vld [vmem:[#allocation81_spill] sm:$0xff]  ;;  %v12770_v53 = vld [vmem:[#allocation32_spill] sm:$0xff] }
 0x27e   : > { %v9294_v32 = vadd.f32 %v3473_v12, %v12764_v13  ;;  %v9297_v5 = vadd.f32 %v3659_v58, %v12765_v28  ;;  %v9300_v35 = vadd.f32 %v3660_v16, %v12767_v11  ;;  %v2565_v14 = vadd.f32 %v2559_v17, %v12769_v44  ;;  %v12772_v58 = vld [vmem:[#allocation34_spill] sm:$0xff]  ;;  %v12773_v49 = vld [vmem:[#allocation44_spill] sm:$0xff] }
 0x27f   : > { %v2566_v42 = vadd.f32 %v2560_v54, %v12770_v53  ;;  %v2740_v28 = vmul.f32 %v12740_v31, %v9270_v51  ;;  %v2741_v17 = vmul.f32 %v12741_v0, %v9274_v56  ;;  %v2921_v54 = vmul.f32 %v12742_v22, %v9270_v51  ;;  %v12775_v22 = vld [vmem:[#allocation42_spill] sm:$0xff] }
 0x280   : > { %12766 = vst [vmem:[#allocation136_spill] sm:$0xff] %v9297_v5  ;;  %12768 = vst [vmem:[#allocation137_spill] sm:$0xff] %v9300_v35  ;;  %v9311_v13 = vadd.f32 %v2565_v14, %v9099_v33  ;;  %v2922_v11 = vmul.f32 %v12743_v50, %v9274_v56  ;;  %v3108_v44 = vmul.f32 %v12744_v38, %v9270_v51  ;;  %v12771_v14 = vld [vmem:[#allocation40_spill] sm:$0xff]  ;;  %v12776_v35 = vld [vmem:[#allocation43_spill] sm:$0xff]  ;;  %v12777_v38 = vrot.slane %v9231_v1, 5 }
 0x281   : > { %v9314_v16 = vadd.f32 %v2566_v42, %v9102_v57  ;;  %v3109_v33 = vmul.f32 %v12745_v39, %v9274_v56  ;;  %v2746_v53 = vadd.f32 %v2740_v28, %v12771_v14  ;;  %v2747_v12 = vadd.f32 %v2741_v17, %v12772_v58 }
 0x282   : > { %v11798_v57 = vrot.slane %v9311_v13, 5  ;;  %v2927_v48 = vadd.f32 %v2921_v54, %v12773_v49  ;;  %v2928_v37 = vadd.f32 %v2922_v11, %v12774_v29  ;;  %v3114_v50 = vadd.f32 %v3108_v44, %v12775_v22  ;;  %v12783_v11 = vld [vmem:[#allocation45_spill] sm:$0xff] }
 0x283   : > { %v3115_v5 = vadd.f32 %v3109_v33, %v12776_v35  ;;  %v12779_v42 = vrot.slane %v9234_v8, 5  ;;  %v12780_v28 = vrot.slane %v9314_v16, 5  ;;  %v9349_v29 = vadd.f32 %v2746_v53, %v9105_v40  ;;  %v12784_v33 = vld [vmem:[#allocation100_spill] sm:$0xff] }
 0x284   : > { %v2583_v4 = vsel %vm989_vm6, %v11798_v57, %v12777_v38  ;;  %v9352_v22 = vadd.f32 %v2747_v12, %v9108_v43  ;;  %v9355_v35 = vadd.f32 %v2927_v48, %v9111_v25  ;;  %v9358_v58 = vadd.f32 %v2928_v37, %v9114_v21 }
 0x285   : > { %v2584_v49 = vsel %vm989_vm6, %v12780_v28, %v12779_v42  ;;  %v9361_v38 = vadd.f32 %v3114_v50, %v9117_v24  ;;  %v9364_v17 = vadd.f32 %v3115_v5, %v9120_v2  ;;  %v11791_v54 = vrot.slane %v9349_v29, 6 }
 0x286   : > { %v11790_v40 = vrot.slane %v9352_v22, 6  ;;  %v3283_v43 = vmul.f32 %v12750_v59, %v9270_v51  ;;  %v3284_v25 = vmul.f32 %v12751_v34, %v9274_v56  ;;  %v11789_v48 = vrot.slane %v9355_v35, 7 }
 0x287   : > { %v11792_v21 = vrot.slane %v9358_v58, 7  ;;  %v3470_v24 = vmul.f32 %v12752_v63, %v9270_v51  ;;  %v3471_v2 = vmul.f32 %v12753_v23, %v9274_v56  ;;  %v12781_v50 = vrot.slane %v9237_v27, 6 }
 0x288   : > { %v12782_v37 = vrot.slane %v9240_v36, 6  ;;  %v3289_v44 = vadd.f32 %v3283_v43, %v12783_v11  ;;  %v3290_v42 = vadd.f32 %v3284_v25, %v12784_v33  ;;  %v12785_v14 = vrot.slane %v9243_v61, 7  ;;  %v2348_v25 = vpop.permute.xlu0 %2347 }
 0x289   : > { %v2764_v5 = vsel %vm1171_vm7, %v11791_v54, %v12781_v50  ;;  %v12786_v28 = vrot.slane %v9246_v7, 7 }
 0x28a   : > { %v2765_v12 = vsel %vm1171_vm7, %v11790_v40, %v12782_v37  ;;  %v2945_v53 = vsel %vm1353_vm8, %v11789_v48, %v12785_v14  ;;  %v9405_v37 = vadd.f32 %v9249_v9, %v2764_v5  ;;  %v9415_v14 = vadd.f32 %v3289_v44, %v9137_v47  ;;  %v12787_v40 = vld [vmem:[#allocation101_spill] sm:$0xff] }
 0x28b   : > { %v2946_v50 = vsel %vm1353_vm8, %v11792_v21, %v12786_v28  ;;  %v9408_v43 = vadd.f32 %v9252_v10, %v2765_v12  ;;  %v9410_v11 = vadd.f32 %v2945_v53, %v2583_v4  ;;  %v9418_v48 = vadd.f32 %v3290_v42, %v9140_v60  ;;  %v12788_v28 = vld [vmem:[#allocation102_spill] sm:$0xff] }
 0x28c   : > { %v9412_v33 = vadd.f32 %v2946_v50, %v2584_v49  ;;  %v3476_v54 = vadd.f32 %v3470_v24, %v12787_v40  ;;  %v3477_v21 = vadd.f32 %v3471_v2, %v12788_v28  ;;  %v3657_v9 = vmul.f32 %v12754_v62, %v9270_v51  ;;  %v12790_v2 = vld [vmem:[#allocation46_spill] sm:$0xff] }
 0x28d   : > { %v3658_v10 = vmul.f32 %v12755_v30, %v9274_v56  ;;  %v11797_v4 = vrot.slane %v9415_v14, 1  ;;  %v11795_v49 = vrot.slane %v9418_v48, 1  ;;  %v9431_v47 = vsel %vm757_vm5, %v9126_v41, %v2348_v25  ;;  %v12789_v56 = vld [vmem:[#allocation103_spill] sm:$0xff] }
 0x28e   : > { %v9436_v60 = vsel %vm757_vm5, %v2348_v25, %v9126_v41  ;;  %v9439_v40 = vadd.f32 %v3476_v54, %v9143_v52  ;;  %v9442_v51 = vadd.f32 %v3477_v21, %v9146_v18  ;;  %v3663_v24 = vadd.f32 %v3657_v9, %v12789_v56  ;;  %v12794_v25 = vld [vmem:[#allocation47_spill] sm:$0xff]  ;;  %v12795_v9 = vld [vmem:[#allocation49_spill] sm:$0xff] }
 0x28f   : > { %v3664_v5 = vadd.f32 %v3658_v10, %v12790_v2  ;;  %v12791_v12 = vrot.slane %v9281_v6, 1  ;;  %v12792_v41 = vrot.slane %v9284_v3, 1  ;;  %v2557_v18 = vmul.f32 %v12738_v46, %v9431_v47 }
 0x290   : > { %v2558_v54 = vmul.f32 %v12739_v26, %v9436_v60  ;;  %v11793_v21 = vrot.slane %v9439_v40, 2  ;;  %v11794_v42 = vrot.slane %v9442_v51, 2  ;;  %v9469_v53 = vadd.f32 %v3663_v24, %v9149_v15 }
 0x291   : > { %v9452_v44 = vsel %vm1716_vm9, %v11797_v4, %v12791_v12  ;;  %v9460_v52 = vsel %vm1716_vm9, %v11795_v49, %v12792_v41  ;;  %v9472_v50 = vadd.f32 %v3664_v5, %v9152_v19  ;;  %v2563_v28 = vadd.f32 %v2557_v18, %v12794_v25  ;;  %v12798_v5 = vld [vmem:[#allocation124_spill] sm:$0xff]  ;;  %v12799_v41 = vld [vmem:[#allocation109_spill] sm:$0xff]  ;;  %v12809_v4 = vld [vmem:[#allocation55_spill] sm:$0xff] }
 0x292   : > { %v2564_v10 = vadd.f32 %v2558_v54, %v12795_v9  ;;  %v2738_v46 = vmul.f32 %v12740_v31, %v9431_v47  ;;  %v2739_v26 = vmul.f32 %v12741_v0, %v9436_v60  ;;  %v12796_v56 = vrot.slane %v9291_v20, 2  ;;  %v12800_v54 = vld [vmem:[#allocation110_spill] sm:$0xff]  ;;  %v12801_v9 = vld [vmem:[#allocation136_spill] sm:$0xff] }
 0x293   : > { %12793 = vst [vmem:[#allocation138_spill] sm:$0xff] %v9472_v50  ;;  %v12797_v19 = vrot.slane %v9294_v32, 2  ;;  %v11796_v2 = vrot.slane %v9469_v53, 3  ;;  %v11800_v31 = vrot.slane %v9472_v50, 3  ;;  %v2569_v0 = vadd.f32 %v2563_v28, %v9161_v55  ;;  %v12805_v28 = vld [vmem:[#allocation76_spill] sm:$0xff] }
 0x294   : > { %v3494_v15 = vsel %vm1904_vm10, %v11793_v21, %v12796_v56  ;;  %v2570_v12 = vadd.f32 %v2564_v10, %v12798_v5  ;;  %v2744_v18 = vadd.f32 %v2738_v46, %v12799_v41  ;;  %v2745_v25 = vadd.f32 %v2739_v26, %v12800_v54  ;;  %v12806_v46 = vld [vmem:[#allocation77_spill] sm:$0xff] }
 0x295   : > { %v3495_v24 = vsel %vm1904_vm10, %v11794_v42, %v12797_v19  ;;  %v12802_v56 = vrot.slane %v12801_v9, 3  ;;  %v12803_v19 = vld [vmem:[#allocation137_spill] sm:$0xff]  ;;  %v2919_v10 = vmul.f32 %v12805_v28, %v9431_v47  ;;  %v2920_v26 = vmul.f32 %v12806_v46, %v9436_v60  ;;  %v12811_v9 = vld [vmem:[#allocation120_spill] sm:$0xff] }
 0x296   : > { %v12804_v42 = vrot.slane %v12803_v19, 3  ;;  %v2575_v5 = vrot.slane %v2569_v0, 5  ;;  %v2576_v41 = vrot.slane %v2570_v12, 5  ;;  %v12807_v54 = vld [vmem:[#allocation125_spill] sm:$0xff]  ;;  %v12813_v28 = vrot.slane %v9311_v13, 5 }
 0x297   : > { %v9504_v21 = vsel %vm2092_vm11, %v11796_v2, %v12802_v56  ;;  %v2750_v49 = vadd.f32 %v2744_v18, %v12807_v54  ;;  %v12808_v56 = vld [vmem:[#allocation126_spill] sm:$0xff]  ;;  %v2925_v57 = vadd.f32 %v2919_v10, %v12809_v4  ;;  %v2926_v19 = vadd.f32 %v2920_v26, %v12810_v45  ;;  %v12817_v10 = vld [vmem:[#allocation141_spill] sm:$0xff] }
 0x298   : > { %v9512_v55 = vsel %vm2092_vm11, %v11800_v31, %v12804_v42  ;;  %v2751_v2 = vadd.f32 %v2745_v25, %v12808_v56  ;;  %v3106_v42 = vmul.f32 %v12811_v9, %v9431_v47  ;;  %v12812_v31 = vld [vmem:[#allocation121_spill] sm:$0xff]  ;;  %v2579_v0 = vsel %vm989_vm6, %v2575_v5, %v12813_v28  ;;  %v12818_v26 = vld [vmem:[#allocation142_spill] sm:$0xff] }
 0x299   : > { %v3107_v50 = vmul.f32 %v12812_v31, %v9436_v60  ;;  %v12814_v12 = vrot.slane %v9314_v16, 5  ;;  %v12815_v4 = vrot.slane %v9231_v1, 5  ;;  %v12816_v25 = vrot.slane %v9234_v8, 5  ;;  %v12819_v16 = vld [vmem:[#allocation57_spill] sm:$0xff]  ;;  %v12820_v28 = vld [vmem:[#allocation58_spill] sm:$0xff] }
 0x29a   : > { %v2756_v9 = vrot.slane %v2750_v49, 6  ;;  %v2757_v13 = vrot.slane %v2751_v2, 6  ;;  %v2931_v46 = vadd.f32 %v2925_v57, %v12817_v10  ;;  %v2932_v54 = vadd.f32 %v2926_v19, %v12818_v26 }
 0x29b   : > { %v2580_v18 = vsel %vm989_vm6, %v2576_v41, %v12814_v12  ;;  %v2581_v45 = vsel %vm989_vm6, %v12815_v4, %v2575_v5  ;;  %v2582_v31 = vsel %vm989_vm6, %v12816_v25, %v2576_v41  ;;  %v3112_v56 = vadd.f32 %v3106_v42, %v12819_v16  ;;  %v12825_v42 = vld [vmem:[#allocation143_spill] sm:$0xff]  ;;  %v12826_v25 = vld [vmem:[#allocation144_spill] sm:$0xff] }
 0x29c   : > { %v3113_v12 = vadd.f32 %v3107_v50, %v12820_v28  ;;  %v3281_v1 = vmul.f32 %v12750_v59, %v9431_v47  ;;  %v3282_v5 = vmul.f32 %v12751_v34, %v9436_v60  ;;  %v12821_v8 = vrot.slane %v9349_v29, 6  ;;  %v12827_v16 = vld [vmem:[#allocation59_spill] sm:$0xff]  ;;  %v12828_v28 = vld [vmem:[#allocation60_spill] sm:$0xff] }
 0x29d   : > { %v12822_v2 = vrot.slane %v9352_v22, 6  ;;  %v12823_v19 = vrot.slane %v9237_v27, 6  ;;  %v12824_v59 = vrot.slane %v9240_v36, 6  ;;  %v2937_v41 = vrot.slane %v2931_v46, 7 }
 0x29e   : > { %v2760_v49 = vsel %vm1171_vm7, %v2756_v9, %v12821_v8  ;;  %v2938_v29 = vrot.slane %v2932_v54, 7  ;;  %v3118_v4 = vadd.f32 %v3112_v56, %v12825_v42  ;;  %v3119_v10 = vadd.f32 %v3113_v12, %v12826_v25 }
 0x29f   : > { %v2761_v57 = vsel %vm1171_vm7, %v2757_v13, %v12822_v2  ;;  %v2762_v50 = vsel %vm1171_vm7, %v12823_v19, %v2756_v9  ;;  %v2763_v34 = vsel %vm1171_vm7, %v12824_v59, %v2757_v13  ;;  %v3126_v22 = vadd.f32 %v9361_v38, %v2760_v49  ;;  %v12834_v19 = vld [vmem:[#allocation131_spill] sm:$0xff] }
 0x2a0   : > { %v3127_v26 = vadd.f32 %v9364_v17, %v2761_v57  ;;  %v3287_v27 = vadd.f32 %v3281_v1, %v12827_v16  ;;  %v3288_v8 = vadd.f32 %v3282_v5, %v12828_v28  ;;  %v12829_v9 = vrot.slane %v9355_v35, 7  ;;  %v12842_v16 = vld [vmem:[#allocation133_spill] sm:$0xff] }
 0x2a1   : > { %v12830_v13 = vrot.slane %v9358_v58, 7  ;;  %v12831_v54 = vrot.slane %v9243_v61, 7  ;;  %v12832_v17 = vrot.slane %v9246_v7, 7  ;;  %v3124_v49 = vadd.f32 %v3118_v4, %v2762_v50  ;;  %v12833_v58 = vld [vmem:[#allocation127_spill] sm:$0xff]  ;;  %v12835_v50 = vld [vmem:[#allocation61_spill] sm:$0xff] }
 0x2a2   : > { %v2941_v36 = vsel %vm1353_vm8, %v2937_v41, %v12829_v9  ;;  %v3125_v2 = vadd.f32 %v3119_v10, %v2763_v34  ;;  %v3293_v57 = vadd.f32 %v3287_v27, %v12833_v58  ;;  %v3294_v59 = vadd.f32 %v3288_v8, %v12834_v19  ;;  %v12844_v8 = vld [vmem:[#allocation63_spill] sm:$0xff] }
 0x2a3   : > { %v2942_v46 = vsel %vm1353_vm8, %v2938_v29, %v12830_v13  ;;  %v2943_v38 = vsel %vm1353_vm8, %v12831_v54, %v2937_v41  ;;  %v2944_v56 = vsel %vm1353_vm8, %v12832_v17, %v2938_v29  ;;  %v2951_v1 = vadd.f32 %v2941_v36, %v2579_v0  ;;  %v12836_v29 = vld [vmem:[#allocation116_spill] sm:$0xff]  ;;  %v12845_v54 = vld [vmem:[#allocation134_spill] sm:$0xff] }
 0x2a4   : > { %v2949_v12 = vadd.f32 %v2943_v38, %v2581_v45  ;;  %v2950_v35 = vadd.f32 %v2944_v56, %v2582_v31  ;;  %v2952_v5 = vadd.f32 %v2942_v46, %v2580_v18  ;;  %v3468_v7 = vmul.f32 %v12752_v63, %v9431_v47  ;;  %v12846_v38 = vld [vmem:[#allocation135_spill] sm:$0xff]  ;;  %v3699_v17 = vld [vmem:[%s7709_s21 + $0x20] sm:$0xff] }
 0x2a5   : > { %v3313_v61 = vadd.f32 %v9452_v44, %v2951_v1  ;;  %v3469_v41 = vmul.f32 %v12753_v23, %v9436_v60  ;;  %v3299_v45 = vrot.slane %v3293_v57, 1  ;;  %v3300_v31 = vrot.slane %v3294_v59, 1 }
 0x2a6   : > { %v3314_v42 = vadd.f32 %v9460_v52, %v2952_v5  ;;  %v3500_v0 = vadd.f32 %v3494_v15, %v3126_v22  ;;  %v3501_v18 = vadd.f32 %v3495_v24, %v3127_v26  ;;  %v3474_v34 = vadd.f32 %v3468_v7, %v12835_v50  ;;  %v12841_v22 = vld [vmem:[#allocation132_spill] sm:$0xff]  ;;  %v12856_v50 = vld [vmem:[#allocation137_spill] sm:$0xff] }
 0x2a7   : > { %v3475_v4 = vadd.f32 %v3469_v41, %v12836_v29  ;;  %v3655_v25 = vmul.f32 %v12754_v62, %v9431_v47  ;;  %v3656_v44 = vmul.f32 %v12755_v30, %v9436_v60  ;;  %v12837_v52 = vrot.slane %v9415_v14, 1  ;;  %v3700_v41 = vld [vmem:[%s7709_s21 + $0x28] sm:$0xff] }
 0x2a8   : > { %v12838_v23 = vrot.slane %v9418_v48, 1  ;;  %v12839_v24 = vrot.slane %v9281_v6, 1  ;;  %v12840_v62 = vrot.slane %v9284_v3, 1  ;;  %v3480_v26 = vadd.f32 %v3474_v34, %v12841_v22  ;;  %v12843_v6 = vld [vmem:[#allocation62_spill] sm:$0xff] }
 0x2a9   : > { %v3303_v63 = vsel %vm1716_vm9, %v3299_v45, %v12837_v52  ;;  %v3481_v27 = vadd.f32 %v3475_v4, %v12842_v16  ;;  %v3661_v28 = vadd.f32 %v3655_v25, %v12843_v6  ;;  %v3662_v9 = vadd.f32 %v3656_v44, %v12844_v8  ;;  %v3695_v4 = vld [vmem:[%s7709_s21] sm:$0xff]  ;;  %v3708_v6 = vld [vmem:[%s505_s13 + $0x8] sm:$0xff]  ;;  %v3710_v8 = vld [vmem:[%s505_s13 + $0x18] sm:$0xff] }
 0x2aa   : > { %v3304_v15 = vsel %vm1716_vm9, %v3300_v31, %v12838_v23  ;;  %v3305_v10 = vsel %vm1716_vm9, %v12839_v24, %v3299_v45  ;;  %v3306_v30 = vsel %vm1716_vm9, %v12840_v62, %v3300_v31  ;;  %v3311_v60 = vadd.f32 %v3303_v63, %v2949_v12  ;;  %v3711_v45 = vld [vmem:[%s505_s13 + $0x20] sm:$0xff]  ;;  %v3696_v63 = vld [vmem:[%s7709_s21 + $0x8] sm:$0xff]  ;;  %v3697_v23 = vld [vmem:[%s7709_s21 + $0x10] sm:$0xff] }
 0x2ab   : > { %v3309_v14 = vadd.f32 %v3305_v10, %v9410_v11  ;;  %v3310_v47 = vadd.f32 %v3306_v30, %v9412_v33  ;;  %v3312_v48 = vadd.f32 %v3304_v15, %v2950_v35  ;;  %v3687_v3 = vadd.f32 %v9504_v21, %v3313_v61  ;;  %v3698_v15 = vld [vmem:[%s7709_s21 + $0x18] sm:$0xff]  ;;  %v3707_v62 = vld [vmem:[%s505_s13] sm:$0xff]  ;;  %v3712_v30 = vld [vmem:[%s505_s13 + $0x28] sm:$0xff] }
 0x2ac   : > { %v3688_v36 = vadd.f32 %v9512_v55, %v3314_v42  ;;  %v3486_v13 = vrot.slane %v3480_v26, 2  ;;  %v3487_v46 = vrot.slane %v3481_v27, 2  ;;  %v3667_v11 = vadd.f32 %v3661_v28, %v12845_v54  ;;  %v3709_v28 = vld [vmem:[%s505_s13 + $0x10] sm:$0xff] }
 0x2ad   : > { %v3668_v33 = vadd.f32 %v3662_v9, %v12846_v38  ;;  %v3693_v56 = vadd.f32 %v3687_v3, %v3500_v0  ;;  %v12847_v35 = vrot.slane %v9439_v40, 2  ;;  %v12848_v21 = vrot.slane %v9442_v51, 2  ;;  %v12852_v0 = vld [vmem:[#allocation138_spill] sm:$0xff] }
 0x2ae   : > { %v3694_v12 = vadd.f32 %v3688_v36, %v3501_v18  ;;  %v12849_v5 = vrot.slane %v9291_v20, 2  ;;  %v12850_v57 = vrot.slane %v9294_v32, 2  ;;  %v3673_v42 = vrot.slane %v3667_v11, 3  ;;  %v12858_v9 = vld [vmem:[#allocation86_spill] sm:$0xff] }
 0x2af   : > { %v3490_v1 = vsel %vm1904_vm10, %v3486_v13, %v12847_v35  ;;  %v3491_v55 = vsel %vm1904_vm10, %v3487_v46, %v12848_v21  ;;  %v3674_v7 = vrot.slane %v3668_v33, 3  ;;  %v3705_v20 = vmul.f32 %v3699_v17, %v3693_v56  ;;  %v12860_v56 = vld [vmem:[#allocation16_spill] sm:$0xff] }
 0x2b0   : > { %v3492_v58 = vsel %vm1904_vm10, %v12849_v5, %v3486_v13  ;;  %v3493_v19 = vsel %vm1904_vm10, %v12850_v57, %v3487_v46  ;;  %v3498_v61 = vadd.f32 %v3490_v1, %v3124_v49  ;;  %v3499_v51 = vadd.f32 %v3491_v55, %v3125_v2  ;;  %v12854_v49 = vld [vmem:[#allocation136_spill] sm:$0xff]  ;;  %v12859_v46 = vld [vmem:[#allocation93_spill] sm:$0xff]  ;;  %v12861_v1 = vld [vmem:[#allocation87_spill] sm:$0xff] }
 0x2b1   : > { %v3496_v40 = vadd.f32 %v3492_v58, %v9405_v37  ;;  %v3497_v59 = vadd.f32 %v3493_v19, %v9408_v43  ;;  %v12851_v32 = vrot.slane %v9469_v53, 3  ;;  %v12853_v37 = vrot.slane %v12852_v0, 3  ;;  %v12862_v55 = vld [vmem:[#allocation88_spill] sm:$0xff]  ;;  %v12863_v58 = vld [vmem:[#allocation89_spill] sm:$0xff]  ;;  %v12864_v19 = vld [vmem:[#allocation91_spill] sm:$0xff] }
 0x2b2   : > { %v12855_v2 = vrot.slane %v12854_v49, 3  ;;  %v12857_v34 = vrot.slane %v12856_v50, 3  ;;  %v3706_v24 = vmul.f32 %v3700_v41, %v3694_v12  ;;  %v3717_v10 = vadd.f32 %v3711_v45, %v3705_v20  ;;  %v12868_v41 = vld [vmem:[#allocation90_spill] sm:$0xff] }
 0x2b3   : > { %v3677_v31 = vsel %vm2092_vm11, %v3673_v42, %v12851_v32  ;;  %v3678_v43 = vsel %vm2092_vm11, %v3674_v7, %v12853_v37  ;;  %v3747_v54 = vmul.f32 5.0, %v12859_v46  ;;  %v3743_v12 = vmul.f32 5.0, %v12860_v56  ;;  %v3757_v49 = vld [vmem:[%s5838_s18 + $0x10] sm:$0xff] }
 0x2b4   : > { %v3679_v18 = vsel %vm2092_vm11, %v12855_v2, %v3673_v42  ;;  %v3680_v29 = vsel %vm2092_vm11, %v12857_v34, %v3674_v7  ;;  %v3685_v44 = vadd.f32 %v3677_v31, %v3311_v60  ;;  %v3686_v52 = vadd.f32 %v3678_v43, %v3312_v48  ;;  %v12867_v7 = vld [vmem:[#allocation18_spill] sm:$0xff] }
 0x2b5   : > { %v3683_v53 = vadd.f32 %v3679_v18, %v3309_v14  ;;  %v3684_v25 = vadd.f32 %v3680_v29, %v3310_v47  ;;  %v3729_v3 = vadd.f32 %v3717_v10, %v12858_v9  ;;  %v3718_v36 = vadd.f32 %v3712_v30, %v3706_v24  ;;  %v3755_v43 = vld [vmem:[%s5838_s18] sm:$0xff]  ;;  %v3758_v10 = vld [vmem:[%s5838_s18 + $0x18] sm:$0xff] }
 0x2b6   : > { %v3691_v16 = vadd.f32 %v3685_v44, %v3498_v61  ;;  %v3692_v27 = vadd.f32 %v3686_v52, %v3499_v51  ;;  %v12866_v51 = vld [vmem:[#allocation17_spill] sm:$0xff]  ;;  %v3746_v20 = vmul.f32 5.0, %v12867_v7  ;;  %v3759_v44 = vld [vmem:[%s5838_s18 + $0x20] sm:$0xff]  ;;  %v12869_v52 = vld [vmem:[#allocation19_spill] sm:$0xff] }
 0x2b7   : > { %v3689_v22 = vadd.f32 %v3683_v53, %v3496_v40  ;;  %v3690_v26 = vadd.f32 %v3684_v25, %v3497_v59  ;;  %v3735_v13 = vmax.f32 %v3729_v3, 0.0  ;;  %v12865_v59 = vld [vmem:[#allocation92_spill] sm:$0xff]  ;;  %v3745_v42 = vmul.f32 5.0, %v12866_v51  ;;  %v3756_v25 = vld [vmem:[%s5838_s18 + $0x8] sm:$0xff] }
 0x2b8   : > { %v3703_v60 = vmul.f32 %v3697_v23, %v3691_v16  ;;  %v3704_v48 = vmul.f32 %v3698_v15, %v3692_v27  ;;  %v3744_v61 = vmul.f32 5.0, %v12865_v59  ;;  %v3730_v45 = vadd.f32 %v3718_v36, %v12868_v41  ;;  %v5596_v16 = vld [vmem:[%s5945_s10 + $0x12] ss:$8 sm:$0x3] }
 0x2b9   : > { %v3701_v14 = vmul.f32 %v3695_v4, %v3689_v22  ;;  %v3702_v47 = vmul.f32 %v3696_v63, %v3690_v26  ;;  %v3753_v35 = vadd.f32 %v3747_v54, %v3735_v13  ;;  %v3748_v63 = vmul.f32 5.0, %v12869_v52  ;;  %v5589_v26 = vld [vmem:[%s5945_s10 + $0x3] ss:$8 sm:$0x3] }
 0x2ba   : > { %v3715_v33 = vadd.f32 %v3709_v28, %v3703_v60  ;;  %v3716_v17 = vadd.f32 %v3710_v8, %v3704_v48  ;;  %v3736_v29 = vmax.f32 %v3730_v45, 0.0  ;;  %v5603_v27 = vld [vmem:[%s5945_s10 + $0x21] ss:$8 sm:$0x3] }
 0x2bb   : > { %v3713_v11 = vadd.f32 %v3707_v62, %v3701_v14  ;;  %v3714_v38 = vadd.f32 %v3708_v6, %v3702_v47  ;;  %v9695_v24 = vsub.f32 %v3753_v35, %v3759_v44  ;;  %v3760_v62 = vld [vmem:[%s5838_s18 + $0x28] sm:$0xff]  ;;  %v5610_v6 = vld [vmem:[%s5945_s10 + $0x30] ss:$8 sm:$0x3] }
 0x2bc   : > { %v3727_v57 = vadd.f32 %v3715_v33, %v12863_v58  ;;  %v3728_v40 = vadd.f32 %v3716_v17, %v12864_v19  ;;  %v3754_v23 = vadd.f32 %v3748_v63, %v3736_v29  ;;  %v5617_v28 = vld [vmem:[%s5945_s10 + $0x37] ss:$8 sm:$0x3]  ;;  %v3965_v8 = vld [vmem:[%s5945_s10] ss:$8 sm:$0x3] }
 0x2bd   : > { %v3725_v21 = vadd.f32 %v3713_v11, %v12861_v1  ;;  %v3726_v5 = vadd.f32 %v3714_v38, %v12862_v55  ;;  %v5593_v9 = vld [vmem:[%s5945_s10 + $0x7] ss:$8 sm:$0x3]  ;;  %v5624_v48 = vld [vmem:[%s5945_s10 + $0x46] ss:$8 sm:$0x3] }
 0x2be   : > { %v3733_v0 = vmax.f32 %v3727_v57, 0.0  ;;  %v3734_v37 = vmax.f32 %v3728_v40, 0.0  ;;  %v9705_v22 = vsub.f32 %v3754_v23, %v3760_v62  ;;  %v12870_v3 = vld [vmem:[#allocation13_spill] sm:$0xff]  ;;  %v12871_v47 = vld [vmem:[#allocation14_spill] sm:$0xff] }
 0x2bf   : > { %v3731_v32 = vmax.f32 %v3725_v21, 0.0  ;;  %v3732_v31 = vmax.f32 %v3726_v5, 0.0  ;;  %v9779_v14 = vrot.slane %v5589_v26, %v12870_v3  ;;  %v9782_v60 = vrot.slane %v5589_v26, %v12871_v47  ;;  %v5600_v36 = vld [vmem:[%s5945_s10 + $0x16] ss:$8 sm:$0x3] }
 0x2c0   : > { %v3751_v50 = vadd.f32 %v3745_v42, %v3733_v0  ;;  %v3752_v34 = vadd.f32 %v3746_v20, %v3734_v37  ;;  %v5607_v13 = vld [vmem:[%s5945_s10 + $0x25] ss:$8 sm:$0x3]  ;;  %v9788_v46 = vrot.slane %v5596_v16, %v12870_v3  ;;  %v9791_v54 = vrot.slane %v5596_v16, %v12871_v47  ;;  %v5614_v33 = vld [vmem:[%s5945_s10 + $0x34] ss:$8 sm:$0x3] }
 0x2c1   : > { %v3749_v2 = vadd.f32 %v3743_v12, %v3731_v32  ;;  %v3750_v18 = vadd.f32 %v3744_v61, %v3732_v31  ;;  %v9794_v11 = vrot.slane %v5603_v27, %v12870_v3  ;;  %v9797_v38 = vrot.slane %v5603_v27, %v12871_v47  ;;  %v5631_v1 = vld [vmem:[%s5945_s10 + $0x55] ss:$8 sm:$0x3]  ;;  %v5621_v57 = vld [vmem:[%s5945_s10 + $0x43] ss:$8 sm:$0x3] }
 0x2c2   : > { %v9684_v53 = vsub.f32 %v3751_v50, %v3757_v49  ;;  %v9703_v30 = vsub.f32 %v3752_v34, %v3758_v10  ;;  %v9801_v17 = vrot.slane %v5610_v6, %v12870_v3  ;;  %v9804_v56 = vrot.slane %v5610_v6, %v12871_v47  ;;  %v5628_v19 = vld [vmem:[%s5945_s10 + $0x52] ss:$8 sm:$0x3]  ;;  %v5595_v44 = vld [vmem:[%s5945_s10 + $0x11] ss:$8 sm:$0x3] }
 0x2c3   : > { %v9682_v4 = vsub.f32 %v3749_v2, %v3755_v43  ;;  %v9693_v15 = vsub.f32 %v3750_v18, %v3756_v25  ;;  %v9807_v12 = vrot.slane %v5617_v28, %v12870_v3  ;;  %v9810_v35 = vrot.slane %v5617_v28, %v12871_v47  ;;  %v5588_v18 = vld [vmem:[%s5945_s10 + $0x2] ss:$8 sm:$0x3]  ;;  %v5602_v52 = vld [vmem:[%s5945_s10 + $0x20] ss:$8 sm:$0x3] }
 0x2c4   : > { %3781 = vrot.lane.b32.xlu1 %v9684_v53, %s5708_s19  ;;  %v9814_v21 = vrot.slane %v3965_v8, %v12870_v3  ;;  %v9817_v55 = vrot.slane %v3965_v8, %v12871_v47  ;;  %v9820_v5 = vrot.slane %v5593_v9, %v12870_v3  ;;  %v9823_v58 = vrot.slane %v5593_v9, %v12871_v47  ;;  %v5609_v26 = vld [vmem:[%s5945_s10 + $0x27] ss:$8 sm:$0x3]  ;;  %v5616_v16 = vld [vmem:[%s5945_s10 + $0x36] ss:$8 sm:$0x3] }
 0x2c5   : > { %3779 = vrot.lane.b32.xlu0 %v9682_v4, %s5708_s19  ;;  %v9828_v40 = vrot.slane %v5600_v36, %v12870_v3  ;;  %v9831_v59 = vrot.slane %v5600_v36, %v12871_v47  ;;  %v9834_v61 = vrot.slane %v5607_v13, %v12870_v3  ;;  %v9837_v51 = vrot.slane %v5607_v13, %v12871_v47  ;;  %v5623_v9 = vld [vmem:[%s5945_s10 + $0x45] ss:$8 sm:$0x3] }
 0x2c6   : > { %v9840_v42 = vrot.slane %v5614_v33, %v12870_v3  ;;  %v9843_v7 = vrot.slane %v5614_v33, %v12871_v47  ;;  %v9846_v20 = vrot.slane %v5624_v48, %v12871_v47  ;;  %v9849_v41 = vrot.slane %v5631_v1, %v12871_v47 }
 0x2c7   : > { %v9852_v45 = vrot.slane %v5621_v57, %v12870_v3  ;;  %v9855_v32 = vrot.slane %v5621_v57, %v12871_v47  ;;  %v9858_v31 = vrot.slane %v5628_v19, %v12870_v3  ;;  %v9861_v0 = vrot.slane %v5628_v19, %v12871_v47 }
 0x2c8   : > { %3785 = vrot.lane.b32.xlu1 %v9693_v15, %s5708_s19  ;;  %v9864_v37 = vrot.slane %v5624_v48, %v12870_v3  ;;  %v9867_v43 = vrot.slane %v5631_v1, %v12870_v3  ;;  %v9871_v49 = vmul.f32 %v9782_v60, %v9705_v22  ;;  %v9875_v2 = vmul.f32 %v9791_v54, %v9705_v22  ;;  %v5630_v48 = vld [vmem:[%s5945_s10 + $0x54] ss:$8 sm:$0x3] }
 0x2c9   : > { %3783 = vrot.lane.b32.xlu0 %v9695_v24, %s5708_s19  ;;  %v9880_v50 = vmul.f32 %v9782_v60, %v9693_v15  ;;  %v9884_v34 = vmul.f32 %v9791_v54, %v9693_v15  ;;  %v9888_v29 = vmul.f32 %v9797_v38, %v9693_v15  ;;  %v9892_v25 = vmul.f32 %v9804_v56, %v9693_v15 }
 0x2ca   : > { %12872 = vst [vmem:[#allocation139_spill] sm:$0xff] %v9871_v49  ;;  %12873 = vst [vmem:[#allocation68_spill] sm:$0xff] %v9875_v2  ;;  %v9898_v63 = vmul.f32 %v9810_v35, %v9693_v15  ;;  %v9902_v23 = vmul.f32 %v9846_v20, %v9693_v15  ;;  %v9906_v10 = vmul.f32 %v9849_v41, %v9693_v15 }
 0x2cb   : > { %12874 = vst [vmem:[#allocation69_spill] sm:$0xff] %v9880_v50  ;;  %12875 = vst [vmem:[#allocation70_spill] sm:$0xff] %v9884_v34  ;;  %v9910_v62 = vmul.f32 %v9779_v14, %v9682_v4  ;;  %v9916_v27 = vmul.f32 %v9788_v46, %v9682_v4  ;;  %v9920_v6 = vmul.f32 %v9794_v11, %v9682_v4 }
 0x2cc   : > { %3789 = vrot.lane.b32.xlu1 %v9705_v22, %s5708_s19  ;;  %12876 = vst [vmem:[#allocation71_spill] sm:$0xff] %v9888_v29  ;;  %12877 = vst [vmem:[#allocation104_spill] sm:$0xff] %v9892_v25  ;;  %v9924_v28 = vmul.f32 %v9801_v17, %v9682_v4  ;;  %v9931_v8 = vrot.slane %v5588_v18, %v12870_v3  ;;  %v9937_v36 = vmul.f32 %v9864_v37, %v9682_v4 }
 0x2cd   : > { %3787 = vrot.lane.b32.xlu0 %v9703_v30, %s5708_s19  ;;  %12878 = vst [vmem:[#allocation105_spill] sm:$0xff] %v9898_v63  ;;  %12879 = vst [vmem:[#allocation50_spill] sm:$0xff] %v9902_v23  ;;  %v9941_v13 = vmul.f32 %v9867_v43, %v9682_v4  ;;  %v9945_v33 = vmul.f32 %v9797_v38, %v9705_v22  ;;  %v9948_v1 = vrot.slane %v5588_v18, %v12871_v47 }
 0x2ce   : > { %12880 = vst [vmem:[#allocation108_spill] sm:$0xff] %v9906_v10  ;;  %12881 = vst [vmem:[#allocation117_spill] sm:$0xff] %v9910_v62  ;;  %v9951_v57 = vrot.slane %v5595_v44, %v12870_v3  ;;  %v9954_v19 = vrot.slane %v5595_v44, %v12871_v47  ;;  %v9957_v39 = vrot.slane %v5602_v52, %v12870_v3 }
 0x2cf   : > { %12882 = vst [vmem:[#allocation128_spill] sm:$0xff] %v9916_v27  ;;  %12883 = vst [vmem:[#allocation112_spill] sm:$0xff] %v9920_v6  ;;  %v9960_v2 = vrot.slane %v5602_v52, %v12871_v47  ;;  %v9969_v18 = vrot.slane %v5616_v16, %v12870_v3  ;;  %v9972_v49 = vrot.slane %v5616_v16, %v12871_v47 }
 0x2d0   : > { %3841 = vrot.lane.b32.xlu1 %v9684_v53, %s5709_s20  ;;  %12884 = vst [vmem:[#allocation113_spill] sm:$0xff] %v9924_v28  ;;  %12886 = vst [vmem:[#allocation52_spill] sm:$0xff] %v9937_v36  ;;  %v9975_v44 = vrot.slane %v5623_v9, %v12870_v3  ;;  %v9978_v10 = vrot.slane %v5623_v9, %v12871_v47  ;;  %v9981_v52 = vrot.slane %v5630_v48, %v12870_v3 }
 0x2d1   : > { %3839 = vrot.lane.b32.xlu0 %v9682_v4, %s5709_s20  ;;  %12887 = vst [vmem:[#allocation22_spill] sm:$0xff] %v9941_v13  ;;  %12888 = vst [vmem:[#allocation25_spill] sm:$0xff] %v9945_v33  ;;  %v9966_v33 = vrot.slane %v5609_v26, %v12871_v47  ;;  %v9984_v13 = vrot.slane %v5630_v48, %v12871_v47  ;;  %v9992_v16 = vmul.f32 %v9810_v35, %v9705_v22 }
 0x2d2   : > { %v9996_v9 = vmul.f32 %v9846_v20, %v9705_v22  ;;  %v10000_v23 = vmul.f32 %v9849_v41, %v9705_v22  ;;  %v10004_v48 = vmul.f32 %v9779_v14, %v9695_v24 }
 0x2d3   : > { %12890 = vst [vmem:[#allocation73_spill] sm:$0xff] %v9992_v16  ;;  %v10012_v16 = vmul.f32 %v9794_v11, %v9695_v24 }
 0x2d4   : > { %3845 = vrot.lane.b32.xlu1 %v9693_v15, %s5709_s20  ;;  %12891 = vst [vmem:[#allocation106_spill] sm:$0xff] %v9996_v9  ;;  %12892 = vst [vmem:[#allocation107_spill] sm:$0xff] %v10000_v23  ;;  %v10016_v9 = vmul.f32 %v9801_v17, %v9695_v24  ;;  %v10024_v23 = vmul.f32 %v9864_v37, %v9695_v24 }
 0x2d5   : > { %3843 = vrot.lane.b32.xlu0 %v9695_v24, %s5709_s20  ;;  %12893 = vst [vmem:[#allocation129_spill] sm:$0xff] %v10004_v48  ;;  %12895 = vst [vmem:[#allocation53_spill] sm:$0xff] %v10012_v16  ;;  %v5587_v48 = vld [vmem:[%s5945_s10 + $0x1] ss:$8 sm:$0x3]  ;;  %v10033_v16 = vmul.f32 %v9779_v14, %v9684_v53  ;;  %v10051_v14 = vmul.f32 %v9794_v11, %v9684_v53  ;;  %v10069_v11 = vmul.f32 %v9807_v12, %v9684_v53 }
 0x2d6   : > { %12896 = vst [vmem:[#allocation82_spill] sm:$0xff] %v10016_v9  ;;  %12898 = vst [vmem:[#allocation21_spill] sm:$0xff] %v10024_v23  ;;  %v10037_v9 = vmul.f32 %v9782_v60, %v9703_v30  ;;  %v10045_v23 = vmul.f32 %v9791_v54, %v9703_v30  ;;  %v10055_v60 = vmul.f32 %v9797_v38, %v9703_v30  ;;  %v5608_v54 = vld [vmem:[%s5945_s10 + $0x26] ss:$8 sm:$0x3] }
 0x2d7   : > { %12900 = vst [vmem:[#allocation95_spill] sm:$0xff] %v10033_v16  ;;  %12904 = vst [vmem:[#allocation84_spill] sm:$0xff] %v10051_v14  ;;  %v10073_v38 = vmul.f32 %v9810_v35, %v9703_v30  ;;  %v10093_v35 = vmul.f32 %v9867_v43, %v9684_v53  ;;  %v5625_v16 = vld [vmem:[%s5945_s10 + $0x47] ss:$8 sm:$0x3] }
 0x2d8   : > { %3849 = vrot.lane.b32.xlu1 %v9705_v22, %s5709_s20  ;;  %12901 = vst [vmem:[#allocation96_spill] sm:$0xff] %v10037_v9  ;;  %12903 = vst [vmem:[#allocation83_spill] sm:$0xff] %v10045_v23  ;;  %v5615_v23 = vld [vmem:[%s5945_s10 + $0x35] ss:$8 sm:$0x3] }
 0x2d9   : > { %3847 = vrot.lane.b32.xlu0 %v9703_v30, %s5709_s20  ;;  %12905 = vst [vmem:[#allocation85_spill] sm:$0xff] %v10055_v60  ;;  %12908 = vst [vmem:[#allocation54_spill] sm:$0xff] %v10069_v11  ;;  %v5629_v11 = vld [vmem:[%s5945_s10 + $0x53] ss:$8 sm:$0x3] }
 0x2da   : > { %12909 = vst [vmem:[#allocation98_spill] sm:$0xff] %v10073_v38  ;;  %12914 = vst [vmem:[#allocation27_spill] sm:$0xff] %v10093_v35  ;;  %v10114_v35 = vrot.slane %v5608_v54, %v12870_v3  ;;  %v5611_v38 = vld [vmem:[%s5945_s10 + $0x31] ss:$8 sm:$0x3]  ;;  %v10137_v14 = vrot.slane %v5629_v11, %v12871_v47 }
 0x2db   : > { %v5618_v9 = vld [vmem:[%s5945_s10 + $0x40] ss:$8 sm:$0x3] }
 0x2dc   : > { %3811 = vrot.lane.b32.xlu1 %v9684_v53, %s5710_s26  ;;  %12920 = vst [vmem:[#allocation23_spill] sm:$0xff] %v10114_v35  ;;  %12927 = vst [vmem:[#allocation122_spill] sm:$0xff] %v10137_v14 }
 0x2dd   : > { %3809 = vrot.lane.b32.xlu0 %v9682_v4, %s5710_s26 }
 0x2e0   : > { %3815 = vrot.lane.b32.xlu1 %v9693_v15, %s5710_s26 }
 0x2e1   : > { %3813 = vrot.lane.b32.xlu0 %v9695_v24, %s5710_s26 }
 0x2e4   : > { %3819 = vrot.lane.b32.xlu1 %v9705_v22, %s5710_s26 }
 0x2e5   : > { %3817 = vrot.lane.b32.xlu0 %v9703_v30, %s5710_s26 }
 0x2e8   : > { %3883 = vrot.lane.b32.xlu1 %v9684_v53, %s5711_s27 }
 0x2e9   : > { %3881 = vrot.lane.b32.xlu0 %v9682_v4, %s5711_s27 }
 0x2ec   : > { %3887 = vrot.lane.b32.xlu1 %v9693_v15, %s5711_s27 }
 0x2ed   : > { %3885 = vrot.lane.b32.xlu0 %v9695_v24, %s5711_s27 }
 0x2f0   : > { %3891 = vrot.lane.b32.xlu1 %v9705_v22, %s5711_s27 }
 0x2f1   : > { %3889 = vrot.lane.b32.xlu0 %v9703_v30, %s5711_s27 }
 0x2f4   : > { %3913 = vrot.lane.b32.xlu1 %v9684_v53, %s5712_s7 }
 0x2f5   : > { %3911 = vrot.lane.b32.xlu0 %v9682_v4, %s5712_s7 }
 0x2f8   : > { %3917 = vrot.lane.b32.xlu1 %v9693_v15, %s5712_s7 }
 0x2f9   : > { %3915 = vrot.lane.b32.xlu0 %v9695_v24, %s5712_s7 }
 0x2fc   : > { %3921 = vrot.lane.b32.xlu1 %v9705_v22, %s5712_s7 }
 0x2fd   : > { %3919 = vrot.lane.b32.xlu0 %v9703_v30, %s5712_s7 }
 0x300   : > { %3943 = vrot.lane.b32.xlu1 %v9684_v53, %s5713_s8 }
 0x301   : > { %3941 = vrot.lane.b32.xlu0 %v9682_v4, %s5713_s8 }
 0x304   : > { %3947 = vrot.lane.b32.xlu1 %v9693_v15, %s5713_s8  ;;  %v9928_v15 = vmul.f32 %v9807_v12, %v9682_v4  ;;  %v9963_v4 = vrot.slane %v5609_v26, %v12870_v3  ;;  %v9988_v26 = vmul.f32 %v9804_v56, %v9705_v22 }
 0x305   : > { %3945 = vrot.lane.b32.xlu0 %v9695_v24, %s5713_s8 }
 0x306   : > { %12885 = vst [vmem:[#allocation51_spill] sm:$0xff] %v9928_v15  ;;  %12889 = vst [vmem:[#allocation72_spill] sm:$0xff] %v9988_v26  ;;  %v10008_v26 = vmul.f32 %v9788_v46, %v9695_v24  ;;  %v5632_v15 = vld [vmem:[%s5945_s10 + $0x56] ss:$8 sm:$0x3] }
 0x308   : > { %3951 = vrot.lane.b32.xlu1 %v9705_v22, %s5713_s8  ;;  %12894 = vst [vmem:[#allocation130_spill] sm:$0xff] %v10008_v26  ;;  %v10020_v22 = vmul.f32 %v9807_v12, %v9695_v24  ;;  %v10028_v26 = vmul.f32 %v9867_v43, %v9695_v24  ;;  %v5594_v24 = vld [vmem:[%s5945_s10 + $0x10] ss:$8 sm:$0x3] }
 0x309   : > { %3949 = vrot.lane.b32.xlu0 %v9703_v30, %s5713_s8  ;;  %v5622_v12 = vld [vmem:[%s5945_s10 + $0x44] ss:$8 sm:$0x3]  ;;  %v5597_v43 = vld [vmem:[%s5945_s10 + $0x13] ss:$8 sm:$0x3] }
 0x30a   : > { %12897 = vst [vmem:[#allocation20_spill] sm:$0xff] %v10020_v22  ;;  %12899 = vst [vmem:[#allocation94_spill] sm:$0xff] %v10028_v26  ;;  %v10041_v22 = vmul.f32 %v9788_v46, %v9684_v53  ;;  %v5601_v26 = vld [vmem:[%s5945_s10 + $0x17] ss:$8 sm:$0x3]  ;;  %v10059_v46 = vmul.f32 %v9801_v17, %v9684_v53  ;;  %v10077_v17 = vmul.f32 %v9864_v37, %v9684_v53 }
 0x30b   : > { %v10097_v37 = vmul.f32 %v9849_v41, %v9703_v30  ;;  %v5590_v53 = vld [vmem:[%s5945_s10 + $0x4] ss:$8 sm:$0x3]  ;;  %v10120_v41 = vrot.slane %v5615_v23, %v12870_v3  ;;  %v10131_v60 = vrot.slane %v5622_v12, %v12871_v47  ;;  %v10151_v63 = vrot.slane %v5597_v43, %v12871_v47 }
 0x30c   : > { %12902 = vst [vmem:[#allocation97_spill] sm:$0xff] %v10041_v22  ;;  %12906 = vst [vmem:[#allocation114_spill] sm:$0xff] %v10059_v46  ;;  %v10063_v22 = vmul.f32 %v9804_v56, %v9703_v30  ;;  %v10081_v56 = vmul.f32 %v9846_v20, %v9703_v30  ;;  %v10087_v46 = vrot.slane %v5587_v48, %v12871_v47 }
 0x30d   : > { %12910 = vst [vmem:[#allocation99_spill] sm:$0xff] %v10077_v17  ;;  %12915 = vst [vmem:[#allocation35_spill] sm:$0xff] %v10097_v37  ;;  %v10100_v20 = vrot.slane %v5594_v24, %v12870_v3  ;;  %v10109_v17 = vrot.slane %v5601_v26, %v12871_v47  ;;  %v10117_v30 = vrot.slane %v5608_v54, %v12871_v47  ;;  %v5604_v37 = vld [vmem:[%s5945_s10 + $0x22] ss:$8 sm:$0x3] }
 0x30e   : > { %12907 = vst [vmem:[#allocation115_spill] sm:$0xff] %v10063_v22  ;;  %12911 = vst [vmem:[#allocation26_spill] sm:$0xff] %v10081_v56  ;;  %v10084_v22 = vrot.slane %v5587_v48, %v12870_v3  ;;  %v10103_v56 = vrot.slane %v5594_v24, %v12871_v47  ;;  %v10106_v48 = vrot.slane %v5601_v26, %v12870_v3 }
 0x30f   : > { %12913 = vst [vmem:[#allocation24_spill] sm:$0xff] %v10087_v46  ;;  %12916 = vst [vmem:[#allocation74_spill] sm:$0xff] %v10100_v20  ;;  %v10123_v24 = vrot.slane %v5615_v23, %v12871_v47  ;;  %v10128_v26 = vrot.slane %v5622_v12, %v12870_v3  ;;  %v10134_v54 = vrot.slane %v5629_v11, %v12870_v3 }
 0x310   : > { %12912 = vst [vmem:[#allocation29_spill] sm:$0xff] %v10084_v22  ;;  %12917 = vst [vmem:[#allocation75_spill] sm:$0xff] %v10103_v56  ;;  %v10142_v23 = vrot.slane %v5590_v53, %v12870_v3  ;;  %v10145_v36 = vrot.slane %v5590_v53, %v12871_v47  ;;  %v10148_v12 = vrot.slane %v5597_v43, %v12870_v3 }
 0x311   : > { %12918 = vst [vmem:[#allocation118_spill] sm:$0xff] %v10106_v48  ;;  %12919 = vst [vmem:[#allocation119_spill] sm:$0xff] %v10109_v17  ;;  %v10156_v11 = vrot.slane %v5604_v37, %v12870_v3  ;;  %v10159_v14 = vrot.slane %v5604_v37, %v12871_v47  ;;  %v10162_v53 = vrot.slane %v5611_v38, %v12870_v3 }
 0x312   : > { %12921 = vst [vmem:[#allocation39_spill] sm:$0xff] %v10117_v30  ;;  %12922 = vst [vmem:[#allocation28_spill] sm:$0xff] %v10120_v41  ;;  %v10170_v43 = vrot.slane %v5618_v9, %v12870_v3  ;;  %v10176_v37 = vrot.slane %v5625_v16, %v12870_v3 }
 0x313   : > { %12923 = vst [vmem:[#allocation41_spill] sm:$0xff] %v10123_v24  ;;  %12924 = vst [vmem:[#allocation111_spill] sm:$0xff] %v10128_v26  ;;  %v5627_v24 = vld [vmem:[%s5945_s10 + $0x51] ss:$8 sm:$0x3] }
 0x314   : > { %12925 = vst [vmem:[#allocation78_spill] sm:$0xff] %v10131_v60  ;;  %12926 = vst [vmem:[#allocation79_spill] sm:$0xff] %v10134_v54  ;;  %v5591_v54 = vld [vmem:[%s5945_s10 + $0x5] ss:$8 sm:$0x3] }
 0x315   : > { %12928 = vst [vmem:[#allocation123_spill] sm:$0xff] %v10142_v23  ;;  %12929 = vst [vmem:[#allocation80_spill] sm:$0xff] %v10145_v36  ;;  %v10165_v36 = vrot.slane %v5611_v38, %v12871_v47  ;;  %v5605_v23 = vld [vmem:[%s5945_s10 + $0x23] ss:$8 sm:$0x3]  ;;  %v10184_v38 = vrot.slane %v5632_v15, %v12870_v3 }
 0x316   : > { %12930 = vst [vmem:[#allocation30_spill] sm:$0xff] %v10148_v12  ;;  %12931 = vst [vmem:[#allocation36_spill] sm:$0xff] %v10151_v63  ;;  %v5598_v12 = vld [vmem:[%s5945_s10 + $0x14] ss:$8 sm:$0x3]  ;;  %v10173_v63 = vrot.slane %v5618_v9, %v12871_v47  ;;  %v10193_v9 = vrot.slane %v5591_v54, %v12871_v47 }
 0x317   : > { %12932 = vst [vmem:[#allocation33_spill] sm:$0xff] %v10156_v11  ;;  %12933 = vst [vmem:[#allocation37_spill] sm:$0xff] %v10159_v14  ;;  %v10179_v14 = vrot.slane %v5625_v16, %v12871_v47  ;;  %v5619_v11 = vld [vmem:[%s5945_s10 + $0x41] ss:$8 sm:$0x3]  ;;  %v10198_v16 = vrot.slane %v5598_v12, %v12870_v3 }
 0x318   : > { %12934 = vst [vmem:[#allocation31_spill] sm:$0xff] %v10162_v53  ;;  %12935 = vst [vmem:[#allocation64_spill] sm:$0xff] %v10165_v36  ;;  %v5612_v53 = vld [vmem:[%s5945_s10 + $0x32] ss:$8 sm:$0x3]  ;;  %v10187_v36 = vrot.slane %v5632_v15, %v12871_v47  ;;  %v10207_v15 = vrot.slane %v5605_v23, %v12871_v47 }
 0x319   : > { %12936 = vst [vmem:[#allocation65_spill] sm:$0xff] %v10170_v43  ;;  %12937 = vst [vmem:[#allocation66_spill] sm:$0xff] %v10173_v63  ;;  %v10190_v43 = vrot.slane %v5591_v54, %v12870_v3  ;;  %v5633_v63 = vld [vmem:[%s5945_s10 + $0x57] ss:$8 sm:$0x3]  ;;  %v10214_v60 = vrot.slane %v5612_v53, %v12870_v3 }
 0x31a   : > { %12938 = vst [vmem:[#allocation67_spill] sm:$0xff] %v10176_v37  ;;  %12939 = vst [vmem:[#allocation140_spill] sm:$0xff] %v10179_v14  ;;  %v5626_v37 = vld [vmem:[%s5945_s10 + $0x50] ss:$8 sm:$0x3]  ;;  %v10201_v14 = vrot.slane %v5598_v12, %v12871_v47  ;;  %v10217_v12 = vrot.slane %v5612_v53, %v12871_v47  ;;  %v10237_v53 = vrot.slane %v5633_v63, %v12871_v47 }
 0x31b   : > { %12940 = vst [vmem:[#allocation81_spill] sm:$0xff] %v10184_v38  ;;  %12941 = vst [vmem:[#allocation38_spill] sm:$0xff] %v10187_v36  ;;  %v10204_v38 = vrot.slane %v5605_v23, %v12870_v3  ;;  %v5599_v54 = vld [vmem:[%s5945_s10 + $0x15] ss:$8 sm:$0x3]  ;;  %v10231_v26 = vrot.slane %v5626_v37, %v12871_v47 }
 0x31c   : > { %12942 = vst [vmem:[#allocation32_spill] sm:$0xff] %v10190_v43  ;;  %12943 = vst [vmem:[#allocation40_spill] sm:$0xff] %v10193_v9  ;;  %v5592_v43 = vld [vmem:[%s5945_s10 + $0x6] ss:$8 sm:$0x3] }
 0x31d   : > { %12944 = vst [vmem:[#allocation34_spill] sm:$0xff] %v10198_v16  ;;  %12945 = vst [vmem:[#allocation44_spill] sm:$0xff] %v10201_v14  ;;  %v10220_v14 = vrot.slane %v5619_v11, %v12870_v3  ;;  %v5606_v23 = vld [vmem:[%s5945_s10 + $0x24] ss:$8 sm:$0x3]  ;;  %v10228_v16 = vrot.slane %v5626_v37, %v12870_v3  ;;  %v10251_v37 = vrot.slane %v5599_v54, %v12871_v47 }
 0x31e   : > { %12946 = vst [vmem:[#allocation48_spill] sm:$0xff] %v10204_v38  ;;  %12947 = vst [vmem:[#allocation42_spill] sm:$0xff] %v10207_v15  ;;  %v10223_v38 = vrot.slane %v5619_v11, %v12871_v47  ;;  %v5613_v15 = vld [vmem:[%s5945_s10 + $0x33] ss:$8 sm:$0x3]  ;;  %v10245_v11 = vrot.slane %v5592_v43, %v12871_v47 }
 0x31f   : > { %12948 = vst [vmem:[#allocation43_spill] sm:$0xff] %v10214_v60  ;;  %12949 = vst [vmem:[#allocation45_spill] sm:$0xff] %v10217_v12  ;;  %v10234_v60 = vrot.slane %v5633_v63, %v12870_v3  ;;  %v5620_v12 = vld [vmem:[%s5945_s10 + $0x42] ss:$8 sm:$0x3]  ;;  %v10258_v63 = vrot.slane %v5606_v23, %v12871_v47 }
 0x320   : > { %12950 = vst [vmem:[#allocation100_spill] sm:$0xff] %v10220_v14  ;;  %12951 = vst [vmem:[#allocation101_spill] sm:$0xff] %v10223_v38  ;;  %v10242_v14 = vrot.slane %v5592_v43, %v12870_v3  ;;  %v10248_v38 = vrot.slane %v5599_v54, %v12870_v3  ;;  %v10270_v54 = vrot.slane %v5620_v12, %v12871_v47 }
 0x321   : > { %12952 = vst [vmem:[#allocation102_spill] sm:$0xff] %v10228_v16  ;;  %12953 = vst [vmem:[#allocation103_spill] sm:$0xff] %v10231_v26  ;;  %v5634_v26 = vld [vmem:[%s5945_s10 + $0x60] ss:$8 sm:$0x3] }
 0x322   : > { %12954 = vst [vmem:[#allocation46_spill] sm:$0xff] %v10234_v60  ;;  %12955 = vst [vmem:[#allocation47_spill] sm:$0xff] %v10237_v53  ;;  %v10255_v60 = vrot.slane %v5606_v23, %v12870_v3  ;;  %v10261_v53 = vrot.slane %v5613_v15, %v12870_v3  ;;  %v10276_v23 = vrot.slane %v5627_v24, %v12871_v47 }
 0x323   : > { %12956 = vst [vmem:[#allocation49_spill] sm:$0xff] %v10242_v14  ;;  %12957 = vst [vmem:[#allocation124_spill] sm:$0xff] %v10245_v11  ;;  %v10264_v14 = vrot.slane %v5613_v15, %v12871_v47 }
 0x324   : > { %12958 = vst [vmem:[#allocation109_spill] sm:$0xff] %v10248_v38  ;;  %12959 = vst [vmem:[#allocation110_spill] sm:$0xff] %v10251_v37  ;;  %v10267_v38 = vrot.slane %v5620_v12, %v12870_v3  ;;  %v10273_v37 = vrot.slane %v5627_v24, %v12870_v3 }
 0x325   : > { %12960 = vst [vmem:[#allocation76_spill] sm:$0xff] %v10255_v60  ;;  %12961 = vst [vmem:[#allocation77_spill] sm:$0xff] %v10258_v63 }
 0x326   : > { %12962 = vst [vmem:[#allocation125_spill] sm:$0xff] %v10261_v53  ;;  %12963 = vst [vmem:[#allocation126_spill] sm:$0xff] %v10264_v14  ;;  %v10283_v14 = vrot.slane %v5634_v26, %v12870_v3 }
 0x327   : > { %12964 = vst [vmem:[#allocation55_spill] sm:$0xff] %v10267_v38  ;;  %12965 = vst [vmem:[#allocation56_spill] sm:$0xff] %v10270_v54  ;;  %v10286_v38 = vrot.slane %v5634_v26, %v12871_v47 }
 0x328   : > { %12966 = vst [vmem:[#allocation120_spill] sm:$0xff] %v10273_v37  ;;  %12967 = vst [vmem:[#allocation121_spill] sm:$0xff] %v10276_v23 }
 0x329   : > { %12969 = vst [vmem:[#allocation141_spill] sm:$0xff] %v10283_v14  ;;  %12970 = vst [vmem:[#allocation142_spill] sm:$0xff] %v10286_v38 }
 0x336   : > { %v10211_v9 = vpop.permute.xlu1 %3781 }
 0x337   : > { %v3780_v36 = vpop.permute.xlu0 %3779 }
 0x33a   : > { %v3786_v43 = vpop.permute.xlu1 %3785 }
 0x33b   : > { %v3784_v11 = vpop.permute.xlu0 %3783  ;;  %v3791_v53 = vsel %vm585_vm0, %v3780_v36, %v3786_v43  ;;  %v3794_v15 = vsel %vm585_vm0, %v3786_v43, %v3780_v36 }
 0x33c   : > { %v3983_v12 = vmul.f32 %v9814_v21, %v3794_v15  ;;  %v3984_v54 = vmul.f32 %v9817_v55, %v3791_v53  ;;  %v4193_v37 = vmul.f32 %v9820_v5, %v3794_v15  ;;  %v4194_v24 = vmul.f32 %v9823_v58, %v3791_v53 }
 0x33d   : > { %v4367_v23 = vmul.f32 %v9828_v40, %v3794_v15  ;;  %v4368_v60 = vmul.f32 %v9831_v59, %v3791_v53  ;;  %v4547_v36 = vmul.f32 %v9834_v61, %v3794_v15  ;;  %v4548_v3 = vmul.f32 %v9837_v51, %v3791_v53 }
 0x33e   : > { %v10297_v43 = vmul.f32 %v9840_v42, %v3794_v15  ;;  %v10300_v47 = vmul.f32 %v9843_v7, %v3791_v53  ;;  %v10303_v26 = vmul.f32 %v9852_v45, %v3794_v15  ;;  %v10306_v38 = vmul.f32 %v9855_v32, %v3791_v53  ;;  %v3790_v14 = vpop.permute.xlu1 %3789 }
 0x33f   : > { %v10309_v16 = vmul.f32 %v9858_v31, %v3794_v15  ;;  %v10312_v41 = vmul.f32 %v9861_v0, %v3791_v53  ;;  %v3793_v25 = vsel %vm585_vm0, %v3784_v11, %v3790_v14  ;;  %v3796_v28 = vsel %vm585_vm0, %v3790_v14, %v3784_v11  ;;  %v3788_v53 = vpop.permute.xlu0 %3787 }
 0x340   : > { %v10319_v29 = vmul.f32 %v9814_v21, %v3796_v28  ;;  %v10322_v6 = vmul.f32 %v9817_v55, %v3793_v25  ;;  %v10325_v34 = vmul.f32 %v9820_v5, %v3796_v28  ;;  %v10328_v15 = vmul.f32 %v9823_v58, %v3793_v25 }
 0x341   : > { %v10331_v27 = vmul.f32 %v9828_v40, %v3796_v28  ;;  %v10334_v30 = vmul.f32 %v9831_v59, %v3793_v25  ;;  %v10337_v14 = vmul.f32 %v9834_v61, %v3796_v28  ;;  %v10340_v11 = vmul.f32 %v9837_v51, %v3793_v25 }
 0x342   : > { %v10343_v35 = vmul.f32 %v9840_v42, %v3796_v28  ;;  %v10346_v50 = vmul.f32 %v9843_v7, %v3793_v25  ;;  %v10349_v62 = vmul.f32 %v9852_v45, %v3796_v28  ;;  %v10352_v17 = vmul.f32 %v9855_v32, %v3793_v25  ;;  %v10354_v48 = vpop.permute.xlu1 %3841 }
 0x343   : > { %v10357_v56 = vmul.f32 %v9858_v31, %v3796_v28  ;;  %v10360_v20 = vmul.f32 %v9861_v0, %v3793_v25  ;;  %v3792_v46 = vsel %vm585_vm0, %v10211_v9, %v3788_v53  ;;  %v3795_v22 = vsel %vm585_vm0, %v3788_v53, %v10211_v9 }
 0x344   : > { %12971 = vst [vmem:[#allocation57_spill] sm:$0xff] %v10349_v62  ;;  %12972 = vst [vmem:[#allocation58_spill] sm:$0xff] %v10352_v17  ;;  %v10369_v62 = vmul.f32 %v9814_v21, %v3795_v22  ;;  %v10372_v17 = vmul.f32 %v9817_v55, %v3792_v46  ;;  %v10375_v28 = vmul.f32 %v9820_v5, %v3795_v22 }
 0x345   : > { %12973 = vst [vmem:[#allocation143_spill] sm:$0xff] %v10357_v56  ;;  %12974 = vst [vmem:[#allocation144_spill] sm:$0xff] %v10360_v20  ;;  %v10378_v25 = vmul.f32 %v9823_v58, %v3792_v46  ;;  %v10381_v20 = vmul.f32 %v9828_v40, %v3795_v22  ;;  %v10384_v56 = vmul.f32 %v9831_v59, %v3792_v46  ;;  %v3840_v59 = vpop.permute.xlu0 %3839 }
 0x346   : > { %v10387_v9 = vmul.f32 %v9834_v61, %v3795_v22  ;;  %v10390_v21 = vmul.f32 %v9837_v51, %v3792_v46  ;;  %v10393_v55 = vmul.f32 %v9840_v42, %v3795_v22  ;;  %v10396_v5 = vmul.f32 %v9843_v7, %v3792_v46  ;;  %v3846_v53 = vpop.permute.xlu1 %3845 }
 0x347   : > { %12975 = vst [vmem:[#allocation59_spill] sm:$0xff] %v10381_v20  ;;  %12976 = vst [vmem:[#allocation60_spill] sm:$0xff] %v10384_v56  ;;  %v10399_v58 = vmul.f32 %v9852_v45, %v3795_v22  ;;  %v10402_v40 = vmul.f32 %v9855_v32, %v3792_v46  ;;  %v10405_v61 = vmul.f32 %v9858_v31, %v3795_v22 }
 0x348   : > { %12977 = vst [vmem:[#allocation127_spill] sm:$0xff] %v10387_v9  ;;  %12978 = vst [vmem:[#allocation131_spill] sm:$0xff] %v10390_v21  ;;  %v10408_v51 = vmul.f32 %v9861_v0, %v3792_v46  ;;  %v3851_v42 = vsel %vm648_vm1, %v3840_v59, %v3846_v53  ;;  %v3854_v7 = vsel %vm648_vm1, %v3846_v53, %v3840_v59 }
 0x349   : > { %12979 = vst [vmem:[#allocation61_spill] sm:$0xff] %v10393_v55  ;;  %12980 = vst [vmem:[#allocation116_spill] sm:$0xff] %v10396_v5  ;;  %v4031_v45 = vmul.f32 %v9931_v8, %v3854_v7  ;;  %v4229_v32 = vmul.f32 %v9951_v57, %v3854_v7  ;;  %v4403_v31 = vmul.f32 %v9957_v39, %v3854_v7 }
 0x34a   : > { %12981 = vst [vmem:[#allocation132_spill] sm:$0xff] %v10399_v58  ;;  %12982 = vst [vmem:[#allocation133_spill] sm:$0xff] %v10402_v40  ;;  %v4032_v58 = vmul.f32 %v9948_v1, %v3851_v42  ;;  %v4230_v40 = vmul.f32 %v9954_v19, %v3851_v42  ;;  %v4404_v22 = vmul.f32 %v9960_v2, %v3851_v42  ;;  %v3850_v5 = vpop.permute.xlu1 %3849 }
 0x34b   : > { %12983 = vst [vmem:[#allocation62_spill] sm:$0xff] %v10405_v61  ;;  %12984 = vst [vmem:[#allocation63_spill] sm:$0xff] %v10408_v51  ;;  %v4583_v0 = vmul.f32 %v9963_v4, %v3854_v7  ;;  %v4584_v46 = vmul.f32 %v9966_v33, %v3851_v42  ;;  %v10422_v51 = vadd.f32 %v4031_v45, %v3983_v12 }
 0x34c   : > { %v10424_v61 = vadd.f32 %v4032_v58, %v3984_v54  ;;  %v10426_v59 = vadd.f32 %v4229_v32, %v4193_v37  ;;  %v10428_v53 = vadd.f32 %v4230_v40, %v4194_v24  ;;  %v10430_v55 = vadd.f32 %v4403_v31, %v4367_v23  ;;  %v3844_v58 = vpop.permute.xlu0 %3843 }
 0x34d   : > { %v10432_v21 = vadd.f32 %v4404_v22, %v4368_v60  ;;  %v10434_v9 = vadd.f32 %v4583_v0, %v4547_v36  ;;  %v10436_v56 = vadd.f32 %v4584_v46, %v4548_v3  ;;  %v4751_v20 = vmul.f32 %v9969_v18, %v3854_v7 }
 0x34e   : > { %v4752_v12 = vmul.f32 %v9972_v49, %v3851_v42  ;;  %v4931_v54 = vmul.f32 %v9975_v44, %v3854_v7  ;;  %v4932_v37 = vmul.f32 %v9978_v10, %v3851_v42  ;;  %v5111_v24 = vmul.f32 %v9981_v52, %v3854_v7 }
 0x34f   : > { %v5112_v23 = vmul.f32 %v9984_v13, %v3851_v42  ;;  %v3853_v60 = vsel %vm648_vm1, %v3844_v58, %v3850_v5  ;;  %v3856_v36 = vsel %vm648_vm1, %v3850_v5, %v3844_v58  ;;  %v10449_v3 = vadd.f32 %v4751_v20, %v10297_v43 }
 0x350   : > { %v10452_v40 = vadd.f32 %v4752_v12, %v10300_v47  ;;  %v10455_v45 = vadd.f32 %v4931_v54, %v10303_v26  ;;  %v10458_v32 = vadd.f32 %v4932_v37, %v10306_v38  ;;  %v10461_v42 = vadd.f32 %v5111_v24, %v10309_v16  ;;  %v10500_v24 = vpop.permute.xlu1 %3811 }
 0x351   : > { %v10464_v7 = vadd.f32 %v5112_v23, %v10312_v41  ;;  %v4035_v5 = vmul.f32 %v9931_v8, %v3856_v36  ;;  %v4036_v20 = vmul.f32 %v9948_v1, %v3853_v60  ;;  %v4233_v43 = vmul.f32 %v9951_v57, %v3856_v36 }
 0x352   : > { %v4234_v47 = vmul.f32 %v9954_v19, %v3853_v60  ;;  %v4407_v26 = vmul.f32 %v9957_v39, %v3856_v36  ;;  %v4408_v31 = vmul.f32 %v9960_v2, %v3853_v60  ;;  %v4587_v41 = vmul.f32 %v9963_v4, %v3856_v36 }
 0x353   : > { %v10473_v38 = vadd.f32 %v4035_v5, %v10319_v29  ;;  %v10476_v16 = vadd.f32 %v4036_v20, %v10322_v6  ;;  %v4588_v22 = vmul.f32 %v9966_v33, %v3853_v60  ;;  %v10481_v0 = vadd.f32 %v4233_v43, %v10325_v34  ;;  %v3848_v29 = vpop.permute.xlu0 %3847  ;;  %v12986_v43 = vld [vmem:[#allocation57_spill] sm:$0xff] }
 0x354   : > { %v10484_v46 = vadd.f32 %v4234_v47, %v10328_v15  ;;  %v10487_v12 = vadd.f32 %v4407_v26, %v10331_v27  ;;  %v10490_v54 = vadd.f32 %v4408_v31, %v10334_v30  ;;  %v10493_v6 = vadd.f32 %v4587_v41, %v10337_v14  ;;  %v12992_v31 = vld [vmem:[#allocation144_spill] sm:$0xff] }
 0x355   : > { %v10496_v37 = vadd.f32 %v4588_v22, %v10340_v11  ;;  %v4755_v58 = vmul.f32 %v9969_v18, %v3856_v36  ;;  %v4756_v34 = vmul.f32 %v9972_v49, %v3853_v60  ;;  %v4935_v15 = vmul.f32 %v9975_v44, %v3856_v36 }
 0x356   : > { %v4936_v27 = vmul.f32 %v9978_v10, %v3853_v60  ;;  %v5115_v30 = vmul.f32 %v9981_v52, %v3856_v36  ;;  %v5116_v23 = vmul.f32 %v9984_v13, %v3853_v60  ;;  %v3852_v5 = vsel %vm648_vm1, %v10354_v48, %v3848_v29  ;;  %v12988_v36 = vld [vmem:[#allocation58_spill] sm:$0xff]  ;;  %v12990_v60 = vld [vmem:[#allocation143_spill] sm:$0xff] }
 0x357   : > { %v10507_v14 = vadd.f32 %v4755_v58, %v10343_v35  ;;  %v10510_v11 = vadd.f32 %v4756_v34, %v10346_v50  ;;  %v3855_v20 = vsel %vm648_vm1, %v3848_v29, %v10354_v48  ;;  %v10519_v47 = vadd.f32 %v4935_v15, %v12986_v43 }
 0x358   : > { %v10522_v26 = vadd.f32 %v4936_v27, %v12988_v36  ;;  %v10525_v35 = vadd.f32 %v5115_v30, %v12990_v60  ;;  %v10528_v50 = vadd.f32 %v5116_v23, %v12992_v31  ;;  %v4033_v41 = vmul.f32 %v9931_v8, %v3855_v20  ;;  %v3810_v31 = vpop.permute.xlu0 %3809 }
 0x359   : > { %12985 = vst [vmem:[#allocation134_spill] sm:$0xff] %v10510_v11  ;;  %12987 = vst [vmem:[#allocation135_spill] sm:$0xff] %v10519_v47  ;;  %v4034_v22 = vmul.f32 %v9948_v1, %v3852_v5  ;;  %v4231_v58 = vmul.f32 %v9951_v57, %v3855_v20  ;;  %v4232_v48 = vmul.f32 %v9954_v19, %v3852_v5  ;;  %v3816_v57 = vpop.permute.xlu1 %3815  ;;  %v13069_v47 = vld [vmem:[#allocation82_spill] sm:$0xff] }
 0x35a   : > { %12989 = vst [vmem:[#allocation138_spill] sm:$0xff] %v10522_v26  ;;  %12991 = vst [vmem:[#allocation136_spill] sm:$0xff] %v10525_v35  ;;  %v4405_v29 = vmul.f32 %v9957_v39, %v3855_v20  ;;  %v4406_v34 = vmul.f32 %v9960_v2, %v3852_v5  ;;  %v4585_v15 = vmul.f32 %v9963_v4, %v3855_v20  ;;  %v12998_v39 = vld [vmem:[#allocation59_spill] sm:$0xff]  ;;  %v13000_v2 = vld [vmem:[#allocation60_spill] sm:$0xff] }
 0x35b   : > { %12993 = vst [vmem:[#allocation137_spill] sm:$0xff] %v10528_v50  ;;  %v4586_v27 = vmul.f32 %v9966_v33, %v3852_v5  ;;  %v10539_v30 = vadd.f32 %v4033_v41, %v10369_v62  ;;  %v10542_v23 = vadd.f32 %v4034_v22, %v10372_v17  ;;  %v10545_v8 = vadd.f32 %v4231_v58, %v10375_v28  ;;  %v13002_v33 = vld [vmem:[#allocation127_spill] sm:$0xff]  ;;  %v13067_v35 = vld [vmem:[#allocation25_spill] sm:$0xff] }
 0x35c   : > { %v10548_v1 = vadd.f32 %v4232_v48, %v10378_v25  ;;  %v10551_v19 = vadd.f32 %v4405_v29, %v12998_v39  ;;  %v10554_v4 = vadd.f32 %v4406_v34, %v13000_v2  ;;  %v10557_v43 = vadd.f32 %v4585_v15, %v13002_v33  ;;  %v13004_v62 = vld [vmem:[#allocation131_spill] sm:$0xff]  ;;  %v13006_v29 = vld [vmem:[#allocation61_spill] sm:$0xff]  ;;  %v13019_v2 = vld [vmem:[#allocation24_spill] sm:$0xff] }
 0x35d   : > { %12994 = vst [vmem:[#allocation86_spill] sm:$0xff] %v10539_v30  ;;  %12995 = vst [vmem:[#allocation93_spill] sm:$0xff] %v10542_v23  ;;  %v10560_v36 = vadd.f32 %v4586_v27, %v13004_v62  ;;  %v4753_v17 = vmul.f32 %v9969_v18, %v3855_v20  ;;  %v4754_v28 = vmul.f32 %v9972_v49, %v3852_v5  ;;  %v13008_v18 = vld [vmem:[#allocation116_spill] sm:$0xff]  ;;  %v13018_v39 = vld [vmem:[#allocation29_spill] sm:$0xff] }
 0x35e   : > { %12996 = vst [vmem:[#allocation16_spill] sm:$0xff] %v10545_v8  ;;  %12997 = vst [vmem:[#allocation87_spill] sm:$0xff] %v10548_v1  ;;  %v4933_v25 = vmul.f32 %v9975_v44, %v3855_v20  ;;  %v4934_v60 = vmul.f32 %v9978_v10, %v3852_v5  ;;  %v5113_v41 = vmul.f32 %v9981_v52, %v3855_v20  ;;  %v13010_v44 = vld [vmem:[#allocation132_spill] sm:$0xff]  ;;  %v13012_v10 = vld [vmem:[#allocation133_spill] sm:$0xff] }
 0x35f   : > { %12999 = vst [vmem:[#allocation88_spill] sm:$0xff] %v10551_v19  ;;  %13001 = vst [vmem:[#allocation89_spill] sm:$0xff] %v10554_v4  ;;  %v5114_v22 = vmul.f32 %v9984_v13, %v3852_v5  ;;  %v3821_v58 = vsel %vm616_vm2, %v3810_v31, %v3816_v57  ;;  %v3824_v48 = vsel %vm616_vm2, %v3816_v57, %v3810_v31  ;;  %v13014_v52 = vld [vmem:[#allocation62_spill] sm:$0xff]  ;;  %v13016_v5 = vld [vmem:[#allocation63_spill] sm:$0xff] }
 0x360   : > { %13003 = vst [vmem:[#allocation91_spill] sm:$0xff] %v10557_v43  ;;  %13005 = vst [vmem:[#allocation92_spill] sm:$0xff] %v10560_v36  ;;  %v10573_v34 = vadd.f32 %v4753_v17, %v13006_v29  ;;  %v10576_v49 = vadd.f32 %v4754_v28, %v13008_v18  ;;  %v10579_v15 = vadd.f32 %v4933_v25, %v13010_v44  ;;  %v13020_v62 = vld [vmem:[#allocation74_spill] sm:$0xff]  ;;  %v13021_v28 = vld [vmem:[#allocation75_spill] sm:$0xff] }
 0x361   : > { %v10582_v27 = vadd.f32 %v4934_v60, %v13012_v10  ;;  %v10585_v13 = vadd.f32 %v5113_v41, %v13014_v52  ;;  %v10588_v20 = vadd.f32 %v5114_v22, %v13016_v5  ;;  %v4007_v57 = vmul.f32 %v13018_v39, %v3824_v48  ;;  %v13022_v29 = vld [vmem:[#allocation118_spill] sm:$0xff]  ;;  %v13023_v18 = vld [vmem:[#allocation119_spill] sm:$0xff]  ;;  %v13024_v60 = vld [vmem:[#allocation117_spill] sm:$0xff] }
 0x362   : > { %13007 = vst [vmem:[#allocation17_spill] sm:$0xff] %v10573_v34  ;;  %13009 = vst [vmem:[#allocation18_spill] sm:$0xff] %v10576_v49  ;;  %v4008_v33 = vmul.f32 %v13019_v2, %v3821_v58  ;;  %v4211_v17 = vmul.f32 %v13020_v62, %v3824_v48  ;;  %v4212_v31 = vmul.f32 %v13021_v28, %v3821_v58  ;;  %v13026_v41 = vld [vmem:[#allocation69_spill] sm:$0xff]  ;;  %v13028_v22 = vld [vmem:[#allocation23_spill] sm:$0xff] }
 0x363   : > { %13011 = vst [vmem:[#allocation90_spill] sm:$0xff] %v10579_v15  ;;  %13013 = vst [vmem:[#allocation19_spill] sm:$0xff] %v10582_v27  ;;  %v4385_v25 = vmul.f32 %v13022_v29, %v3824_v48  ;;  %v4386_v44 = vmul.f32 %v13023_v18, %v3821_v58  ;;  %v10597_v10 = vadd.f32 %v13024_v60, %v4007_v57  ;;  %v13030_v27 = vld [vmem:[#allocation128_spill] sm:$0xff]  ;;  %v13032_v49 = vld [vmem:[#allocation70_spill] sm:$0xff]  ;;  %v3820_v57 = vpop.permute.xlu1 %3819 }
 0x364   : > { %13015 = vst [vmem:[#allocation13_spill] sm:$0xff] %v10585_v13  ;;  %13017 = vst [vmem:[#allocation14_spill] sm:$0xff] %v10588_v20  ;;  %v10600_v52 = vadd.f32 %v13026_v41, %v4008_v33  ;;  %v4565_v5 = vmul.f32 %v13028_v22, %v3824_v48  ;;  %v13029_v20 = vld [vmem:[#allocation39_spill] sm:$0xff]  ;;  %v10605_v15 = vadd.f32 %v13030_v27, %v4211_v17  ;;  %v13034_v36 = vld [vmem:[#allocation112_spill] sm:$0xff] }
 0x365   : > { %13025 = vst [vmem:[#allocation15_spill] sm:$0xff] %v10597_v10  ;;  %v4566_v13 = vmul.f32 %v13029_v20, %v3821_v58  ;;  %v10608_v34 = vadd.f32 %v13032_v49, %v4212_v31  ;;  %v10611_v43 = vadd.f32 %v13034_v36, %v4385_v25  ;;  %v13036_v4 = vld [vmem:[#allocation71_spill] sm:$0xff]  ;;  %v13038_v60 = vld [vmem:[#allocation113_spill] sm:$0xff]  ;;  %v13040_v41 = vld [vmem:[#allocation104_spill] sm:$0xff] }
 0x366   : > { %13027 = vst [vmem:[#allocation57_spill] sm:$0xff] %v10600_v52  ;;  %13031 = vst [vmem:[#allocation58_spill] sm:$0xff] %v10605_v15  ;;  %v10614_v19 = vadd.f32 %v13036_v4, %v4386_v44  ;;  %v10617_v33 = vadd.f32 %v13038_v60, %v4565_v5  ;;  %v13042_v10 = vld [vmem:[#allocation28_spill] sm:$0xff]  ;;  %v13043_v27 = vld [vmem:[#allocation41_spill] sm:$0xff]  ;;  %v3814_v15 = vpop.permute.xlu0 %3813 }
 0x367   : > { %13033 = vst [vmem:[#allocation143_spill] sm:$0xff] %v10608_v34  ;;  %13035 = vst [vmem:[#allocation144_spill] sm:$0xff] %v10611_v43  ;;  %v10620_v52 = vadd.f32 %v13040_v41, %v4566_v13  ;;  %v4733_v1 = vmul.f32 %v13042_v10, %v3824_v48  ;;  %v4734_v17 = vmul.f32 %v13043_v27, %v3821_v58  ;;  %v13044_v49 = vld [vmem:[#allocation111_spill] sm:$0xff]  ;;  %v13045_v34 = vld [vmem:[#allocation78_spill] sm:$0xff] }
 0x368   : > { %13037 = vst [vmem:[#allocation59_spill] sm:$0xff] %v10614_v19  ;;  %13039 = vst [vmem:[#allocation60_spill] sm:$0xff] %v10617_v33  ;;  %v4913_v31 = vmul.f32 %v13044_v49, %v3824_v48  ;;  %v4914_v36 = vmul.f32 %v13045_v34, %v3821_v58  ;;  %v13046_v25 = vld [vmem:[#allocation79_spill] sm:$0xff]  ;;  %v13047_v4 = vld [vmem:[#allocation122_spill] sm:$0xff]  ;;  %v3823_v13 = vsel %vm616_vm2, %v3814_v15, %v3820_v57 }
 0x369   : > { %13041 = vst [vmem:[#allocation127_spill] sm:$0xff] %v10620_v52  ;;  %v5093_v43 = vmul.f32 %v13046_v25, %v3824_v48  ;;  %v5094_v44 = vmul.f32 %v13047_v4, %v3821_v58  ;;  %v13048_v19 = vld [vmem:[#allocation51_spill] sm:$0xff]  ;;  %v13050_v5 = vld [vmem:[#allocation105_spill] sm:$0xff]  ;;  %v3826_v41 = vsel %vm616_vm2, %v3820_v57, %v3814_v15  ;;  %v13052_v52 = vld [vmem:[#allocation52_spill] sm:$0xff]  ;;  %v4216_v15 = vmul.f32 %v13021_v28, %v3823_v13 }
 0x36a   : > { %v10629_v8 = vadd.f32 %v13048_v19, %v4733_v1  ;;  %v10632_v60 = vadd.f32 %v13050_v5, %v4734_v17  ;;  %v10639_v33 = vadd.f32 %v13052_v52, %v4913_v31  ;;  %v13054_v23 = vld [vmem:[#allocation50_spill] sm:$0xff]  ;;  %v13058_v1 = vld [vmem:[#allocation108_spill] sm:$0xff]  ;;  %v4011_v17 = vmul.f32 %v13018_v39, %v3826_v41  ;;  %v13060_v31 = vld [vmem:[#allocation129_spill] sm:$0xff] }
 0x36b   : > { %v10642_v30 = vadd.f32 %v13054_v23, %v4914_v36  ;;  %v13056_v48 = vld [vmem:[#allocation22_spill] sm:$0xff]  ;;  %v10648_v19 = vadd.f32 %v13058_v1, %v5094_v44  ;;  %v4012_v5 = vmul.f32 %v13019_v2, %v3823_v13  ;;  %v4389_v52 = vmul.f32 %v13022_v29, %v3826_v41  ;;  %v13061_v44 = vld [vmem:[#allocation139_spill] sm:$0xff] }
 0x36c   : > { %13049 = vst [vmem:[#allocation131_spill] sm:$0xff] %v10629_v8  ;;  %13051 = vst [vmem:[#allocation61_spill] sm:$0xff] %v10632_v60  ;;  %v10645_v58 = vadd.f32 %v13056_v48, %v5093_v43  ;;  %v4215_v60 = vmul.f32 %v13020_v62, %v3826_v41  ;;  %v4390_v57 = vmul.f32 %v13023_v18, %v3823_v13  ;;  %v13062_v1 = vld [vmem:[#allocation130_spill] sm:$0xff]  ;;  %v13065_v8 = vld [vmem:[#allocation53_spill] sm:$0xff] }
 0x36d   : > { %13053 = vst [vmem:[#allocation116_spill] sm:$0xff] %v10639_v33  ;;  %13055 = vst [vmem:[#allocation132_spill] sm:$0xff] %v10642_v30  ;;  %v4569_v23 = vmul.f32 %v13028_v22, %v3826_v41  ;;  %v4570_v43 = vmul.f32 %v13029_v20, %v3823_v13  ;;  %v10659_v36 = vadd.f32 %v13060_v31, %v4011_v17  ;;  %v3818_v33 = vpop.permute.xlu0 %3817  ;;  %v13071_v17 = vld [vmem:[#allocation72_spill] sm:$0xff] }
 0x36e   : > { %13057 = vst [vmem:[#allocation133_spill] sm:$0xff] %v10645_v58  ;;  %13059 = vst [vmem:[#allocation62_spill] sm:$0xff] %v10648_v19  ;;  %v10662_v48 = vadd.f32 %v13061_v44, %v4012_v5  ;;  %v10665_v19 = vadd.f32 %v13062_v1, %v4215_v60  ;;  %v13063_v58 = vld [vmem:[#allocation68_spill] sm:$0xff]  ;;  %v10671_v50 = vadd.f32 %v13065_v8, %v4389_v52  ;;  %v10686_v44 = vpop.permute.xlu1 %3883 }
 0x36f   : > { %v10668_v30 = vadd.f32 %v13063_v58, %v4216_v15  ;;  %v10674_v26 = vadd.f32 %v13067_v35, %v4390_v57  ;;  %v10677_v11 = vadd.f32 %v13069_v47, %v4569_v23  ;;  %v10680_v31 = vadd.f32 %v13071_v17, %v4570_v43  ;;  %v13073_v57 = vld [vmem:[#allocation20_spill] sm:$0xff]  ;;  %v13074_v43 = vld [vmem:[#allocation73_spill] sm:$0xff] }
 0x370   : > { %13066 = vst [vmem:[#allocation29_spill] sm:$0xff] %v10671_v50  ;;  %v4737_v5 = vmul.f32 %v13042_v10, %v3826_v41  ;;  %v4738_v60 = vmul.f32 %v13043_v27, %v3823_v13  ;;  %v4917_v58 = vmul.f32 %v13044_v49, %v3826_v41  ;;  %v4918_v15 = vmul.f32 %v13045_v34, %v3823_v13  ;;  %v13075_v17 = vld [vmem:[#allocation21_spill] sm:$0xff]  ;;  %v13078_v50 = vld [vmem:[#allocation107_spill] sm:$0xff] }
 0x371   : > { %13064 = vst [vmem:[#allocation63_spill] sm:$0xff] %v10668_v30  ;;  %13068 = vst [vmem:[#allocation24_spill] sm:$0xff] %v10674_v26  ;;  %v5097_v8 = vmul.f32 %v13046_v25, %v3826_v41  ;;  %v5098_v35 = vmul.f32 %v13047_v4, %v3823_v13  ;;  %v3822_v47 = vsel %vm616_vm2, %v10500_v24, %v3818_v33  ;;  %v13076_v41 = vld [vmem:[#allocation106_spill] sm:$0xff] }
 0x372   : > { %13070 = vst [vmem:[#allocation74_spill] sm:$0xff] %v10677_v11  ;;  %13072 = vst [vmem:[#allocation75_spill] sm:$0xff] %v10680_v31  ;;  %v3825_v52 = vsel %vm616_vm2, %v3818_v33, %v10500_v24  ;;  %v10697_v23 = vadd.f32 %v13073_v57, %v4737_v5  ;;  %v10700_v1 = vadd.f32 %v13074_v43, %v4738_v60  ;;  %v13077_v13 = vld [vmem:[#allocation94_spill] sm:$0xff] }
 0x373   : > { %v10703_v31 = vadd.f32 %v13075_v17, %v4917_v58  ;;  %v10706_v11 = vadd.f32 %v13076_v41, %v4918_v15  ;;  %v10709_v26 = vadd.f32 %v13077_v13, %v5097_v8  ;;  %v10712_v30 = vadd.f32 %v13078_v50, %v5098_v35  ;;  %v13079_v15 = vld [vmem:[#allocation95_spill] sm:$0xff]  ;;  %v13080_v8 = vld [vmem:[#allocation96_spill] sm:$0xff]  ;;  %v13081_v35 = vld [vmem:[#allocation97_spill] sm:$0xff] }
 0x374   : > { %v4009_v24 = vmul.f32 %v13018_v39, %v3825_v52  ;;  %v4010_v33 = vmul.f32 %v13019_v2, %v3822_v47  ;;  %v4213_v5 = vmul.f32 %v13020_v62, %v3825_v52  ;;  %v4214_v60 = vmul.f32 %v13021_v28, %v3822_v47  ;;  %v13082_v62 = vld [vmem:[#allocation83_spill] sm:$0xff]  ;;  %v13083_v28 = vld [vmem:[#allocation84_spill] sm:$0xff] }
 0x375   : > { %v4387_v58 = vmul.f32 %v13022_v29, %v3825_v52  ;;  %v4388_v57 = vmul.f32 %v13023_v18, %v3822_v47  ;;  %v4567_v50 = vmul.f32 %v13028_v22, %v3825_v52  ;;  %v4568_v39 = vmul.f32 %v13029_v20, %v3822_v47  ;;  %v13085_v18 = vld [vmem:[#allocation85_spill] sm:$0xff] }
 0x376   : > { %v10721_v43 = vadd.f32 %v13079_v15, %v4009_v24  ;;  %v10724_v17 = vadd.f32 %v13080_v8, %v4010_v33  ;;  %v10729_v2 = vadd.f32 %v13081_v35, %v4213_v5  ;;  %v10732_v41 = vadd.f32 %v13082_v62, %v4214_v60  ;;  %v3888_v24 = vpop.permute.xlu1 %3887  ;;  %v13087_v15 = vld [vmem:[#allocation114_spill] sm:$0xff]  ;;  %v13089_v8 = vld [vmem:[#allocation115_spill] sm:$0xff]  ;;  %v3882_v62 = vpop.permute.xlu0 %3881 }
 0x377   : > { %v10735_v29 = vadd.f32 %v13083_v28, %v4387_v58  ;;  %v10738_v13 = vadd.f32 %v13085_v18, %v4388_v57  ;;  %v10741_v33 = vadd.f32 %v13087_v15, %v4567_v50  ;;  %v10744_v22 = vadd.f32 %v13089_v8, %v4568_v39  ;;  %v13091_v28 = vld [vmem:[#allocation54_spill] sm:$0xff] }
 0x378   : > { %v4735_v20 = vmul.f32 %v13042_v10, %v3825_v52  ;;  %v4736_v5 = vmul.f32 %v13043_v27, %v3822_v47  ;;  %v4915_v60 = vmul.f32 %v13044_v49, %v3825_v52  ;;  %v4916_v35 = vmul.f32 %v13045_v34, %v3822_v47  ;;  %v13093_v50 = vld [vmem:[#allocation98_spill] sm:$0xff]  ;;  %v13095_v49 = vld [vmem:[#allocation99_spill] sm:$0xff] }
 0x379   : > { %13084 = vst [vmem:[#allocation118_spill] sm:$0xff] %v10735_v29  ;;  %13086 = vst [vmem:[#allocation119_spill] sm:$0xff] %v10738_v13  ;;  %v5095_v58 = vmul.f32 %v13046_v25, %v3825_v52  ;;  %v5096_v57 = vmul.f32 %v13047_v4, %v3822_v47  ;;  %v3893_v10 = vsel %vm693_vm3, %v3882_v62, %v3888_v24  ;;  %v13097_v34 = vld [vmem:[#allocation26_spill] sm:$0xff]  ;;  %v13099_v4 = vld [vmem:[#allocation27_spill] sm:$0xff] }
 0x37a   : > { %13088 = vst [vmem:[#allocation117_spill] sm:$0xff] %v10741_v33  ;;  %13090 = vst [vmem:[#allocation69_spill] sm:$0xff] %v10744_v22  ;;  %v10753_v18 = vadd.f32 %v13091_v28, %v4735_v20  ;;  %v10756_v15 = vadd.f32 %v13093_v50, %v4736_v5  ;;  %v3896_v27 = vsel %vm693_vm3, %v3888_v24, %v3882_v62  ;;  %v13101_v52 = vld [vmem:[#allocation35_spill] sm:$0xff]  ;;  %v13104_v28 = vld [vmem:[#allocation80_spill] sm:$0xff] }
 0x37b   : > { %v10763_v39 = vadd.f32 %v13095_v49, %v4915_v60  ;;  %v10766_v25 = vadd.f32 %v13097_v34, %v4916_v35  ;;  %v10769_v47 = vadd.f32 %v13099_v4, %v5095_v58  ;;  %v10772_v8 = vadd.f32 %v13101_v52, %v5096_v57  ;;  %v13103_v20 = vld [vmem:[#allocation123_spill] sm:$0xff]  ;;  %v13106_v22 = vld [vmem:[#allocation36_spill] sm:$0xff]  ;;  %v13107_v62 = vld [vmem:[#allocation33_spill] sm:$0xff] }
 0x37c   : > { %13092 = vst [vmem:[#allocation23_spill] sm:$0xff] %v10753_v18  ;;  %13094 = vst [vmem:[#allocation39_spill] sm:$0xff] %v10756_v15  ;;  %v4091_v5 = vmul.f32 %v13103_v20, %v3893_v10  ;;  %v4092_v50 = vmul.f32 %v13104_v28, %v3896_v27  ;;  %v13105_v15 = vld [vmem:[#allocation30_spill] sm:$0xff]  ;;  %v4278_v24 = vmul.f32 %v13106_v22, %v3896_v27  ;;  %v13108_v49 = vld [vmem:[#allocation37_spill] sm:$0xff] }
 0x37d   : > { %13096 = vst [vmem:[#allocation128_spill] sm:$0xff] %v10763_v39  ;;  %13098 = vst [vmem:[#allocation70_spill] sm:$0xff] %v10766_v25  ;;  %v4277_v18 = vmul.f32 %v13105_v15, %v3893_v10  ;;  %v4451_v60 = vmul.f32 %v13107_v62, %v3893_v10  ;;  %v4452_v39 = vmul.f32 %v13108_v49, %v3896_v27  ;;  %v13109_v35 = vld [vmem:[#allocation31_spill] sm:$0xff]  ;;  %v13110_v25 = vld [vmem:[#allocation64_spill] sm:$0xff] }
 0x37e   : > { %13100 = vst [vmem:[#allocation112_spill] sm:$0xff] %v10769_v47  ;;  %13102 = vst [vmem:[#allocation71_spill] sm:$0xff] %v10772_v8  ;;  %v4631_v34 = vmul.f32 %v13109_v35, %v3893_v10  ;;  %v4632_v58 = vmul.f32 %v13110_v25, %v3896_v27  ;;  %v10783_v4 = vadd.f32 %v4091_v5, %v10422_v51  ;;  %v3892_v47 = vpop.permute.xlu1 %3891 }
 0x37f   : > { %v10786_v57 = vadd.f32 %v4092_v50, %v10424_v61  ;;  %v10789_v52 = vadd.f32 %v4277_v18, %v10426_v59  ;;  %v10792_v8 = vadd.f32 %v4278_v24, %v10428_v53  ;;  %v10795_v33 = vadd.f32 %v4451_v60, %v10430_v55  ;;  %v13115_v61 = vld [vmem:[#allocation65_spill] sm:$0xff]  ;;  %v13116_v59 = vld [vmem:[#allocation66_spill] sm:$0xff]  ;;  %v13117_v50 = vld [vmem:[#allocation67_spill] sm:$0xff] }
 0x380   : > { %v10798_v13 = vadd.f32 %v4452_v39, %v10432_v21  ;;  %v10801_v29 = vadd.f32 %v4631_v34, %v10434_v9  ;;  %v10804_v51 = vadd.f32 %v4632_v58, %v10436_v56  ;;  %v4799_v5 = vmul.f32 %v13115_v61, %v3893_v10  ;;  %v13118_v24 = vld [vmem:[#allocation140_spill] sm:$0xff]  ;;  %v13119_v55 = vld [vmem:[#allocation81_spill] sm:$0xff] }
 0x381   : > { %13111 = vst [vmem:[#allocation113_spill] sm:$0xff] %v10789_v52  ;;  %13112 = vst [vmem:[#allocation104_spill] sm:$0xff] %v10792_v8  ;;  %v4800_v18 = vmul.f32 %v13116_v59, %v3896_v27  ;;  %v4979_v53 = vmul.f32 %v13117_v50, %v3893_v10  ;;  %v4980_v8 = vmul.f32 %v13118_v24, %v3896_v27  ;;  %v3886_v52 = vpop.permute.xlu0 %3885 }
 0x382   : > { %13113 = vst [vmem:[#allocation28_spill] sm:$0xff] %v10795_v33  ;;  %13114 = vst [vmem:[#allocation41_spill] sm:$0xff] %v10804_v51  ;;  %v5159_v60 = vmul.f32 %v13119_v55, %v3893_v10  ;;  %v13120_v33 = vld [vmem:[#allocation38_spill] sm:$0xff]  ;;  %v3895_v9 = vsel %vm693_vm3, %v3886_v52, %v3892_v47  ;;  %v3898_v56 = vsel %vm693_vm3, %v3892_v47, %v3886_v52 }
 0x383   : > { %v5160_v21 = vmul.f32 %v13120_v33, %v3896_v27  ;;  %v10817_v39 = vadd.f32 %v4799_v5, %v10449_v3  ;;  %v10820_v34 = vadd.f32 %v4800_v18, %v10452_v40  ;;  %v10823_v58 = vadd.f32 %v4979_v53, %v10455_v45 }
 0x384   : > { %v10826_v51 = vadd.f32 %v4980_v8, %v10458_v32  ;;  %v10829_v10 = vadd.f32 %v5159_v60, %v10461_v42  ;;  %v4095_v47 = vmul.f32 %v13103_v20, %v3895_v9  ;;  %v4096_v3 = vmul.f32 %v13104_v28, %v3898_v56 }
 0x385   : > { %13121 = vst [vmem:[#allocation111_spill] sm:$0xff] %v10820_v34  ;;  %13122 = vst [vmem:[#allocation78_spill] sm:$0xff] %v10823_v58  ;;  %v10832_v27 = vadd.f32 %v5160_v21, %v10464_v7  ;;  %v4281_v52 = vmul.f32 %v13105_v15, %v3895_v9  ;;  %v4282_v40 = vmul.f32 %v13106_v22, %v3898_v56  ;;  %v13210_v58 = vld [vmem:[#allocation74_spill] sm:$0xff] }
 0x386   : > { %13123 = vst [vmem:[#allocation79_spill] sm:$0xff] %v10826_v51  ;;  %13124 = vst [vmem:[#allocation122_spill] sm:$0xff] %v10829_v10  ;;  %v4455_v45 = vmul.f32 %v13107_v62, %v3895_v9  ;;  %v4456_v5 = vmul.f32 %v13108_v49, %v3898_v56  ;;  %v10841_v32 = vadd.f32 %v4095_v47, %v10473_v38  ;;  %v3890_v38 = vpop.permute.xlu0 %3889  ;;  %v13201_v10 = vld [vmem:[#allocation132_spill] sm:$0xff] }
 0x387   : > { %13125 = vst [vmem:[#allocation51_spill] sm:$0xff] %v10832_v27  ;;  %v10844_v42 = vadd.f32 %v4096_v3, %v10476_v16  ;;  %v4635_v7 = vmul.f32 %v13109_v35, %v3895_v9  ;;  %v4636_v8 = vmul.f32 %v13110_v25, %v3898_v56  ;;  %v10849_v18 = vadd.f32 %v4281_v52, %v10481_v0  ;;  %v10868_v52 = vpop.permute.xlu1 %3913 }
 0x388   : > { %13126 = vst [vmem:[#allocation105_spill] sm:$0xff] %v10841_v32  ;;  %v10852_v53 = vadd.f32 %v4282_v40, %v10484_v46  ;;  %v10855_v60 = vadd.f32 %v4455_v45, %v10487_v12  ;;  %v10858_v21 = vadd.f32 %v4456_v5, %v10490_v54  ;;  %v4803_v3 = vmul.f32 %v13115_v61, %v3895_v9  ;;  %v13135_v45 = vld [vmem:[#allocation134_spill] sm:$0xff]  ;;  %v13199_v32 = vld [vmem:[#allocation116_spill] sm:$0xff] }
 0x389   : > { %13127 = vst [vmem:[#allocation52_spill] sm:$0xff] %v10844_v42  ;;  %13128 = vst [vmem:[#allocation50_spill] sm:$0xff] %v10849_v18  ;;  %v10861_v16 = vadd.f32 %v4635_v7, %v10493_v6  ;;  %v10864_v47 = vadd.f32 %v4636_v8, %v10496_v37  ;;  %v4804_v0 = vmul.f32 %v13116_v59, %v3898_v56  ;;  %v13137_v8 = vld [vmem:[#allocation135_spill] sm:$0xff] }
 0x38a   : > { %13129 = vst [vmem:[#allocation22_spill] sm:$0xff] %v10852_v53  ;;  %13130 = vst [vmem:[#allocation108_spill] sm:$0xff] %v10855_v60  ;;  %v4983_v46 = vmul.f32 %v13117_v50, %v3895_v9  ;;  %v4984_v12 = vmul.f32 %v13118_v24, %v3898_v56  ;;  %v5163_v54 = vmul.f32 %v13119_v55, %v3895_v9  ;;  %v13139_v9 = vld [vmem:[#allocation138_spill] sm:$0xff]  ;;  %v13192_v60 = vld [vmem:[#allocation103_spill] sm:$0xff] }
 0x38b   : > { %13131 = vst [vmem:[#allocation129_spill] sm:$0xff] %v10858_v21  ;;  %13132 = vst [vmem:[#allocation139_spill] sm:$0xff] %v10861_v16  ;;  %v5164_v40 = vmul.f32 %v13120_v33, %v3898_v56  ;;  %v10875_v6 = vadd.f32 %v4803_v3, %v10507_v14  ;;  %v10878_v37 = vadd.f32 %v4804_v0, %v13135_v45  ;;  %v13141_v56 = vld [vmem:[#allocation136_spill] sm:$0xff]  ;;  %v13143_v3 = vld [vmem:[#allocation137_spill] sm:$0xff] }
 0x38c   : > { %13133 = vst [vmem:[#allocation130_spill] sm:$0xff] %v10864_v47  ;;  %v3894_v5 = vsel %vm693_vm3, %v10686_v44, %v3890_v38  ;;  %v3897_v7 = vsel %vm693_vm3, %v3890_v38, %v10686_v44  ;;  %v10887_v47 = vadd.f32 %v4983_v46, %v13137_v8  ;;  %v10890_v16 = vadd.f32 %v4984_v12, %v13139_v9  ;;  %v13145_v8 = vld [vmem:[#allocation86_spill] sm:$0xff]  ;;  %v13195_v18 = vld [vmem:[#allocation131_spill] sm:$0xff] }
 0x38d   : > { %13134 = vst [vmem:[#allocation68_spill] sm:$0xff] %v10875_v6  ;;  %13136 = vst [vmem:[#allocation53_spill] sm:$0xff] %v10878_v37  ;;  %v10893_v14 = vadd.f32 %v5163_v54, %v13141_v56  ;;  %v10896_v0 = vadd.f32 %v5164_v40, %v13143_v3  ;;  %v4093_v45 = vmul.f32 %v13103_v20, %v3894_v5  ;;  %v13147_v40 = vld [vmem:[#allocation93_spill] sm:$0xff]  ;;  %v13149_v20 = vld [vmem:[#allocation16_spill] sm:$0xff] }
 0x38e   : > { %13138 = vst [vmem:[#allocation25_spill] sm:$0xff] %v10887_v47  ;;  %13140 = vst [vmem:[#allocation82_spill] sm:$0xff] %v10890_v16  ;;  %v4094_v37 = vmul.f32 %v13104_v28, %v3897_v7  ;;  %v4279_v6 = vmul.f32 %v13105_v15, %v3894_v5  ;;  %v4280_v44 = vmul.f32 %v13106_v22, %v3897_v7  ;;  %v13151_v15 = vld [vmem:[#allocation87_spill] sm:$0xff]  ;;  %v3918_v22 = vpop.permute.xlu1 %3917  ;;  %v13189_v16 = vld [vmem:[#allocation100_spill] sm:$0xff] }
 0x38f   : > { %13142 = vst [vmem:[#allocation72_spill] sm:$0xff] %v10893_v14  ;;  %13144 = vst [vmem:[#allocation20_spill] sm:$0xff] %v10896_v0  ;;  %v4453_v38 = vmul.f32 %v13107_v62, %v3894_v5  ;;  %v4454_v46 = vmul.f32 %v13108_v49, %v3897_v7  ;;  %v4633_v12 = vmul.f32 %v13109_v35, %v3894_v5  ;;  %v13153_v62 = vld [vmem:[#allocation88_spill] sm:$0xff]  ;;  %v13155_v49 = vld [vmem:[#allocation89_spill] sm:$0xff] }
 0x390   : > { %v4634_v54 = vmul.f32 %v13110_v25, %v3897_v7  ;;  %v10907_v9 = vadd.f32 %v4093_v45, %v13145_v8  ;;  %v10910_v56 = vadd.f32 %v4094_v37, %v13147_v40  ;;  %v10913_v28 = vadd.f32 %v4279_v6, %v13149_v20  ;;  %v13157_v25 = vld [vmem:[#allocation91_spill] sm:$0xff]  ;;  %v13159_v45 = vld [vmem:[#allocation92_spill] sm:$0xff]  ;;  %v3912_v20 = vpop.permute.xlu0 %3911 }
 0x391   : > { %v10916_v3 = vadd.f32 %v4280_v44, %v13151_v15  ;;  %v10919_v0 = vadd.f32 %v4453_v38, %v13153_v62  ;;  %v10922_v35 = vadd.f32 %v4454_v46, %v13155_v49  ;;  %v10925_v14 = vadd.f32 %v4633_v12, %v13157_v25  ;;  %v13161_v15 = vld [vmem:[#allocation17_spill] sm:$0xff] }
 0x392   : > { %13146 = vst [vmem:[#allocation73_spill] sm:$0xff] %v10907_v9  ;;  %13148 = vst [vmem:[#allocation21_spill] sm:$0xff] %v10910_v56  ;;  %v10928_v8 = vadd.f32 %v4634_v54, %v13159_v45  ;;  %v4801_v37 = vmul.f32 %v13115_v61, %v3894_v5  ;;  %v4802_v6 = vmul.f32 %v13116_v59, %v3897_v7  ;;  %v13163_v61 = vld [vmem:[#allocation18_spill] sm:$0xff]  ;;  %v13173_v45 = vld [vmem:[#allocation32_spill] sm:$0xff] }
 0x393   : > { %13150 = vst [vmem:[#allocation106_spill] sm:$0xff] %v10913_v28  ;;  %13152 = vst [vmem:[#allocation94_spill] sm:$0xff] %v10916_v3  ;;  %v4981_v44 = vmul.f32 %v13117_v50, %v3894_v5  ;;  %v4982_v40 = vmul.f32 %v13118_v24, %v3897_v7  ;;  %v5161_v38 = vmul.f32 %v13119_v55, %v3894_v5  ;;  %v13165_v50 = vld [vmem:[#allocation90_spill] sm:$0xff]  ;;  %v13167_v24 = vld [vmem:[#allocation19_spill] sm:$0xff] }
 0x394   : > { %13154 = vst [vmem:[#allocation107_spill] sm:$0xff] %v10919_v0  ;;  %13156 = vst [vmem:[#allocation95_spill] sm:$0xff] %v10922_v35  ;;  %v5162_v46 = vmul.f32 %v13120_v33, %v3897_v7  ;;  %v3923_v12 = vsel %vm725_vm4, %v3912_v20, %v3918_v22  ;;  %v3926_v54 = vsel %vm725_vm4, %v3918_v22, %v3912_v20  ;;  %v13169_v55 = vld [vmem:[#allocation13_spill] sm:$0xff]  ;;  %v13171_v5 = vld [vmem:[#allocation14_spill] sm:$0xff]  ;;  %v3916_v21 = vpop.permute.xlu0 %3915 }
 0x395   : > { %13158 = vst [vmem:[#allocation96_spill] sm:$0xff] %v10925_v14  ;;  %13160 = vst [vmem:[#allocation97_spill] sm:$0xff] %v10928_v8  ;;  %v10941_v62 = vadd.f32 %v4801_v37, %v13161_v15  ;;  %v10944_v59 = vadd.f32 %v4802_v6, %v13163_v61  ;;  %v10947_v49 = vadd.f32 %v4981_v44, %v13165_v50  ;;  %v13174_v20 = vld [vmem:[#allocation40_spill] sm:$0xff]  ;;  %v13175_v15 = vld [vmem:[#allocation34_spill] sm:$0xff] }
 0x396   : > { %v10950_v25 = vadd.f32 %v4982_v40, %v13167_v24  ;;  %v10953_v33 = vadd.f32 %v5161_v38, %v13169_v55  ;;  %v10956_v7 = vadd.f32 %v5162_v46, %v13171_v5  ;;  %v4121_v22 = vmul.f32 %v13173_v45, %v3923_v12  ;;  %v13176_v6 = vld [vmem:[#allocation44_spill] sm:$0xff]  ;;  %v13178_v50 = vld [vmem:[#allocation42_spill] sm:$0xff]  ;;  %v13179_v40 = vld [vmem:[#allocation15_spill] sm:$0xff] }
 0x397   : > { %13162 = vst [vmem:[#allocation83_spill] sm:$0xff] %v10941_v62  ;;  %13164 = vst [vmem:[#allocation84_spill] sm:$0xff] %v10944_v59  ;;  %v4122_v37 = vmul.f32 %v13174_v20, %v3926_v54  ;;  %v4301_v62 = vmul.f32 %v13175_v15, %v3923_v12  ;;  %v4302_v61 = vmul.f32 %v13176_v6, %v3926_v54  ;;  %v13177_v59 = vld [vmem:[#allocation48_spill] sm:$0xff]  ;;  %v13180_v38 = vld [vmem:[#allocation57_spill] sm:$0xff] }
 0x398   : > { %13166 = vst [vmem:[#allocation85_spill] sm:$0xff] %v10947_v49  ;;  %13168 = vst [vmem:[#allocation114_spill] sm:$0xff] %v10950_v25  ;;  %v4475_v44 = vmul.f32 %v13177_v59, %v3923_v12  ;;  %v4476_v49 = vmul.f32 %v13178_v50, %v3926_v54  ;;  %v10965_v24 = vadd.f32 %v4121_v22, %v13179_v40  ;;  %v13181_v46 = vld [vmem:[#allocation43_spill] sm:$0xff]  ;;  %v13183_v25 = vld [vmem:[#allocation58_spill] sm:$0xff]  ;;  %v3922_v22 = vpop.permute.xlu1 %3921 }
 0x399   : > { %13170 = vst [vmem:[#allocation115_spill] sm:$0xff] %v10953_v33  ;;  %13172 = vst [vmem:[#allocation54_spill] sm:$0xff] %v10956_v7  ;;  %v10968_v55 = vadd.f32 %v4122_v37, %v13180_v38  ;;  %v4655_v5 = vmul.f32 %v13181_v46, %v3923_v12  ;;  %v13182_v7 = vld [vmem:[#allocation45_spill] sm:$0xff]  ;;  %v10973_v8 = vadd.f32 %v4301_v62, %v13183_v25  ;;  %v13184_v14 = vld [vmem:[#allocation143_spill] sm:$0xff] }
 0x39a   : > { %v4656_v33 = vmul.f32 %v13182_v7, %v3926_v54  ;;  %v10976_v35 = vadd.f32 %v4302_v61, %v13184_v14  ;;  %v13185_v0 = vld [vmem:[#allocation144_spill] sm:$0xff]  ;;  %v13186_v28 = vld [vmem:[#allocation59_spill] sm:$0xff]  ;;  %v4823_v47 = vmul.f32 %v13189_v16, %v3923_v12  ;;  %v13190_v62 = vld [vmem:[#allocation101_spill] sm:$0xff] }
 0x39b   : > { %v10979_v3 = vadd.f32 %v4475_v44, %v13185_v0  ;;  %v10982_v56 = vadd.f32 %v4476_v49, %v13186_v28  ;;  %v13187_v40 = vld [vmem:[#allocation60_spill] sm:$0xff]  ;;  %v13188_v38 = vld [vmem:[#allocation127_spill] sm:$0xff]  ;;  %v4824_v25 = vmul.f32 %v13190_v62, %v3926_v54  ;;  %v13191_v14 = vld [vmem:[#allocation102_spill] sm:$0xff]  ;;  %v5004_v0 = vmul.f32 %v13192_v60, %v3926_v54 }
 0x39c   : > { %v10985_v37 = vadd.f32 %v4655_v5, %v13187_v40  ;;  %v10988_v9 = vadd.f32 %v4656_v33, %v13188_v38  ;;  %v5003_v61 = vmul.f32 %v13191_v14, %v3923_v12  ;;  %v13193_v44 = vld [vmem:[#allocation46_spill] sm:$0xff]  ;;  %v13194_v28 = vld [vmem:[#allocation47_spill] sm:$0xff]  ;;  %v10997_v42 = vadd.f32 %v4823_v47, %v13195_v18  ;;  %v13197_v5 = vld [vmem:[#allocation61_spill] sm:$0xff] }
 0x39d   : > { %v5183_v53 = vmul.f32 %v13193_v44, %v3923_v12  ;;  %v5184_v49 = vmul.f32 %v13194_v28, %v3926_v54  ;;  %v11000_v40 = vadd.f32 %v4824_v25, %v13197_v5  ;;  %v3925_v33 = vsel %vm725_vm4, %v3916_v21, %v3922_v22  ;;  %v13203_v12 = vld [vmem:[#allocation133_spill] sm:$0xff]  ;;  %v13205_v18 = vld [vmem:[#allocation62_spill] sm:$0xff] }
 0x39e   : > { %13196 = vst [vmem:[#allocation98_spill] sm:$0xff] %v10997_v42  ;;  %v3928_v38 = vsel %vm725_vm4, %v3922_v22, %v3916_v21  ;;  %v11007_v27 = vadd.f32 %v5003_v61, %v13199_v32  ;;  %v11010_v51 = vadd.f32 %v5004_v0, %v13201_v10  ;;  %v4125_v25 = vmul.f32 %v13173_v45, %v3925_v33 }
 0x39f   : > { %13198 = vst [vmem:[#allocation99_spill] sm:$0xff] %v11000_v40  ;;  %v11013_v54 = vadd.f32 %v5183_v53, %v13203_v12  ;;  %v11016_v47 = vadd.f32 %v5184_v49, %v13205_v18  ;;  %v4126_v5 = vmul.f32 %v13174_v20, %v3928_v38  ;;  %v4305_v40 = vmul.f32 %v13175_v15, %v3925_v33  ;;  %v13207_v12 = vld [vmem:[#allocation63_spill] sm:$0xff] }
 0x3a0   : > { %13200 = vst [vmem:[#allocation26_spill] sm:$0xff] %v11007_v27  ;;  %13202 = vst [vmem:[#allocation27_spill] sm:$0xff] %v11010_v51  ;;  %v4306_v21 = vmul.f32 %v13176_v6, %v3928_v38  ;;  %v4479_v32 = vmul.f32 %v13177_v59, %v3925_v33  ;;  %v4480_v22 = vmul.f32 %v13178_v50, %v3928_v38  ;;  %v13209_v27 = vld [vmem:[#allocation24_spill] sm:$0xff] }
 0x3a1   : > { %13204 = vst [vmem:[#allocation35_spill] sm:$0xff] %v11013_v54  ;;  %13206 = vst [vmem:[#allocation123_spill] sm:$0xff] %v11016_v47  ;;  %v4659_v10 = vmul.f32 %v13181_v46, %v3925_v33  ;;  %v4660_v53 = vmul.f32 %v13182_v7, %v3928_v38  ;;  %v11027_v61 = vadd.f32 %v4125_v25, %v10659_v36  ;;  %v3920_v47 = vpop.permute.xlu0 %3919  ;;  %v13208_v54 = vld [vmem:[#allocation29_spill] sm:$0xff]  ;;  %v13211_v36 = vld [vmem:[#allocation75_spill] sm:$0xff] }
 0x3a2   : > { %v11030_v0 = vadd.f32 %v4126_v5, %v10662_v48  ;;  %v11033_v49 = vadd.f32 %v4305_v40, %v10665_v19  ;;  %v11036_v18 = vadd.f32 %v4306_v21, %v13207_v12  ;;  %v11039_v51 = vadd.f32 %v4479_v32, %v13208_v54  ;;  %v11054_v21 = vpop.permute.xlu1 %3943 }
 0x3a3   : > { %v11042_v42 = vadd.f32 %v4480_v22, %v13209_v27  ;;  %v11045_v34 = vadd.f32 %v4659_v10, %v13210_v58  ;;  %v11048_v25 = vadd.f32 %v4660_v53, %v13211_v36  ;;  %v4827_v48 = vmul.f32 %v13189_v16, %v3925_v33 }
 0x3a4   : > { %v4828_v19 = vmul.f32 %v13190_v62, %v3928_v38  ;;  %v5007_v40 = vmul.f32 %v13191_v14, %v3925_v33  ;;  %v5008_v5 = vmul.f32 %v13192_v60, %v3928_v38  ;;  %v5187_v54 = vmul.f32 %v13193_v44, %v3925_v33 }
 0x3a5   : > { %v5188_v27 = vmul.f32 %v13194_v28, %v3928_v38  ;;  %v3924_v58 = vsel %vm725_vm4, %v10868_v52, %v3920_v47  ;;  %v3927_v32 = vsel %vm725_vm4, %v3920_v47, %v10868_v52  ;;  %v11065_v22 = vadd.f32 %v4827_v48, %v10697_v23 }
 0x3a6   : > { %v11068_v10 = vadd.f32 %v4828_v19, %v10700_v1  ;;  %v11071_v53 = vadd.f32 %v5007_v40, %v10703_v31  ;;  %v11074_v33 = vadd.f32 %v5008_v5, %v10706_v11  ;;  %v11077_v38 = vadd.f32 %v5187_v54, %v10709_v26  ;;  %v13219_v19 = vld [vmem:[#allocation117_spill] sm:$0xff] }
 0x3a7   : > { %v11080_v12 = vadd.f32 %v5188_v27, %v10712_v30  ;;  %v4123_v52 = vmul.f32 %v13173_v45, %v3924_v58  ;;  %v4124_v23 = vmul.f32 %v13174_v20, %v3927_v32  ;;  %v4303_v47 = vmul.f32 %v13175_v15, %v3924_v58  ;;  %v13221_v40 = vld [vmem:[#allocation69_spill] sm:$0xff] }
 0x3a8   : > { %v4304_v1 = vmul.f32 %v13176_v6, %v3927_v32  ;;  %v4477_v31 = vmul.f32 %v13177_v59, %v3924_v58  ;;  %v4478_v36 = vmul.f32 %v13178_v50, %v3927_v32  ;;  %v4657_v30 = vmul.f32 %v13181_v46, %v3924_v58  ;;  %v13215_v6 = vld [vmem:[#allocation118_spill] sm:$0xff]  ;;  %v13217_v50 = vld [vmem:[#allocation119_spill] sm:$0xff] }
 0x3a9   : > { %v11089_v11 = vadd.f32 %v4123_v52, %v10721_v43  ;;  %v11092_v26 = vadd.f32 %v4124_v23, %v10724_v17  ;;  %v4658_v45 = vmul.f32 %v13182_v7, %v3927_v32  ;;  %v11097_v20 = vadd.f32 %v4303_v47, %v10729_v2  ;;  %v3948_v43 = vpop.permute.xlu1 %3947  ;;  %v3942_v52 = vpop.permute.xlu0 %3941  ;;  %v13223_v23 = vld [vmem:[#allocation23_spill] sm:$0xff] }
 0x3aa   : > { %v11100_v15 = vadd.f32 %v4304_v1, %v10732_v41  ;;  %v11103_v59 = vadd.f32 %v4477_v31, %v13215_v6  ;;  %v11106_v48 = vadd.f32 %v4478_v36, %v13217_v50  ;;  %v11109_v17 = vadd.f32 %v4657_v30, %v13219_v19  ;;  %v13225_v1 = vld [vmem:[#allocation39_spill] sm:$0xff]  ;;  %v13236_v50 = vld [vmem:[#allocation124_spill] sm:$0xff] }
 0x3ab   : > { %13212 = vst [vmem:[#allocation80_spill] sm:$0xff] %v11092_v26  ;;  %13213 = vst [vmem:[#allocation30_spill] sm:$0xff] %v11097_v20  ;;  %v11112_v46 = vadd.f32 %v4658_v45, %v13221_v40  ;;  %v4825_v7 = vmul.f32 %v13189_v16, %v3924_v58  ;;  %v4826_v2 = vmul.f32 %v13190_v62, %v3927_v32  ;;  %v13235_v45 = vld [vmem:[#allocation49_spill] sm:$0xff] }
 0x3ac   : > { %13214 = vst [vmem:[#allocation36_spill] sm:$0xff] %v11100_v15  ;;  %13216 = vst [vmem:[#allocation33_spill] sm:$0xff] %v11103_v59  ;;  %v5005_v41 = vmul.f32 %v13191_v14, %v3924_v58  ;;  %v5006_v5 = vmul.f32 %v13192_v60, %v3927_v32  ;;  %v5185_v54 = vmul.f32 %v13193_v44, %v3924_v58  ;;  %v13227_v14 = vld [vmem:[#allocation128_spill] sm:$0xff]  ;;  %v13229_v60 = vld [vmem:[#allocation70_spill] sm:$0xff] }
 0x3ad   : > { %13218 = vst [vmem:[#allocation37_spill] sm:$0xff] %v11106_v48  ;;  %13220 = vst [vmem:[#allocation31_spill] sm:$0xff] %v11109_v17  ;;  %v5186_v27 = vmul.f32 %v13194_v28, %v3927_v32  ;;  %v11121_v47 = vadd.f32 %v4825_v7, %v13223_v23  ;;  %v11124_v31 = vadd.f32 %v4826_v2, %v13225_v1  ;;  %v13231_v28 = vld [vmem:[#allocation112_spill] sm:$0xff]  ;;  %v13233_v32 = vld [vmem:[#allocation71_spill] sm:$0xff] }
 0x3ae   : > { %13222 = vst [vmem:[#allocation64_spill] sm:$0xff] %v11112_v46  ;;  %v3953_v16 = vsel %vm757_vm5, %v3942_v52, %v3948_v43  ;;  %v3956_v62 = vsel %vm757_vm5, %v3948_v43, %v3942_v52  ;;  %v11131_v36 = vadd.f32 %v5005_v41, %v13227_v14  ;;  %v11134_v44 = vadd.f32 %v5006_v5, %v13229_v60  ;;  %v13237_v40 = vld [vmem:[#allocation109_spill] sm:$0xff]  ;;  %v13238_v2 = vld [vmem:[#allocation110_spill] sm:$0xff]  ;;  %v13239_v52 = vld [vmem:[#allocation76_spill] sm:$0xff] }
 0x3af   : > { %13224 = vst [vmem:[#allocation65_spill] sm:$0xff] %v11121_v47  ;;  %13226 = vst [vmem:[#allocation66_spill] sm:$0xff] %v11124_v31  ;;  %v11137_v58 = vadd.f32 %v5185_v54, %v13231_v28  ;;  %v11140_v30 = vadd.f32 %v5186_v27, %v13233_v32  ;;  %v4151_v6 = vmul.f32 %v13235_v45, %v3953_v16  ;;  %v13240_v23 = vld [vmem:[#allocation77_spill] sm:$0xff]  ;;  %v13242_v60 = vld [vmem:[#allocation126_spill] sm:$0xff] }
 0x3b0   : > { %13228 = vst [vmem:[#allocation67_spill] sm:$0xff] %v11131_v36  ;;  %13230 = vst [vmem:[#allocation140_spill] sm:$0xff] %v11134_v44  ;;  %v4152_v19 = vmul.f32 %v13236_v50, %v3956_v62  ;;  %v4325_v7 = vmul.f32 %v13237_v40, %v3953_v16  ;;  %v4326_v43 = vmul.f32 %v13238_v2, %v3956_v62  ;;  %v13241_v5 = vld [vmem:[#allocation125_spill] sm:$0xff]  ;;  %v13245_v36 = vld [vmem:[#allocation28_spill] sm:$0xff] }
 0x3b1   : > { %13232 = vst [vmem:[#allocation81_spill] sm:$0xff] %v11137_v58  ;;  %13234 = vst [vmem:[#allocation38_spill] sm:$0xff] %v11140_v30  ;;  %v4499_v41 = vmul.f32 %v13239_v52, %v3953_v16  ;;  %v4500_v1 = vmul.f32 %v13240_v23, %v3956_v62  ;;  %v4679_v14 = vmul.f32 %v13241_v5, %v3953_v16  ;;  %v13243_v32 = vld [vmem:[#allocation113_spill] sm:$0xff]  ;;  %v13244_v58 = vld [vmem:[#allocation104_spill] sm:$0xff] }
 0x3b2   : > { %v4680_v54 = vmul.f32 %v13242_v60, %v3956_v62  ;;  %v4157_v28 = vadd.f32 %v4151_v6, %v10783_v4  ;;  %v4158_v27 = vadd.f32 %v4152_v19, %v10786_v57  ;;  %v4331_v30 = vadd.f32 %v4325_v7, %v13243_v32  ;;  %v13246_v17 = vld [vmem:[#allocation41_spill] sm:$0xff]  ;;  %v13252_v7 = vld [vmem:[#allocation142_spill] sm:$0xff] }
 0x3b3   : > { %v4332_v44 = vadd.f32 %v4326_v43, %v13244_v58  ;;  %v4505_v31 = vadd.f32 %v4499_v41, %v13245_v36  ;;  %v4506_v47 = vadd.f32 %v4500_v1, %v10798_v13  ;;  %v4685_v46 = vadd.f32 %v4679_v14, %v10801_v29  ;;  %v13249_v58 = vld [vmem:[#allocation120_spill] sm:$0xff]  ;;  %v13251_v6 = vld [vmem:[#allocation141_spill] sm:$0xff]  ;;  %v3946_v41 = vpop.permute.xlu0 %3945  ;;  %v13253_v14 = vld [vmem:[#allocation111_spill] sm:$0xff] }
 0x3b4   : > { %v4686_v48 = vadd.f32 %v4680_v54, %v13246_v17  ;;  %v11159_v59 = vadd.f32 %v4157_v28, %v10965_v24  ;;  %v11162_v15 = vadd.f32 %v4158_v27, %v10968_v55  ;;  %v11165_v4 = vadd.f32 %v4331_v30, %v10973_v8  ;;  %v13254_v32 = vld [vmem:[#allocation78_spill] sm:$0xff] }
 0x3b5   : > { %v11168_v57 = vadd.f32 %v4332_v44, %v10976_v35  ;;  %v11171_v36 = vadd.f32 %v4505_v31, %v10979_v3  ;;  %v11174_v13 = vadd.f32 %v4506_v47, %v10982_v56  ;;  %v11177_v29 = vadd.f32 %v4685_v46, %v10985_v37  ;;  %v3952_v44 = vpop.permute.xlu1 %3951  ;;  %v13247_v47 = vld [vmem:[#allocation55_spill] sm:$0xff]  ;;  %v13248_v37 = vld [vmem:[#allocation56_spill] sm:$0xff]  ;;  %v13258_v55 = vld [vmem:[#allocation98_spill] sm:$0xff] }
 0x3b6   : > { %v11180_v24 = vadd.f32 %v4686_v48, %v10988_v9  ;;  %v4847_v31 = vmul.f32 %v13247_v47, %v3953_v16  ;;  %v4848_v46 = vmul.f32 %v13248_v37, %v3956_v62  ;;  %v5027_v9 = vmul.f32 %v13249_v58, %v3953_v16  ;;  %v13250_v48 = vld [vmem:[#allocation121_spill] sm:$0xff]  ;;  %v13255_v3 = vld [vmem:[#allocation79_spill] sm:$0xff] }
 0x3b7   : > { %v5028_v30 = vmul.f32 %v13250_v48, %v3956_v62  ;;  %v5207_v19 = vmul.f32 %v13251_v6, %v3953_v16  ;;  %v5208_v43 = vmul.f32 %v13252_v7, %v3956_v62  ;;  %v11198_v28 = vsel %vm757_vm5, %v3946_v41, %v3952_v44  ;;  %v13256_v16 = vld [vmem:[#allocation122_spill] sm:$0xff]  ;;  %v13257_v62 = vld [vmem:[#allocation51_spill] sm:$0xff] }
 0x3b8   : > { %v4853_v1 = vadd.f32 %v4847_v31, %v10817_v39  ;;  %v4854_v54 = vadd.f32 %v4848_v46, %v13253_v14  ;;  %v11202_v27 = vsel %vm757_vm5, %v3952_v44, %v3946_v41  ;;  %v5033_v56 = vadd.f32 %v5027_v9, %v13254_v32  ;;  %v13259_v31 = vld [vmem:[#allocation99_spill] sm:$0xff]  ;;  %v13260_v41 = vld [vmem:[#allocation26_spill] sm:$0xff]  ;;  %v13271_v32 = vld [vmem:[#allocation129_spill] sm:$0xff] }
 0x3b9   : > { %v5034_v35 = vadd.f32 %v5028_v30, %v13255_v3  ;;  %v5213_v17 = vadd.f32 %v5207_v19, %v13256_v16  ;;  %v5214_v8 = vadd.f32 %v5208_v43, %v13257_v62  ;;  %v4155_v14 = vmul.f32 %v13235_v45, %v11198_v28  ;;  %v13261_v3 = vld [vmem:[#allocation27_spill] sm:$0xff]  ;;  %v13266_v16 = vld [vmem:[#allocation105_spill] sm:$0xff] }
 0x3ba   : > { %v11209_v39 = vadd.f32 %v4853_v1, %v13258_v55  ;;  %v11212_v46 = vadd.f32 %v4854_v54, %v13259_v31  ;;  %v4156_v44 = vmul.f32 %v13236_v50, %v11202_v27  ;;  %v11219_v9 = vadd.f32 %v5033_v56, %v13260_v41  ;;  %v13262_v19 = vld [vmem:[#allocation35_spill] sm:$0xff]  ;;  %v13267_v31 = vld [vmem:[#allocation52_spill] sm:$0xff] }
 0x3bb   : > { %v11222_v30 = vadd.f32 %v5034_v35, %v13261_v3  ;;  %v11225_v43 = vadd.f32 %v5213_v17, %v13262_v19  ;;  %v13264_v55 = vld [vmem:[#allocation123_spill] sm:$0xff]  ;;  %v4161_v62 = vadd.f32 %v4155_v14, %v13266_v16  ;;  %v4329_v19 = vmul.f32 %v13237_v40, %v11198_v28  ;;  %v13269_v17 = vld [vmem:[#allocation22_spill] sm:$0xff]  ;;  %v13270_v41 = vld [vmem:[#allocation108_spill] sm:$0xff] }
 0x3bc   : > { %v11228_v1 = vadd.f32 %v5214_v8, %v13264_v55  ;;  %v4162_v20 = vadd.f32 %v4156_v44, %v13267_v31  ;;  %v4330_v14 = vmul.f32 %v13238_v2, %v11202_v27  ;;  %v4503_v44 = vmul.f32 %v13239_v52, %v11198_v28  ;;  %v13272_v52 = vld [vmem:[#allocation139_spill] sm:$0xff] }
 0x3bd   : > { %13263 = vst [vmem:[#allocation134_spill] sm:$0xff] %v11225_v43  ;;  %v11239_v3 = vadd.f32 %v4161_v62, %v11027_v61  ;;  %v4504_v55 = vmul.f32 %v13240_v23, %v11202_v27  ;;  %v4683_v16 = vmul.f32 %v13241_v5, %v11198_v28  ;;  %v4684_v61 = vmul.f32 %v13242_v60, %v11202_v27  ;;  %v13268_v62 = vld [vmem:[#allocation50_spill] sm:$0xff]  ;;  %v5262_v60 = vld [vmem:[%s7734_s11 + $0x8] sm:$0xff] }
 0x3be   : > { %13265 = vst [vmem:[#allocation135_spill] sm:$0xff] %v11228_v1  ;;  %v11242_v8 = vadd.f32 %v4162_v20, %v11030_v0  ;;  %v4335_v31 = vadd.f32 %v4329_v19, %v13268_v62  ;;  %v4336_v35 = vadd.f32 %v4330_v14, %v13269_v17  ;;  %v4509_v56 = vadd.f32 %v4503_v44, %v13270_v41  ;;  %v13273_v1 = vld [vmem:[#allocation130_spill] sm:$0xff] }
 0x3bf   : > { %v11876_v0 = vrot.slane %v11239_v3, 5  ;;  %v4510_v54 = vadd.f32 %v4504_v55, %v13271_v32  ;;  %v4689_v23 = vadd.f32 %v4683_v16, %v13272_v52  ;;  %v4690_v43 = vadd.f32 %v4684_v61, %v13273_v1  ;;  %v13280_v55 = vld [vmem:[#allocation68_spill] sm:$0xff]  ;;  %v13281_v61 = vld [vmem:[#allocation53_spill] sm:$0xff] }
 0x3c0   : > { %v13274_v5 = vrot.slane %v11159_v59, 5  ;;  %v13276_v20 = vrot.slane %v11162_v15, 5  ;;  %v13277_v19 = vrot.slane %v11242_v8, 5  ;;  %v11277_v32 = vadd.f32 %v4335_v31, %v11033_v49 }
 0x3c1   : > { %v11280_v52 = vadd.f32 %v4336_v35, %v11036_v18  ;;  %v11283_v1 = vadd.f32 %v4509_v56, %v11039_v51  ;;  %v11286_v17 = vadd.f32 %v4510_v54, %v11042_v42  ;;  %v11292_v14 = vadd.f32 %v4690_v43, %v11048_v25 }
 0x3c2   : > { %v4179_v26 = vsel %vm989_vm6, %v11876_v0, %v13274_v5  ;;  %v4180_v41 = vsel %vm989_vm6, %v13277_v19, %v13276_v20  ;;  %v11289_v5 = vadd.f32 %v4689_v23, %v11045_v34  ;;  %v11869_v44 = vrot.slane %v11277_v32, 6  ;;  %v13307_v0 = vld [vmem:[#allocation95_spill] sm:$0xff] }
 0x3c3   : > { %v11868_v49 = vrot.slane %v11280_v52, 6  ;;  %v4851_v18 = vmul.f32 %v13247_v47, %v11198_v28  ;;  %v4852_v51 = vmul.f32 %v13248_v37, %v11202_v27  ;;  %v11867_v56 = vrot.slane %v11283_v1, 7 }
 0x3c4   : > { %v11870_v42 = vrot.slane %v11286_v17, 7  ;;  %v5031_v34 = vmul.f32 %v13249_v58, %v11198_v28  ;;  %v5032_v25 = vmul.f32 %v13250_v48, %v11202_v27  ;;  %v13278_v23 = vrot.slane %v11165_v4, 6 }
 0x3c5   : > { %v13279_v54 = vrot.slane %v11168_v57, 6  ;;  %v4857_v16 = vadd.f32 %v4851_v18, %v13280_v55  ;;  %v4858_v20 = vadd.f32 %v4852_v51, %v13281_v61  ;;  %v13282_v62 = vrot.slane %v11171_v36, 7  ;;  %v3950_v51 = vpop.permute.xlu0 %3949 }
 0x3c6   : > { %v4353_v43 = vsel %vm1171_vm7, %v11869_v44, %v13278_v23  ;;  %v13283_v19 = vrot.slane %v11174_v13, 7  ;;  %v13289_v63 = vrot.slane %v11212_v46, 1 }
 0x3c7   : > { %v4354_v35 = vsel %vm1171_vm7, %v11868_v49, %v13279_v54  ;;  %v4527_v31 = vsel %vm1353_vm8, %v11867_v56, %v13282_v62  ;;  %v11333_v54 = vadd.f32 %v11177_v29, %v4353_v43  ;;  %v11343_v62 = vadd.f32 %v4857_v16, %v11065_v22  ;;  %v13284_v49 = vld [vmem:[#allocation25_spill] sm:$0xff] }
 0x3c8   : > { %v4528_v23 = vsel %vm1353_vm8, %v11870_v42, %v13283_v19  ;;  %v11336_v18 = vadd.f32 %v11180_v24, %v4354_v35  ;;  %v11338_v55 = vadd.f32 %v4527_v31, %v4179_v26  ;;  %v11346_v56 = vadd.f32 %v4858_v20, %v11068_v10  ;;  %v13285_v19 = vld [vmem:[#allocation82_spill] sm:$0xff] }
 0x3c9   : > { %v11340_v61 = vadd.f32 %v4528_v23, %v4180_v41  ;;  %v5037_v44 = vadd.f32 %v5031_v34, %v13284_v49  ;;  %v5038_v42 = vadd.f32 %v5032_v25, %v13285_v19  ;;  %v5211_v29 = vmul.f32 %v13251_v6, %v11198_v28  ;;  %v13287_v25 = vld [vmem:[#allocation20_spill] sm:$0xff]  ;;  %v13291_v23 = vld [vmem:[#allocation73_spill] sm:$0xff] }
 0x3ca   : > { %v5212_v24 = vmul.f32 %v13252_v7, %v11202_v27  ;;  %v11875_v26 = vrot.slane %v11343_v62, 1  ;;  %v11874_v41 = vrot.slane %v11346_v56, 1  ;;  %v11359_v22 = vsel %vm757_vm5, %v11054_v21, %v3950_v51  ;;  %v13286_v27 = vld [vmem:[#allocation72_spill] sm:$0xff]  ;;  %v13292_v19 = vld [vmem:[#allocation21_spill] sm:$0xff] }
 0x3cb   : > { %v11364_v10 = vsel %vm757_vm5, %v3950_v51, %v11054_v21  ;;  %v11367_v49 = vadd.f32 %v5037_v44, %v11071_v53  ;;  %v11370_v28 = vadd.f32 %v5038_v42, %v11074_v33  ;;  %v5217_v34 = vadd.f32 %v5211_v29, %v13286_v27 }
 0x3cc   : > { %v5218_v43 = vadd.f32 %v5212_v24, %v13287_v25  ;;  %v13288_v35 = vrot.slane %v11209_v39, 1  ;;  %v11388_v21 = vsel %vm1716_vm9, %v11874_v41, %v13289_v63  ;;  %v4153_v53 = vmul.f32 %v13235_v45, %v11359_v22  ;;  %v13295_v25 = vld [vmem:[#allocation80_spill] sm:$0xff]  ;;  %v13306_v41 = vld [vmem:[#allocation107_spill] sm:$0xff] }
 0x3cd   : > { %v4154_v33 = vmul.f32 %v13236_v50, %v11364_v10  ;;  %v11872_v44 = vrot.slane %v11367_v49, 2  ;;  %v11871_v42 = vrot.slane %v11370_v28, 2  ;;  %v11397_v20 = vadd.f32 %v5217_v34, %v11077_v38 }
 0x3ce   : > { %v11380_v16 = vsel %vm1716_vm9, %v11875_v26, %v13288_v35  ;;  %v11400_v31 = vadd.f32 %v5218_v43, %v11080_v12  ;;  %v4159_v51 = vadd.f32 %v4153_v53, %v13291_v23  ;;  %v4327_v45 = vmul.f32 %v13237_v40, %v11359_v22  ;;  %v13296_v35 = vld [vmem:[#allocation106_spill] sm:$0xff] }
 0x3cf   : > { %v4160_v29 = vadd.f32 %v4154_v33, %v13292_v19  ;;  %v4328_v50 = vmul.f32 %v13238_v2, %v11364_v10  ;;  %v13293_v24 = vrot.slane %v11219_v9, 2  ;;  %v13294_v12 = vrot.slane %v11222_v30, 2  ;;  %v13297_v53 = vld [vmem:[#allocation94_spill] sm:$0xff] }
 0x3d0   : > { %13290 = vst [vmem:[#allocation138_spill] sm:$0xff] %v11400_v31  ;;  %v11873_v34 = vrot.slane %v11397_v20, 3  ;;  %v11877_v40 = vrot.slane %v11400_v31, 3  ;;  %v4165_v2 = vadd.f32 %v4159_v51, %v11089_v11  ;;  %v4333_v63 = vadd.f32 %v4327_v45, %v13296_v35  ;;  %v13298_v23 = vld [vmem:[#allocation134_spill] sm:$0xff]  ;;  %v13302_v51 = vld [vmem:[#allocation76_spill] sm:$0xff]  ;;  %v13303_v45 = vld [vmem:[#allocation77_spill] sm:$0xff] }
 0x3d1   : > { %v5055_v38 = vsel %vm1904_vm10, %v11872_v44, %v13293_v24  ;;  %v5056_v27 = vsel %vm1904_vm10, %v11871_v42, %v13294_v12  ;;  %v4166_v43 = vadd.f32 %v4160_v29, %v13295_v25  ;;  %v4334_v33 = vadd.f32 %v4328_v50, %v13297_v53  ;;  %v13300_v12 = vld [vmem:[#allocation135_spill] sm:$0xff]  ;;  %v13304_v53 = vld [vmem:[#allocation30_spill] sm:$0xff] }
 0x3d2   : > { %v13299_v19 = vrot.slane %v13298_v23, 3  ;;  %v13301_v42 = vrot.slane %v13300_v12, 3  ;;  %v4501_v29 = vmul.f32 %v13302_v51, %v11359_v22  ;;  %v4502_v50 = vmul.f32 %v13303_v45, %v11364_v10  ;;  %v13308_v23 = vld [vmem:[#allocation125_spill] sm:$0xff] }
 0x3d3   : > { %v4171_v25 = vrot.slane %v4165_v2, 5  ;;  %v4172_v35 = vrot.slane %v4166_v43, 5  ;;  %v4339_v44 = vadd.f32 %v4333_v63, %v13304_v53  ;;  %v13310_v51 = vrot.slane %v11239_v3, 5 }
 0x3d4   : > { %v11432_v24 = vsel %vm2092_vm11, %v11873_v34, %v13299_v19  ;;  %v11440_v11 = vsel %vm2092_vm11, %v11877_v40, %v13301_v42  ;;  %v13305_v19 = vld [vmem:[#allocation36_spill] sm:$0xff]  ;;  %v4507_v26 = vadd.f32 %v4501_v29, %v13306_v41  ;;  %v4508_v12 = vadd.f32 %v4502_v50, %v13307_v0  ;;  %v13309_v40 = vld [vmem:[#allocation126_spill] sm:$0xff]  ;;  %v13314_v29 = vld [vmem:[#allocation33_spill] sm:$0xff] }
 0x3d5   : > { %v4340_v34 = vadd.f32 %v4334_v33, %v13305_v19  ;;  %v4681_v42 = vmul.f32 %v13308_v23, %v11359_v22  ;;  %v4682_v31 = vmul.f32 %v13309_v40, %v11364_v10  ;;  %v4175_v2 = vsel %vm989_vm6, %v4171_v25, %v13310_v51  ;;  %v13315_v50 = vld [vmem:[#allocation37_spill] sm:$0xff] }
 0x3d6   : > { %v13311_v43 = vrot.slane %v11242_v8, 5  ;;  %v13312_v41 = vrot.slane %v11159_v59, 5  ;;  %v13313_v33 = vrot.slane %v11162_v15, 5  ;;  %v4345_v23 = vrot.slane %v4339_v44, 6  ;;  %v13316_v8 = vld [vmem:[#allocation96_spill] sm:$0xff]  ;;  %v13317_v51 = vld [vmem:[#allocation97_spill] sm:$0xff] }
 0x3d7   : > { %v4346_v3 = vrot.slane %v4340_v34, 6  ;;  %v4513_v45 = vadd.f32 %v4507_v26, %v13314_v29  ;;  %v4514_v53 = vadd.f32 %v4508_v12, %v13315_v50  ;;  %v4687_v19 = vadd.f32 %v4681_v42, %v13316_v8  ;;  %v13322_v42 = vld [vmem:[#allocation31_spill] sm:$0xff] }
 0x3d8   : > { %v4176_v63 = vsel %vm989_vm6, %v4172_v35, %v13311_v43  ;;  %v4177_v0 = vsel %vm989_vm6, %v13312_v41, %v4171_v25  ;;  %v4178_v40 = vsel %vm989_vm6, %v13313_v33, %v4172_v35  ;;  %v4688_v43 = vadd.f32 %v4682_v31, %v13317_v51  ;;  %v13323_v33 = vld [vmem:[#allocation64_spill] sm:$0xff]  ;;  %v13324_v8 = vld [vmem:[#allocation83_spill] sm:$0xff] }
 0x3d9   : > { %v4849_v59 = vmul.f32 %v13247_v47, %v11359_v22  ;;  %v4850_v25 = vmul.f32 %v13248_v37, %v11364_v10  ;;  %v13318_v15 = vrot.slane %v11277_v32, 6  ;;  %v13319_v34 = vrot.slane %v11280_v52, 6  ;;  %v13325_v51 = vld [vmem:[#allocation84_spill] sm:$0xff] }
 0x3da   : > { %v13320_v12 = vrot.slane %v11165_v4, 6  ;;  %v13321_v47 = vrot.slane %v11168_v57, 6  ;;  %v4519_v35 = vrot.slane %v4513_v45, 7  ;;  %v4520_v32 = vrot.slane %v4514_v53, 7 }
 0x3db   : > { %v4349_v44 = vsel %vm1171_vm7, %v4345_v23, %v13318_v15  ;;  %v4350_v26 = vsel %vm1171_vm7, %v4346_v3, %v13319_v34  ;;  %v4693_v41 = vadd.f32 %v4687_v19, %v13322_v42  ;;  %v4694_v29 = vadd.f32 %v4688_v43, %v13323_v33 }
 0x3dc   : > { %v4351_v31 = vsel %vm1171_vm7, %v13320_v12, %v4345_v23  ;;  %v4352_v37 = vsel %vm1171_vm7, %v13321_v47, %v4346_v3  ;;  %v4701_v52 = vadd.f32 %v11289_v5, %v4349_v44  ;;  %v4702_v50 = vadd.f32 %v11292_v14, %v4350_v26  ;;  %v13331_v12 = vld [vmem:[#allocation66_spill] sm:$0xff] }
 0x3dd   : > { %v4855_v4 = vadd.f32 %v4849_v59, %v13324_v8  ;;  %v4856_v15 = vadd.f32 %v4850_v25, %v13325_v51  ;;  %v13326_v23 = vrot.slane %v11283_v1, 7  ;;  %v13327_v3 = vrot.slane %v11286_v17, 7  ;;  %v13330_v17 = vld [vmem:[#allocation65_spill] sm:$0xff]  ;;  %v13339_v8 = vld [vmem:[#allocation140_spill] sm:$0xff] }
 0x3de   : > { %v13328_v53 = vrot.slane %v11171_v36, 7  ;;  %v13329_v14 = vrot.slane %v11174_v13, 7  ;;  %v4699_v44 = vadd.f32 %v4693_v41, %v4351_v31  ;;  %v4700_v34 = vadd.f32 %v4694_v29, %v4352_v37  ;;  %v13332_v31 = vld [vmem:[#allocation85_spill] sm:$0xff] }
 0x3df   : > { %v4523_v57 = vsel %vm1353_vm8, %v4519_v35, %v13326_v23  ;;  %v4524_v45 = vsel %vm1353_vm8, %v4520_v32, %v13327_v3  ;;  %v4861_v26 = vadd.f32 %v4855_v4, %v13330_v17  ;;  %v4862_v47 = vadd.f32 %v4856_v15, %v13331_v12  ;;  %v13340_v4 = vld [vmem:[#allocation115_spill] sm:$0xff]  ;;  %v13341_v15 = vld [vmem:[#allocation54_spill] sm:$0xff] }
 0x3e0   : > { %v4525_v5 = vsel %vm1353_vm8, %v13328_v53, %v4519_v35  ;;  %v4526_v19 = vsel %vm1353_vm8, %v13329_v14, %v4520_v32  ;;  %v4533_v59 = vadd.f32 %v4523_v57, %v4175_v2  ;;  %v4534_v25 = vadd.f32 %v4524_v45, %v4176_v63  ;;  %v13333_v32 = vld [vmem:[#allocation114_spill] sm:$0xff]  ;;  %v13342_v53 = vld [vmem:[#allocation81_spill] sm:$0xff] }
 0x3e1   : > { %v4531_v43 = vadd.f32 %v4525_v5, %v4177_v0  ;;  %v4532_v1 = vadd.f32 %v4526_v19, %v4178_v40  ;;  %v5029_v13 = vmul.f32 %v13249_v58, %v11359_v22  ;;  %v5030_v35 = vmul.f32 %v13250_v48, %v11364_v10  ;;  %v13343_v5 = vld [vmem:[#allocation38_spill] sm:$0xff]  ;;  %v5254_v19 = vld [vmem:[%s7709_s21 + $0x28] sm:$0xff] }
 0x3e2   : > { %v4881_v36 = vadd.f32 %v11380_v16, %v4533_v59  ;;  %v4882_v42 = vadd.f32 %v11388_v21, %v4534_v25  ;;  %v4867_v0 = vrot.slane %v4861_v26, 1  ;;  %v4868_v40 = vrot.slane %v4862_v47, 1  ;;  %v5253_v14 = vld [vmem:[%s7709_s21 + $0x20] sm:$0xff] }
 0x3e3   : > { %v5061_v2 = vadd.f32 %v5055_v38, %v4701_v52  ;;  %v5062_v63 = vadd.f32 %v5056_v27, %v4702_v50  ;;  %v5035_v37 = vadd.f32 %v5029_v13, %v13332_v31  ;;  %v5036_v41 = vadd.f32 %v5030_v35, %v13333_v32  ;;  %v13338_v52 = vld [vmem:[#allocation67_spill] sm:$0xff] }
 0x3e4   : > { %v5209_v33 = vmul.f32 %v13251_v6, %v11359_v22  ;;  %v5210_v16 = vmul.f32 %v13252_v7, %v11364_v10  ;;  %v13334_v21 = vrot.slane %v11343_v62, 1  ;;  %v13335_v48 = vrot.slane %v11346_v56, 1  ;;  %v13353_v32 = vld [vmem:[#allocation135_spill] sm:$0xff] }
 0x3e5   : > { %v13336_v27 = vrot.slane %v11209_v39, 1  ;;  %v13337_v6 = vrot.slane %v11212_v46, 1  ;;  %v5041_v50 = vadd.f32 %v5035_v37, %v13338_v52  ;;  %v5042_v39 = vadd.f32 %v5036_v41, %v13339_v8  ;;  %v5261_v52 = vld [vmem:[%s7734_s11] sm:$0xff] }
 0x3e6   : > { %v4871_v58 = vsel %vm1716_vm9, %v4867_v0, %v13334_v21  ;;  %v4872_v38 = vsel %vm1716_vm9, %v4868_v40, %v13335_v48  ;;  %v5215_v51 = vadd.f32 %v5209_v33, %v13340_v4  ;;  %v5216_v23 = vadd.f32 %v5210_v16, %v13341_v15  ;;  %v5264_v15 = vld [vmem:[%s7734_s11 + $0x18] sm:$0xff] }
 0x3e7   : > { %v4873_v29 = vsel %vm1716_vm9, %v13336_v27, %v4867_v0  ;;  %v4874_v7 = vsel %vm1716_vm9, %v13337_v6, %v4868_v40  ;;  %v4879_v56 = vadd.f32 %v4871_v58, %v4531_v43  ;;  %v4880_v10 = vadd.f32 %v4872_v38, %v4532_v1  ;;  %v5265_v40 = vld [vmem:[%s7734_s11 + $0x20] sm:$0xff]  ;;  %v5250_v38 = vld [vmem:[%s7709_s21 + $0x8] sm:$0xff]  ;;  %v5251_v27 = vld [vmem:[%s7709_s21 + $0x10] sm:$0xff] }
 0x3e8   : > { %v4877_v62 = vadd.f32 %v4873_v29, %v11338_v55  ;;  %v4878_v22 = vadd.f32 %v4874_v7, %v11340_v61  ;;  %v5241_v46 = vadd.f32 %v11432_v24, %v4881_v36  ;;  %v5242_v57 = vadd.f32 %v11440_v11, %v4882_v42  ;;  %v5252_v29 = vld [vmem:[%s7709_s21 + $0x18] sm:$0xff] }
 0x3e9   : > { %v5047_v3 = vrot.slane %v5041_v50, 2  ;;  %v5048_v45 = vrot.slane %v5042_v39, 2  ;;  %v5221_v55 = vadd.f32 %v5215_v51, %v13342_v53  ;;  %v5222_v61 = vadd.f32 %v5216_v23, %v13343_v5  ;;  %v5263_v51 = vld [vmem:[%s7734_s11 + $0x10] sm:$0xff] }
 0x3ea   : > { %v5247_v43 = vadd.f32 %v5241_v46, %v5061_v2  ;;  %v5248_v1 = vadd.f32 %v5242_v57, %v5062_v63  ;;  %v13344_v59 = vrot.slane %v11367_v49, 2  ;;  %v13345_v24 = vrot.slane %v11370_v28, 2 }
 0x3eb   : > { %v13346_v17 = vrot.slane %v11219_v9, 2  ;;  %v13347_v12 = vrot.slane %v11222_v30, 2  ;;  %v5227_v13 = vrot.slane %v5221_v55, 3  ;;  %v5228_v35 = vrot.slane %v5222_v61, 3  ;;  %v5266_v30 = vld [vmem:[%s7734_s11 + $0x28] sm:$0xff] }
 0x3ec   : > { %v5051_v25 = vsel %vm1904_vm10, %v5047_v3, %v13344_v59  ;;  %v5052_v11 = vsel %vm1904_vm10, %v5048_v45, %v13345_v24  ;;  %v5259_v9 = vmul.f32 %v5253_v14, %v5247_v43  ;;  %v5260_v0 = vmul.f32 %v5254_v19, %v5248_v1 }
 0x3ed   : > { %v5053_v26 = vsel %vm1904_vm10, %v13346_v17, %v5047_v3  ;;  %v5054_v47 = vsel %vm1904_vm10, %v13347_v12, %v5048_v45  ;;  %v5059_v42 = vadd.f32 %v5051_v25, %v4699_v44  ;;  %v5060_v28 = vadd.f32 %v5052_v11, %v4700_v34  ;;  %v13351_v44 = vld [vmem:[#allocation134_spill] sm:$0xff] }
 0x3ee   : > { %v5057_v49 = vadd.f32 %v5053_v26, %v11333_v54  ;;  %v5058_v36 = vadd.f32 %v5054_v47, %v11336_v18  ;;  %v13348_v2 = vrot.slane %v11397_v20, 3  ;;  %v13349_v54 = vld [vmem:[#allocation138_spill] sm:$0xff]  ;;  %v13352_v34 = vrot.slane %v13351_v44, 3 }
 0x3ef   : > { %v13350_v31 = vrot.slane %v13349_v54, 3  ;;  %v13354_v41 = vrot.slane %v13353_v32, 3  ;;  %v5249_v20 = vld [vmem:[%s7709_s21] sm:$0xff]  ;;  %v5271_v6 = vadd.f32 %v5265_v40, %v5259_v9  ;;  %v5272_v7 = vadd.f32 %v5266_v30, %v5260_v0 }
 0x3f0   : > { %v5231_v63 = vsel %vm2092_vm11, %v5227_v13, %v13348_v2  ;;  %v5233_v37 = vsel %vm2092_vm11, %v13352_v34, %v5227_v13 }
 0x3f1   : > { %v5232_v18 = vsel %vm2092_vm11, %v5228_v35, %v13350_v31  ;;  %v5234_v33 = vsel %vm2092_vm11, %v13354_v41, %v5228_v35  ;;  %v5237_v16 = vadd.f32 %v5233_v37, %v4877_v62  ;;  %v5239_v58 = vadd.f32 %v5231_v63, %v4879_v56 }
 0x3f2   : > { %v5238_v21 = vadd.f32 %v5234_v33, %v4878_v22  ;;  %v5240_v48 = vadd.f32 %v5232_v18, %v4880_v10  ;;  %v5277_v23 = vadd.f32 2.0, %v5271_v6  ;;  %v5278_v62 = vadd.f32 2.0, %v5272_v7 }
 0x3f3   : > { %v5243_v50 = vadd.f32 %v5237_v16, %v5057_v49  ;;  %v5245_v39 = vadd.f32 %v5239_v58, %v5059_v42 }
 0x3f4   : > { %v5244_v8 = vadd.f32 %v5238_v21, %v5058_v36  ;;  %v5246_v4 = vadd.f32 %v5240_v48, %v5060_v28  ;;  %v5283_v57 = vmax.f32 %v5277_v23, 0.0  ;;  %v5284_v3 = vmax.f32 %v5278_v62, 0.0 }
 0x3f5   : > { %v5255_v46 = vmul.f32 %v5249_v20, %v5243_v50  ;;  %v5257_v56 = vmul.f32 %v5251_v27, %v5245_v39 }
 0x3f6   : > { %v5256_v22 = vmul.f32 %v5250_v38, %v5244_v8  ;;  %v5258_v10 = vmul.f32 %v5252_v29, %v5246_v4  ;;  %5289 = vst [vmem:[%s557_s14 + $0x20] sm:$0xff] %v5283_v57  ;;  %5290 = vst [vmem:[%s557_s14 + $0x28] sm:$0xff] %v5284_v3 }
 0x3f7   : > { %v5267_v45 = vadd.f32 %v5261_v52, %v5255_v46  ;;  %v5269_v55 = vadd.f32 %v5263_v51, %v5257_v56 }
 0x3f8   : > { %v5268_v53 = vadd.f32 %v5262_v60, %v5256_v22  ;;  %v5270_v5 = vadd.f32 %v5264_v15, %v5258_v10 }
 0x3f9   : > { %v5273_v61 = vadd.f32 2.0, %v5267_v45  ;;  %v5275_v19 = vadd.f32 2.0, %v5269_v55 }
 0x3fa   : > { %v5274_v14 = vadd.f32 2.0, %v5268_v53  ;;  %v5276_v43 = vadd.f32 2.0, %v5270_v5  ;;  %5297 = sbr.rel (!%p5783_p5) target bundleno = 1031 (0x407), region = 186 }
 0x3fb   : > { %v5279_v1 = vmax.f32 %v5273_v61, 0.0  ;;  %v5281_v25 = vmax.f32 %v5275_v19, 0.0 }
 0x3fc   : > { %v5280_v59 = vmax.f32 %v5274_v14, 0.0  ;;  %v5282_v24 = vmax.f32 %v5276_v43, 0.0 }
 0x3fd   : > { %5285 = vst [vmem:[%s557_s14] sm:$0xff] %v5279_v1  ;;  %5287 = vst [vmem:[%s557_s14 + $0x10] sm:$0xff] %v5281_v25  ;;  %v5321_v47 = vld [vmem:[%s557_s14 + $0x20] sm:$0xff] (%p5783_p5)  ;;  %v5323_v49 = vld [vmem:[%s557_s14 + $0x28] sm:$0xff] (%p5783_p5) }
 0x3fe   : > { %5286 = vst [vmem:[%s557_s14 + $0x8] sm:$0xff] %v5280_v59  ;;  %5288 = vst [vmem:[%s557_s14 + $0x18] sm:$0xff] %v5282_v24 }
 0x3ff   : > { %5322 = vst [vmem:[%s5300_s17 + $0x40] sm:$0xff] %v5321_v47  ;;  %5324 = vst [vmem:[%s5300_s17 + $0x48] sm:$0xff] %v5323_v49 }
 0x404   : > { %v5313_v11 = vld [vmem:[%s557_s14] sm:$0xff]  ;;  %v5317_v26 = vld [vmem:[%s557_s14 + $0x10] sm:$0xff] }
 0x405   : > { %v5315_v17 = vld [vmem:[%s557_s14 + $0x8] sm:$0xff]  ;;  %v5319_v12 = vld [vmem:[%s557_s14 + $0x18] sm:$0xff]  ;;  %5314 = vst [vmem:[%s5300_s17] sm:$0xff] %v5313_v11  ;;  %5318 = vst [vmem:[%s5300_s17 + $0x20] sm:$0xff] %v5317_v26 }
 0x406   : > { %5316 = vst [vmem:[%s5300_s17 + $0x8] sm:$0xff] %v5315_v17  ;;  %5320 = vst [vmem:[%s5300_s17 + $0x28] sm:$0xff] %v5319_v12 }
 0x407 PF: > { %p13_p10 = scmp.ge.s32.totalorder %s5766_s25, 4   ;;  %s13355_s21 = smov %s5702_s22 }
 0x408   : > { %s13356_s22 = smov %s5777_s28  ;;  %s13357_s23 = smov %s5766_s25 }
 0x409   :  { %15 = sbr.rel (!%p13_p10) target bundleno = 2 (0x2), region = 382 }

</bundles_post_ra>
